<compile_context>
chip_gen: v6e
topology: v6e:2x2x1
jax: 0.10.0
libtpu: 0.0.40
codegen_flags: <defaults>
</compile_context>

<pallas_src>
import jax
import jax.numpy as jnp
from jax import lax
from jax.experimental import pallas as pl
from jax.experimental.pallas import tpu as pltpu

F32 = jnp.float32
BF16 = jnp.bfloat16
BN_EPS = 1e-5


# ------------------------------ Pallas kernel ------------------------------ #

def _basic_block_kernel(x_ref, w1_ref, b1_ref, w2_ref, b2_ref, o_ref,
                        xpad_ref, acc_ref):
    """Fused BasicBlock forward for one batch element (NHWC, C on lanes).

    x_ref   : (1, H, W, C)      f32   input activation (also the residual)
    w1_ref  : (9, C, C)         bf16  conv1 weights, BN1 scale folded in
    b1_ref  : (1, C)            f32   BN1 shift
    w2_ref  : (9, C, C)         bf16  conv2 weights, BN2 scale folded in
    b2_ref  : (1, C)            f32   BN2 shift
    o_ref   : (1, H, W, C)      f32   output
    xpad_ref: (1, H+2, W+2, C)  bf16  VMEM scratch (zero-padded activations)
    acc_ref : (H*W, C)          f32   VMEM scratch (matmul accumulator)
    """
    _, H, W, C = x_ref.shape
    HW = H * W

    def conv3x3(w_ref):
        # 3x3 conv (stride 1, pad 1) == 9 shifted matmuls on the padded tile.
        acc_ref[...] = jnp.zeros_like(acc_ref)
        for kh in range(3):
            for kw in range(3):
                a = xpad_ref[:, kh:kh + H, kw:kw + W, :].reshape(HW, C)
                acc_ref[...] += jnp.dot(
                    a, w_ref[kh * 3 + kw],
                    preferred_element_type=jnp.float32)
        return acc_ref[...]

    # Zero the padded buffer once; both stages only overwrite its interior, so
    # the 1-pixel zero border stays valid for both convs.
    xpad_ref[...] = jnp.zeros_like(xpad_ref)

    # Stage 1: conv1 -> BN1 (scale folded into weights, shift added) -> ReLU.
    xpad_ref[:, 1:H + 1, 1:W + 1, :] = x_ref[...].astype(xpad_ref.dtype)
    h1 = jnp.maximum(conv3x3(w1_ref) + b1_ref[...], 0.0)

    # Stage 2: conv2 -> BN2 -> residual add -> ReLU.
    xpad_ref[:, 1:H + 1, 1:W + 1, :] = (
        h1.astype(xpad_ref.dtype).reshape(1, H, W, C))
    h2 = conv3x3(w2_ref) + b2_ref[...] + x_ref[...].reshape(HW, C)
    o_ref[...] = jnp.maximum(h2, 0.0).reshape(1, H, W, C).astype(o_ref.dtype)


def basic_block_pallas(x_nhwc, w1f, b1, w2f, b2):
    N, H, W, C = x_nhwc.shape
    grid_spec = pltpu.PrefetchScalarGridSpec(
        num_scalar_prefetch=0,
        grid=(N,),
        in_specs=[
            pl.BlockSpec((1, H, W, C), lambda n: (n, 0, 0, 0)),   # x
            pl.BlockSpec((9, C, C), lambda n: (0, 0, 0)),         # w1 (folded)
            pl.BlockSpec((1, C), lambda n: (0, 0)),               # bn1 shift
            pl.BlockSpec((9, C, C), lambda n: (0, 0, 0)),         # w2 (folded)
            pl.BlockSpec((1, C), lambda n: (0, 0)),               # bn2 shift
        ],
        out_specs=pl.BlockSpec((1, H, W, C), lambda n: (n, 0, 0, 0)),
        scratch_shapes=[
            pltpu.VMEM((1, H + 2, W + 2, C), BF16),   # padded activation tile
            pltpu.VMEM((H * W, C), F32),              # f32 matmul accumulator
        ],
    )
    return pl.pallas_call(
        _basic_block_kernel,
        out_shape=jax.ShapeDtypeStruct((N, H, W, C), F32),
        grid_spec=grid_spec,
        compiler_params=pltpu.CompilerParams(
            dimension_semantics=("parallel",)),
    )(x_nhwc, w1f, b1, w2f, b2)


# ------------------------------- JAX glue ---------------------------------- #

def _fold_bn_into_conv(w_hwio, bn):
    """Fold inference-mode BN scale into conv weights (exact: BN is pre-ReLU).

    Returns (bf16 weights shaped (9, Cin, Cout), f32 shift shaped (1, Cout)).
    """
    gamma, beta, mean, var = bn
    scale = gamma * lax.rsqrt(var + BN_EPS)          # (Cout,)
    shift = beta - mean * scale                      # (Cout,)
    kh, kw, cin, cout = w_hwio.shape
    wf = (w_hwio * scale).reshape(kh * kw, cin, cout).astype(BF16)
    return wf, shift.reshape(1, cout).astype(F32)


@jax.jit
def basic_block_forward(x_nchw, params):
    """NCHW in, NCHW out — matches BasicBlock.forward (stride=1, no downsample)."""
    # TODO(synk): stride>1 / downsample branch not implemented (module defaults
    # are stride=1, downsample=None, which is what this kernel covers).
    w1f, b1 = _fold_bn_into_conv(params["w1"], params["bn1"])
    w2f, b2 = _fold_bn_into_conv(params["w2"], params["bn2"])
    x_nhwc = jnp.transpose(x_nchw, (0, 2, 3, 1))     # NCHW -> NHWC (C on lanes)
    out_nhwc = basic_block_pallas(x_nhwc, w1f, b1, w2f, b2)
    return jnp.transpose(out_nhwc, (0, 3, 1, 2))     # back to NCHW


def init_params(key, c):
    ks = jax.random.split(key, 4)

    def bn_params(k):
        k1, k2, k3, k4 = jax.random.split(k, 4)
        gamma = 1.0 + 0.05 * jax.random.normal(k1, (c,), F32)
        beta = 0.1 * jax.random.normal(k2, (c,), F32)
        running_mean = 0.1 * jax.random.normal(k3, (c,), F32)
        running_var = jax.random.uniform(k4, (c,), F32, 0.8, 1.25)
        return gamma, beta, running_mean, running_var

    return {
        "w1": 0.05 * jax.random.normal(ks[0], (3, 3, c, c), F32),  # HWIO
        "w2": 0.05 * jax.random.normal(ks[1], (3, 3, c, c), F32),  # HWIO
        "bn1": bn_params(ks[2]),
        "bn2": bn_params(ks[3]),
    }


@jax.jit
def reference_forward(x_nchw, params):
    """Pure-JAX f32 reference with the exact PyTorch BasicBlock semantics."""
    x = jnp.transpose(x_nchw, (0, 2, 3, 1))

    def conv(h, w):
        return lax.conv_general_dilated(
            h, w, window_strides=(1, 1), padding=((1, 1), (1, 1)),
            dimension_numbers=("NHWC", "HWIO", "NHWC"),
            precision=lax.Precision.HIGHEST)

    def bn(h, p):
        gamma, beta, mean, var = p
        return (h - mean) * (gamma * lax.rsqrt(var + BN_EPS)) + beta

    h = jnp.maximum(bn(conv(x, params["w1"]), params["bn1"]), 0.0)
    h = bn(conv(h, params["w2"]), params["bn2"]) + x
    return jnp.transpose(jnp.maximum(h, 0.0), (0, 3, 1, 2))


# --------------------------------- main ------------------------------------ #

if __name__ == "__main__":
    N, C, H, W = 2, 128, 16, 16            # inplanes == planes, stride = 1
    kx, kp = jax.random.split(jax.random.PRNGKey(0))
    x = jax.random.normal(kx, (N, C, H, W), F32)
    params = init_params(kp, C)

    out = basic_block_forward(x, params)
    jax.block_until_ready(out)
    assert out.shape == (N, C, H, W), out.shape
    assert out.dtype == F32, out.dtype

    # Correctness check vs. f32 reference (bf16 MXU inputs, f32 accumulation).
    ref = reference_forward(x, params)
    max_err = float(jnp.max(jnp.abs(out - ref)))
    max_ref = float(jnp.max(jnp.abs(ref)))
    assert max_err <= 0.05 * (max_ref + 1.0), (max_err, max_ref)

    print("KERNEL_OK")
</pallas_src>

<mosaic_0001>
module attributes {stable_mosaic.version = 11 : i64} {
  func.func @_basic_block_kernel(%arg0: i32, %arg1: memref<1x16x16x128xf32, #tpu.memory_space<vmem>>, %arg2: memref<9x128x128xbf16, #tpu.memory_space<vmem>>, %arg3: memref<1x128xf32, #tpu.memory_space<vmem>>, %arg4: memref<9x128x128xbf16, #tpu.memory_space<vmem>>, %arg5: memref<1x128xf32, #tpu.memory_space<vmem>>, %arg6: memref<1x16x16x128xf32, #tpu.memory_space<vmem>>, %arg7: memref<1x18x18x128xbf16, #tpu.memory_space<vmem>>, %arg8: memref<256x128xf32, #tpu.memory_space<vmem>>) attributes {dimension_semantics = [#tpu.dimension_semantics<parallel>], iteration_bounds = array<i64: 2>, scalar_prefetch = 0 : i64, scratch_operands = 2 : i64, tpu.core_type = #tpu.core_type<tc>, window_params = [{transform_indices = @transform_0, window_bounds = array<i64: 1, 16, 16, 128>}, {pipeline_mode = #tpu.pipeline_mode<synchronous>, transform_indices = @transform_1, window_bounds = array<i64: 9, 128, 128>}, {pipeline_mode = #tpu.pipeline_mode<synchronous>, transform_indices = @transform_2, window_bounds = array<i64: 1, 128>}, {pipeline_mode = #tpu.pipeline_mode<synchronous>, transform_indices = @transform_3, window_bounds = array<i64: 9, 128, 128>}, {pipeline_mode = #tpu.pipeline_mode<synchronous>, transform_indices = @transform_4, window_bounds = array<i64: 1, 128>}, {transform_indices = @transform_5, window_bounds = array<i64: 1, 16, 16, 128>}]} {
    %cst = arith.constant 0.000000e+00 : bf16
    %0 = vector.broadcast %cst : bf16 to vector<1x18x18x128xbf16>
    %c0 = arith.constant 0 : index
    %c0_0 = arith.constant 0 : index
    %c0_1 = arith.constant 0 : index
    %c0_2 = arith.constant 0 : index
    %1 = vector.load %arg7[%c0, %c0_0, %c0_1, %c0_2] : memref<1x18x18x128xbf16, #tpu.memory_space<vmem>>, vector<1x18x18x128xbf16>
    tpu.vector_store %arg7[%c0, %c0_0, %c0_1, %c0_2], %0 {strides = array<i32>} : memref<1x18x18x128xbf16, #tpu.memory_space<vmem>>, vector<1x18x18x128xbf16>,
    %c0_3 = arith.constant 0 : index
    %c0_4 = arith.constant 0 : index
    %c0_5 = arith.constant 0 : index
    %c0_6 = arith.constant 0 : index
    %2 = vector.load %arg1[%c0_3, %c0_4, %c0_5, %c0_6] : memref<1x16x16x128xf32, #tpu.memory_space<vmem>>, vector<1x16x16x128xf32>
    %3 = arith.truncf %2 : vector<1x16x16x128xf32> to vector<1x16x16x128xbf16>
    %c0_7 = arith.constant 0 : index
    %c1 = arith.constant 1 : index
    %c1_8 = arith.constant 1 : index
    %c0_9 = arith.constant 0 : index
    %4 = vector.load %arg7[%c0_7, %c1, %c1_8, %c0_9] : memref<1x18x18x128xbf16, #tpu.memory_space<vmem>>, vector<1x16x16x128xbf16>
    tpu.vector_store %arg7[%c0_7, %c1, %c1_8, %c0_9], %3 {strides = array<i32>} : memref<1x18x18x128xbf16, #tpu.memory_space<vmem>>, vector<1x16x16x128xbf16>,
    %cst_10 = arith.constant 0.000000e+00 : f32
    %5 = vector.broadcast %cst_10 : f32 to vector<256x128xf32>
    %c0_11 = arith.constant 0 : index
    %c0_12 = arith.constant 0 : index
    %6 = vector.load %arg8[%c0_11, %c0_12] : memref<256x128xf32, #tpu.memory_space<vmem>>, vector<256x128xf32>
    tpu.vector_store %arg8[%c0_11, %c0_12], %5 {strides = array<i32>} : memref<256x128xf32, #tpu.memory_space<vmem>>, vector<256x128xf32>,
    %c0_13 = arith.constant 0 : index
    %c0_14 = arith.constant 0 : index
    %c0_15 = arith.constant 0 : index
    %c0_16 = arith.constant 0 : index
    %7 = vector.load %arg7[%c0_13, %c0_14, %c0_15, %c0_16] : memref<1x18x18x128xbf16, #tpu.memory_space<vmem>>, vector<1x16x16x128xbf16>
    %8 = vector.shape_cast %7 : vector<1x16x16x128xbf16> to vector<256x128xbf16>
    %c0_17 = arith.constant 0 : index
    %c0_18 = arith.constant 0 : index
    %9 = vector.load %arg8[%c0_17, %c0_18] : memref<256x128xf32, #tpu.memory_space<vmem>>, vector<256x128xf32>
    %c0_19 = arith.constant 0 : index
    %c0_20 = arith.constant 0 : index
    %c0_21 = arith.constant 0 : index
    %10 = vector.load %arg2[%c0_19, %c0_20, %c0_21] : memref<9x128x128xbf16, #tpu.memory_space<vmem>>, vector<1x128x128xbf16>
    %11 = vector.shape_cast %10 : vector<1x128x128xbf16> to vector<128x128xbf16>
    %cst_22 = arith.constant dense<0.000000e+00> : vector<256x128xf32>
    %12 = tpu.matmul %8, %11, %cst_22 {dimension_numbers = #tpu.dot_dimension_numbers<[1], [0], [0], [1], [0, 0, 1, 1], [], []>} : vector<256x128xbf16>, vector<128x128xbf16>, vector<256x128xf32> -> vector<256x128xf32>
    %13 = arith.addf %9, %12 : vector<256x128xf32>
    %c0_23 = arith.constant 0 : index
    %c0_24 = arith.constant 0 : index
    %14 = vector.load %arg8[%c0_23, %c0_24] : memref<256x128xf32, #tpu.memory_space<vmem>>, vector<256x128xf32>
    tpu.vector_store %arg8[%c0_23, %c0_24], %13 {strides = array<i32>} : memref<256x128xf32, #tpu.memory_space<vmem>>, vector<256x128xf32>,
    %c0_25 = arith.constant 0 : index
    %c0_26 = arith.constant 0 : index
    %c1_27 = arith.constant 1 : index
    %c0_28 = arith.constant 0 : index
    %15 = vector.load %arg7[%c0_25, %c0_26, %c1_27, %c0_28] : memref<1x18x18x128xbf16, #tpu.memory_space<vmem>>, vector<1x16x16x128xbf16>
    %16 = vector.shape_cast %15 : vector<1x16x16x128xbf16> to vector<256x128xbf16>
    %c0_29 = arith.constant 0 : index
    %c0_30 = arith.constant 0 : index
    %17 = vector.load %arg8[%c0_29, %c0_30] : memref<256x128xf32, #tpu.memory_space<vmem>>, vector<256x128xf32>
    %c1_31 = arith.constant 1 : index
    %c0_32 = arith.constant 0 : index
    %c0_33 = arith.constant 0 : index
    %18 = vector.load %arg2[%c1_31, %c0_32, %c0_33] : memref<9x128x128xbf16, #tpu.memory_space<vmem>>, vector<1x128x128xbf16>
    %19 = vector.shape_cast %18 : vector<1x128x128xbf16> to vector<128x128xbf16>
    %cst_34 = arith.constant dense<0.000000e+00> : vector<256x128xf32>
    %20 = tpu.matmul %16, %19, %cst_34 {dimension_numbers = #tpu.dot_dimension_numbers<[1], [0], [0], [1], [0, 0, 1, 1], [], []>} : vector<256x128xbf16>, vector<128x128xbf16>, vector<256x128xf32> -> vector<256x128xf32>
    %21 = arith.addf %17, %20 : vector<256x128xf32>
    %c0_35 = arith.constant 0 : index
    %c0_36 = arith.constant 0 : index
    %22 = vector.load %arg8[%c0_35, %c0_36] : memref<256x128xf32, #tpu.memory_space<vmem>>, vector<256x128xf32>
    tpu.vector_store %arg8[%c0_35, %c0_36], %21 {strides = array<i32>} : memref<256x128xf32, #tpu.memory_space<vmem>>, vector<256x128xf32>,
    %c0_37 = arith.constant 0 : index
    %c0_38 = arith.constant 0 : index
    %c2 = arith.constant 2 : index
    %c0_39 = arith.constant 0 : index
    %23 = vector.load %arg7[%c0_37, %c0_38, %c2, %c0_39] : memref<1x18x18x128xbf16, #tpu.memory_space<vmem>>, vector<1x16x16x128xbf16>
    %24 = vector.shape_cast %23 : vector<1x16x16x128xbf16> to vector<256x128xbf16>
    %c0_40 = arith.constant 0 : index
    %c0_41 = arith.constant 0 : index
    %25 = vector.load %arg8[%c0_40, %c0_41] : memref<256x128xf32, #tpu.memory_space<vmem>>, vector<256x128xf32>
    %c2_42 = arith.constant 2 : index
    %c0_43 = arith.constant 0 : index
    %c0_44 = arith.constant 0 : index
    %26 = vector.load %arg2[%c2_42, %c0_43, %c0_44] : memref<9x128x128xbf16, #tpu.memory_space<vmem>>, vector<1x128x128xbf16>
    %27 = vector.shape_cast %26 : vector<1x128x128xbf16> to vector<128x128xbf16>
    %cst_45 = arith.constant dense<0.000000e+00> : vector<256x128xf32>
    %28 = tpu.matmul %24, %27, %cst_45 {dimension_numbers = #tpu.dot_dimension_numbers<[1], [0], [0], [1], [0, 0, 1, 1], [], []>} : vector<256x128xbf16>, vector<128x128xbf16>, vector<256x128xf32> -> vector<256x128xf32>
    %29 = arith.addf %25, %28 : vector<256x128xf32>
    %c0_46 = arith.constant 0 : index
    %c0_47 = arith.constant 0 : index
    %30 = vector.load %arg8[%c0_46, %c0_47] : memref<256x128xf32, #tpu.memory_space<vmem>>, vector<256x128xf32>
    tpu.vector_store %arg8[%c0_46, %c0_47], %29 {strides = array<i32>} : memref<256x128xf32, #tpu.memory_space<vmem>>, vector<256x128xf32>,
    %c0_48 = arith.constant 0 : index
    %c1_49 = arith.constant 1 : index
    %c0_50 = arith.constant 0 : index
    %c0_51 = arith.constant 0 : index
    %31 = vector.load %arg7[%c0_48, %c1_49, %c0_50, %c0_51] : memref<1x18x18x128xbf16, #tpu.memory_space<vmem>>, vector<1x16x16x128xbf16>
    %32 = vector.shape_cast %31 : vector<1x16x16x128xbf16> to vector<256x128xbf16>
    %c0_52 = arith.constant 0 : index
    %c0_53 = arith.constant 0 : index
    %33 = vector.load %arg8[%c0_52, %c0_53] : memref<256x128xf32, #tpu.memory_space<vmem>>, vector<256x128xf32>
    %c3 = arith.constant 3 : index
    %c0_54 = arith.constant 0 : index
    %c0_55 = arith.constant 0 : index
    %34 = vector.load %arg2[%c3, %c0_54, %c0_55] : memref<9x128x128xbf16, #tpu.memory_space<vmem>>, vector<1x128x128xbf16>
    %35 = vector.shape_cast %34 : vector<1x128x128xbf16> to vector<128x128xbf16>
    %cst_56 = arith.constant dense<0.000000e+00> : vector<256x128xf32>
    %36 = tpu.matmul %32, %35, %cst_56 {dimension_numbers = #tpu.dot_dimension_numbers<[1], [0], [0], [1], [0, 0, 1, 1], [], []>} : vector<256x128xbf16>, vector<128x128xbf16>, vector<256x128xf32> -> vector<256x128xf32>
    %37 = arith.addf %33, %36 : vector<256x128xf32>
    %c0_57 = arith.constant 0 : index
    %c0_58 = arith.constant 0 : index
    %38 = vector.load %arg8[%c0_57, %c0_58] : memref<256x128xf32, #tpu.memory_space<vmem>>, vector<256x128xf32>
    tpu.vector_store %arg8[%c0_57, %c0_58], %37 {strides = array<i32>} : memref<256x128xf32, #tpu.memory_space<vmem>>, vector<256x128xf32>,
    %c0_59 = arith.constant 0 : index
    %c1_60 = arith.constant 1 : index
    %c1_61 = arith.constant 1 : index
    %c0_62 = arith.constant 0 : index
    %39 = vector.load %arg7[%c0_59, %c1_60, %c1_61, %c0_62] : memref<1x18x18x128xbf16, #tpu.memory_space<vmem>>, vector<1x16x16x128xbf16>
    %40 = vector.shape_cast %39 : vector<1x16x16x128xbf16> to vector<256x128xbf16>
    %c0_63 = arith.constant 0 : index
    %c0_64 = arith.constant 0 : index
    %41 = vector.load %arg8[%c0_63, %c0_64] : memref<256x128xf32, #tpu.memory_space<vmem>>, vector<256x128xf32>
    %c4 = arith.constant 4 : index
    %c0_65 = arith.constant 0 : index
    %c0_66 = arith.constant 0 : index
    %42 = vector.load %arg2[%c4, %c0_65, %c0_66] : memref<9x128x128xbf16, #tpu.memory_space<vmem>>, vector<1x128x128xbf16>
    %43 = vector.shape_cast %42 : vector<1x128x128xbf16> to vector<128x128xbf16>
    %cst_67 = arith.constant dense<0.000000e+00> : vector<256x128xf32>
    %44 = tpu.matmul %40, %43, %cst_67 {dimension_numbers = #tpu.dot_dimension_numbers<[1], [0], [0], [1], [0, 0, 1, 1], [], []>} : vector<256x128xbf16>, vector<128x128xbf16>, vector<256x128xf32> -> vector<256x128xf32>
    %45 = arith.addf %41, %44 : vector<256x128xf32>
    %c0_68 = arith.constant 0 : index
    %c0_69 = arith.constant 0 : index
    %46 = vector.load %arg8[%c0_68, %c0_69] : memref<256x128xf32, #tpu.memory_space<vmem>>, vector<256x128xf32>
    tpu.vector_store %arg8[%c0_68, %c0_69], %45 {strides = array<i32>} : memref<256x128xf32, #tpu.memory_space<vmem>>, vector<256x128xf32>,
    %c0_70 = arith.constant 0 : index
    %c1_71 = arith.constant 1 : index
    %c2_72 = arith.constant 2 : index
    %c0_73 = arith.constant 0 : index
    %47 = vector.load %arg7[%c0_70, %c1_71, %c2_72, %c0_73] : memref<1x18x18x128xbf16, #tpu.memory_space<vmem>>, vector<1x16x16x128xbf16>
    %48 = vector.shape_cast %47 : vector<1x16x16x128xbf16> to vector<256x128xbf16>
    %c0_74 = arith.constant 0 : index
    %c0_75 = arith.constant 0 : index
    %49 = vector.load %arg8[%c0_74, %c0_75] : memref<256x128xf32, #tpu.memory_space<vmem>>, vector<256x128xf32>
    %c5 = arith.constant 5 : index
    %c0_76 = arith.constant 0 : index
    %c0_77 = arith.constant 0 : index
    %50 = vector.load %arg2[%c5, %c0_76, %c0_77] : memref<9x128x128xbf16, #tpu.memory_space<vmem>>, vector<1x128x128xbf16>
    %51 = vector.shape_cast %50 : vector<1x128x128xbf16> to vector<128x128xbf16>
    %cst_78 = arith.constant dense<0.000000e+00> : vector<256x128xf32>
    %52 = tpu.matmul %48, %51, %cst_78 {dimension_numbers = #tpu.dot_dimension_numbers<[1], [0], [0], [1], [0, 0, 1, 1], [], []>} : vector<256x128xbf16>, vector<128x128xbf16>, vector<256x128xf32> -> vector<256x128xf32>
    %53 = arith.addf %49, %52 : vector<256x128xf32>
    %c0_79 = arith.constant 0 : index
    %c0_80 = arith.constant 0 : index
    %54 = vector.load %arg8[%c0_79, %c0_80] : memref<256x128xf32, #tpu.memory_space<vmem>>, vector<256x128xf32>
    tpu.vector_store %arg8[%c0_79, %c0_80], %53 {strides = array<i32>} : memref<256x128xf32, #tpu.memory_space<vmem>>, vector<256x128xf32>,
    %c0_81 = arith.constant 0 : index
    %c2_82 = arith.constant 2 : index
    %c0_83 = arith.constant 0 : index
    %c0_84 = arith.constant 0 : index
    %55 = vector.load %arg7[%c0_81, %c2_82, %c0_83, %c0_84] : memref<1x18x18x128xbf16, #tpu.memory_space<vmem>>, vector<1x16x16x128xbf16>
    %56 = vector.shape_cast %55 : vector<1x16x16x128xbf16> to vector<256x128xbf16>
    %c0_85 = arith.constant 0 : index
    %c0_86 = arith.constant 0 : index
    %57 = vector.load %arg8[%c0_85, %c0_86] : memref<256x128xf32, #tpu.memory_space<vmem>>, vector<256x128xf32>
    %c6 = arith.constant 6 : index
    %c0_87 = arith.constant 0 : index
    %c0_88 = arith.constant 0 : index
    %58 = vector.load %arg2[%c6, %c0_87, %c0_88] : memref<9x128x128xbf16, #tpu.memory_space<vmem>>, vector<1x128x128xbf16>
    %59 = vector.shape_cast %58 : vector<1x128x128xbf16> to vector<128x128xbf16>
    %cst_89 = arith.constant dense<0.000000e+00> : vector<256x128xf32>
    %60 = tpu.matmul %56, %59, %cst_89 {dimension_numbers = #tpu.dot_dimension_numbers<[1], [0], [0], [1], [0, 0, 1, 1], [], []>} : vector<256x128xbf16>, vector<128x128xbf16>, vector<256x128xf32> -> vector<256x128xf32>
    %61 = arith.addf %57, %60 : vector<256x128xf32>
    %c0_90 = arith.constant 0 : index
    %c0_91 = arith.constant 0 : index
    %62 = vector.load %arg8[%c0_90, %c0_91] : memref<256x128xf32, #tpu.memory_space<vmem>>, vector<256x128xf32>
    tpu.vector_store %arg8[%c0_90, %c0_91], %61 {strides = array<i32>} : memref<256x128xf32, #tpu.memory_space<vmem>>, vector<256x128xf32>,
    %c0_92 = arith.constant 0 : index
    %c2_93 = arith.constant 2 : index
    %c1_94 = arith.constant 1 : index
    %c0_95 = arith.constant 0 : index
    %63 = vector.load %arg7[%c0_92, %c2_93, %c1_94, %c0_95] : memref<1x18x18x128xbf16, #tpu.memory_space<vmem>>, vector<1x16x16x128xbf16>
    %64 = vector.shape_cast %63 : vector<1x16x16x128xbf16> to vector<256x128xbf16>
    %c0_96 = arith.constant 0 : index
    %c0_97 = arith.constant 0 : index
    %65 = vector.load %arg8[%c0_96, %c0_97] : memref<256x128xf32, #tpu.memory_space<vmem>>, vector<256x128xf32>
    %c7 = arith.constant 7 : index
    %c0_98 = arith.constant 0 : index
    %c0_99 = arith.constant 0 : index
    %66 = vector.load %arg2[%c7, %c0_98, %c0_99] : memref<9x128x128xbf16, #tpu.memory_space<vmem>>, vector<1x128x128xbf16>
    %67 = vector.shape_cast %66 : vector<1x128x128xbf16> to vector<128x128xbf16>
    %cst_100 = arith.constant dense<0.000000e+00> : vector<256x128xf32>
    %68 = tpu.matmul %64, %67, %cst_100 {dimension_numbers = #tpu.dot_dimension_numbers<[1], [0], [0], [1], [0, 0, 1, 1], [], []>} : vector<256x128xbf16>, vector<128x128xbf16>, vector<256x128xf32> -> vector<256x128xf32>
    %69 = arith.addf %65, %68 : vector<256x128xf32>
    %c0_101 = arith.constant 0 : index
    %c0_102 = arith.constant 0 : index
    %70 = vector.load %arg8[%c0_101, %c0_102] : memref<256x128xf32, #tpu.memory_space<vmem>>, vector<256x128xf32>
    tpu.vector_store %arg8[%c0_101, %c0_102], %69 {strides = array<i32>} : memref<256x128xf32, #tpu.memory_space<vmem>>, vector<256x128xf32>,
    %c0_103 = arith.constant 0 : index
    %c2_104 = arith.constant 2 : index
    %c2_105 = arith.constant 2 : index
    %c0_106 = arith.constant 0 : index
    %71 = vector.load %arg7[%c0_103, %c2_104, %c2_105, %c0_106] : memref<1x18x18x128xbf16, #tpu.memory_space<vmem>>, vector<1x16x16x128xbf16>
    %72 = vector.shape_cast %71 : vector<1x16x16x128xbf16> to vector<256x128xbf16>
    %c0_107 = arith.constant 0 : index
    %c0_108 = arith.constant 0 : index
    %73 = vector.load %arg8[%c0_107, %c0_108] : memref<256x128xf32, #tpu.memory_space<vmem>>, vector<256x128xf32>
    %c8 = arith.constant 8 : index
    %c0_109 = arith.constant 0 : index
    %c0_110 = arith.constant 0 : index
    %74 = vector.load %arg2[%c8, %c0_109, %c0_110] : memref<9x128x128xbf16, #tpu.memory_space<vmem>>, vector<1x128x128xbf16>
    %75 = vector.shape_cast %74 : vector<1x128x128xbf16> to vector<128x128xbf16>
    %cst_111 = arith.constant dense<0.000000e+00> : vector<256x128xf32>
    %76 = tpu.matmul %72, %75, %cst_111 {dimension_numbers = #tpu.dot_dimension_numbers<[1], [0], [0], [1], [0, 0, 1, 1], [], []>} : vector<256x128xbf16>, vector<128x128xbf16>, vector<256x128xf32> -> vector<256x128xf32>
    %77 = arith.addf %73, %76 : vector<256x128xf32>
    %c0_112 = arith.constant 0 : index
    %c0_113 = arith.constant 0 : index
    %78 = vector.load %arg8[%c0_112, %c0_113] : memref<256x128xf32, #tpu.memory_space<vmem>>, vector<256x128xf32>
    tpu.vector_store %arg8[%c0_112, %c0_113], %77 {strides = array<i32>} : memref<256x128xf32, #tpu.memory_space<vmem>>, vector<256x128xf32>,
    %c0_114 = arith.constant 0 : index
    %c0_115 = arith.constant 0 : index
    %79 = vector.load %arg8[%c0_114, %c0_115] : memref<256x128xf32, #tpu.memory_space<vmem>>, vector<256x128xf32>
    %c0_116 = arith.constant 0 : index
    %c0_117 = arith.constant 0 : index
    %80 = vector.load %arg3[%c0_116, %c0_117] : memref<1x128xf32, #tpu.memory_space<vmem>>, vector<1x128xf32>
    %81 = vector.broadcast %80 : vector<1x128xf32> to vector<256x128xf32>
    %82 = arith.addf %79, %81 : vector<256x128xf32>
    %cst_118 = arith.constant 0.000000e+00 : f32
    %83 = vector.broadcast %cst_118 : f32 to vector<256x128xf32>
    %84 = arith.maximumf %82, %83 : vector<256x128xf32>
    %85 = arith.truncf %84 : vector<256x128xf32> to vector<256x128xbf16>
    %86 = vector.shape_cast %85 : vector<256x128xbf16> to vector<1x16x16x128xbf16>
    %c0_119 = arith.constant 0 : index
    %c1_120 = arith.constant 1 : index
    %c1_121 = arith.constant 1 : index
    %c0_122 = arith.constant 0 : index
    %87 = vector.load %arg7[%c0_119, %c1_120, %c1_121, %c0_122] : memref<1x18x18x128xbf16, #tpu.memory_space<vmem>>, vector<1x16x16x128xbf16>
    tpu.vector_store %arg7[%c0_119, %c1_120, %c1_121, %c0_122], %86 {strides = array<i32>} : memref<1x18x18x128xbf16, #tpu.memory_space<vmem>>, vector<1x16x16x128xbf16>,
    %cst_123 = arith.constant 0.000000e+00 : f32
    %88 = vector.broadcast %cst_123 : f32 to vector<256x128xf32>
    %c0_124 = arith.constant 0 : index
    %c0_125 = arith.constant 0 : index
    %89 = vector.load %arg8[%c0_124, %c0_125] : memref<256x128xf32, #tpu.memory_space<vmem>>, vector<256x128xf32>
    tpu.vector_store %arg8[%c0_124, %c0_125], %88 {strides = array<i32>} : memref<256x128xf32, #tpu.memory_space<vmem>>, vector<256x128xf32>,
    %c0_126 = arith.constant 0 : index
    %c0_127 = arith.constant 0 : index
    %c0_128 = arith.constant 0 : index
    %c0_129 = arith.constant 0 : index
    %90 = vector.load %arg7[%c0_126, %c0_127, %c0_128, %c0_129] : memref<1x18x18x128xbf16, #tpu.memory_space<vmem>>, vector<1x16x16x128xbf16>
    %91 = vector.shape_cast %90 : vector<1x16x16x128xbf16> to vector<256x128xbf16>
    %c0_130 = arith.constant 0 : index
    %c0_131 = arith.constant 0 : index
    %92 = vector.load %arg8[%c0_130, %c0_131] : memref<256x128xf32, #tpu.memory_space<vmem>>, vector<256x128xf32>
    %c0_132 = arith.constant 0 : index
    %c0_133 = arith.constant 0 : index
    %c0_134 = arith.constant 0 : index
    %93 = vector.load %arg4[%c0_132, %c0_133, %c0_134] : memref<9x128x128xbf16, #tpu.memory_space<vmem>>, vector<1x128x128xbf16>
    %94 = vector.shape_cast %93 : vector<1x128x128xbf16> to vector<128x128xbf16>
    %cst_135 = arith.constant dense<0.000000e+00> : vector<256x128xf32>
    %95 = tpu.matmul %91, %94, %cst_135 {dimension_numbers = #tpu.dot_dimension_numbers<[1], [0], [0], [1], [0, 0, 1, 1], [], []>} : vector<256x128xbf16>, vector<128x128xbf16>, vector<256x128xf32> -> vector<256x128xf32>
    %96 = arith.addf %92, %95 : vector<256x128xf32>
    %c0_136 = arith.constant 0 : index
    %c0_137 = arith.constant 0 : index
    %97 = vector.load %arg8[%c0_136, %c0_137] : memref<256x128xf32, #tpu.memory_space<vmem>>, vector<256x128xf32>
    tpu.vector_store %arg8[%c0_136, %c0_137], %96 {strides = array<i32>} : memref<256x128xf32, #tpu.memory_space<vmem>>, vector<256x128xf32>,
    %c0_138 = arith.constant 0 : index
    %c0_139 = arith.constant 0 : index
    %c1_140 = arith.constant 1 : index
    %c0_141 = arith.constant 0 : index
    %98 = vector.load %arg7[%c0_138, %c0_139, %c1_140, %c0_141] : memref<1x18x18x128xbf16, #tpu.memory_space<vmem>>, vector<1x16x16x128xbf16>
    %99 = vector.shape_cast %98 : vector<1x16x16x128xbf16> to vector<256x128xbf16>
    %c0_142 = arith.constant 0 : index
    %c0_143 = arith.constant 0 : index
    %100 = vector.load %arg8[%c0_142, %c0_143] : memref<256x128xf32, #tpu.memory_space<vmem>>, vector<256x128xf32>
    %c1_144 = arith.constant 1 : index
    %c0_145 = arith.constant 0 : index
    %c0_146 = arith.constant 0 : index
    %101 = vector.load %arg4[%c1_144, %c0_145, %c0_146] : memref<9x128x128xbf16, #tpu.memory_space<vmem>>, vector<1x128x128xbf16>
    %102 = vector.shape_cast %101 : vector<1x128x128xbf16> to vector<128x128xbf16>
    %cst_147 = arith.constant dense<0.000000e+00> : vector<256x128xf32>
    %103 = tpu.matmul %99, %102, %cst_147 {dimension_numbers = #tpu.dot_dimension_numbers<[1], [0], [0], [1], [0, 0, 1, 1], [], []>} : vector<256x128xbf16>, vector<128x128xbf16>, vector<256x128xf32> -> vector<256x128xf32>
    %104 = arith.addf %100, %103 : vector<256x128xf32>
    %c0_148 = arith.constant 0 : index
    %c0_149 = arith.constant 0 : index
    %105 = vector.load %arg8[%c0_148, %c0_149] : memref<256x128xf32, #tpu.memory_space<vmem>>, vector<256x128xf32>
    tpu.vector_store %arg8[%c0_148, %c0_149], %104 {strides = array<i32>} : memref<256x128xf32, #tpu.memory_space<vmem>>, vector<256x128xf32>,
    %c0_150 = arith.constant 0 : index
    %c0_151 = arith.constant 0 : index
    %c2_152 = arith.constant 2 : index
    %c0_153 = arith.constant 0 : index
    %106 = vector.load %arg7[%c0_150, %c0_151, %c2_152, %c0_153] : memref<1x18x18x128xbf16, #tpu.memory_space<vmem>>, vector<1x16x16x128xbf16>
    %107 = vector.shape_cast %106 : vector<1x16x16x128xbf16> to vector<256x128xbf16>
    %c0_154 = arith.constant 0 : index
    %c0_155 = arith.constant 0 : index
    %108 = vector.load %arg8[%c0_154, %c0_155] : memref<256x128xf32, #tpu.memory_space<vmem>>, vector<256x128xf32>
    %c2_156 = arith.constant 2 : index
    %c0_157 = arith.constant 0 : index
    %c0_158 = arith.constant 0 : index
    %109 = vector.load %arg4[%c2_156, %c0_157, %c0_158] : memref<9x128x128xbf16, #tpu.memory_space<vmem>>, vector<1x128x128xbf16>
    %110 = vector.shape_cast %109 : vector<1x128x128xbf16> to vector<128x128xbf16>
    %cst_159 = arith.constant dense<0.000000e+00> : vector<256x128xf32>
    %111 = tpu.matmul %107, %110, %cst_159 {dimension_numbers = #tpu.dot_dimension_numbers<[1], [0], [0], [1], [0, 0, 1, 1], [], []>} : vector<256x128xbf16>, vector<128x128xbf16>, vector<256x128xf32> -> vector<256x128xf32>
    %112 = arith.addf %108, %111 : vector<256x128xf32>
    %c0_160 = arith.constant 0 : index
    %c0_161 = arith.constant 0 : index
    %113 = vector.load %arg8[%c0_160, %c0_161] : memref<256x128xf32, #tpu.memory_space<vmem>>, vector<256x128xf32>
    tpu.vector_store %arg8[%c0_160, %c0_161], %112 {strides = array<i32>} : memref<256x128xf32, #tpu.memory_space<vmem>>, vector<256x128xf32>,
    %c0_162 = arith.constant 0 : index
    %c1_163 = arith.constant 1 : index
    %c0_164 = arith.constant 0 : index
    %c0_165 = arith.constant 0 : index
    %114 = vector.load %arg7[%c0_162, %c1_163, %c0_164, %c0_165] : memref<1x18x18x128xbf16, #tpu.memory_space<vmem>>, vector<1x16x16x128xbf16>
    %115 = vector.shape_cast %114 : vector<1x16x16x128xbf16> to vector<256x128xbf16>
    %c0_166 = arith.constant 0 : index
    %c0_167 = arith.constant 0 : index
    %116 = vector.load %arg8[%c0_166, %c0_167] : memref<256x128xf32, #tpu.memory_space<vmem>>, vector<256x128xf32>
    %c3_168 = arith.constant 3 : index
    %c0_169 = arith.constant 0 : index
    %c0_170 = arith.constant 0 : index
    %117 = vector.load %arg4[%c3_168, %c0_169, %c0_170] : memref<9x128x128xbf16, #tpu.memory_space<vmem>>, vector<1x128x128xbf16>
    %118 = vector.shape_cast %117 : vector<1x128x128xbf16> to vector<128x128xbf16>
    %cst_171 = arith.constant dense<0.000000e+00> : vector<256x128xf32>
    %119 = tpu.matmul %115, %118, %cst_171 {dimension_numbers = #tpu.dot_dimension_numbers<[1], [0], [0], [1], [0, 0, 1, 1], [], []>} : vector<256x128xbf16>, vector<128x128xbf16>, vector<256x128xf32> -> vector<256x128xf32>
    %120 = arith.addf %116, %119 : vector<256x128xf32>
    %c0_172 = arith.constant 0 : index
    %c0_173 = arith.constant 0 : index
    %121 = vector.load %arg8[%c0_172, %c0_173] : memref<256x128xf32, #tpu.memory_space<vmem>>, vector<256x128xf32>
    tpu.vector_store %arg8[%c0_172, %c0_173], %120 {strides = array<i32>} : memref<256x128xf32, #tpu.memory_space<vmem>>, vector<256x128xf32>,
    %c0_174 = arith.constant 0 : index
    %c1_175 = arith.constant 1 : index
    %c1_176 = arith.constant 1 : index
    %c0_177 = arith.constant 0 : index
    %122 = vector.load %arg7[%c0_174, %c1_175, %c1_176, %c0_177] : memref<1x18x18x128xbf16, #tpu.memory_space<vmem>>, vector<1x16x16x128xbf16>
    %123 = vector.shape_cast %122 : vector<1x16x16x128xbf16> to vector<256x128xbf16>
    %c0_178 = arith.constant 0 : index
    %c0_179 = arith.constant 0 : index
    %124 = vector.load %arg8[%c0_178, %c0_179] : memref<256x128xf32, #tpu.memory_space<vmem>>, vector<256x128xf32>
    %c4_180 = arith.constant 4 : index
    %c0_181 = arith.constant 0 : index
    %c0_182 = arith.constant 0 : index
    %125 = vector.load %arg4[%c4_180, %c0_181, %c0_182] : memref<9x128x128xbf16, #tpu.memory_space<vmem>>, vector<1x128x128xbf16>
    %126 = vector.shape_cast %125 : vector<1x128x128xbf16> to vector<128x128xbf16>
    %cst_183 = arith.constant dense<0.000000e+00> : vector<256x128xf32>
    %127 = tpu.matmul %123, %126, %cst_183 {dimension_numbers = #tpu.dot_dimension_numbers<[1], [0], [0], [1], [0, 0, 1, 1], [], []>} : vector<256x128xbf16>, vector<128x128xbf16>, vector<256x128xf32> -> vector<256x128xf32>
    %128 = arith.addf %124, %127 : vector<256x128xf32>
    %c0_184 = arith.constant 0 : index
    %c0_185 = arith.constant 0 : index
    %129 = vector.load %arg8[%c0_184, %c0_185] : memref<256x128xf32, #tpu.memory_space<vmem>>, vector<256x128xf32>
    tpu.vector_store %arg8[%c0_184, %c0_185], %128 {strides = array<i32>} : memref<256x128xf32, #tpu.memory_space<vmem>>, vector<256x128xf32>,
    %c0_186 = arith.constant 0 : index
    %c1_187 = arith.constant 1 : index
    %c2_188 = arith.constant 2 : index
    %c0_189 = arith.constant 0 : index
    %130 = vector.load %arg7[%c0_186, %c1_187, %c2_188, %c0_189] : memref<1x18x18x128xbf16, #tpu.memory_space<vmem>>, vector<1x16x16x128xbf16>
    %131 = vector.shape_cast %130 : vector<1x16x16x128xbf16> to vector<256x128xbf16>
    %c0_190 = arith.constant 0 : index
    %c0_191 = arith.constant 0 : index
    %132 = vector.load %arg8[%c0_190, %c0_191] : memref<256x128xf32, #tpu.memory_space<vmem>>, vector<256x128xf32>
    %c5_192 = arith.constant 5 : index
    %c0_193 = arith.constant 0 : index
    %c0_194 = arith.constant 0 : index
    %133 = vector.load %arg4[%c5_192, %c0_193, %c0_194] : memref<9x128x128xbf16, #tpu.memory_space<vmem>>, vector<1x128x128xbf16>
    %134 = vector.shape_cast %133 : vector<1x128x128xbf16> to vector<128x128xbf16>
    %cst_195 = arith.constant dense<0.000000e+00> : vector<256x128xf32>
    %135 = tpu.matmul %131, %134, %cst_195 {dimension_numbers = #tpu.dot_dimension_numbers<[1], [0], [0], [1], [0, 0, 1, 1], [], []>} : vector<256x128xbf16>, vector<128x128xbf16>, vector<256x128xf32> -> vector<256x128xf32>
    %136 = arith.addf %132, %135 : vector<256x128xf32>
    %c0_196 = arith.constant 0 : index
    %c0_197 = arith.constant 0 : index
    %137 = vector.load %arg8[%c0_196, %c0_197] : memref<256x128xf32, #tpu.memory_space<vmem>>, vector<256x128xf32>
    tpu.vector_store %arg8[%c0_196, %c0_197], %136 {strides = array<i32>} : memref<256x128xf32, #tpu.memory_space<vmem>>, vector<256x128xf32>,
    %c0_198 = arith.constant 0 : index
    %c2_199 = arith.constant 2 : index
    %c0_200 = arith.constant 0 : index
    %c0_201 = arith.constant 0 : index
    %138 = vector.load %arg7[%c0_198, %c2_199, %c0_200, %c0_201] : memref<1x18x18x128xbf16, #tpu.memory_space<vmem>>, vector<1x16x16x128xbf16>
    %139 = vector.shape_cast %138 : vector<1x16x16x128xbf16> to vector<256x128xbf16>
    %c0_202 = arith.constant 0 : index
    %c0_203 = arith.constant 0 : index
    %140 = vector.load %arg8[%c0_202, %c0_203] : memref<256x128xf32, #tpu.memory_space<vmem>>, vector<256x128xf32>
    %c6_204 = arith.constant 6 : index
    %c0_205 = arith.constant 0 : index
    %c0_206 = arith.constant 0 : index
    %141 = vector.load %arg4[%c6_204, %c0_205, %c0_206] : memref<9x128x128xbf16, #tpu.memory_space<vmem>>, vector<1x128x128xbf16>
    %142 = vector.shape_cast %141 : vector<1x128x128xbf16> to vector<128x128xbf16>
    %cst_207 = arith.constant dense<0.000000e+00> : vector<256x128xf32>
    %143 = tpu.matmul %139, %142, %cst_207 {dimension_numbers = #tpu.dot_dimension_numbers<[1], [0], [0], [1], [0, 0, 1, 1], [], []>} : vector<256x128xbf16>, vector<128x128xbf16>, vector<256x128xf32> -> vector<256x128xf32>
    %144 = arith.addf %140, %143 : vector<256x128xf32>
    %c0_208 = arith.constant 0 : index
    %c0_209 = arith.constant 0 : index
    %145 = vector.load %arg8[%c0_208, %c0_209] : memref<256x128xf32, #tpu.memory_space<vmem>>, vector<256x128xf32>
    tpu.vector_store %arg8[%c0_208, %c0_209], %144 {strides = array<i32>} : memref<256x128xf32, #tpu.memory_space<vmem>>, vector<256x128xf32>,
    %c0_210 = arith.constant 0 : index
    %c2_211 = arith.constant 2 : index
    %c1_212 = arith.constant 1 : index
    %c0_213 = arith.constant 0 : index
    %146 = vector.load %arg7[%c0_210, %c2_211, %c1_212, %c0_213] : memref<1x18x18x128xbf16, #tpu.memory_space<vmem>>, vector<1x16x16x128xbf16>
    %147 = vector.shape_cast %146 : vector<1x16x16x128xbf16> to vector<256x128xbf16>
    %c0_214 = arith.constant 0 : index
    %c0_215 = arith.constant 0 : index
    %148 = vector.load %arg8[%c0_214, %c0_215] : memref<256x128xf32, #tpu.memory_space<vmem>>, vector<256x128xf32>
    %c7_216 = arith.constant 7 : index
    %c0_217 = arith.constant 0 : index
    %c0_218 = arith.constant 0 : index
    %149 = vector.load %arg4[%c7_216, %c0_217, %c0_218] : memref<9x128x128xbf16, #tpu.memory_space<vmem>>, vector<1x128x128xbf16>
    %150 = vector.shape_cast %149 : vector<1x128x128xbf16> to vector<128x128xbf16>
    %cst_219 = arith.constant dense<0.000000e+00> : vector<256x128xf32>
    %151 = tpu.matmul %147, %150, %cst_219 {dimension_numbers = #tpu.dot_dimension_numbers<[1], [0], [0], [1], [0, 0, 1, 1], [], []>} : vector<256x128xbf16>, vector<128x128xbf16>, vector<256x128xf32> -> vector<256x128xf32>
    %152 = arith.addf %148, %151 : vector<256x128xf32>
    %c0_220 = arith.constant 0 : index
    %c0_221 = arith.constant 0 : index
    %153 = vector.load %arg8[%c0_220, %c0_221] : memref<256x128xf32, #tpu.memory_space<vmem>>, vector<256x128xf32>
    tpu.vector_store %arg8[%c0_220, %c0_221], %152 {strides = array<i32>} : memref<256x128xf32, #tpu.memory_space<vmem>>, vector<256x128xf32>,
    %c0_222 = arith.constant 0 : index
    %c2_223 = arith.constant 2 : index
    %c2_224 = arith.constant 2 : index
    %c0_225 = arith.constant 0 : index
    %154 = vector.load %arg7[%c0_222, %c2_223, %c2_224, %c0_225] : memref<1x18x18x128xbf16, #tpu.memory_space<vmem>>, vector<1x16x16x128xbf16>
    %155 = vector.shape_cast %154 : vector<1x16x16x128xbf16> to vector<256x128xbf16>
    %c0_226 = arith.constant 0 : index
    %c0_227 = arith.constant 0 : index
    %156 = vector.load %arg8[%c0_226, %c0_227] : memref<256x128xf32, #tpu.memory_space<vmem>>, vector<256x128xf32>
    %c8_228 = arith.constant 8 : index
    %c0_229 = arith.constant 0 : index
    %c0_230 = arith.constant 0 : index
    %157 = vector.load %arg4[%c8_228, %c0_229, %c0_230] : memref<9x128x128xbf16, #tpu.memory_space<vmem>>, vector<1x128x128xbf16>
    %158 = vector.shape_cast %157 : vector<1x128x128xbf16> to vector<128x128xbf16>
    %cst_231 = arith.constant dense<0.000000e+00> : vector<256x128xf32>
    %159 = tpu.matmul %155, %158, %cst_231 {dimension_numbers = #tpu.dot_dimension_numbers<[1], [0], [0], [1], [0, 0, 1, 1], [], []>} : vector<256x128xbf16>, vector<128x128xbf16>, vector<256x128xf32> -> vector<256x128xf32>
    %160 = arith.addf %156, %159 : vector<256x128xf32>
    %c0_232 = arith.constant 0 : index
    %c0_233 = arith.constant 0 : index
    %161 = vector.load %arg8[%c0_232, %c0_233] : memref<256x128xf32, #tpu.memory_space<vmem>>, vector<256x128xf32>
    tpu.vector_store %arg8[%c0_232, %c0_233], %160 {strides = array<i32>} : memref<256x128xf32, #tpu.memory_space<vmem>>, vector<256x128xf32>,
    %c0_234 = arith.constant 0 : index
    %c0_235 = arith.constant 0 : index
    %162 = vector.load %arg8[%c0_234, %c0_235] : memref<256x128xf32, #tpu.memory_space<vmem>>, vector<256x128xf32>
    %c0_236 = arith.constant 0 : index
    %c0_237 = arith.constant 0 : index
    %163 = vector.load %arg5[%c0_236, %c0_237] : memref<1x128xf32, #tpu.memory_space<vmem>>, vector<1x128xf32>
    %164 = vector.broadcast %163 : vector<1x128xf32> to vector<256x128xf32>
    %165 = arith.addf %162, %164 : vector<256x128xf32>
    %c0_238 = arith.constant 0 : index
    %c0_239 = arith.constant 0 : index
    %c0_240 = arith.constant 0 : index
    %c0_241 = arith.constant 0 : index
    %166 = vector.load %arg1[%c0_238, %c0_239, %c0_240, %c0_241] : memref<1x16x16x128xf32, #tpu.memory_space<vmem>>, vector<1x16x16x128xf32>
    %167 = vector.shape_cast %166 : vector<1x16x16x128xf32> to vector<256x128xf32>
    %168 = arith.addf %165, %167 : vector<256x128xf32>
    %cst_242 = arith.constant 0.000000e+00 : f32
    %169 = vector.broadcast %cst_242 : f32 to vector<256x128xf32>
    %170 = arith.maximumf %168, %169 : vector<256x128xf32>
    %171 = vector.shape_cast %170 : vector<256x128xf32> to vector<1x16x16x128xf32>
    %c0_243 = arith.constant 0 : index
    %c0_244 = arith.constant 0 : index
    %c0_245 = arith.constant 0 : index
    %c0_246 = arith.constant 0 : index
    %172 = vector.load %arg6[%c0_243, %c0_244, %c0_245, %c0_246] : memref<1x16x16x128xf32, #tpu.memory_space<vmem>>, vector<1x16x16x128xf32>
    tpu.vector_store %arg6[%c0_243, %c0_244, %c0_245, %c0_246], %171 {strides = array<i32>} : memref<1x16x16x128xf32, #tpu.memory_space<vmem>>, vector<1x16x16x128xf32>,
    return
  }
  func.func @transform_0(%arg0: i32) -> (i32, i32, i32, i32) {
    %c0_i32 = arith.constant 0 : i32
    %c0_i32_0 = arith.constant 0 : i32
    %c0_i32_1 = arith.constant 0 : i32
    %c0_i32_2 = arith.constant 0 : i32
    return %arg0, %c0_i32, %c0_i32_0, %c0_i32_1 : i32, i32, i32, i32
  }
  func.func @transform_1(%arg0: i32) -> (i32, i32, i32) {
    %c0_i32 = arith.constant 0 : i32
    %c0_i32_0 = arith.constant 0 : i32
    %c0_i32_1 = arith.constant 0 : i32
    %c0_i32_2 = arith.constant 0 : i32
    return %c0_i32, %c0_i32_0, %c0_i32_1 : i32, i32, i32
  }
  func.func @transform_2(%arg0: i32) -> (i32, i32) {
    %c0_i32 = arith.constant 0 : i32
    %c0_i32_0 = arith.constant 0 : i32
    %c0_i32_1 = arith.constant 0 : i32
    return %c0_i32, %c0_i32_0 : i32, i32
  }
  func.func @transform_3(%arg0: i32) -> (i32, i32, i32) {
    %c0_i32 = arith.constant 0 : i32
    %c0_i32_0 = arith.constant 0 : i32
    %c0_i32_1 = arith.constant 0 : i32
    %c0_i32_2 = arith.constant 0 : i32
    return %c0_i32, %c0_i32_0, %c0_i32_1 : i32, i32, i32
  }
  func.func @transform_4(%arg0: i32) -> (i32, i32) {
    %c0_i32 = arith.constant 0 : i32
    %c0_i32_0 = arith.constant 0 : i32
    %c0_i32_1 = arith.constant 0 : i32
    return %c0_i32, %c0_i32_0 : i32, i32
  }
  func.func @transform_5(%arg0: i32) -> (i32, i32, i32, i32) {
    %c0_i32 = arith.constant 0 : i32
    %c0_i32_0 = arith.constant 0 : i32
    %c0_i32_1 = arith.constant 0 : i32
    %c0_i32_2 = arith.constant 0 : i32
    return %arg0, %c0_i32, %c0_i32_0, %c0_i32_1 : i32, i32, i32, i32
  }
}

</mosaic_0001>

<bundles_post_ra>
// kernel: basic_block_forward.1
= control target key start
LH: loop header
LB: loop body
LE: loop exit
PB: predicated region body
PF: predicated region fallthrough
CT: control target
= control target key end

     0   :  { %10 = vsyncpa [#allocation5], 0  ;;  %s19572_s0 = inlined_call_operand.vmem [shape: f32[2,16,16,128], index: 0, kind: input, shape index: {}]   ;;  %s19573_s1 = inlined_call_operand.vmem [shape: bf16[9,128,128], index: 1, kind: input, shape index: {}]   ;;  %s19574_s2 = inlined_call_operand.vmem [shape: f32[1,128], index: 2, kind: input, shape index: {}]   ;;  %s19575_s3 = inlined_call_operand.vmem [shape: bf16[9,128,128], index: 3, kind: input, shape index: {}]   ;;  %s19576_s4 = inlined_call_operand.vmem [shape: f32[1,128], index: 4, kind: input, shape index: {}]   ;;  %s19577_s5 = inlined_call_operand.hbm [shape: f32[2,16,16,128], index: 5, kind: output, shape index: {}]  }
   0x1   :  { %12 = vsyncpa [#allocation5 + $0x1], 0  ;;  %s15598_s18 = smov 0   ;;  %s15600_s19 = smov 0  }
   0x2   :  { %s15602_s20 = smov 0   ;;  %s15604_s21 = smov 0  }
   0x3 LB: > { %s15619_s22 = sadd.s32 4294967295, %s15562_s21   ;;  %s12994_s23 = sadd.s32 4294967294, %s15562_s21   ;;  %s15562_s21 = sphi %s15604_s21, %s19870_s21   ;;  %s15558_s20 = sphi %s15602_s20, %s19869_s20   ;;  %s15554_s19 = sphi %s15600_s19, %s19868_s19   ;;  %s15550_s18 = sphi %s15598_s18, %s19867_s18  }
   0x4   : > { %s15623_s24 = sadd.s32 1, %s15562_s21   ;;  %s135_s25 = sadd.s32 1, %s15558_s20 }
   0x5   : > { %s132_s26 = ssub.s32 %s15562_s21, %s15623_s24  ;;  %p145_p0 = scmp.ne.s32.totalorder %s15558_s20, %s15554_s19 }
   0x6   : > { %p133_p1 = scmp.eq.s32.totalorder %s132_s26, 0  ;;  %p146_p2 = scmp.eq.s32.totalorder %s15619_s22, 1 }
   0x7   : > { %p151_p3 = scmp.ne.s32.totalorder %s15554_s19, %s15550_s18  ;;  %p152_p4 = scmp.eq.s32.totalorder %s12994_s23, 1 }
   0x8   : > { %s15634_s27 = scalar_select %p133_p1, %s15558_s20, %s135_s25  }
   0x9   : > { %p15636_p5 = por %p146_p2, %p145_p0  ;;  %p15640_p6 = por %p152_p4, %p151_p3 }
   0xa   : > { %p12997_p7 = scmp.ge.s32.totalorder %s15562_s21, 1  ;;  %p190_p8 = scmp.lt.s32.totalorder %s15562_s21, 3 }
   0xc   : > { %p191_p9 = pnand %p12997_p7, %p190_p8 }
   0xe   : > { %194 = sbr.rel (%p191_p9) target bundleno = 1214 (0x4be), region = 40 }
  0x13   : > { %v15260_v0 = vld [vmem:[%s19573_s1 + $0x38] sm:$0xff]   ;;  %v15564_v2 = vmov 0   ;;  %v15262_v3 = vld [vmem:[%s19573_s1 + $0x30] sm:$0xff]   ;;  %v15264_v5 = vld [vmem:[%s19573_s1 + $0x28] sm:$0xff]   ;;  %p218_p10 = scmp.lt.s32.totalorder %s15619_s22, 1  ;;  %vm730_vm0 = vcmask 1043456  }
  0x14   : > { %v15261_v1 = vld [vmem:[%s19573_s1 + $0x78] sm:$0xff]   ;;  %224 = vst [vmem:[#allocation2] sm:$0xf] %v15564_v2  ;;  %225 = vst [vmem:[#allocation2 + $0x4] sm:$0xf] %v15564_v2  ;;  %14354 = vmatprep.subr.bf16.mxu0 %v15260_v0  ;;  %v15263_v4 = vld [vmem:[%s19573_s1 + $0x70] sm:$0xff]  }
  0x15   : > { %226 = vst [vmem:[#allocation2 + $0x8] sm:$0x1] %v15564_v2  ;;  %227 = vst [vmem:[#allocation2 + $0xc] sm:$0xf] %v15564_v2  ;;  %14402 = vmatprep.subr.bf16.mxu1 %v15261_v1  ;;  %14355 = vmatpush3.bf16.msra.mxu0 %v15260_v0  ;;  %v15265_v6 = vld [vmem:[%s19573_s1 + $0x68] sm:$0xff]   ;;  %v15266_v7 = vld [vmem:[%s19573_s1 + $0x20] sm:$0xff]  }
  0x16   : > { %228 = vst [vmem:[#allocation2 + $0x10] sm:$0xf] %v15564_v2  ;;  %229 = vst [vmem:[#allocation2 + $0x14] sm:$0x1] %v15564_v2  ;;  %14403 = vmatpush3.bf16.msra.mxu1 %v15261_v1  ;;  %14356 = vmatprep.subr.bf16.mxu0 %v15262_v3  ;;  %v15267_v8 = vld [vmem:[%s19573_s1 + $0x60] sm:$0xff]   ;;  %s219_s30 = scalar_select %p218_p10, %s15619_s22, 1 }
  0x17   : > { %230 = vst [vmem:[#allocation2 + $0x18] sm:$0xf] %v15564_v2  ;;  %231 = vst [vmem:[#allocation2 + $0x1c] sm:$0xf] %v15564_v2  ;;  %14404 = vmatprep.subr.bf16.mxu1 %v15263_v4  ;;  %v15268_v9 = vld [vmem:[%s19573_s1 + $0x18] sm:$0xff]   ;;  %v15270_v11 = vld [vmem:[%s19573_s1 + $0x10] sm:$0xff]  }
  0x18   : > { %232 = vst [vmem:[#allocation2 + $0x20] sm:$0x1] %v15564_v2  ;;  %233 = vst [vmem:[#allocation2 + $0x24] sm:$0xf] %v15564_v2  ;;  %v15269_v10 = vld [vmem:[%s19573_s1 + $0x58] sm:$0xff]   ;;  %s13856_s10 = sshll.u32 %s219_s30, 8 }
  0x19   : > { %234 = vst [vmem:[#allocation2 + $0x28] sm:$0xf] %v15564_v2  ;;  %235 = vst [vmem:[#allocation2 + $0x2c] sm:$0x1] %v15564_v2  ;;  %14357 = vmatpush3.bf16.msra.mxu0 %v15262_v3  ;;  %v15271_v12 = vld [vmem:[%s19573_s1 + $0x50] sm:$0xff]   ;;  %s15687_s17 = scalar_lea.vmem %s19572_s0, %s13856_s10  ;;  %vm737_vm3 = vcmask 1040384  }
  0x1a   : > { %236 = vst [vmem:[#allocation2 + $0x30] sm:$0xf] %v15564_v2  ;;  %237 = vst [vmem:[#allocation2 + $0x34] sm:$0xf] %v15564_v2  ;;  %14405 = vmatpush3.bf16.msra.mxu1 %v15263_v4  ;;  %14358 = vmatprep.subr.bf16.mxu0 %v15264_v5  ;;  %vm1376_vm1 = vsmask.f32 3328 }
  0x1b   : > { %238 = vst [vmem:[#allocation2 + $0x38] sm:$0x1] %v15564_v2  ;;  %239 = vst [vmem:[#allocation2 + $0x3c] sm:$0xf] %v15564_v2  ;;  %14406 = vmatprep.subr.bf16.mxu1 %v15265_v6  ;;  %v15276_v13 = vld [vmem:[#allocation2] sm:$0xff]   ;;  %v279_v23 = vld [vmem:[%s15687_s17 + $0x8] sm:$0xff] }
  0x1c   : > { %240 = vst [vmem:[#allocation2 + $0x40] sm:$0xf] %v15564_v2  ;;  %241 = vst [vmem:[#allocation2 + $0x44] sm:$0x1] %v15564_v2  ;;  %v1328_v14 = vld [vmem:[#allocation2] sm:$0xf]  ;;  %14370 = vmatprep.mubr.bf16.mxu0 %v15276_v13  ;;  %v13858_v28 = vpack.c.bf16 %v279_v23, %v279_v23 }
  0x1d   : > { %242 = vst [vmem:[#allocation2 + $0x48] sm:$0xf] %v15564_v2  ;;  %243 = vst [vmem:[#allocation2 + $0x4c] sm:$0xf] %v15564_v2  ;;  %14359 = vmatpush3.bf16.msra.mxu0 %v15264_v5  ;;  %v1329_v15 = vld [vmem:[#allocation2 + $0x4] sm:$0xf] }
  0x1e   : > { %244 = vst [vmem:[#allocation2 + $0x50] sm:$0x1] %v15564_v2  ;;  %245 = vst [vmem:[#allocation2 + $0x54] sm:$0xf] %v15564_v2  ;;  %14407 = vmatpush3.bf16.msra.mxu1 %v15265_v6  ;;  %14360 = vmatprep.subr.bf16.mxu0 %v15266_v7  ;;  %v1330_v16 = vld [vmem:[#allocation2 + $0x8] sm:$0x1] }
  0x1f   : > { %246 = vst [vmem:[#allocation2 + $0x58] sm:$0xf] %v15564_v2  ;;  %247 = vst [vmem:[#allocation2 + $0x5c] sm:$0x1] %v15564_v2  ;;  %14408 = vmatprep.subr.bf16.mxu1 %v15267_v8  ;;  %vm1377_vm2 = vsmask.f32 7440 }
  0x20   : > { %248 = vst [vmem:[#allocation2 + $0x60] sm:$0xf] %v15564_v2  ;;  %249 = vst [vmem:[#allocation2 + $0x64] sm:$0xf] %v15564_v2  ;;  %v1380_v17 = vshrl.u32 %v1328_v14, 16  ;;  %v1383_v18 = vshll.u32 %v1328_v14, 16 }
  0x21   : > { %250 = vst [vmem:[#allocation2 + $0x68] sm:$0x1] %v15564_v2  ;;  %251 = vst [vmem:[#allocation2 + $0x6c] sm:$0xf] %v15564_v2  ;;  %14361 = vmatpush3.bf16.msra.mxu0 %v15266_v7  ;;  %v1389_v19 = vshll.u32 %v1329_v15, 16  ;;  %v1393_v20 = vshrl.u32 %v1329_v15, 16 }
  0x22   : > { %252 = vst [vmem:[#allocation2 + $0x70] sm:$0xf] %v15564_v2  ;;  %253 = vst [vmem:[#allocation2 + $0x74] sm:$0x1] %v15564_v2  ;;  %14409 = vmatpush3.bf16.msra.mxu1 %v15267_v8  ;;  %14362 = vmatprep.subr.bf16.mxu0 %v15268_v9  ;;  %v1399_v21 = vshll.u32 %v1330_v16, 16  ;;  %v278_v22 = vld [vmem:[%s15687_s17] sm:$0xff] }
  0x23   : > { %254 = vst [vmem:[#allocation2 + $0x78] sm:$0xf] %v15564_v2  ;;  %255 = vst [vmem:[#allocation2 + $0x7c] sm:$0xf] %v15564_v2  ;;  %14410 = vmatprep.subr.bf16.mxu1 %v15269_v10  ;;  %v15272_v24 = vld [vmem:[%s19573_s1 + $0x8] sm:$0xff]   ;;  %v1382_v25 = vrot.slane %v1380_v17, 4  ;;  %v13857_v27 = vpack.c.bf16 %v278_v22, %v278_v22 }
  0x24   : > { %256 = vst [vmem:[#allocation2 + $0x80] sm:$0x1] %v15564_v2  ;;  %257 = vst [vmem:[#allocation2 + $0x84] sm:$0xf] %v15564_v2  ;;  %v1385_v26 = vrot.slane %v1383_v18, 5  ;;  %v15273_v29 = vld [vmem:[%s19573_s1 + $0x48] sm:$0xff]  }
  0x25   : > { %258 = vst [vmem:[#allocation2 + $0x88] sm:$0xf] %v15564_v2  ;;  %259 = vst [vmem:[#allocation2 + $0x8c] sm:$0x1] %v15564_v2  ;;  %14363 = vmatpush3.bf16.msra.mxu0 %v15268_v9  ;;  %v1391_v30 = vrot.slane %v1389_v19, 5  ;;  %v1395_v31 = vrot.slane %v1393_v20, 4 }
  0x26   : > { %260 = vst [vmem:[#allocation2 + $0x90] sm:$0xf] %v15564_v2  ;;  %261 = vst [vmem:[#allocation2 + $0x94] sm:$0xf] %v15564_v2  ;;  %14411 = vmatpush3.bf16.msra.mxu1 %v15269_v10  ;;  %14364 = vmatprep.subr.bf16.mxu0 %v15270_v11  ;;  %v1401_v32 = vrot.slane %v1399_v21, 5  ;;  %v15274_v33 = vld [vmem:[%s19573_s1] sm:$0xff]   ;;  %v1386_v34 = vor.u32 %v1385_v26, %v1382_v25 }
  0x27   : > { %262 = vst [vmem:[#allocation2 + $0x98] sm:$0x1] %v15564_v2  ;;  %263 = vst [vmem:[#allocation2 + $0x9c] sm:$0xf] %v15564_v2  ;;  %14412 = vmatprep.subr.bf16.mxu1 %v15271_v12  ;;  %vm406_vm4 = vsmask.f32 256  ;;  %v1396_v38 = vor.u32 %v1395_v31, %v1391_v30 }
  0x28   : > { %264 = vst [vmem:[#allocation2 + $0xa0] sm:$0xf] %v15564_v2  ;;  %265 = vst [vmem:[#allocation2 + $0xa4] sm:$0x1] %v15564_v2  ;;  %vm407_vm5 = vsmask.f32 4368 }
  0x29   : > { %266 = vst [vmem:[#allocation2 + $0xa8] sm:$0xf] %v15564_v2  ;;  %267 = vst [vmem:[#allocation2 + $0xac] sm:$0xf] %v15564_v2  ;;  %v410_v35 = vshrl.u32 %v13857_v27, 16  ;;  %v413_v36 = vshll.u32 %v13857_v27, 16  ;;  %14365 = vmatpush3.bf16.msra.mxu0 %v15270_v11 }
  0x2a   : > { %268 = vst [vmem:[#allocation2 + $0xb0] sm:$0x1] %v15564_v2  ;;  %269 = vst [vmem:[#allocation2 + $0xb4] sm:$0xf] %v15564_v2  ;;  %v19591_v37 = vmov 0  ;;  %v418_v39 = vshrl.u32 %v13858_v28, 16  ;;  %14413 = vmatpush3.bf16.msra.mxu1 %v15271_v12  ;;  %14366 = vmatprep.subr.bf16.mxu0 %v15272_v24 }
  0x2b   : > { %270 = vst [vmem:[#allocation2 + $0xb8] sm:$0xf] %v15564_v2  ;;  %271 = vst [vmem:[#allocation2 + $0xbc] sm:$0x1] %v15564_v2  ;;  %v421_v40 = vshll.u32 %v13858_v28, 16  ;;  %v1387_v41 = vrot.slane %v1386_v34, 4  ;;  %14414 = vmatprep.subr.bf16.mxu1 %v15273_v29 }
  0x2c   : > { %272 = vst [vmem:[#allocation2 + $0xc0] sm:$0xf] %v15564_v2  ;;  %273 = vst [vmem:[#allocation2 + $0xc4] sm:$0xf] %v15564_v2  ;;  %vm731_vm7 = vsmask.f32 7938 }
  0x2d   : > { %274 = vst [vmem:[#allocation2 + $0xc8] sm:$0x1] %v15564_v2  ;;  %275 = vst [vmem:[#allocation2 + $0xcc] sm:$0xf] %v15564_v2  ;;  %v412_v42 = vrot.slane %v410_v35, 7  ;;  %v19594_v43 = vmov 0  ;;  %14367 = vmatpush3.bf16.msra.mxu0 %v15272_v24 }
  0x2e   : > { %276 = vst [vmem:[#allocation2 + $0xd0] sm:$0xf] %v15564_v2  ;;  %277 = vst [vmem:[#allocation2 + $0xd4] sm:$0x1] %v15564_v2  ;;  %v280_v44 = vld [vmem:[%s15687_s17 + $0x10] sm:$0xff]  ;;  %v281_v45 = vld [vmem:[%s15687_s17 + $0x18] sm:$0xff]  ;;  %14415 = vmatpush3.bf16.msra.mxu1 %v15273_v29  ;;  %14368 = vmatprep.subr.bf16.mxu0 %v15274_v33 }
  0x2f   : > { %vm15702_vm6 = vmor %vm1376_vm1, %vm1377_vm2  ;;  %v15275_v46 = vld [vmem:[%s19573_s1 + $0x40] sm:$0xff]   ;;  %v1397_v47 = vrot.slane %v1396_v38, 4  ;;  %v420_v48 = vrot.slane %v418_v39, 7  ;;  %v19597_v49 = vmov 0  ;;  %v733_v50 = vld [vmem:[#allocation2 + $0xc] sm:$0xf]  ;;  %v13859_v51 = vpack.c.bf16 %v280_v44, %v280_v44 }
  0x30   : > { %v19592_v37 = vsel %vm15702_vm6, 4294967295, %v19591_v37  ;;  %vm15708_vm8 = vmand %vm737_vm3, %vm406_vm4  ;;  %v13860_v52 = vpack.c.bf16 %v281_v45, %v281_v45  ;;  %v1392_v53 = vsel %vm15702_vm6, %v1387_v41, %v1391_v30  ;;  %v19600_v54 = vmov 0  ;;  %v739_v57 = vld [vmem:[#allocation2 + $0x14] sm:$0x1]  ;;  %v282_v62 = vld [vmem:[%s15687_s17 + $0x20] sm:$0xff]  ;;  %14416 = vmatprep.subr.bf16.mxu1 %v15275_v46  ;;  %s215_s23 = sand.u32 1, %s15554_s19  }
  0x31   : > { %19593 = vst [vmem:[#allocation7_spill] sm:$0xff] %v19592_v37  ;;  %v19595_v43 = vsel %vm15708_vm8, 4294967295, %v19594_v43  ;;  %vm15718_vm9 = vmand %vm730_vm0, %vm731_vm7  ;;  %v415_v55 = vor.u32 %v413_v36, %v412_v42  ;;  %v416_v56 = vrot.slane %v412_v42, 4  ;;  %v1402_v58 = vsel %vm15702_vm6, %v1397_v47, %v1401_v32  ;;  %v283_v63 = vld [vmem:[%s15687_s17 + $0x28] sm:$0xff]  ;;  %v15739_v2 = vld [vmem:[%s19573_s1 + $0xb8] sm:$0xff]   ;;  %14369 = vmatpush3.bf16.msra.mxu0 %v15274_v33  ;;  %s12998_s30 = sshll.u32 %s215_s23, 8 }
  0x32   : > { %19596 = vst [vmem:[#allocation8_spill] sm:$0xff] %v19595_v43  ;;  %v19598_v49 = vsel %vm15718_vm9, 4294967295, %v19597_v49  ;;  %vm15726_vm10 = vmor %vm406_vm4, %vm407_vm5  ;;  %v423_v59 = vor.u32 %v421_v40, %v420_v48  ;;  %v425_v60 = vrot.slane %v420_v48, 4  ;;  %v427_v61 = vshrl.u32 %v13859_v51, 16  ;;  %v284_v5 = vld [vmem:[%s15687_s17 + $0x30] sm:$0xff]  ;;  %v285_v10 = vld [vmem:[%s15687_s17 + $0x38] sm:$0xff]  ;;  %14417 = vmatpush3.bf16.msra.mxu1 %v15275_v46  ;;  %14450 = vmatprep.subr.bf16.mxu0 %v15739_v2 }
  0x33   : > { %19599 = vst [vmem:[#allocation9_spill] sm:$0xff] %v19598_v49  ;;  %v19601_v54 = vsel %vm15726_vm10, 4294967295, %v19600_v54  ;;  %v13073_v0 = vcombine.low %v1392_v53, %v1402_v58  ;;  %v734_v1 = vsel %vm15718_vm9, %v415_v55, %v733_v50  ;;  %v430_v3 = vshll.u32 %v13859_v51, 16  ;;  %v286_v11 = vld [vmem:[%s15687_s17 + $0x40] sm:$0xff]  ;;  %v742_v13 = vld [vmem:[#allocation2 + $0x18] sm:$0xf] }
  0x34   : > { %19602 = vst [vmem:[#allocation10_spill] sm:$0xff] %v19601_v54  ;;  %v435_v4 = vshrl.u32 %v13860_v52, 16  ;;  %v424_v6 = vsel %vm15726_vm10, %v416_v56, %v423_v59  ;;  %735 = vst [vmem:[#allocation2 + $0xc] sm:$0xf] %v734_v1  ;;  %v740_v7 = vsel %vm15708_vm8, %v425_v60, %v739_v57  ;;  %v429_v8 = vrot.slane %v427_v61, 7  ;;  %v287_v35 = vld [vmem:[%s15687_s17 + $0x48] sm:$0xff] }
  0x35   : > { %v438_v9 = vshll.u32 %v13860_v52, 16  ;;  %14418 = vmatprep.mubr.bf16.mxu1 %v13073_v0  ;;  %736 = vst [vmem:[#allocation2 + $0x10] sm:$0xf] %v424_v6  ;;  %741 = vst [vmem:[#allocation2 + $0x14] sm:$0x1] %v740_v7  ;;  %v13861_v14 = vpack.c.bf16 %v282_v62, %v282_v62  ;;  %v13862_v15 = vpack.c.bf16 %v283_v63, %v283_v63  ;;  %v15281_v39 = vld [vmem:[%s19573_s1 + $0xb0] sm:$0xff]  }
  0x36   : > { %v437_v12 = vrot.slane %v435_v4, 7  ;;  %v13863_v16 = vpack.c.bf16 %v284_v5, %v284_v5  ;;  %v432_v17 = vor.u32 %v430_v3, %v429_v8  ;;  %v433_v18 = vrot.slane %v429_v8, 4  ;;  %v746_v19 = vld [vmem:[#allocation2 + $0x20] sm:$0x1]  ;;  %v749_v33 = vld [vmem:[#allocation2 + $0x24] sm:$0xf] }
  0x37   : > { %v15748_v20 = vpack.c.bf16 %v285_v10, %v285_v10  ;;  %v15750_v21 = vpack.c.bf16 %v286_v11, %v286_v11  ;;  %v444_v24 = vshrl.u32 %v13861_v14, 16  ;;  %v447_v25 = vshll.u32 %v13861_v14, 16  ;;  %v753_v38 = vld [vmem:[#allocation2 + $0x2c] sm:$0x1]  ;;  %v756_v47 = vld [vmem:[#allocation2 + $0x30] sm:$0xf] }
  0x38   : > { %v440_v22 = vor.u32 %v438_v9, %v437_v12  ;;  %v442_v23 = vrot.slane %v437_v12, 4  ;;  %v743_v26 = vsel %vm15718_vm9, %v432_v17, %v742_v13  ;;  %v452_v27 = vshrl.u32 %v13862_v15, 16  ;;  %v288_v50 = vld [vmem:[%s15687_s17 + $0x50] sm:$0xff]  ;;  %v289_v4 = vld [vmem:[%s15687_s17 + $0x58] sm:$0xff]  ;;  %v15284_v9 = vld [vmem:[%s19573_s1 + $0xa8] sm:$0xff]   ;;  %s19316_s6 = scalar_lea.vmem [#allocation4], %s12998_s30 }
  0x39   : > { %v455_v28 = vshll.u32 %v13862_v15, 16  ;;  %v461_v29 = vshrl.u32 %v13863_v16, 16  ;;  %744 = vst [vmem:[#allocation2 + $0x18] sm:$0xf] %v743_v26  ;;  %v446_v32 = vrot.slane %v444_v24, 7  ;;  %v464_v34 = vshll.u32 %v13863_v16, 16 }
  0x3a   : > { %v441_v30 = vsel %vm15726_vm10, %v433_v18, %v440_v22  ;;  %v747_v31 = vsel %vm15708_vm8, %v442_v23, %v746_v19  ;;  %v454_v36 = vrot.slane %v452_v27, 7  ;;  %v469_v41 = vshrl.u32 %v15748_v20, 16  ;;  %s13921_s7 = sshll.u32 %s15619_s22, 12  ;;  %s12932_s8 = sshll.u32 %s19316_s6, 4  ;;  %s19526_s8 = int_to_ptr.vmem [resolvable:$true] %s12932_s8 }
  0x3b   : > { %745 = vst [vmem:[#allocation2 + $0x1c] sm:$0xf] %v441_v30  ;;  %748 = vst [vmem:[#allocation2 + $0x20] sm:$0x1] %v747_v31  ;;  %v15763_v40 = vrot.slane %v461_v29, 7  ;;  %v472_v42 = vshll.u32 %v15748_v20, 16  ;;  %v449_v45 = vor.u32 %v447_v25, %v446_v32  ;;  %v15770_v57 = vpack.c.bf16 %v287_v35, %v287_v35  ;;  %s19524_s11 = scalar_lea.hbm %s19577_s5, %s13921_s7 }
  0x3c   : > { %v1331_v44 = vld [vmem:[#allocation2 + $0xc] sm:$0xf]  ;;  %v450_v46 = vrot.slane %v446_v32, 4  ;;  %v478_v48 = vshrl.u32 %v15750_v21, 16  ;;  %v1332_v52 = vld [vmem:[#allocation2 + $0x10] sm:$0xf]  ;;  %v457_v55 = vor.u32 %v455_v28, %v454_v36  ;;  %v15786_v14 = vpack.c.bf16 %v288_v50, %v288_v50 }
  0x3d   : > { %v15277_v51 = vld [vmem:[#allocation2 + $0xc] sm:$0xff]   ;;  %v1404_v53 = vshrl.u32 %v1331_v44, 16  ;;  %v466_v56 = vor.u32 %v464_v34, %v15763_v40  ;;  %v1333_v58 = vld [vmem:[#allocation2 + $0x14] sm:$0x1]  ;;  %v1407_v59 = vshll.u32 %v1331_v44, 16  ;;  %v1413_v60 = vshll.u32 %v1332_v52, 16 }
  0x3e   : > { %v1417_v61 = vshrl.u32 %v1332_v52, 16  ;;  %v459_v62 = vrot.slane %v454_v36, 4  ;;  %14371 = vmatmul.mubr.bf16.vlgmr.msra.gmra.mxu0 %v15277_v51  ;;  %v1423_v0 = vshll.u32 %v1333_v58, 16  ;;  %v458_v1 = vsel %vm15726_vm10, %v450_v46, %v457_v55  ;;  %v760_v30 = vld [vmem:[#allocation2 + $0x38] sm:$0x1]  ;;  %v290_v35 = vld [vmem:[%s15687_s17 + $0x60] sm:$0xff] }
  0x3f   : > { %v1406_v63 = vrot.slane %v1404_v53, 4  ;;  %v750_v3 = vsel %vm15718_vm9, %v449_v45, %v749_v33  ;;  %v1409_v5 = vrot.slane %v1407_v59, 5  ;;  %v1415_v6 = vrot.slane %v1413_v60, 5  ;;  %14451 = vmatpush3.bf16.msra.mxu0 %v15739_v2  ;;  %752 = vst [vmem:[#allocation2 + $0x28] sm:$0xf] %v458_v1  ;;  %v291_v36 = vld [vmem:[%s15687_s17 + $0x68] sm:$0xff] }
  0x40   : > { %v1419_v7 = vrot.slane %v1417_v61, 4  ;;  %751 = vst [vmem:[#allocation2 + $0x24] sm:$0xf] %v750_v3  ;;  %v754_v8 = vsel %vm15708_vm8, %v459_v62, %v753_v38  ;;  %v1425_v10 = vrot.slane %v1423_v0, 5  ;;  %v1334_v11 = vld [vmem:[#allocation2 + $0x18] sm:$0xf]  ;;  %14452 = vmatprep.subr.bf16.mxu0 %v15281_v39  ;;  %v757_v13 = vsel %vm15718_vm9, %v466_v56, %v756_v47 }
  0x41   : > { %755 = vst [vmem:[#allocation2 + $0x2c] sm:$0x1] %v754_v8  ;;  %v467_v12 = vrot.slane %v15763_v40, 4  ;;  %v1410_v2 = vor.u32 %v1409_v5, %v1406_v63  ;;  %v1428_v18 = vshrl.u32 %v1334_v11, 16  ;;  %758 = vst [vmem:[#allocation2 + $0x30] sm:$0xf] %v757_v13  ;;  %v15788_v19 = vpack.c.bf16 %v289_v4, %v289_v4 }
  0x42   : > { %v1420_v15 = vor.u32 %v1419_v7, %v1415_v6  ;;  %v15279_v16 = vld [vmem:[#allocation2 + $0x18] sm:$0xff]   ;;  %v1336_v20 = vld [vmem:[#allocation2 + $0x20] sm:$0x1]  ;;  %v1431_v22 = vshll.u32 %v1334_v11, 16  ;;  %v471_v25 = vrot.slane %v469_v41, 7  ;;  %v292_v38 = vld [vmem:[%s15687_s17 + $0x70] sm:$0xff]  ;;  %v15807_v59 = vpack.c.bf16 %v290_v35, %v290_v35 }
  0x43   : > { %v1335_v17 = vld [vmem:[#allocation2 + $0x1c] sm:$0xf]  ;;  %v1411_v26 = vrot.slane %v1410_v2, 4  ;;  %14374 = vmatprep.mubr.bf16.mxu0 %v15279_v16  ;;  %v1430_v28 = vrot.slane %v1428_v18, 4  ;;  %v1447_v29 = vshll.u32 %v1336_v20, 16  ;;  %14453 = vmatpush3.bf16.msra.mxu0 %v15281_v39  ;;  %v15287_v39 = vld [vmem:[%s19573_s1 + $0xa0] sm:$0xff]   ;;  %v15809_v60 = vpack.c.bf16 %v291_v36, %v291_v36 }
  0x44   : > { %v1437_v23 = vshll.u32 %v1335_v17, 16  ;;  %v1441_v24 = vshrl.u32 %v1335_v17, 16  ;;  %v1421_v27 = vrot.slane %v1420_v15, 4  ;;  %v1433_v31 = vrot.slane %v1431_v22, 5  ;;  %14454 = vmatprep.subr.bf16.mxu0 %v15284_v9  ;;  %v15290_v52 = vld [vmem:[%s19573_s1 + $0x98] sm:$0xff]   ;;  %v294_v13 = vld [vmem:[%s15687_s17 + $0x80] sm:$0xff] }
  0x45   : > { %v474_v34 = vor.u32 %v472_v42, %v471_v25  ;;  %v1416_v40 = vsel %vm15702_vm6, %v1411_v26, %v1415_v6  ;;  %v1449_v44 = vrot.slane %v1447_v29, 5  ;;  %v476_v45 = vrot.slane %v471_v25, 4  ;;  %v15292_v25 = vld [vmem:[%s19573_s1 + $0xf0] sm:$0xff]   ;;  %s15502_s22 = scalar_lea.vmem %s19526_s8, 4096  ;;  %s15565_s12 = smov [#allocation4]  }
  0x46   : > { %v1439_v32 = vrot.slane %v1437_v23, 5  ;;  %v1443_v33 = vrot.slane %v1441_v24, 4  ;;  %v1426_v41 = vsel %vm15702_vm6, %v1421_v27, %v1425_v10  ;;  %v1434_v47 = vor.u32 %v1433_v31, %v1430_v28  ;;  %v1338_v55 = vld [vmem:[#allocation2 + $0x28] sm:$0xf]  ;;  %v763_v24 = vld [vmem:[#allocation2 + $0x3c] sm:$0xf]  ;;  %p15503_p11 = scmp.ne.s32.totalorder %s19526_s8, %s15502_s22 }
  0x47   : > { %v13074_v46 = vcombine.low %v1416_v40, %v1426_v41  ;;  %v15280_v42 = vld [vmem:[#allocation2 + $0x24] sm:$0xff]   ;;  %v475_v51 = vsel %vm15726_vm10, %v467_v12, %v474_v34  ;;  %v761_v58 = vsel %vm15708_vm8, %v476_v45, %v760_v30  ;;  %14455 = vmatpush3.bf16.msra.mxu0 %v15284_v9  ;;  %v15811_v61 = vpack.c.bf16 %v292_v38, %v292_v38  ;;  %v293_v12 = vld [vmem:[%s15687_s17 + $0x78] sm:$0xff]  ;;  %s15506_s13 = sshll.u32 %s15565_s12, 4  ;;  %s15507_s13 = int_to_ptr.vmem [resolvable:$false] %s15506_s13 }
  0x48   : > { %v1444_v50 = vor.u32 %v1443_v33, %v1439_v32  ;;  %v1337_v53 = vld [vmem:[#allocation2 + $0x24] sm:$0xf]  ;;  %v1339_v56 = vld [vmem:[#allocation2 + $0x2c] sm:$0x1]  ;;  %759 = vst [vmem:[#allocation2 + $0x34] sm:$0xf] %v475_v51  ;;  %14375 = vmatmul.mubr.bf16.gmra.mxu0 %v15280_v42  ;;  %14456 = vmatprep.subr.bf16.mxu0 %v15287_v39  ;;  %v15834_v33 = vpack.c.bf16 %v293_v12, %v293_v12  ;;  %p15504_p12 = pnand %p15503_p11, %p15636_p5  ;;  %p15509_p0 = scmp.lt.s32.totalorder %s19526_s8, %s15507_s13 }
  0x49   : > { %14419 = vmatmul.mubr.bf16.vlgmr.msra.gmra.mxu1 %v13074_v46  ;;  %v1435_v62 = vrot.slane %v1434_v47, 4  ;;  %v1452_v0 = vshrl.u32 %v1337_v53, 16  ;;  %v1455_v1 = vshll.u32 %v1337_v53, 16  ;;  %762 = vst [vmem:[#allocation2 + $0x38] sm:$0x1] %v761_v58  ;;  %v1461_v3 = vshll.u32 %v1338_v55, 16 }
  0x4a   : > { %v1445_v63 = vrot.slane %v1444_v50, 4  ;;  %v1465_v4 = vshrl.u32 %v1338_v55, 16  ;;  %v1471_v5 = vshll.u32 %v1339_v56, 16  ;;  %v1340_v6 = vld [vmem:[#allocation2 + $0x30] sm:$0xf]  ;;  %v15815_v7 = vrot.slane %v478_v48, 7  ;;  %p15505_p13 = pneg %p15504_p12 }
  0x4b   : > { %v1440_v8 = vsel %vm15702_vm6, %v1435_v62, %v1439_v32  ;;  %v1454_v10 = vrot.slane %v1452_v0, 4  ;;  %v1457_v11 = vrot.slane %v1455_v1, 5  ;;  %v1463_v15 = vrot.slane %v1461_v3, 5  ;;  %14457 = vmatpush3.bf16.msra.mxu0 %v15287_v39  ;;  %v15291_v48 = vld [vmem:[%s19573_s1 + $0xf8] sm:$0xff]   ;;  %v767_v56 = vld [vmem:[#allocation2 + $0x44] sm:$0x1] }
  0x4c   : > { %v1450_v9 = vsel %vm15702_vm6, %v1445_v63, %v1449_v44  ;;  %v1467_v16 = vrot.slane %v1465_v4, 4  ;;  %v1473_v17 = vrot.slane %v1471_v5, 5  ;;  %v1476_v20 = vshrl.u32 %v1340_v6, 16  ;;  %14458 = vmatprep.subr.bf16.mxu0 %v15290_v52  ;;  %14498 = vmatprep.subr.bf16.mxu1 %v15291_v48  ;;  %v15295_v1 = vld [vmem:[%s19573_s1 + $0x90] sm:$0xff]   ;;  %s15508_s14 = scalar_lea.vmem %s15507_s13, 8192 }
  0x4d   : > { %v13075_v2 = vcombine.low %v1440_v8, %v1450_v9  ;;  %v1458_v18 = vor.u32 %v1457_v11, %v1454_v10  ;;  %v1479_v22 = vshll.u32 %v1340_v6, 16  ;;  %v481_v23 = vshll.u32 %v15750_v21, 16  ;;  %14499 = vmatpush3.bf16.msra.mxu1 %v15291_v48  ;;  %v774_v10 = vld [vmem:[#allocation2 + $0x50] sm:$0x1]  ;;  %p15510_p1 = scmp.lt.s32.totalorder %s15508_s14, %s15502_s22 }
  0x4e   : > { %v1468_v26 = vor.u32 %v1467_v16, %v1463_v15  ;;  %v484_v27 = vrot.slane %v15815_v7, 4  ;;  %v486_v28 = vshrl.u32 %v15770_v57, 16  ;;  %v489_v29 = vshll.u32 %v15770_v57, 16  ;;  %14500 = vmatprep.subr.bf16.mxu1 %v15292_v25 }
  0x4f   : > { %14422 = vmatprep.mubr.bf16.mxu1 %v13075_v2  ;;  %v1459_v30 = vrot.slane %v1458_v18, 4  ;;  %v15282_v31 = vld [vmem:[#allocation2 + $0x30] sm:$0xff]   ;;  %v483_v21 = vor.u32 %v481_v23, %v15815_v7  ;;  %v15836_v34 = vpack.c.bf16 %v294_v13, %v294_v13  ;;  %v1478_v38 = vrot.slane %v1476_v20, 4  ;;  %14459 = vmatpush3.bf16.msra.mxu0 %v15290_v52  ;;  %v770_v7 = vld [vmem:[#allocation2 + $0x48] sm:$0xf]  ;;  %v297_v23 = vld [vmem:[%s15687_s17 + $0x98] sm:$0xff]  ;;  %p15511_p2 = por %p15510_p1, %p15509_p0 }
  0x50   : > { %v1341_v32 = vld [vmem:[#allocation2 + $0x34] sm:$0xf]  ;;  %v1469_v35 = vrot.slane %v1468_v26, 4  ;;  %v1342_v36 = vld [vmem:[#allocation2 + $0x38] sm:$0x1]  ;;  %v1481_v40 = vrot.slane %v1479_v22, 5  ;;  %14378 = vmatprep.mubr.bf16.mxu0 %v15282_v31  ;;  %14460 = vmatprep.subr.bf16.mxu0 %v15295_v1 }
  0x51   : > { %v1485_v41 = vshll.u32 %v1341_v32, 16  ;;  %v1464_v57 = vsel %vm15702_vm6, %v1459_v30, %v1463_v15  ;;  %v1489_v44 = vshrl.u32 %v1341_v32, 16  ;;  %v1495_v45 = vshll.u32 %v1342_v36, 16  ;;  %14501 = vmatpush3.bf16.msra.mxu1 %v15292_v25  ;;  %v777_v15 = vld [vmem:[#allocation2 + $0x54] sm:$0xf]  ;;  %v295_v20 = vld [vmem:[%s15687_s17 + $0x88] sm:$0xff]  ;;  %p15512_p3 = pnand %p15511_p2, %p15505_p13 }
  0x52   : > { %v488_v39 = vrot.slane %v486_v28, 7  ;;  %v1474_v46 = vsel %vm15702_vm6, %v1469_v35, %v1473_v17  ;;  %v1482_v47 = vor.u32 %v1481_v40, %v1478_v38  ;;  %v764_v42 = vsel %vm15718_vm9, %v483_v21, %v763_v24  ;;  %v296_v22 = vld [vmem:[%s15687_s17 + $0x90] sm:$0xff]  ;;  %v15296_v24 = vld [vmem:[%s19573_s1 + $0xe8] sm:$0xff]   ;;  %v15297_v32 = vld [vmem:[%s19573_s1 + $0xe0] sm:$0xff]  }
  0x53   : > { %v1487_v50 = vrot.slane %v1485_v41, 5  ;;  %v13076_v51 = vcombine.low %v1464_v57, %v1474_v46  ;;  %v1491_v53 = vrot.slane %v1489_v44, 4  ;;  %v1497_v55 = vrot.slane %v1495_v45, 5  ;;  %765 = vst [vmem:[#allocation2 + $0x3c] sm:$0xf] %v764_v42  ;;  %14461 = vmatpush3.bf16.msra.mxu0 %v15295_v1  ;;  %14502 = vmatprep.subr.bf16.mxu1 %v15296_v24 }
  0x54   : > { %v491_v52 = vor.u32 %v489_v29, %v488_v39  ;;  %v1483_v58 = vrot.slane %v1482_v47, 4  ;;  %v493_v62 = vrot.slane %v488_v39, 4  ;;  %v495_v63 = vshrl.u32 %v15786_v14, 16  ;;  %v781_v44 = vld [vmem:[#allocation2 + $0x5c] sm:$0x1] }
  0x55   : > { %v498_v0 = vshll.u32 %v15786_v14, 16  ;;  %14423 = vmatmul.mubr.bf16.gmra.mxu1 %v13076_v51  ;;  %v1492_v3 = vor.u32 %v1491_v53, %v1487_v50  ;;  %v503_v5 = vshrl.u32 %v15788_v19, 16  ;;  %v506_v6 = vshll.u32 %v15788_v19, 16 }
  0x56   : > { %v492_v4 = vsel %vm15726_vm10, %v484_v27, %v491_v52  ;;  %v1488_v8 = vsel %vm15702_vm6, %v1483_v58, %v1487_v50  ;;  %v768_v14 = vsel %vm15708_vm8, %v493_v62, %v767_v56  ;;  %v497_v9 = vrot.slane %v495_v63, 7  ;;  %14503 = vmatpush3.bf16.msra.mxu1 %v15296_v24  ;;  %v784_v62 = vld [vmem:[#allocation2 + $0x60] sm:$0xf]  ;;  %v15300_v63 = vld [vmem:[%s19573_s1 + $0x88] sm:$0xff]  }
  0x57   : > { %766 = vst [vmem:[#allocation2 + $0x40] sm:$0xf] %v492_v4  ;;  %v512_v11 = vshrl.u32 %v15807_v59, 16  ;;  %v1493_v12 = vrot.slane %v1492_v3, 4  ;;  %769 = vst [vmem:[#allocation2 + $0x44] sm:$0x1] %v768_v14  ;;  %14504 = vmatprep.subr.bf16.mxu1 %v15297_v32  ;;  %v15881_v50 = vpack.c.bf16 %v295_v20, %v295_v20  ;;  %v15883_v42 = vpack.c.bf16 %v296_v22, %v296_v22 }
  0x58   : > { %v505_v13 = vrot.slane %v503_v5, 7  ;;  %v515_v19 = vshll.u32 %v15807_v59, 16  ;;  %v520_v2 = vshrl.u32 %v15809_v60, 16  ;;  %v500_v16 = vor.u32 %v498_v0, %v497_v9  ;;  %v298_v5 = vld [vmem:[%s15687_s17 + $0xa0] sm:$0xff]  ;;  %14462 = vmatprep.subr.bf16.mxu0 %v15300_v63 }
  0x59   : > { %v501_v17 = vrot.slane %v497_v9, 4  ;;  %v514_v48 = vrot.slane %v512_v11, 7  ;;  %v523_v18 = vshll.u32 %v15809_v60, 16  ;;  %v1498_v25 = vsel %vm15702_vm6, %v1493_v12, %v1497_v55  ;;  %v300_v11 = vld [vmem:[%s15687_s17 + $0xb0] sm:$0xff]  ;;  %14463 = vmatpush3.bf16.msra.mxu0 %v15300_v63 }
  0x5a   : > { %v508_v59 = vor.u32 %v506_v6, %v505_v13  ;;  %v510_v26 = vrot.slane %v505_v13, 4  ;;  %v522_v27 = vrot.slane %v520_v2, 7  ;;  %v13077_v28 = vcombine.low %v1488_v8, %v1498_v25  ;;  %v1343_v29 = vld [vmem:[#allocation2 + $0x3c] sm:$0xf]  ;;  %14505 = vmatpush3.bf16.msra.mxu1 %v15297_v32  ;;  %v15302_v12 = vld [vmem:[%s19573_s1 + $0xd0] sm:$0xff]  }
  0x5b   : > { %v771_v30 = vsel %vm15718_vm9, %v500_v16, %v770_v7  ;;  %v517_v31 = vor.u32 %v515_v19, %v514_v48  ;;  %v518_v60 = vrot.slane %v514_v48, 4  ;;  %v1500_v21 = vshrl.u32 %v1343_v29, 16  ;;  %v15301_v6 = vld [vmem:[%s19573_s1 + $0xd8] sm:$0xff]  }
  0x5c   : > { %v1503_v35 = vshll.u32 %v1343_v29, 16  ;;  %v509_v36 = vsel %vm15726_vm10, %v501_v17, %v508_v59  ;;  %772 = vst [vmem:[#allocation2 + $0x48] sm:$0xf] %v771_v30  ;;  %v775_v38 = vsel %vm15708_vm8, %v510_v26, %v774_v10  ;;  %14426 = vmatprep.mubr.bf16.mxu1 %v13077_v28  ;;  %v525_v40 = vor.u32 %v523_v18, %v522_v27  ;;  %v299_v10 = vld [vmem:[%s15687_s17 + $0xa8] sm:$0xff] }
  0x5d   : > { %773 = vst [vmem:[#allocation2 + $0x4c] sm:$0xf] %v509_v36  ;;  %776 = vst [vmem:[#allocation2 + $0x50] sm:$0x1] %v775_v38  ;;  %v527_v41 = vrot.slane %v522_v27, 4  ;;  %v778_v57 = vsel %vm15718_vm9, %v517_v31, %v777_v15  ;;  %v529_v45 = vshrl.u32 %v15811_v61, 16  ;;  %v15885_v51 = vpack.c.bf16 %v297_v23, %v297_v23  ;;  %14506 = vmatprep.subr.bf16.mxu1 %v15301_v6 }
  0x5e   : > { %v15283_v39 = vld [vmem:[#allocation2 + $0x3c] sm:$0xff]   ;;  %v1502_v47 = vrot.slane %v1500_v21, 4  ;;  %779 = vst [vmem:[#allocation2 + $0x54] sm:$0xf] %v778_v57  ;;  %v1345_v53 = vld [vmem:[#allocation2 + $0x44] sm:$0x1]  ;;  %v526_v58 = vsel %vm15726_vm10, %v518_v60, %v525_v40  ;;  %v15906_v18 = vpack.c.bf16 %v298_v5, %v298_v5  ;;  %v15910_v25 = vpack.c.bf16 %v299_v10, %v299_v10  ;;  %14507 = vmatpush3.bf16.msra.mxu1 %v15301_v6 }
  0x5f   : > { %v1344_v46 = vld [vmem:[#allocation2 + $0x40] sm:$0xf]  ;;  %v1505_v55 = vrot.slane %v1503_v35, 5  ;;  %14379 = vmatmul.mubr.bf16.gmra.mxu0 %v15283_v39  ;;  %v1519_v0 = vshll.u32 %v1345_v53, 16  ;;  %780 = vst [vmem:[#allocation2 + $0x58] sm:$0xf] %v526_v58  ;;  %v782_v1 = vsel %vm15708_vm8, %v527_v41, %v781_v44  ;;  %v15912_v59 = vpack.c.bf16 %v300_v11, %v300_v11  ;;  %14508 = vmatprep.subr.bf16.mxu1 %v15302_v12 }
  0x60   : > { %v1509_v52 = vshll.u32 %v1344_v46, 16  ;;  %v1513_v56 = vshrl.u32 %v1344_v46, 16  ;;  %v531_v3 = vrot.slane %v529_v45, 7  ;;  %v532_v4 = vshll.u32 %v15811_v61, 16  ;;  %783 = vst [vmem:[#allocation2 + $0x5c] sm:$0x1] %v782_v1 }
  0x61   : > { %v1506_v7 = vor.u32 %v1505_v55, %v1502_v47  ;;  %v537_v9 = vshrl.u32 %v15834_v33, 16  ;;  %v1521_v61 = vrot.slane %v1519_v0, 5  ;;  %v540_v2 = vshll.u32 %v15834_v33, 16  ;;  %v788_v30 = vld [vmem:[#allocation2 + $0x68] sm:$0x1] }
  0x62   : > { %v1511_v8 = vrot.slane %v1509_v52, 5  ;;  %v1515_v14 = vrot.slane %v1513_v56, 4  ;;  %v534_v13 = vor.u32 %v532_v4, %v531_v3  ;;  %v535_v19 = vrot.slane %v531_v3, 4  ;;  %14509 = vmatpush3.bf16.msra.mxu1 %v15302_v12 }
  0x63   : > { %v1507_v15 = vrot.slane %v1506_v7, 4  ;;  %v1346_v17 = vld [vmem:[#allocation2 + $0x48] sm:$0xf]  ;;  %v539_v48 = vrot.slane %v537_v9, 7  ;;  %v301_v7 = vld [vmem:[%s15687_s17 + $0xb8] sm:$0xff]  ;;  %v546_v12 = vshrl.u32 %v15836_v34, 16 }
  0x64   : > { %v1516_v16 = vor.u32 %v1515_v14, %v1511_v8  ;;  %v15285_v20 = vld [vmem:[#allocation2 + $0x48] sm:$0xff]   ;;  %v1524_v23 = vshrl.u32 %v1346_v17, 16  ;;  %v785_v24 = vsel %vm15718_vm9, %v534_v13, %v784_v62  ;;  %v1348_v27 = vld [vmem:[#allocation2 + $0x50] sm:$0x1]  ;;  %v1527_v28 = vshll.u32 %v1346_v17, 16 }
  0x65   : > { %v1347_v22 = vld [vmem:[#allocation2 + $0x4c] sm:$0xf]  ;;  %v1512_v33 = vsel %vm15702_vm6, %v1507_v15, %v1511_v8  ;;  %786 = vst [vmem:[#allocation2 + $0x60] sm:$0xf] %v785_v24  ;;  %14382 = vmatprep.mubr.bf16.mxu0 %v15285_v20  ;;  %v1543_v32 = vshll.u32 %v1348_v27, 16  ;;  %v542_v21 = vor.u32 %v540_v2, %v539_v48  ;;  %v544_v41 = vrot.slane %v539_v48, 4 }
  0x66   : > { %v1517_v26 = vrot.slane %v1516_v16, 4  ;;  %v1533_v29 = vshll.u32 %v1347_v22, 16  ;;  %v1526_v31 = vrot.slane %v1524_v23, 4  ;;  %v1537_v60 = vshrl.u32 %v1347_v22, 16  ;;  %v15286_v40 = vld [vmem:[#allocation2 + $0x54] sm:$0xff]   ;;  %v302_v8 = vld [vmem:[%s15687_s17 + $0xc0] sm:$0xff] }
  0x67   : > { %v1529_v36 = vrot.slane %v1527_v28, 5  ;;  %v1545_v45 = vrot.slane %v1543_v32, 5  ;;  %v1349_v39 = vld [vmem:[#allocation2 + $0x54] sm:$0xf]  ;;  %v1350_v46 = vld [vmem:[#allocation2 + $0x58] sm:$0xf]  ;;  %v543_v47 = vsel %vm15726_vm10, %v535_v19, %v542_v21  ;;  %14383 = vmatmul.mubr.bf16.gmra.mxu0 %v15286_v40  ;;  %v789_v1 = vsel %vm15708_vm8, %v544_v41, %v788_v30 }
  0x68   : > { %v1522_v35 = vsel %vm15702_vm6, %v1517_v26, %v1521_v61  ;;  %v1535_v38 = vrot.slane %v1533_v29, 5  ;;  %v1539_v44 = vrot.slane %v1537_v60, 4  ;;  %v1351_v55 = vld [vmem:[#allocation2 + $0x5c] sm:$0x1]  ;;  %v1548_v52 = vshrl.u32 %v1349_v39, 16  ;;  %v303_v14 = vld [vmem:[%s15687_s17 + $0xc8] sm:$0xff] }
  0x69   : > { %v13078_v57 = vcombine.low %v1512_v33, %v1522_v35  ;;  %v1530_v53 = vor.u32 %v1529_v36, %v1526_v31  ;;  %v1551_v56 = vshll.u32 %v1349_v39, 16  ;;  %v1557_v58 = vshll.u32 %v1350_v46, 16  ;;  %787 = vst [vmem:[#allocation2 + $0x64] sm:$0xf] %v543_v47  ;;  %790 = vst [vmem:[#allocation2 + $0x68] sm:$0x1] %v789_v1 }
  0x6a   : > { %v1540_v62 = vor.u32 %v1539_v44, %v1535_v38  ;;  %v1561_v63 = vshrl.u32 %v1350_v46, 16  ;;  %v1567_v0 = vshll.u32 %v1351_v55, 16  ;;  %v1550_v4 = vrot.slane %v1548_v52, 4  ;;  %v15305_v26 = vld [vmem:[%s19573_s1 + $0x80] sm:$0xff]   ;;  %v791_v36 = vld [vmem:[#allocation2 + $0x6c] sm:$0xf] }
  0x6b   : > { %14427 = vmatmul.mubr.bf16.gmra.mxu1 %v13078_v57  ;;  %v1531_v3 = vrot.slane %v1530_v53, 4  ;;  %v1553_v5 = vrot.slane %v1551_v56, 5  ;;  %v1559_v6 = vrot.slane %v1557_v58, 5  ;;  %v549_v2 = vshll.u32 %v15836_v34, 16  ;;  %14464 = vmatprep.subr.bf16.mxu0 %v15305_v26  ;;  %v795_v39 = vld [vmem:[#allocation2 + $0x74] sm:$0x1] }
  0x6c   : > { %v1541_v9 = vrot.slane %v1540_v62, 4  ;;  %v1563_v10 = vrot.slane %v1561_v63, 4  ;;  %v1569_v11 = vrot.slane %v1567_v0, 5  ;;  %v1352_v19 = vld [vmem:[#allocation2 + $0x60] sm:$0xf]  ;;  %v554_v15 = vshrl.u32 %v15881_v50, 16  ;;  %14465 = vmatpush3.bf16.msra.mxu0 %v15305_v26 }
  0x6d   : > { %v1536_v61 = vsel %vm15702_vm6, %v1531_v3, %v1535_v38  ;;  %v1554_v13 = vor.u32 %v1553_v5, %v1550_v4  ;;  %v1572_v48 = vshrl.u32 %v1352_v19, 16  ;;  %v1575_v20 = vshll.u32 %v1352_v19, 16  ;;  %v15306_v38 = vld [vmem:[%s19573_s1 + $0xc8] sm:$0xff]   ;;  %v15307_v63 = vld [vmem:[%s19573_s1 + $0xc0] sm:$0xff]  }
  0x6e   : > { %v1546_v16 = vsel %vm15702_vm6, %v1541_v9, %v1545_v45  ;;  %v1564_v17 = vor.u32 %v1563_v10, %v1559_v6  ;;  %v548_v24 = vrot.slane %v546_v12, 7  ;;  %v556_v33 = vrot.slane %v554_v15, 7  ;;  %14510 = vmatprep.subr.bf16.mxu1 %v15306_v38 }
  0x6f   : > { %v13079_v22 = vcombine.low %v1536_v61, %v1546_v16  ;;  %v1555_v23 = vrot.slane %v1554_v13, 4  ;;  %v15935_v34 = vpack.c.bf16 %v301_v7, %v301_v7  ;;  %v15937_v30 = vpack.c.bf16 %v302_v8, %v302_v8  ;;  %14511 = vmatpush3.bf16.msra.mxu1 %v15306_v38  ;;  %v15962_v8 = vld [vmem:[%s19573_s1 + $0x138] sm:$0xff]   ;;  %v802_v16 = vld [vmem:[#allocation2 + $0x80] sm:$0x1] }
  0x70   : > { %v1565_v27 = vrot.slane %v1564_v17, 4  ;;  %v15288_v28 = vld [vmem:[#allocation2 + $0x60] sm:$0xff]   ;;  %v15939_v31 = vpack.c.bf16 %v303_v14, %v303_v14  ;;  %v1574_v32 = vrot.slane %v1572_v48, 4  ;;  %v1577_v21 = vrot.slane %v1575_v20, 5  ;;  %v1354_v41 = vld [vmem:[#allocation2 + $0x68] sm:$0x1]  ;;  %14512 = vmatprep.subr.bf16.mxu1 %v15307_v63  ;;  %14546 = vmatprep.subr.bf16.mxu0 %v15962_v8 }
  0x71   : > { %v1353_v29 = vld [vmem:[#allocation2 + $0x64] sm:$0xf]  ;;  %14430 = vmatprep.mubr.bf16.mxu1 %v13079_v22  ;;  %v1560_v60 = vsel %vm15702_vm6, %v1555_v23, %v1559_v6  ;;  %14386 = vmatprep.mubr.bf16.mxu0 %v15288_v28  ;;  %v551_v44 = vor.u32 %v549_v2, %v548_v24  ;;  %v552_v45 = vrot.slane %v548_v24, 4  ;;  %v1591_v55 = vshll.u32 %v1354_v41, 16  ;;  %v798_v13 = vld [vmem:[#allocation2 + $0x78] sm:$0xf] }
  0x72   : > { %v1581_v35 = vshll.u32 %v1353_v29, 16  ;;  %v1570_v40 = vsel %vm15702_vm6, %v1565_v27, %v1569_v11  ;;  %v1585_v57 = vshrl.u32 %v1353_v29, 16  ;;  %v1578_v47 = vor.u32 %v1577_v21, %v1574_v32  ;;  %v805_v24 = vld [vmem:[#allocation2 + $0x84] sm:$0xf]  ;;  %v809_v28 = vld [vmem:[#allocation2 + $0x8c] sm:$0x1] }
  0x73   : > { %v13080_v46 = vcombine.low %v1560_v60, %v1570_v40  ;;  %v557_v56 = vshll.u32 %v15881_v50, 16  ;;  %v561_v58 = vrot.slane %v556_v33, 4  ;;  %v792_v62 = vsel %vm15718_vm9, %v551_v44, %v791_v36  ;;  %14513 = vmatpush3.bf16.msra.mxu1 %v15307_v63  ;;  %v812_v41 = vld [vmem:[#allocation2 + $0x90] sm:$0xf] }
  0x74   : > { %v1583_v53 = vrot.slane %v1581_v35, 5  ;;  %v1587_v52 = vrot.slane %v1585_v57, 4  ;;  %v1579_v0 = vrot.slane %v1578_v47, 4  ;;  %v1593_v1 = vrot.slane %v1591_v55, 5  ;;  %793 = vst [vmem:[#allocation2 + $0x6c] sm:$0xf] %v792_v62 }
  0x75   : > { %14431 = vmatmul.mubr.bf16.gmra.mxu1 %v13080_v46  ;;  %v563_v3 = vshrl.u32 %v15883_v42, 16  ;;  %v566_v4 = vshll.u32 %v15883_v42, 16  ;;  %v559_v6 = vor.u32 %v557_v56, %v556_v33  ;;  %v796_v50 = vsel %vm15708_vm8, %v561_v58, %v795_v39  ;;  %v304_v56 = vld [vmem:[%s15687_s17 + $0xd0] sm:$0xff] }
  0x76   : > { %v1588_v5 = vor.u32 %v1587_v52, %v1583_v53  ;;  %v571_v7 = vshrl.u32 %v15885_v51, 16  ;;  %v1584_v14 = vsel %vm15702_vm6, %v1579_v0, %v1583_v53  ;;  %797 = vst [vmem:[#allocation2 + $0x74] sm:$0x1] %v796_v50  ;;  %v574_v42 = vshll.u32 %v15885_v51, 16  ;;  %v305_v50 = vld [vmem:[%s15687_s17 + $0xd8] sm:$0xff] }
  0x77   : > { %v565_v9 = vrot.slane %v563_v3, 7  ;;  %v580_v10 = vshrl.u32 %v15906_v18, 16  ;;  %v560_v12 = vsel %vm15726_vm10, %v552_v45, %v559_v6  ;;  %v583_v19 = vshll.u32 %v15906_v18, 16 }
  0x78   : > { %v1589_v11 = vrot.slane %v1588_v5, 4  ;;  %v573_v61 = vrot.slane %v571_v7, 7  ;;  %794 = vst [vmem:[#allocation2 + $0x70] sm:$0xf] %v560_v12  ;;  %v588_v51 = vshrl.u32 %v15910_v25, 16  ;;  %v591_v23 = vshll.u32 %v15910_v25, 16 }
  0x79   : > { %v568_v2 = vor.u32 %v566_v4, %v565_v9  ;;  %v569_v15 = vrot.slane %v565_v9, 4  ;;  %v582_v17 = vrot.slane %v580_v10, 7  ;;  %v597_v35 = vshrl.u32 %v15912_v59, 16 }
  0x7a   : > { %v1594_v48 = vsel %vm15702_vm6, %v1589_v11, %v1593_v1  ;;  %v576_v20 = vor.u32 %v574_v42, %v573_v61  ;;  %v578_v22 = vrot.slane %v573_v61, 4  ;;  %v590_v21 = vrot.slane %v588_v51, 7 }
  0x7b   : > { %v13081_v33 = vcombine.low %v1584_v14, %v1594_v48  ;;  %v799_v18 = vsel %vm15718_vm9, %v568_v2, %v798_v13  ;;  %v585_v26 = vor.u32 %v583_v19, %v582_v17  ;;  %v586_v27 = vrot.slane %v582_v17, 4  ;;  %v1355_v29 = vld [vmem:[#allocation2 + $0x6c] sm:$0xf]  ;;  %v816_v14 = vld [vmem:[#allocation2 + $0x98] sm:$0x1]  ;;  %v306_v13 = vld [vmem:[%s15687_s17 + $0xe0] sm:$0xff] }
  0x7c   : > { %v577_v60 = vsel %vm15726_vm10, %v569_v15, %v576_v20  ;;  %800 = vst [vmem:[#allocation2 + $0x78] sm:$0xf] %v799_v18  ;;  %v803_v32 = vsel %vm15708_vm8, %v578_v22, %v802_v16  ;;  %v1596_v25 = vshrl.u32 %v1355_v29, 16  ;;  %v1599_v36 = vshll.u32 %v1355_v29, 16 }
  0x7d   : > { %14434 = vmatprep.mubr.bf16.mxu1 %v13081_v33  ;;  %801 = vst [vmem:[#allocation2 + $0x7c] sm:$0xf] %v577_v60  ;;  %804 = vst [vmem:[#allocation2 + $0x80] sm:$0x1] %v803_v32  ;;  %v806_v38 = vsel %vm15718_vm9, %v585_v26, %v805_v24  ;;  %v600_v40 = vshll.u32 %v15912_v59, 16  ;;  %v593_v44 = vor.u32 %v591_v23, %v590_v21  ;;  %v595_v45 = vrot.slane %v590_v21, 4 }
  0x7e   : > { %v1357_v57 = vld [vmem:[#allocation2 + $0x74] sm:$0x1]  ;;  %807 = vst [vmem:[#allocation2 + $0x84] sm:$0xf] %v806_v38  ;;  %v599_v39 = vrot.slane %v597_v35, 7  ;;  %v605_v46 = vshrl.u32 %v15935_v34, 16  ;;  %v16000_v17 = vpack.c.bf16 %v304_v56, %v304_v56  ;;  %v16002_v51 = vpack.c.bf16 %v305_v50, %v305_v50 }
  0x7f   : > { %v1598_v47 = vrot.slane %v1596_v25, 4  ;;  %v1601_v53 = vrot.slane %v1599_v36, 5  ;;  %v1615_v55 = vshll.u32 %v1357_v57, 16  ;;  %v608_v52 = vshll.u32 %v15935_v34, 16  ;;  %v15289_v58 = vld [vmem:[#allocation2 + $0x6c] sm:$0xff]  }
  0x80   : > { %v1356_v62 = vld [vmem:[#allocation2 + $0x70] sm:$0xf]  ;;  %v594_v59 = vsel %vm15726_vm10, %v586_v27, %v593_v44  ;;  %v810_v63 = vsel %vm15708_vm8, %v595_v45, %v809_v28  ;;  %v602_v0 = vor.u32 %v600_v40, %v599_v39  ;;  %v603_v1 = vrot.slane %v599_v39, 4  ;;  %14387 = vmatmul.mubr.bf16.gmra.mxu0 %v15289_v58 }
  0x81   : > { %v1602_v3 = vor.u32 %v1601_v53, %v1598_v47  ;;  %v1605_v4 = vshll.u32 %v1356_v62, 16  ;;  %v1609_v5 = vshrl.u32 %v1356_v62, 16  ;;  %v1617_v6 = vrot.slane %v1615_v55, 5  ;;  %808 = vst [vmem:[#allocation2 + $0x88] sm:$0xf] %v594_v59  ;;  %v307_v53 = vld [vmem:[%s15687_s17 + $0xe8] sm:$0xff] }
  0x82   : > { %811 = vst [vmem:[#allocation2 + $0x8c] sm:$0x1] %v810_v63  ;;  %v607_v34 = vrot.slane %v605_v46, 7  ;;  %v813_v7 = vsel %vm15718_vm9, %v602_v0, %v812_v41  ;;  %v614_v9 = vshrl.u32 %v15937_v30, 16  ;;  %v617_v42 = vshll.u32 %v15937_v30, 16 }
  0x83   : > { %v1603_v10 = vrot.slane %v1602_v3, 4  ;;  %v1607_v11 = vrot.slane %v1605_v4, 5  ;;  %v1611_v12 = vrot.slane %v1609_v5, 4  ;;  %814 = vst [vmem:[#allocation2 + $0x90] sm:$0xf] %v813_v7  ;;  %v622_v61 = vshrl.u32 %v15939_v31, 16 }
  0x84   : > { %v15293_v19 = vld [vmem:[#allocation2 + $0x78] sm:$0xff]   ;;  %v610_v15 = vor.u32 %v608_v52, %v607_v34  ;;  %v612_v16 = vrot.slane %v607_v34, 4  ;;  %v1360_v23 = vld [vmem:[#allocation2 + $0x80] sm:$0x1]  ;;  %v16010_v41 = vpack.c.bf16 %v306_v13, %v306_v13  ;;  %v634_v30 = vshll.u32 %v16000_v17, 16 }
  0x85   : > { %v1358_v2 = vld [vmem:[#allocation2 + $0x78] sm:$0xf]  ;;  %v1608_v48 = vsel %vm15702_vm6, %v1603_v10, %v1607_v11  ;;  %v1612_v20 = vor.u32 %v1611_v12, %v1607_v11  ;;  %v1359_v22 = vld [vmem:[#allocation2 + $0x7c] sm:$0xf]  ;;  %14390 = vmatprep.mubr.bf16.mxu0 %v15293_v19  ;;  %v1639_v27 = vshll.u32 %v1360_v23, 16  ;;  %vm2245_vm11 = vcmask 1042432  }
  0x86   : > { %v1620_v24 = vshrl.u32 %v1358_v2, 16  ;;  %v1623_v33 = vshll.u32 %v1358_v2, 16  ;;  %v1629_v18 = vshll.u32 %v1359_v22, 16  ;;  %v1633_v26 = vshrl.u32 %v1359_v22, 16  ;;  %v1361_v21 = vld [vmem:[#allocation2 + $0x84] sm:$0xf] }
  0x87   : > { %v611_v28 = vsel %vm15726_vm10, %v603_v1, %v610_v15  ;;  %v1613_v29 = vrot.slane %v1612_v20, 4  ;;  %v817_v35 = vsel %vm15708_vm8, %v612_v16, %v816_v14  ;;  %v1641_v38 = vrot.slane %v1639_v27, 5 }
  0x88   : > { %v1622_v60 = vrot.slane %v1620_v24, 4  ;;  %v1625_v32 = vrot.slane %v1623_v33, 5  ;;  %815 = vst [vmem:[#allocation2 + $0x94] sm:$0xf] %v611_v28  ;;  %v1631_v25 = vrot.slane %v1629_v18, 5  ;;  %v1635_v36 = vrot.slane %v1633_v26, 4 }
  0x89   : > { %v15294_v40 = vld [vmem:[#allocation2 + $0x84] sm:$0xff]   ;;  %818 = vst [vmem:[#allocation2 + $0x98] sm:$0x1] %v817_v35  ;;  %v1618_v57 = vsel %vm15702_vm6, %v1613_v29, %v1617_v6  ;;  %v1363_v39 = vld [vmem:[#allocation2 + $0x8c] sm:$0x1]  ;;  %v1644_v46 = vshrl.u32 %v1361_v21, 16  ;;  %v16019_v2 = vpack.c.bf16 %v307_v53, %v307_v53 }
  0x8a   : > { %v1626_v44 = vor.u32 %v1625_v32, %v1622_v60  ;;  %v1362_v45 = vld [vmem:[#allocation2 + $0x88] sm:$0xf]  ;;  %v1647_v47 = vshll.u32 %v1361_v21, 16  ;;  %v13082_v55 = vcombine.low %v1608_v48, %v1618_v57  ;;  %v1636_v52 = vor.u32 %v1635_v36, %v1631_v25  ;;  %14391 = vmatmul.mubr.bf16.gmra.mxu0 %v15294_v40  ;;  %v1364_v62 = vld [vmem:[#allocation2 + $0x90] sm:$0xf] }
  0x8b   : > { %v1653_v56 = vshll.u32 %v1362_v45, 16  ;;  %v1657_v58 = vshrl.u32 %v1362_v45, 16  ;;  %v1646_v63 = vrot.slane %v1644_v46, 4  ;;  %v1663_v1 = vshll.u32 %v1363_v39, 16  ;;  %v819_v60 = vld [vmem:[#allocation2 + $0x9c] sm:$0xf] }
  0x8c   : > { %v1627_v59 = vrot.slane %v1626_v44, 4  ;;  %v1649_v0 = vrot.slane %v1647_v47, 5  ;;  %14435 = vmatmul.mubr.bf16.gmra.mxu1 %v13082_v55  ;;  %v1637_v3 = vrot.slane %v1636_v52, 4  ;;  %v1668_v6 = vshrl.u32 %v1364_v62, 16  ;;  %v823_v32 = vld [vmem:[#allocation2 + $0xa4] sm:$0x1] }
  0x8d   : > { %v1655_v4 = vrot.slane %v1653_v56, 5  ;;  %v1659_v5 = vrot.slane %v1657_v58, 4  ;;  %v1665_v7 = vrot.slane %v1663_v1, 5  ;;  %v1671_v14 = vshll.u32 %v1364_v62, 16  ;;  %v826_v56 = vld [vmem:[#allocation2 + $0xa8] sm:$0xf] }
  0x8e   : > { %v1632_v50 = vsel %vm15702_vm6, %v1627_v59, %v1631_v25  ;;  %v1650_v34 = vor.u32 %v1649_v0, %v1646_v63  ;;  %v1642_v10 = vsel %vm15702_vm6, %v1637_v3, %v1641_v38  ;;  %v1670_v19 = vrot.slane %v1668_v6, 4  ;;  %v830_v59 = vld [vmem:[#allocation2 + $0xb0] sm:$0x1] }
  0x8f   : > { %v1660_v11 = vor.u32 %v1659_v5, %v1655_v4  ;;  %v15298_v12 = vld [vmem:[#allocation2 + $0x90] sm:$0xff]   ;;  %v13083_v15 = vcombine.low %v1632_v50, %v1642_v10  ;;  %v1673_v20 = vrot.slane %v1671_v14, 5  ;;  %v616_v18 = vrot.slane %v614_v9, 7  ;;  %v2149_v5 = vld [vmem:[#allocation2] sm:$0xe] }
  0x90   : > { %v1365_v13 = vld [vmem:[#allocation2 + $0x94] sm:$0xf]  ;;  %v1651_v16 = vrot.slane %v1650_v34, 4  ;;  %v1366_v48 = vld [vmem:[#allocation2 + $0x98] sm:$0x1]  ;;  %14394 = vmatprep.mubr.bf16.mxu0 %v15298_v12  ;;  %v624_v29 = vrot.slane %v622_v61, 7 }
  0x91   : > { %v1677_v22 = vshll.u32 %v1365_v13, 16  ;;  %v1661_v23 = vrot.slane %v1660_v11, 4  ;;  %v1681_v24 = vshrl.u32 %v1365_v13, 16  ;;  %v1687_v33 = vshll.u32 %v1366_v48, 16  ;;  %14438 = vmatprep.mubr.bf16.mxu1 %v13083_v15  ;;  %v837_v14 = vld [vmem:[#allocation2 + $0xbc] sm:$0x1] }
  0x92   : > { %v1656_v26 = vsel %vm15702_vm6, %v1651_v16, %v1655_v4  ;;  %v1674_v27 = vor.u32 %v1673_v20, %v1670_v19  ;;  %v619_v36 = vor.u32 %v617_v42, %v616_v18  ;;  %v620_v40 = vrot.slane %v616_v18, 4  ;;  %v2150_v10 = vld [vmem:[#allocation2 + $0x4] sm:$0xf]  ;;  %v2151_v11 = vld [vmem:[#allocation2 + $0x8] sm:$0x1]  ;;  %v16055_v19 = vld [vmem:[%s19573_s1 + $0x178] sm:$0xff]  }
  0x93   : > { %v1679_v28 = vrot.slane %v1677_v22, 5  ;;  %v1666_v21 = vsel %vm15702_vm6, %v1661_v23, %v1665_v7  ;;  %v1683_v35 = vrot.slane %v1681_v24, 4  ;;  %v1689_v25 = vrot.slane %v1687_v33, 5  ;;  %v2152_v24 = vld [vmem:[#allocation2 + $0xc] sm:$0xe]  ;;  %14594 = vmatprep.subr.bf16.mxu1 %v16055_v19 }
  0x94   : > { %v13084_v9 = vcombine.low %v1656_v26, %v1666_v21  ;;  %v1675_v38 = vrot.slane %v1674_v27, 4  ;;  %v625_v57 = vshll.u32 %v15939_v31, 16  ;;  %v629_v45 = vrot.slane %v624_v29, 4  ;;  %v2153_v33 = vld [vmem:[#allocation2 + $0x10] sm:$0xf] }
  0x95   : > { %v1684_v44 = vor.u32 %v1683_v35, %v1679_v28  ;;  %v820_v61 = vsel %vm15718_vm9, %v619_v36, %v819_v60  ;;  %v631_v39 = vshrl.u32 %v16000_v17, 16  ;;  %v639_v42 = vshrl.u32 %v16002_v51, 16 }
  0x96   : > { %14439 = vmatmul.mubr.bf16.gmra.mxu1 %v13084_v9  ;;  %v1680_v46 = vsel %vm15702_vm6, %v1675_v38, %v1679_v28  ;;  %v627_v47 = vor.u32 %v625_v57, %v624_v29  ;;  %821 = vst [vmem:[#allocation2 + $0x9c] sm:$0xf] %v820_v61  ;;  %v824_v31 = vsel %vm15708_vm8, %v629_v45, %v823_v32  ;;  %v642_v52 = vshll.u32 %v16002_v51, 16  ;;  %v833_v51 = vld [vmem:[#allocation2 + $0xb4] sm:$0xf] }
  0x97   : > { %v1685_v53 = vrot.slane %v1684_v44, 4  ;;  %v633_v55 = vrot.slane %v631_v39, 7  ;;  %825 = vst [vmem:[#allocation2 + $0xa4] sm:$0x1] %v824_v31  ;;  %v641_v62 = vrot.slane %v639_v42, 7  ;;  %v648_v63 = vshrl.u32 %v16010_v41, 16 }
  0x98   : > { %v628_v58 = vsel %vm15726_vm10, %v620_v40, %v627_v47  ;;  %v651_v17 = vshll.u32 %v16010_v41, 16  ;;  %v656_v4 = vshrl.u32 %v16019_v2, 16  ;;  %v659_v13 = vshll.u32 %v16019_v2, 16 }
  0x99   : > { %v1690_v0 = vsel %vm15702_vm6, %v1685_v53, %v1689_v25  ;;  %822 = vst [vmem:[#allocation2 + $0xa0] sm:$0xf] %v628_v58  ;;  %v636_v1 = vor.u32 %v634_v30, %v633_v55  ;;  %v637_v3 = vrot.slane %v633_v55, 4  ;;  %v644_v50 = vor.u32 %v642_v52, %v641_v62 }
  0x9a   : > { %v13085_v6 = vcombine.low %v1680_v46, %v1690_v0  ;;  %v646_v34 = vrot.slane %v641_v62, 4  ;;  %v650_v7 = vrot.slane %v648_v63, 7  ;;  %v658_v12 = vrot.slane %v656_v4, 7  ;;  %v2154_v46 = vld [vmem:[#allocation2 + $0x14] sm:$0x1] }
  0x9b   : > { %v827_v41 = vsel %vm15718_vm9, %v636_v1, %v826_v56  ;;  %v645_v15 = vsel %vm15726_vm10, %v637_v3, %v644_v50  ;;  %vm2246_vm12 = vcmask 1046532   ;;  %v13097_v28 = vrot.slane %v2149_v5, 9 }
  0x9c   : > { %14442 = vmatprep.mubr.bf16.mxu1 %v13085_v6  ;;  %828 = vst [vmem:[#allocation2 + $0xa8] sm:$0xf] %v827_v41  ;;  %v831_v16 = vsel %vm15708_vm8, %v646_v34, %v830_v59  ;;  %v653_v48 = vor.u32 %v651_v17, %v650_v7  ;;  %v654_v20 = vrot.slane %v650_v7, 4  ;;  %829 = vst [vmem:[#allocation2 + $0xac] sm:$0xf] %v645_v15  ;;  %v663_v23 = vrot.slane %v658_v12, 4 }
  0x9d   : > { %v1367_v22 = vld [vmem:[#allocation2 + $0x9c] sm:$0xf]  ;;  %832 = vst [vmem:[#allocation2 + $0xb0] sm:$0x1] %v831_v16  ;;  %v661_v2 = vor.u32 %v659_v13, %v658_v12  ;;  %vm16069_vm13 = vmor %vm2245_vm11, %vm2246_vm12  ;;  %v19603_v21 = vmov 0  ;;  %v2250_v35 = vrot.slane %v2150_v10, 5 }
  0x9e   : > { %v1692_v18 = vshrl.u32 %v1367_v22, 16  ;;  %v1695_v26 = vshll.u32 %v1367_v22, 16  ;;  %v834_v27 = vsel %vm15718_vm9, %v653_v48, %v833_v51  ;;  %v1369_v29 = vld [vmem:[#allocation2 + $0xa4] sm:$0x1]  ;;  %v838_v32 = vsel %vm15708_vm8, %v663_v23, %v837_v14  ;;  %v2155_v48 = vld [vmem:[#allocation2 + $0x18] sm:$0xe] }
  0x9f   : > { %v662_v60 = vsel %vm15726_vm10, %v654_v20, %v661_v2  ;;  %835 = vst [vmem:[#allocation2 + $0xb4] sm:$0xf] %v834_v27  ;;  %v19604_v21 = vsel %vm16069_vm13, 4294967295, %v19603_v21  ;;  %v2253_v25 = vrot.slane %v2151_v11, 5  ;;  %839 = vst [vmem:[#allocation2 + $0xbc] sm:$0x1] %v838_v32  ;;  %v2251_v61 = vsel %vm16069_vm13, %v13097_v28, %v2250_v35 }
  0xa0   : > { %19605 = vst [vmem:[#allocation11_spill] sm:$0xff] %v19604_v21  ;;  %v15299_v36 = vld [vmem:[#allocation2 + $0x9c] sm:$0xff]   ;;  %v1694_v38 = vrot.slane %v1692_v18, 4  ;;  %836 = vst [vmem:[#allocation2 + $0xb8] sm:$0xf] %v662_v60  ;;  %v1697_v40 = vrot.slane %v1695_v26, 5 }
  0xa1   : > { %v1368_v9 = vld [vmem:[#allocation2 + $0xa0] sm:$0xf]  ;;  %v1711_v45 = vshll.u32 %v1369_v29, 16  ;;  %14395 = vmatmul.mubr.bf16.gmra.mxu0 %v15299_v36  ;;  %v2252_v39 = vrot.slane %v2250_v35, 4  ;;  %v13098_v47 = vrot.slane %v2152_v24, 9  ;;  %v2257_v30 = vrot.slane %v2153_v33, 5 }
  0xa2   : > { %v1701_v57 = vshll.u32 %v1368_v9, 16  ;;  %v1705_v44 = vshrl.u32 %v1368_v9, 16  ;;  %v1698_v42 = vor.u32 %v1697_v40, %v1694_v38  ;;  %v2260_v11 = vrot.slane %v2154_v46, 5  ;;  %v2156_v18 = vld [vmem:[#allocation2 + $0x1c] sm:$0xf] }
  0xa3   : > { %v1713_v55 = vrot.slane %v1711_v45, 5  ;;  %v15303_v52 = vld [vmem:[#allocation2 + $0xa8] sm:$0xff]   ;;  %v2254_v58 = vsel %vm16069_vm13, %v2252_v39, %v2253_v25  ;;  %v16079_v62 = vsel %vm16069_vm13, %v13098_v47, %v2257_v30  ;;  %v2259_v59 = vrot.slane %v2257_v30, 4  ;;  %v2157_v60 = vld [vmem:[#allocation2 + $0x20] sm:$0x1] }
  0xa4   : > { %v1703_v53 = vrot.slane %v1701_v57, 5  ;;  %v1707_v31 = vrot.slane %v1705_v44, 4  ;;  %v1370_v56 = vld [vmem:[#allocation2 + $0xa8] sm:$0xf]  ;;  %v1699_v63 = vrot.slane %v1698_v42, 4  ;;  %v13129_v4 = vcombine.low %v2251_v61, %v2254_v58  ;;  %14398 = vmatprep.mubr.bf16.mxu0 %v15303_v52 }
  0xa5   : > { %v1371_v0 = vld [vmem:[#allocation2 + $0xac] sm:$0xf]  ;;  %v1372_v1 = vld [vmem:[#allocation2 + $0xb0] sm:$0x1]  ;;  %v1716_v3 = vshrl.u32 %v1370_v56, 16  ;;  %v1719_v51 = vshll.u32 %v1370_v56, 16  ;;  %v2261_v33 = vsel %vm16069_vm13, %v2259_v59, %v2260_v11 }
  0xa6   : > { %v1708_v17 = vor.u32 %v1707_v31, %v1703_v53  ;;  %v1725_v5 = vshll.u32 %v1371_v0, 16  ;;  %v1729_v6 = vshrl.u32 %v1371_v0, 16  ;;  %v1735_v50 = vshll.u32 %v1372_v1, 16  ;;  %v1373_v16 = vld [vmem:[#allocation2 + $0xb4] sm:$0xf] }
  0xa7   : > { %v1704_v34 = vsel %vm15702_vm6, %v1699_v63, %v1703_v53  ;;  %v1718_v14 = vrot.slane %v1716_v3, 4  ;;  %v15304_v10 = vld [vmem:[#allocation2 + $0xb4] sm:$0xff]   ;;  %v1721_v41 = vrot.slane %v1719_v51, 5  ;;  %v1375_v2 = vld [vmem:[#allocation2 + $0xbc] sm:$0x1]  ;;  %v1740_v23 = vshrl.u32 %v1373_v16, 16 }
  0xa8   : > { %v1709_v7 = vrot.slane %v1708_v17, 4  ;;  %v1727_v12 = vrot.slane %v1725_v5, 5  ;;  %v1731_v13 = vrot.slane %v1729_v6, 4  ;;  %v1737_v15 = vrot.slane %v1735_v50, 5  ;;  %v1374_v22 = vld [vmem:[#allocation2 + $0xb8] sm:$0xf] }
  0xa9   : > { %v1743_v24 = vshll.u32 %v1373_v16, 16  ;;  %v1722_v27 = vor.u32 %v1721_v41, %v1718_v14  ;;  %14399 = vmatmul.mubr.bf16.gmra.mxu0 %v15304_v10  ;;  %v1749_v29 = vshll.u32 %v1374_v22, 16  ;;  %v2158_v32 = vld [vmem:[#allocation2 + $0x24] sm:$0xe]  ;;  %v1742_v35 = vrot.slane %v1740_v23, 4  ;;  %v15311_v5 = vld [vmem:[%s19573_s1 + $0x130] sm:$0xff]  }
  0xaa   : > { %v1714_v20 = vsel %vm15702_vm6, %v1709_v7, %v1713_v55  ;;  %v1732_v28 = vor.u32 %v1731_v13, %v1727_v12  ;;  %v1753_v36 = vshrl.u32 %v1374_v22, 16  ;;  %v1759_v9 = vshll.u32 %v1375_v2, 16  ;;  %14466 = vmatprep.mubr.bf16.mxu0 %v13129_v4  ;;  %v2159_v38 = vld [vmem:[#allocation2 + $0x28] sm:$0xf]  ;;  %v2160_v40 = vld [vmem:[#allocation2 + $0x2c] sm:$0x1] }
  0xab   : > { %v13086_v26 = vcombine.low %v1704_v34, %v1714_v20  ;;  %v1745_v25 = vrot.slane %v1743_v24, 5  ;;  %v1723_v57 = vrot.slane %v1722_v27, 4  ;;  %v1751_v45 = vrot.slane %v1749_v29, 5  ;;  %v2161_v39 = vld [vmem:[#allocation2 + $0x30] sm:$0xe] }
  0xac   : > { %v1733_v44 = vrot.slane %v1732_v28, 4  ;;  %v13130_v61 = vcombine.low %v16079_v62, %v2261_v33  ;;  %v2162_v46 = vld [vmem:[#allocation2 + $0x34] sm:$0xf]  ;;  %v1755_v30 = vrot.slane %v1753_v36, 4  ;;  %v1761_v42 = vrot.slane %v1759_v9, 5 }
  0xad   : > { %14443 = vmatmul.mubr.bf16.gmra.mxu1 %v13086_v26  ;;  %v1746_v47 = vor.u32 %v1745_v25, %v1742_v35  ;;  %v13099_v53 = vrot.slane %v2155_v48, 9  ;;  %v2163_v31 = vld [vmem:[#allocation2 + $0x38] sm:$0x1]  ;;  %v1728_v55 = vsel %vm15702_vm6, %v1723_v57, %v1727_v12  ;;  %v2264_v56 = vrot.slane %v2156_v18, 5  ;;  %v16092_v62 = vld [vmem:[#allocation2 + $0x40] sm:$0xf] }
  0xae   : > { %v1738_v52 = vsel %vm15702_vm6, %v1733_v44, %v1737_v15  ;;  %v2267_v58 = vrot.slane %v2157_v60, 5  ;;  %v1756_v17 = vor.u32 %v1755_v30, %v1751_v45  ;;  %v13100_v0 = vrot.slane %v2158_v32, 9  ;;  %v16099_v6 = vld [vmem:[#allocation2 + $0x3c] sm:$0xe]  ;;  %v2166_v10 = vld [vmem:[#allocation2 + $0x44] sm:$0x1] }
  0xaf   : > { %v13087_v59 = vcombine.low %v1728_v55, %v1738_v52  ;;  %v1747_v63 = vrot.slane %v1746_v47, 4  ;;  %v2265_v1 = vsel %vm16069_vm13, %v13099_v53, %v2264_v56  ;;  %v2266_v3 = vrot.slane %v2264_v56, 4  ;;  %v2167_v13 = vld [vmem:[#allocation2 + $0x48] sm:$0xe]  ;;  %v2168_v15 = vld [vmem:[#allocation2 + $0x4c] sm:$0xf] }
  0xb0   : > { %v2271_v4 = vrot.slane %v2159_v38, 5  ;;  %v2274_v51 = vrot.slane %v2160_v40, 5  ;;  %v1757_v34 = vrot.slane %v1756_v17, 4  ;;  %v13101_v7 = vrot.slane %v2161_v39, 9  ;;  %v15309_v48 = vld [vmem:[#allocation2 + $0xc] sm:$0xff]   ;;  %v15310_v30 = vld [vmem:[#allocation2 + $0x18] sm:$0xff]  }
  0xb1   : > { %14446 = vmatprep.mubr.bf16.mxu1 %v13087_v59  ;;  %v1752_v50 = vsel %vm15702_vm6, %v1747_v63, %v1751_v45  ;;  %v2278_v14 = vrot.slane %v2162_v46, 5  ;;  %14467 = vmatmul.mubr.bf16.vlgmr.msra.gmra.mxu0 %v13130_v61  ;;  %v2268_v11 = vsel %vm16069_vm13, %v2266_v3, %v2267_v58  ;;  %v2281_v12 = vrot.slane %v2163_v31, 5  ;;  %v2169_v23 = vld [vmem:[#allocation2 + $0x50] sm:$0x1]  ;;  %v16110_v24 = vld [vmem:[#allocation2 + $0x58] sm:$0xf] }
  0xb2   : > { %v2273_v41 = vrot.slane %v2271_v4, 4  ;;  %v1762_v16 = vsel %vm15702_vm6, %v1757_v34, %v1761_v42  ;;  %14547 = vmatpush3.bf16.msra.mxu0 %v15962_v8  ;;  %v13131_v20 = vcombine.low %v2265_v1, %v2268_v11  ;;  %v2272_v22 = vsel %vm16069_vm13, %v13100_v0, %v2271_v4  ;;  %v15314_v8 = vld [vmem:[%s19573_s1 + $0x128] sm:$0xff]   ;;  %v16120_v28 = vld [vmem:[#allocation2 + $0x64] sm:$0xf]  ;;  %v16125_v32 = vld [vmem:[#allocation2 + $0x54] sm:$0xe] }
  0xb3   : > { %v2280_v2 = vrot.slane %v2278_v14, 4  ;;  %v13088_v33 = vcombine.low %v1752_v50, %v1762_v16  ;;  %14548 = vmatprep.subr.bf16.mxu0 %v15311_v5  ;;  %v2279_v26 = vsel %vm16069_vm13, %v13101_v7, %v2278_v14  ;;  %v2285_v27 = vrot.slane %v16092_v62, 5  ;;  %v16127_v35 = vld [vmem:[#allocation2 + $0x5c] sm:$0x1]  ;;  %v16129_v25 = vld [vmem:[#allocation2 + $0x60] sm:$0xe] }
  0xb4   : > { %v2275_v18 = vsel %vm16069_vm13, %v2273_v41, %v2274_v51  ;;  %14470 = vmatprep.mubr.bf16.mxu0 %v13131_v20  ;;  %v13102_v60 = vrot.slane %v16099_v6, 9  ;;  %v16131_v36 = vld [vmem:[#allocation2 + $0x70] sm:$0xf]  ;;  %v2288_v38 = vrot.slane %v2166_v10, 5  ;;  %v2292_v40 = vrot.slane %v2168_v15, 5  ;;  %v15317_v46 = vld [vmem:[%s19573_s1 + $0x120] sm:$0xff]  }
  0xb5   : > { %v2282_v29 = vsel %vm16069_vm13, %v2280_v2, %v2281_v12  ;;  %14447 = vmatmul.mubr.bf16.gmra.mxu1 %v13088_v33  ;;  %v13132_v9 = vcombine.low %v2272_v22, %v2275_v18  ;;  %v16133_v57 = vld [vmem:[#allocation2 + $0x68] sm:$0x1]  ;;  %v2287_v45 = vrot.slane %v2285_v27, 4  ;;  %v13103_v61 = vrot.slane %v2167_v13, 9  ;;  %v16139_v47 = vld [vmem:[#allocation2 + $0x6c] sm:$0xe] }
  0xb6   : > { %14514 = vmatprep.mubr.bf16.mxu1 %v15309_v48  ;;  %14549 = vmatpush3.bf16.msra.mxu0 %v15311_v5  ;;  %v13133_v44 = vcombine.low %v2279_v26, %v2282_v29  ;;  %v2299_v39 = vrot.slane %v16110_v24, 5  ;;  %v2294_v42 = vrot.slane %v2292_v40, 4  ;;  %v2295_v53 = vrot.slane %v2169_v23, 5  ;;  %v16141_v31 = vld [vmem:[#allocation2 + $0x74] sm:$0x1]  ;;  %v15312_v55 = vld [vmem:[#allocation2 + $0x24] sm:$0xff]  }
  0xb7   : > { %14550 = vmatprep.subr.bf16.mxu0 %v15314_v8  ;;  %v2306_v52 = vrot.slane %v16120_v28, 5  ;;  %v13104_v56 = vrot.slane %v16125_v32, 9  ;;  %v2302_v58 = vrot.slane %v16127_v35, 5  ;;  %v13105_v59 = vrot.slane %v16129_v25, 9  ;;  %v15320_v17 = vld [vmem:[%s19573_s1 + $0x118] sm:$0xff]   ;;  %v15324_v51 = vld [vmem:[%s19573_s1 + $0x170] sm:$0xff]  }
  0xb8   : > { %v2313_v63 = vrot.slane %v16131_v36, 5  ;;  %v16151_v0 = vld [vmem:[#allocation2 + $0x78] sm:$0xe]  ;;  %v2286_v62 = vsel %vm16069_vm13, %v13102_v60, %v2285_v27  ;;  %v2289_v1 = vsel %vm16069_vm13, %v2287_v45, %v2288_v38  ;;  %v2301_v3 = vrot.slane %v2299_v39, 4  ;;  %v16161_v5 = vld [vmem:[#allocation2 + $0x7c] sm:$0xf] }
  0xb9   : > { %14471 = vmatmul.mubr.bf16.gmra.mxu0 %v13132_v9  ;;  %v2309_v4 = vrot.slane %v16133_v57, 5  ;;  %v16163_v6 = vld [vmem:[#allocation2 + $0x80] sm:$0x1]  ;;  %v2293_v50 = vsel %vm16069_vm13, %v13103_v61, %v2292_v40  ;;  %v2296_v34 = vsel %vm16069_vm13, %v2294_v42, %v2295_v53  ;;  %v2308_v7 = vrot.slane %v2306_v52, 4  ;;  %v16170_v10 = vld [vmem:[#allocation2 + $0x84] sm:$0xe] }
  0xba   : > { %14474 = vmatprep.mubr.bf16.mxu0 %v13133_v44  ;;  %14551 = vmatpush3.bf16.msra.mxu0 %v15314_v8  ;;  %v13106_v14 = vrot.slane %v16139_v47, 9  ;;  %v16172_v11 = vld [vmem:[#allocation2 + $0x88] sm:$0xf]  ;;  %v2315_v41 = vrot.slane %v2313_v63, 4  ;;  %v2316_v12 = vrot.slane %v16141_v31, 5  ;;  %v13107_v13 = vrot.slane %v16151_v0, 9 }
  0xbb   : > { %14552 = vmatprep.subr.bf16.mxu0 %v15317_v46  ;;  %v2320_v15 = vrot.slane %v16161_v5, 5  ;;  %v16179_v16 = vld [vmem:[#allocation2 + $0x8c] sm:$0x1]  ;;  %v13134_v48 = vcombine.low %v2286_v62, %v2289_v1  ;;  %v2323_v20 = vrot.slane %v16163_v6, 5  ;;  %v13108_v22 = vrot.slane %v16170_v10, 9  ;;  %v15325_v2 = vld [vmem:[%s19573_s1 + $0x110] sm:$0xff]  }
  0xbc   : > { %v13135_v23 = vcombine.low %v2293_v50, %v2296_v34  ;;  %v2327_v33 = vrot.slane %v16172_v11, 5  ;;  %v15328_v18 = vld [vmem:[%s19573_s1 + $0x168] sm:$0xff]   ;;  %v15313_v26 = vld [vmem:[#allocation2 + $0x30] sm:$0xff]   ;;  %v2330_v27 = vrot.slane %v16179_v16, 5  ;;  %v15315_v28 = vld [vmem:[#allocation2 + $0x3c] sm:$0xff]   ;;  %v2300_v29 = vsel %vm16069_vm13, %v13104_v56, %v2299_v39 }
  0xbd   : > { %14515 = vmatmul.mubr.bf16.vlgmr.msra.gmra.mxu1 %v15310_v30  ;;  %v2322_v24 = vrot.slane %v2320_v15, 4  ;;  %v308_v8 = vld [vmem:[%s15687_s17 + $0xf0] sm:$0xff]  ;;  %v15330_v35 = vld [vmem:[%s19573_s1 + $0x108] sm:$0xff]   ;;  %v2303_v25 = vsel %vm16069_vm13, %v2301_v3, %v2302_v58  ;;  %v15329_v9 = vld [vmem:[%s19573_s1 + $0x160] sm:$0xff]   ;;  %v2307_v45 = vsel %vm16069_vm13, %v13105_v59, %v2306_v52  ;;  %v2310_v61 = vsel %vm16069_vm13, %v2308_v7, %v2309_v4 }
  0xbe   : > { %14518 = vmatprep.mubr.bf16.mxu1 %v15312_v55  ;;  %14553 = vmatpush3.bf16.msra.mxu0 %v15317_v46  ;;  %v2185_v60 = vld [vmem:[#allocation2 + $0x90] sm:$0xe]  ;;  %v2186_v32 = vld [vmem:[#allocation2 + $0x94] sm:$0xf]  ;;  %v2187_v38 = vld [vmem:[#allocation2 + $0x98] sm:$0x1]  ;;  %v16205_v44 = vpack.c.bf16 %v308_v8, %v308_v8  ;;  %v13136_v56 = vcombine.low %v2300_v29, %v2303_v25  ;;  %v16215_v52 = vsel %vm16069_vm13, %v13106_v14, %v2313_v63 }
  0xbf   : > { %14554 = vmatprep.subr.bf16.mxu0 %v15320_v17  ;;  %14595 = vmatpush3.bf16.msra.mxu1 %v16055_v19  ;;  %v2329_v19 = vrot.slane %v2327_v33, 4  ;;  %v2334_v40 = vrot.slane %v2186_v32, 5  ;;  %v2188_v57 = vld [vmem:[#allocation2 + $0x9c] sm:$0xe]  ;;  %v13109_v39 = vrot.slane %v2185_v60, 9  ;;  %v2337_v46 = vrot.slane %v2187_v38, 5 }
  0xc0   : > { %14596 = vmatprep.subr.bf16.mxu1 %v15324_v51  ;;  %v2189_v47 = vld [vmem:[#allocation2 + $0xa0] sm:$0xf]  ;;  %v2190_v30 = vld [vmem:[#allocation2 + $0xa4] sm:$0x1]  ;;  %v13110_v53 = vrot.slane %v2188_v57, 9  ;;  %v16219_v58 = vsel %vm16069_vm13, %v2315_v41, %v2316_v12  ;;  %v13137_v62 = vcombine.low %v2307_v45, %v2310_v61  ;;  %v15333_v36 = vld [vmem:[%s19573_s1 + $0x158] sm:$0xff]   ;;  %v16237_v50 = vsel %vm16069_vm13, %v13107_v13, %v2320_v15 }
  0xc1   : > { %14475 = vmatmul.mubr.bf16.gmra.mxu0 %v13134_v48  ;;  %v2336_v42 = vrot.slane %v2334_v40, 4  ;;  %v2341_v31 = vrot.slane %v2189_v47, 5  ;;  %v2344_v55 = vrot.slane %v2190_v30, 5  ;;  %v15335_v59 = vld [vmem:[%s19573_s1 + $0x100] sm:$0xff]   ;;  %v665_v63 = vshrl.u32 %v16205_v44, 16  ;;  %v15316_v3 = vld [vmem:[#allocation2 + $0x48] sm:$0xff]  }
  0xc2   : > { %14478 = vmatprep.mubr.bf16.mxu0 %v13135_v23  ;;  %14555 = vmatpush3.bf16.msra.mxu0 %v15320_v17  ;;  %v309_v17 = vld [vmem:[%s15687_s17 + $0xf8] sm:$0xff]  ;;  %v2191_v34 = vld [vmem:[#allocation2 + $0xa8] sm:$0xe]  ;;  %v2192_v7 = vld [vmem:[#allocation2 + $0xac] sm:$0xf]  ;;  %v2324_v14 = vsel %vm16069_vm13, %v2322_v24, %v2323_v20  ;;  %v16247_v5 = vsel %vm16069_vm13, %v13108_v22, %v2327_v33  ;;  %v16251_v13 = vsel %vm16069_vm13, %v2329_v19, %v2330_v27  ;;  %v668_v25 = vshll.u32 %v16205_v44, 16 }
  0xc3   : > { %14597 = vmatpush3.bf16.msra.mxu1 %v15324_v51  ;;  %14556 = vmatprep.subr.bf16.mxu0 %v15325_v2  ;;  %v2343_v1 = vrot.slane %v2341_v31, 4  ;;  %v15318_v4 = vld [vmem:[#allocation2 + $0x54] sm:$0xff]   ;;  %v13138_v51 = vcombine.low %v16215_v52, %v16219_v58  ;;  %v2193_v0 = vld [vmem:[#allocation2 + $0xb0] sm:$0x1]  ;;  %v13111_v11 = vrot.slane %v2191_v34, 9  ;;  %v2348_v41 = vrot.slane %v2192_v7, 5 }
  0xc4   : > { %14598 = vmatprep.subr.bf16.mxu1 %v15328_v18  ;;  %v2194_v12 = vld [vmem:[#allocation2 + $0xb4] sm:$0xe]  ;;  %v16255_v6 = vsel %vm16069_vm13, %v13109_v39, %v2334_v40  ;;  %v2351_v15 = vrot.slane %v2193_v0, 5  ;;  %v2195_v16 = vld [vmem:[#allocation2 + $0xb8] sm:$0xf]  ;;  %v13888_v20 = vpack.c.bf16 %v309_v17, %v309_v17  ;;  %v16262_v33 = vsel %vm16069_vm13, %v2336_v42, %v2337_v46  ;;  %v15338_v38 = vld [vmem:[%s19573_s1 + $0x148] sm:$0xff]  }
  0xc5   : > { %14519 = vmatmul.mubr.bf16.gmra.mxu1 %v15313_v26  ;;  %v15334_v10 = vld [vmem:[%s19573_s1 + $0x150] sm:$0xff]   ;;  %v2196_v48 = vld [vmem:[#allocation2 + $0xbc] sm:$0x1]  ;;  %v2350_v22 = vrot.slane %v2348_v41, 4  ;;  %v2355_v23 = vrot.slane %v2195_v16, 5  ;;  %v16270_v26 = vsel %vm16069_vm13, %v2343_v1, %v2344_v55  ;;  %v16274_v27 = vsel %vm16069_vm13, %v13111_v11, %v2348_v41  ;;  %v15319_v40 = vld [vmem:[#allocation2 + $0x60] sm:$0xff]  }
  0xc6   : > { %14522 = vmatprep.mubr.bf16.mxu1 %v15315_v28  ;;  %14557 = vmatpush3.bf16.msra.mxu0 %v15325_v2  ;;  %v13112_v2 = vrot.slane %v2194_v12, 9  ;;  %v2358_v24 = vrot.slane %v2196_v48, 5  ;;  %v13139_v8 = vcombine.low %v16237_v50, %v2324_v14  ;;  %v667_v60 = vrot.slane %v665_v63, 7  ;;  %v840_v32 = vld [vmem:[#allocation2 + $0xc0] sm:$0xf]  ;;  %v16300_v39 = vld [vmem:[%s19573_s1 + $0x1b8] sm:$0xff]  }
  0xc7   : > { %14599 = vmatpush3.bf16.msra.mxu1 %v15328_v18  ;;  %14558 = vmatprep.subr.bf16.mxu0 %v15330_v35  ;;  %v16266_v18 = vsel %vm16069_vm13, %v13110_v53, %v2341_v31  ;;  %v16279_v28 = vsel %vm16069_vm13, %v2350_v22, %v2351_v15  ;;  %v2357_v29 = vrot.slane %v2355_v23, 4  ;;  %v673_v19 = vshrl.u32 %v13888_v20, 16  ;;  %v15321_v46 = vld [vmem:[#allocation2 + $0x6c] sm:$0xff]   ;;  %v3201_v14 = vld [vmem:[#allocation2 + $0x20] sm:$0x1] }
  0xc8   : > { %14600 = vmatprep.subr.bf16.mxu1 %v15329_v9  ;;  %v13141_v57 = vcombine.low %v16255_v6, %v16262_v33  ;;  %v13142_v45 = vcombine.low %v16266_v18, %v16270_v26  ;;  %v13143_v61 = vcombine.low %v16274_v27, %v16279_v28  ;;  %v16295_v44 = vsel %vm16069_vm13, %v13112_v2, %v2355_v23  ;;  %v3196_v31 = vld [vmem:[#allocation2 + $0xc] sm:$0xf]  ;;  %v3197_v55 = vld [vmem:[#allocation2 + $0x10] sm:$0xf]  ;;  %v15339_v11 = vld [vmem:[%s19573_s1 + $0x140] sm:$0xff]  }
  0xc9   : > { %14479 = vmatmul.mubr.bf16.gmra.mxu0 %v13136_v56  ;;  %v16304_v47 = vsel %vm16069_vm13, %v2357_v29, %v2358_v24  ;;  %v670_v30 = vor.u32 %v668_v25, %v667_v60  ;;  %v671_v42 = vrot.slane %v667_v60, 4  ;;  %v16306_v53 = vrot.slane %v673_v19, 7  ;;  %v3198_v56 = vld [vmem:[#allocation2 + $0x14] sm:$0x1]  ;;  %v4014_v22 = vld [vmem:[#allocation2 + $0xc] sm:$0xe] }
  0xca   : > { %14482 = vmatprep.mubr.bf16.mxu0 %v13137_v62  ;;  %14559 = vmatpush3.bf16.msra.mxu0 %v15330_v35  ;;  %v13140_v35 = vcombine.low %v16247_v5, %v16251_v13  ;;  %v3245_v52 = vshrl.u32 %v3196_v31, 16  ;;  %v3248_v58 = vshll.u32 %v3196_v31, 16  ;;  %v3258_v17 = vshrl.u32 %v3197_v55, 16  ;;  %v4023_v18 = vld [vmem:[#allocation2 + $0x30] sm:$0xe] }
  0xcb   : > { %14601 = vmatpush3.bf16.msra.mxu1 %v15329_v9  ;;  %14560 = vmatprep.subr.bf16.mxu0 %v15335_v59  ;;  %v676_v9 = vshll.u32 %v13888_v20, 16  ;;  %v680_v1 = vrot.slane %v16306_v53, 4  ;;  %v3264_v63 = vshll.u32 %v3198_v56, 16  ;;  %v3288_v24 = vshll.u32 %v3201_v14, 16  ;;  %v4017_v56 = vld [vmem:[#allocation2 + $0x18] sm:$0xe] }
  0xcc   : > { %14602 = vmatprep.subr.bf16.mxu1 %v15333_v36  ;;  %v3250_v50 = vrot.slane %v3248_v58, 5  ;;  %v3260_v7 = vrot.slane %v3258_v17, 4  ;;  %v13233_v29 = vrot.slane %v4014_v22, 9  ;;  %v4019_v17 = vld [vmem:[#allocation2 + $0x20] sm:$0x1] }
  0xcd   : > { %14523 = vmatmul.mubr.bf16.gmra.mxu1 %v15316_v3  ;;  %v678_v62 = vor.u32 %v676_v9, %v16306_v53  ;;  %v3199_v3 = vld [vmem:[#allocation2 + $0x18] sm:$0xf]  ;;  %v3266_v41 = vrot.slane %v3264_v63, 5  ;;  %v4016_v9 = vld [vmem:[#allocation2 + $0x14] sm:$0x1] }
  0xce   : > { %14526 = vmatprep.mubr.bf16.mxu1 %v15318_v4  ;;  %14561 = vmatpush3.bf16.msra.mxu0 %v15335_v59  ;;  %v3254_v59 = vshll.u32 %v3197_v55, 16  ;;  %v3200_v4 = vld [vmem:[#allocation2 + $0x1c] sm:$0xf]  ;;  %v3269_v12 = vshrl.u32 %v3199_v3, 16  ;;  %v3272_v15 = vshll.u32 %v3199_v3, 16  ;;  %v4115_v55 = vrot.slane %v4016_v9, 5 }
  0xcf   : > { %14603 = vmatpush3.bf16.msra.mxu1 %v15333_v36  ;;  %14642 = vmatprep.subr.bf16.mxu0 %v16300_v39  ;;  %v841_v36 = vsel %vm15718_vm9, %v670_v30, %v840_v32  ;;  %v679_v0 = vsel %vm15726_vm10, %v671_v42, %v678_v62  ;;  %v3278_v48 = vshll.u32 %v3200_v4, 16  ;;  %v3282_v20 = vshrl.u32 %v3200_v4, 16  ;;  %v15322_v30 = vld [vmem:[#allocation2 + $0x78] sm:$0xff]   ;;  %v3202_v63 = vld [vmem:[#allocation2 + $0x24] sm:$0xf] }
  0xd0   : > { %14604 = vmatprep.subr.bf16.mxu1 %v15334_v10  ;;  %842 = vst [vmem:[#allocation2 + $0xc0] sm:$0xf] %v841_v36  ;;  %v3256_v34 = vrot.slane %v3254_v59, 5  ;;  %843 = vst [vmem:[#allocation2 + $0xc4] sm:$0xf] %v679_v0  ;;  %v3271_v2 = vrot.slane %v3269_v12, 4  ;;  %v13144_v36 = vcombine.low %v16295_v44, %v16304_v47 }
  0xd1   : > { %14483 = vmatmul.mubr.bf16.gmra.mxu0 %v13138_v51  ;;  %v3247_v51 = vrot.slane %v3245_v52, 4  ;;  %v3274_v23 = vrot.slane %v3272_v15, 5  ;;  %v3280_v25 = vrot.slane %v3278_v48, 5  ;;  %v3284_v19 = vrot.slane %v3282_v20, 4  ;;  %v4018_v59 = vld [vmem:[#allocation2 + $0x1c] sm:$0xf] }
  0xd2   : > { %14486 = vmatprep.mubr.bf16.mxu0 %v13139_v8  ;;  %v3261_v16 = vor.u32 %v3260_v7, %v3256_v34  ;;  %v4015_v8 = vld [vmem:[#allocation2 + $0x10] sm:$0xf]  ;;  %v3290_v42 = vrot.slane %v3288_v24, 5  ;;  %v13234_v62 = vrot.slane %v4017_v56, 9  ;;  %v4119_v4 = vrot.slane %v4018_v59, 5 }
  0xd3   : > { %14605 = vmatpush3.bf16.msra.mxu1 %v15334_v10  ;;  %v3251_v10 = vor.u32 %v3250_v50, %v3247_v51  ;;  %v4112_v31 = vrot.slane %v4015_v8, 5  ;;  %v3285_v58 = vor.u32 %v3284_v19, %v3280_v25  ;;  %v4122_v51 = vrot.slane %v4019_v17, 5  ;;  %v3203_v50 = vld [vmem:[#allocation2 + $0x28] sm:$0xf]  ;;  %v3205_v15 = vld [vmem:[#allocation2 + $0x30] sm:$0xf] }
  0xd4   : > { %14606 = vmatprep.subr.bf16.mxu1 %v15338_v38  ;;  %v3262_v32 = vrot.slane %v3261_v16, 4  ;;  %v3296_v14 = vshll.u32 %v3202_v63, 16  ;;  %v4121_v12 = vrot.slane %v4119_v4, 4  ;;  %v16353_v16 = vld [vmem:[%s19573_s1 + $0x1f8] sm:$0xff]   ;;  %v15327_v24 = vld [vmem:[#allocation2 + $0x90] sm:$0xff]  }
  0xd5   : > { %14527 = vmatmul.mubr.bf16.gmra.mxu1 %v15319_v40  ;;  %v3252_v60 = vrot.slane %v3251_v10, 4  ;;  %v3275_v40 = vor.u32 %v3274_v23, %v3271_v2  ;;  %v16332_v13 = vsel %vm16069_vm13, %v13233_v29, %v4112_v31  ;;  %v3286_v3 = vrot.slane %v3285_v58, 4  ;;  %v3206_v10 = vld [vmem:[#allocation2 + $0x34] sm:$0xf]  ;;  %v3207_v23 = vld [vmem:[#allocation2 + $0x38] sm:$0x1] }
  0xd6   : > { %14530 = vmatprep.mubr.bf16.mxu1 %v15321_v46  ;;  %v15326_v46 = vld [vmem:[#allocation2 + $0x84] sm:$0xff]   ;;  %v3267_v52 = vsel %vm15702_vm6, %v3262_v32, %v3266_v41  ;;  %v16348_v41 = vsel %vm16069_vm13, %v13234_v62, %v4119_v4  ;;  %v3298_v22 = vrot.slane %v3296_v14, 5  ;;  %v3302_v2 = vshll.u32 %v3203_v50, 16  ;;  %v4022_v62 = vld [vmem:[#allocation2 + $0x2c] sm:$0x1] }
  0xd7   : > { %14607 = vmatpush3.bf16.msra.mxu1 %v15338_v38  ;;  %v3257_v38 = vsel %vm15702_vm6, %v3252_v60, %v3256_v34  ;;  %v3276_v5 = vrot.slane %v3275_v40, 4  ;;  %v3293_v34 = vshrl.u32 %v3202_v63, 16  ;;  %v3291_v0 = vsel %vm15702_vm6, %v3286_v3, %v3290_v42  ;;  %v4020_v42 = vld [vmem:[#allocation2 + $0x24] sm:$0xe]  ;;  %v5099_v49 = vld [vmem:[#allocation2 + $0xb8] sm:$0xf] }
  0xd8   : > { %14608 = vmatprep.subr.bf16.mxu1 %v15339_v11  ;;  %v16334_v7 = vcombine.low %v3257_v38, %v3267_v52  ;;  %v16359_v8 = vsel %vm16069_vm13, %v4121_v12, %v4122_v51  ;;  %v3306_v29 = vshrl.u32 %v3203_v50, 16  ;;  %v3317_v32 = vshrl.u32 %v3205_v15, 16  ;;  %v4021_v38 = vld [vmem:[#allocation2 + $0x28] sm:$0xf]  ;;  %v4024_v50 = vld [vmem:[#allocation2 + $0x34] sm:$0xf] }
  0xd9   : > { %14487 = vmatmul.mubr.bf16.gmra.mxu0 %v13140_v35  ;;  %v4114_v35 = vrot.slane %v4112_v31, 4  ;;  %v3281_v6 = vsel %vm15702_vm6, %v3276_v5, %v3280_v25  ;;  %v3295_v20 = vrot.slane %v3293_v34, 4  ;;  %v15331_v25 = vld [vmem:[#allocation2 + $0x9c] sm:$0xff]   ;;  %v13266_v19 = vcombine.low %v16348_v41, %v16359_v8  ;;  %v4025_v34 = vld [vmem:[#allocation2 + $0x38] sm:$0x1] }
  0xda   : > { %14490 = vmatprep.mubr.bf16.mxu0 %v13141_v57  ;;  %v3204_v57 = vld [vmem:[#allocation2 + $0x2c] sm:$0x1]  ;;  %v16355_v48 = vcombine.low %v3281_v6, %v3291_v0  ;;  %v3320_v40 = vshll.u32 %v3205_v15, 16  ;;  %v3308_v31 = vrot.slane %v3306_v29, 4  ;;  %v3319_v56 = vrot.slane %v3317_v32, 4 }
  0xdb   : > { %14609 = vmatpush3.bf16.msra.mxu1 %v15339_v11  ;;  %v16340_v33 = vsel %vm16069_vm13, %v4114_v35, %v4115_v55  ;;  %v3312_v60 = vshll.u32 %v3204_v57, 16  ;;  %v3299_v9 = vor.u32 %v3298_v22, %v3295_v20  ;;  %v3330_v59 = vshrl.u32 %v3206_v10, 16  ;;  %v3208_v57 = vld [vmem:[#allocation2 + $0x3c] sm:$0xf] }
  0xdc   : > { %v13265_v11 = vcombine.low %v16332_v13, %v16340_v33  ;;  %14690 = vmatprep.subr.bf16.mxu1 %v16353_v16  ;;  %v3322_v58 = vrot.slane %v3320_v40, 5  ;;  %v3336_v17 = vshll.u32 %v3207_v23, 16  ;;  %v13235_v63 = vrot.slane %v4020_v42, 9  ;;  %v3210_v23 = vld [vmem:[#allocation2 + $0x44] sm:$0x1]  ;;  %v15332_v40 = vld [vmem:[#allocation2 + $0xa8] sm:$0xff]  }
  0xdd   : > { %14531 = vmatmul.mubr.bf16.gmra.mxu1 %v15322_v30  ;;  %v3304_v30 = vrot.slane %v3302_v2, 5  ;;  %v3314_v55 = vrot.slane %v3312_v60, 5  ;;  %v3300_v52 = vrot.slane %v3299_v9, 4  ;;  %v4126_v3 = vrot.slane %v4021_v38, 5  ;;  %v3209_v2 = vld [vmem:[#allocation2 + $0x40] sm:$0xf] }
  0xde   : > { %14534 = vmatprep.mubr.bf16.mxu1 %v15326_v46  ;;  %v3326_v46 = vshll.u32 %v3206_v10, 16  ;;  %v3332_v4 = vrot.slane %v3330_v59, 4  ;;  %v3338_v51 = vrot.slane %v3336_v17, 5  ;;  %v4129_v6 = vrot.slane %v4022_v62, 5  ;;  %v3211_v9 = vld [vmem:[#allocation2 + $0x48] sm:$0xf] }
  0xdf   : > { %v3309_v5 = vor.u32 %v3308_v31, %v3304_v30  ;;  %v3305_v26 = vsel %vm15702_vm6, %v3300_v52, %v3304_v30  ;;  %v16374_v28 = vsel %vm16069_vm13, %v13235_v63, %v4126_v3  ;;  %v13236_v12 = vrot.slane %v4023_v18, 9  ;;  %v3212_v30 = vld [vmem:[#allocation2 + $0x4c] sm:$0xf]  ;;  %v4027_v18 = vld [vmem:[#allocation2 + $0x40] sm:$0xf] }
  0xe0   : > { %v3328_v35 = vrot.slane %v3326_v46, 5  ;;  %v4133_v15 = vrot.slane %v4024_v50, 5  ;;  %v4136_v22 = vrot.slane %v4025_v34, 5  ;;  %v15336_v46 = vld [vmem:[#allocation2 + $0xb4] sm:$0xff]   ;;  %v3350_v52 = vshll.u32 %v3209_v2, 16 }
  0xe1   : > { %14491 = vmatmul.mubr.bf16.gmra.mxu0 %v13142_v45  ;;  %v3323_v45 = vor.u32 %v3322_v58, %v3319_v56  ;;  %v3310_v27 = vrot.slane %v3309_v5, 4  ;;  %v3344_v56 = vshll.u32 %v3208_v57, 16  ;;  %v3354_v58 = vshrl.u32 %v3209_v2, 16  ;;  %v4026_v5 = vld [vmem:[#allocation2 + $0x3c] sm:$0xe]  ;;  %v15341_v34 = vld [vmem:[%s19573_s1 + $0x1b0] sm:$0xff]  }
  0xe2   : > { %14494 = vmatprep.mubr.bf16.mxu0 %v13143_v61  ;;  %v4128_v61 = vrot.slane %v4126_v3, 4  ;;  %v3333_v0 = vor.u32 %v3332_v4, %v3328_v35  ;;  %v16391_v42 = vsel %vm16069_vm13, %v13236_v12, %v4133_v15  ;;  %v4135_v31 = vrot.slane %v4133_v15, 4  ;;  %v4028_v50 = vld [vmem:[#allocation2 + $0x44] sm:$0x1] }
  0xe3   : > { %v3324_v14 = vrot.slane %v3323_v45, 4  ;;  %v3315_v10 = vsel %vm15702_vm6, %v3310_v27, %v3314_v55  ;;  %v3360_v59 = vshll.u32 %v3210_v23, 16  ;;  %v3346_v47 = vrot.slane %v3344_v56, 5 }
  0xe4   : > { %v16380_v20 = vsel %vm16069_vm13, %v4128_v61, %v4129_v6  ;;  %v13211_v29 = vcombine.low %v3305_v26, %v3315_v10  ;;  %v3334_v32 = vrot.slane %v3333_v0, 4  ;;  %v16400_v44 = vsel %vm16069_vm13, %v4135_v31, %v4136_v22  ;;  %v4030_v22 = vld [vmem:[#allocation2 + $0x4c] sm:$0xf] }
  0xe5   : > { %14535 = vmatmul.mubr.bf16.gmra.mxu1 %v15327_v24  ;;  %v3341_v24 = vshrl.u32 %v3208_v57, 16  ;;  %v3329_v60 = vsel %vm15702_vm6, %v3324_v14, %v3328_v35  ;;  %v3365_v62 = vshrl.u32 %v3211_v9, 16  ;;  %v13268_v35 = vcombine.low %v16391_v42, %v16400_v44  ;;  %v4029_v14 = vld [vmem:[#allocation2 + $0x48] sm:$0xe] }
  0xe6   : > { %14538 = vmatprep.mubr.bf16.mxu1 %v15331_v25  ;;  %v13267_v25 = vcombine.low %v16374_v28, %v16380_v20  ;;  %v3339_v38 = vsel %vm15702_vm6, %v3334_v32, %v3338_v51  ;;  %v3356_v63 = vrot.slane %v3354_v58, 4  ;;  %v3362_v3 = vrot.slane %v3360_v59, 5  ;;  %v4031_v32 = vld [vmem:[#allocation2 + $0x50] sm:$0x1]  ;;  %v15342_v31 = vld [vmem:[%s19573_s1 + $0x1a8] sm:$0xff]  }
  0xe7   : > { %v3343_v55 = vrot.slane %v3341_v24, 4  ;;  %v16396_v17 = vcombine.low %v3329_v60, %v3339_v38  ;;  %v3367_v45 = vrot.slane %v3365_v62, 4  ;;  %v3368_v4 = vshll.u32 %v3211_v9, 16  ;;  %v15337_v9 = vld [vmem:[#allocation2 + $0xc0] sm:$0xff]   ;;  %v3214_v58 = vld [vmem:[#allocation2 + $0x54] sm:$0xf] }
  0xe8   : > { %v3374_v51 = vshll.u32 %v3212_v30, 16  ;;  %v3378_v61 = vshrl.u32 %v3212_v30, 16  ;;  %v13237_v57 = vrot.slane %v4026_v5, 9  ;;  %v4140_v10 = vrot.slane %v4027_v18, 5  ;;  %v3215_v59 = vld [vmem:[#allocation2 + $0x58] sm:$0xf] }
  0xe9   : > { %14495 = vmatmul.mubr.bf16.gmra.mxu0 %v13144_v36  ;;  %v3213_v36 = vld [vmem:[#allocation2 + $0x50] sm:$0x1]  ;;  %v3347_v26 = vor.u32 %v3346_v47, %v3343_v55  ;;  %v3370_v12 = vrot.slane %v3368_v4, 5  ;;  %v4143_v60 = vrot.slane %v4028_v50, 5  ;;  %v13238_v38 = vrot.slane %v4029_v14, 9  ;;  %v15343_v14 = vld [vmem:[%s19573_s1 + $0x1a0] sm:$0xff]  }
  0xea   : > { %14562 = vmatprep.mubr.bf16.mxu0 %v16334_v7  ;;  %v3352_v7 = vrot.slane %v3350_v52, 5  ;;  %v3384_v6 = vshll.u32 %v3213_v36, 16  ;;  %v3376_v15 = vrot.slane %v3374_v51, 5  ;;  %v3380_v23 = vrot.slane %v3378_v61, 4  ;;  %v3217_v51 = vld [vmem:[#allocation2 + $0x60] sm:$0xf] }
  0xeb   : > { %v3348_v0 = vrot.slane %v3347_v26, 4  ;;  %v3371_v30 = vor.u32 %v3370_v12, %v3367_v45  ;;  %v16415_v55 = vsel %vm16069_vm13, %v13237_v57, %v4140_v10  ;;  %v4142_v56 = vrot.slane %v4140_v10, 4  ;;  %v3218_v57 = vld [vmem:[#allocation2 + $0x64] sm:$0xf]  ;;  %v4032_v12 = vld [vmem:[#allocation2 + $0x54] sm:$0xe] }
  0xec   : > { %v3357_v27 = vor.u32 %v3356_v63, %v3352_v7  ;;  %v3386_v24 = vrot.slane %v3384_v6, 5  ;;  %v4147_v52 = vrot.slane %v4030_v22, 5  ;;  %v4150_v5 = vrot.slane %v4031_v32, 5  ;;  %v3221_v28 = vld [vmem:[#allocation2 + $0x70] sm:$0xf]  ;;  %v15348_v20 = vld [vmem:[%s19573_s1 + $0x1e8] sm:$0xff]  }
  0xed   : > { %14539 = vmatmul.mubr.bf16.gmra.mxu1 %v15332_v40  ;;  %v3353_v40 = vsel %vm15702_vm6, %v3348_v0, %v3352_v7  ;;  %v3372_v36 = vrot.slane %v3371_v30, 4  ;;  %v16422_v62 = vsel %vm16069_vm13, %v4142_v56, %v4143_v60  ;;  %v3216_v7 = vld [vmem:[#allocation2 + $0x5c] sm:$0x1]  ;;  %v3389_v26 = vshrl.u32 %v3214_v58, 16 }
  0xee   : > { %14542 = vmatprep.mubr.bf16.mxu1 %v15336_v46  ;;  %v3358_v2 = vrot.slane %v3357_v27, 4  ;;  %v3392_v45 = vshll.u32 %v3214_v58, 16  ;;  %v3398_v4 = vshll.u32 %v3215_v59, 16  ;;  %v3402_v61 = vshrl.u32 %v3215_v59, 16  ;;  %v15344_v30 = vld [vmem:[%s19573_s1 + $0x198] sm:$0xff]  }
  0xef   : > { %v3377_v18 = vsel %vm15702_vm6, %v3372_v36, %v3376_v15  ;;  %v3408_v6 = vshll.u32 %v3216_v7, 16  ;;  %v3391_v33 = vrot.slane %v3389_v26, 4  ;;  %v3416_v60 = vshll.u32 %v3217_v51, 16  ;;  %v4036_v7 = vld [vmem:[#allocation2 + $0x64] sm:$0xf] }
  0xf0   : > { %v3363_v46 = vsel %vm15702_vm6, %v3358_v2, %v3362_v3  ;;  %v4149_v3 = vrot.slane %v4147_v52, 4  ;;  %v3404_v10 = vrot.slane %v3402_v61, 4  ;;  %v3413_v2 = vshrl.u32 %v3217_v51, 16 }
  0xf1   : > { %14563 = vmatmul.mubr.bf16.vlgmr.msra.gmra.mxu0 %v16355_v48  ;;  %v3381_v48 = vor.u32 %v3380_v23, %v3376_v15  ;;  %v13213_v47 = vcombine.low %v3353_v40, %v3363_v46  ;;  %v3400_v15 = vrot.slane %v3398_v4, 5  ;;  %v3410_v22 = vrot.slane %v3408_v6, 5  ;;  %v4033_v23 = vld [vmem:[#allocation2 + $0x58] sm:$0xf]  ;;  %v4034_v40 = vld [vmem:[#allocation2 + $0x5c] sm:$0x1] }
  0xf2   : > { %14643 = vmatpush3.bf16.msra.mxu0 %v16300_v39  ;;  %14566 = vmatprep.mubr.bf16.mxu0 %v13211_v29  ;;  %v13269_v39 = vcombine.low %v16415_v55, %v16422_v62  ;;  %v16428_v29 = vsel %vm16069_vm13, %v13238_v38, %v4147_v52  ;;  %v16439_v27 = vsel %vm16069_vm13, %v4149_v3, %v4150_v5  ;;  %v3422_v32 = vshll.u32 %v3218_v57, 16  ;;  %v4035_v52 = vld [vmem:[#allocation2 + $0x60] sm:$0xe] }
  0xf3   : > { %14644 = vmatprep.subr.bf16.mxu0 %v15341_v34  ;;  %v3382_v63 = vrot.slane %v3381_v48, 4  ;;  %v13270_v13 = vcombine.low %v16428_v29, %v16439_v27  ;;  %v3405_v56 = vor.u32 %v3404_v10, %v3400_v15  ;;  %v3415_v46 = vrot.slane %v3413_v2, 4  ;;  %v15353_v55 = vld [vmem:[%s19573_s1 + $0x180] sm:$0xff]  }
  0xf4   : > { %v13239_v38 = vrot.slane %v4032_v12, 9  ;;  %v3418_v59 = vrot.slane %v3416_v60, 5  ;;  %v3424_v36 = vrot.slane %v3422_v32, 5  ;;  %v13240_v51 = vrot.slane %v4035_v52, 9  ;;  %v3224_v60 = vld [vmem:[#allocation2 + $0x7c] sm:$0xf] }
  0xf5   : > { %14543 = vmatmul.mubr.bf16.gmra.mxu1 %v15337_v9  ;;  %v3387_v50 = vsel %vm15702_vm6, %v3382_v63, %v3386_v24  ;;  %v3426_v9 = vshrl.u32 %v3218_v57, 16  ;;  %v3406_v63 = vrot.slane %v3405_v56, 4  ;;  %v4161_v8 = vrot.slane %v4036_v7, 5  ;;  %v3225_v32 = vld [vmem:[#allocation2 + $0x80] sm:$0x1] }
  0xf6   : > { %14610 = vmatprep.mubr.bf16.mxu1 %v13265_v11  ;;  %14645 = vmatpush3.bf16.msra.mxu0 %v15341_v34  ;;  %v16444_v0 = vcombine.low %v3377_v18, %v3387_v50  ;;  %v3394_v11 = vrot.slane %v3392_v45, 5  ;;  %v3219_v34 = vld [vmem:[#allocation2 + $0x68] sm:$0x1]  ;;  %v4154_v18 = vrot.slane %v4033_v23, 5  ;;  %v3419_v45 = vor.u32 %v3418_v59, %v3415_v46  ;;  %v3220_v50 = vld [vmem:[#allocation2 + $0x6c] sm:$0xf] }
  0xf7   : > { %14646 = vmatprep.subr.bf16.mxu0 %v15342_v31  ;;  %v3432_v48 = vshll.u32 %v3219_v34, 16  ;;  %v3428_v5 = vrot.slane %v3426_v9, 4  ;;  %v3411_v61 = vsel %vm15702_vm6, %v3406_v63, %v3410_v22  ;;  %v4163_v12 = vrot.slane %v4161_v8, 4  ;;  %v3223_v22 = vld [vmem:[#allocation2 + $0x78] sm:$0xf] }
  0xf8   : > { %v3395_v24 = vor.u32 %v3394_v11, %v3391_v33  ;;  %v16467_v6 = vsel %vm16069_vm13, %v13239_v38, %v4154_v18  ;;  %v4156_v41 = vrot.slane %v4154_v18, 4  ;;  %v3420_v33 = vrot.slane %v3419_v45, 4  ;;  %v4038_v46 = vld [vmem:[#allocation2 + $0x6c] sm:$0xe]  ;;  %v4040_v7 = vld [vmem:[#allocation2 + $0x74] sm:$0x1] }
  0xf9   : > { %14567 = vmatmul.mubr.bf16.gmra.mxu0 %v16396_v17  ;;  %v15346_v17 = vld [vmem:[%s19573_s1 + $0x1f0] sm:$0xff]   ;;  %v3434_v3 = vrot.slane %v3432_v48, 5  ;;  %v3429_v4 = vor.u32 %v3428_v5, %v3424_v36  ;;  %v3437_v10 = vshrl.u32 %v3220_v50, 16  ;;  %v15349_v48 = vld [vmem:[%s19573_s1 + $0x1e0] sm:$0xff]   ;;  %v3450_v59 = vshrl.u32 %v3221_v28, 16 }
  0xfa   : > { %14570 = vmatprep.mubr.bf16.mxu0 %v13213_v47  ;;  %14647 = vmatpush3.bf16.msra.mxu0 %v15342_v31  ;;  %v3396_v58 = vrot.slane %v3395_v24, 4  ;;  %v4157_v47 = vrot.slane %v4034_v40, 5  ;;  %v4037_v31 = vld [vmem:[#allocation2 + $0x68] sm:$0x1]  ;;  %v3440_v24 = vshll.u32 %v3220_v50, 16  ;;  %v3464_v18 = vshll.u32 %v3223_v22, 16 }
  0xfb   : > { %14648 = vmatprep.subr.bf16.mxu0 %v15343_v14  ;;  %v3430_v11 = vrot.slane %v3429_v4, 4  ;;  %v4164_v34 = vrot.slane %v4037_v31, 5  ;;  %v3439_v56 = vrot.slane %v3437_v10, 4  ;;  %v4039_v5 = vld [vmem:[#allocation2 + $0x70] sm:$0xf]  ;;  %v3474_v4 = vshrl.u32 %v3224_v60, 16 }
  0xfc   : > { %v3401_v26 = vsel %vm15702_vm6, %v3396_v58, %v3400_v15  ;;  %v3222_v15 = vld [vmem:[#allocation2 + $0x74] sm:$0x1]  ;;  %v3442_v58 = vrot.slane %v3440_v24, 5  ;;  %v3466_v50 = vrot.slane %v3464_v18, 5  ;;  %v16547_v18 = vld [vmem:[%s19573_s1 + $0x238] sm:$0xff]  }
  0xfd   : > { %14611 = vmatmul.mubr.bf16.vlgmr.msra.gmra.mxu1 %v13266_v19  ;;  %v15347_v19 = vld [vmem:[%s19573_s1 + $0x190] sm:$0xff]   ;;  %v13215_v57 = vcombine.low %v3401_v26, %v3411_v61  ;;  %v3435_v2 = vsel %vm15702_vm6, %v3430_v11, %v3434_v3  ;;  %v16493_v40 = vsel %vm16069_vm13, %v4163_v12, %v4164_v34  ;;  %v3461_v3 = vshrl.u32 %v3223_v22, 16  ;;  %v4043_v11 = vld [vmem:[#allocation2 + $0x80] sm:$0x1]  ;;  %v3226_v12 = vld [vmem:[#allocation2 + $0x84] sm:$0xf] }
  0xfe   : > { %14614 = vmatprep.mubr.bf16.mxu1 %v13267_v25  ;;  %14649 = vmatpush3.bf16.msra.mxu0 %v15343_v14  ;;  %v16478_v25 = vsel %vm16069_vm13, %v4156_v41, %v4157_v47  ;;  %v16482_v14 = vsel %vm16069_vm13, %v13240_v51, %v4161_v8  ;;  %v16498_v38 = vpop.f32.mrf.mxu0  ;;  %v3470_v47 = vshll.u32 %v3224_v60, 16  ;;  %v3443_v31 = vor.u32 %v3442_v58, %v3439_v56  ;;  %v4041_v51 = vld [vmem:[#allocation2 + $0x78] sm:$0xe]  ;;  %v4042_v8 = vld [vmem:[#allocation2 + $0x7c] sm:$0xf] }
  0xff   : > { %14650 = vmatprep.subr.bf16.mxu0 %v15344_v30  ;;  %14691 = vmatpush3.bf16.msra.mxu1 %v16353_v16  ;;  %v3425_v16 = vsel %vm15702_vm6, %v3420_v33, %v3424_v36  ;;  %v13271_v23 = vcombine.low %v16467_v6, %v16478_v25  ;;  %v13272_v52 = vcombine.low %v16482_v14, %v16493_v40  ;;  %v3456_v36 = vshll.u32 %v3222_v15, 16  ;;  %v4044_v27 = vld [vmem:[#allocation2 + $0x84] sm:$0xe] }
 0x100   : > { %14692 = vmatprep.subr.bf16.mxu1 %v15346_v17  ;;  %v13216_v9 = vcombine.low %v3425_v16, %v3435_v2  ;;  %v3452_v26 = vrot.slane %v3450_v59, 4  ;;  %v3472_v61 = vrot.slane %v3470_v47, 5  ;;  %v3480_v41 = vshll.u32 %v3225_v32, 16  ;;  %v3227_v16 = vld [vmem:[#allocation2 + $0x88] sm:$0xf]  ;;  %v15352_v59 = vld [vmem:[%s19573_s1 + $0x1d0] sm:$0xff]  }
 0x101   : > { %14571 = vmatmul.mubr.bf16.gmra.mxu0 %v16444_v0  ;;  %v3446_v0 = vshll.u32 %v3221_v28, 16  ;;  %v3458_v45 = vrot.slane %v3456_v36, 5  ;;  %v3444_v33 = vrot.slane %v3443_v31, 4  ;;  %v3476_v44 = vrot.slane %v3474_v4, 4  ;;  %v3230_v4 = vld [vmem:[#allocation2 + $0x94] sm:$0xf] }
 0x102   : > { %14574 = vmatprep.mubr.bf16.mxu0 %v13215_v57  ;;  %14651 = vmatpush3.bf16.msra.mxu0 %v15344_v30  ;;  %v15350_v30 = vld [vmem:[%s19573_s1 + $0x188] sm:$0xff]   ;;  %v16511_v57 = vpop.f32.mrf.mxu0  ;;  %v4168_v34 = vrot.slane %v4039_v5, 5  ;;  %v4171_v28 = vrot.slane %v4040_v7, 5  ;;  %v13242_v22 = vrot.slane %v4041_v51, 9  ;;  %v4175_v32 = vrot.slane %v4042_v8, 5 }
 0x103   : > { %14693 = vmatpush3.bf16.msra.mxu1 %v15346_v17  ;;  %14652 = vmatprep.subr.bf16.mxu0 %v15347_v19  ;;  %v3448_v63 = vrot.slane %v3446_v0, 5  ;;  %v3463_v17 = vrot.slane %v3461_v3, 4  ;;  %v3477_v10 = vor.u32 %v3476_v44, %v3472_v61  ;;  %v3485_v58 = vshrl.u32 %v3226_v12, 16  ;;  %v3229_v3 = vld [vmem:[#allocation2 + $0x90] sm:$0xf] }
 0x104   : > { %14694 = vmatprep.subr.bf16.mxu1 %v15348_v20  ;;  %v4170_v60 = vrot.slane %v4168_v34, 4  ;;  %v16525_v56 = vpop.f32.mrf.mxu0  ;;  %v3231_v51 = vld [vmem:[#allocation2 + $0x98] sm:$0x1]  ;;  %v3498_v29 = vshrl.u32 %v3227_v16, 16  ;;  %v3512_v44 = vshll.u32 %v3229_v3, 16 }
 0x105   : > { %14615 = vmatmul.mubr.bf16.gmra.mxu1 %v13268_v35  ;;  %v3453_v42 = vor.u32 %v3452_v26, %v3448_v63  ;;  %v13241_v35 = vrot.slane %v4038_v46, 9  ;;  %v3467_v62 = vor.u32 %v3466_v50, %v3463_v17  ;;  %v3449_v15 = vsel %vm15702_vm6, %v3444_v33, %v3448_v63  ;;  %v3228_v63 = vld [vmem:[#allocation2 + $0x8c] sm:$0x1] }
 0x106   : > { %14618 = vmatprep.mubr.bf16.mxu1 %v13269_v39  ;;  %14653 = vmatpush3.bf16.msra.mxu0 %v15347_v19  ;;  %v3482_v39 = vrot.slane %v3480_v41, 5  ;;  %v15351_v19 = vld [vmem:[%s19573_s1 + $0x1d8] sm:$0xff]   ;;  %v3478_v0 = vrot.slane %v3477_v10, 4  ;;  %v4178_v46 = vrot.slane %v4043_v11, 5  ;;  %v16536_v7 = vsel %vm16069_vm13, %v4170_v60, %v4171_v28  ;;  %v16559_v41 = vpop.f32.mrf.mxu0  ;;  %v4046_v11 = vld [vmem:[#allocation2 + $0x8c] sm:$0x1] }
 0x107   : > { %14695 = vmatpush3.bf16.msra.mxu1 %v15348_v20  ;;  %14654 = vmatprep.subr.bf16.mxu0 %v15350_v30  ;;  %v3454_v20 = vrot.slane %v3453_v42, 4  ;;  %v3468_v2 = vrot.slane %v3467_v62, 4  ;;  %v16523_v24 = vsel %vm16069_vm13, %v13241_v35, %v4168_v34  ;;  %v4177_v26 = vrot.slane %v4175_v32, 4  ;;  %v15354_v62 = vld [vmem:[%s19573_s1 + $0x1c8] sm:$0xff]  }
 0x108   : > { %14696 = vmatprep.subr.bf16.mxu1 %v15349_v48  ;;  %v3483_v47 = vsel %vm15702_vm6, %v3478_v0, %v3482_v39  ;;  %v13273_v31 = vcombine.low %v16523_v24, %v16536_v7  ;;  %v3488_v50 = vshll.u32 %v3226_v12, 16  ;;  %v3504_v33 = vshll.u32 %v3228_v63, 16  ;;  %v15355_v0 = vld [vmem:[%s19573_s1 + $0x1c0] sm:$0xff]   ;;  %v4049_v7 = vld [vmem:[#allocation2 + $0x98] sm:$0x1] }
 0x109   : > { %14575 = vmatmul.mubr.bf16.gmra.mxu0 %v13216_v9  ;;  %v3459_v9 = vsel %vm15702_vm6, %v3454_v20, %v3458_v45  ;;  %v3473_v5 = vsel %vm15702_vm6, %v3468_v2, %v3472_v61  ;;  %v3487_v45 = vrot.slane %v3485_v58, 4  ;;  %v3494_v61 = vshll.u32 %v3227_v16, 16  ;;  %v16573_v16 = vpop.f32.mrf.mxu0 }
 0x10a   : > { %14655 = vmatpush3.bf16.msra.mxu0 %v15350_v30  ;;  %v13217_v36 = vcombine.low %v3449_v15, %v3459_v9  ;;  %v16540_v30 = vsel %vm16069_vm13, %v13242_v22, %v4175_v32  ;;  %v13218_v17 = vcombine.low %v3473_v5, %v3483_v47  ;;  %v16563_v8 = vsel %vm16069_vm13, %v4177_v26, %v4178_v46  ;;  %v4047_v22 = vld [vmem:[#allocation2 + $0x90] sm:$0xe]  ;;  %v4048_v9 = vld [vmem:[#allocation2 + $0x94] sm:$0xf] }
 0x10b   : > { %14697 = vmatpush3.bf16.msra.mxu1 %v15349_v48  ;;  %14656 = vmatprep.subr.bf16.mxu0 %v15353_v55  ;;  %v16542_v48 = vpop.f32.mrf.mxu1  ;;  %v3509_v42 = vshrl.u32 %v3229_v3, 16  ;;  %v13274_v6 = vcombine.low %v16540_v30, %v16563_v8  ;;  %v3490_v25 = vrot.slane %v3488_v50, 5  ;;  %v3500_v35 = vrot.slane %v3498_v29, 4  ;;  %v3234_v29 = vld [vmem:[#allocation2 + $0xa4] sm:$0x1]  ;;  %v16589_v14 = vpop.f32.mrf.mxu0 }
 0x10c   : > { %14698 = vmatprep.subr.bf16.mxu1 %v15351_v19  ;;  %14578 = vmatprep.mubr.bf16.mxu0 %v13217_v36  ;;  %v3506_v34 = vrot.slane %v3504_v33, 5  ;;  %v3518_v12 = vshll.u32 %v3230_v4, 16  ;;  %v3522_v20 = vshrl.u32 %v3230_v4, 16  ;;  %v3528_v10 = vshll.u32 %v3231_v51, 16 }
 0x10d   : > { %14619 = vmatmul.mubr.bf16.gmra.mxu1 %v13270_v13  ;;  %v4045_v13 = vld [vmem:[#allocation2 + $0x88] sm:$0xf]  ;;  %v16571_v39 = vpop.f32.mrf.mxu1  ;;  %v3511_v28 = vrot.slane %v3509_v42, 4  ;;  %v13243_v60 = vrot.slane %v4044_v27, 9  ;;  %v4185_v26 = vrot.slane %v4046_v11, 5  ;;  %v13244_v50 = vrot.slane %v4047_v22, 9  ;;  %v16603_v22 = vpop.f32.mrf.mxu0 }
 0x10e   : > { %14622 = vmatprep.mubr.bf16.mxu1 %v13271_v23  ;;  %14657 = vmatpush3.bf16.msra.mxu0 %v15353_v55  ;;  %v3496_v23 = vrot.slane %v3494_v61, 5  ;;  %v3514_v55 = vrot.slane %v3512_v44, 5  ;;  %v3520_v24 = vrot.slane %v3518_v12, 5  ;;  %v4182_v32 = vrot.slane %v4045_v13, 5  ;;  %v3233_v61 = vld [vmem:[#allocation2 + $0xa0] sm:$0xf] }
 0x10f   : > { %14699 = vmatpush3.bf16.msra.mxu1 %v15351_v19  ;;  %14738 = vmatprep.subr.bf16.mxu0 %v16547_v18  ;;  %v3491_v19 = vor.u32 %v3490_v25, %v3487_v45  ;;  %v3524_v36 = vrot.slane %v3522_v20, 4  ;;  %v3530_v5 = vrot.slane %v3528_v10, 5  ;;  %v16578_v63 = vpop.f32.mrf.mxu1  ;;  %v3232_v45 = vld [vmem:[#allocation2 + $0x9c] sm:$0xf]  ;;  %v3235_v13 = vld [vmem:[#allocation2 + $0xa8] sm:$0xf] }
 0x110   : > { %14700 = vmatprep.subr.bf16.mxu1 %v15352_v59  ;;  %v3501_v15 = vor.u32 %v3500_v35, %v3496_v23  ;;  %v3515_v2 = vor.u32 %v3514_v55, %v3511_v28  ;;  %v4184_v47 = vrot.slane %v4182_v32, 4  ;;  %v4192_v44 = vrot.slane %v4049_v7, 5  ;;  %v3237_v12 = vld [vmem:[#allocation2 + $0xb0] sm:$0x1]  ;;  %v4050_v10 = vld [vmem:[#allocation2 + $0x9c] sm:$0xe] }
 0x111   : > { %14579 = vmatmul.mubr.bf16.gmra.mxu0 %v13218_v17  ;;  %v3492_v46 = vrot.slane %v3491_v19, 4  ;;  %v3525_v17 = vor.u32 %v3524_v36, %v3520_v24  ;;  %v3533_v25 = vshrl.u32 %v3232_v45, 16  ;;  %v16595_v35 = vpop.f32.mrf.mxu1  ;;  %v3536_v28 = vshll.u32 %v3232_v45, 16 }
 0x112   : > { %v3502_v58 = vrot.slane %v3501_v15, 4  ;;  %v3516_v3 = vrot.slane %v3515_v2, 4  ;;  %v4186_v27 = vsel %vm16069_vm13, %v4184_v47, %v4185_v26  ;;  %v3542_v55 = vshll.u32 %v3233_v61, 16 }
 0x113   : > { %14701 = vmatpush3.bf16.msra.mxu1 %v15352_v59  ;;  %v4183_v59 = vsel %vm16069_vm13, %v13243_v60, %v4182_v32  ;;  %v3497_v4 = vsel %vm15702_vm6, %v3492_v46, %v3496_v23  ;;  %v3526_v33 = vrot.slane %v3525_v17, 4  ;;  %v3236_v23 = vld [vmem:[#allocation2 + $0xac] sm:$0xf]  ;;  %v3535_v19 = vrot.slane %v3533_v25, 4  ;;  %v4052_v46 = vld [vmem:[#allocation2 + $0xa4] sm:$0x1] }
 0x114   : > { %14702 = vmatprep.subr.bf16.mxu1 %v15354_v62  ;;  %v3507_v51 = vsel %vm15702_vm6, %v3502_v58, %v3506_v34  ;;  %v13275_v42 = vcombine.low %v4183_v59, %v4186_v27  ;;  %v3546_v15 = vshrl.u32 %v3233_v61, 16  ;;  %v3552_v20 = vshll.u32 %v3234_v29, 16  ;;  %v4055_v29 = vld [vmem:[#allocation2 + $0xb0] sm:$0x1] }
 0x115   : > { %14623 = vmatmul.mubr.bf16.gmra.mxu1 %v13272_v52  ;;  %v13219_v40 = vcombine.low %v3497_v4, %v3507_v51  ;;  %v3521_v52 = vsel %vm15702_vm6, %v3516_v3, %v3520_v24  ;;  %v3538_v60 = vrot.slane %v3536_v28, 5  ;;  %v3544_v32 = vrot.slane %v3542_v55, 5  ;;  %v4053_v3 = vld [vmem:[#allocation2 + $0xa8] sm:$0xe]  ;;  %v16608_v59 = vpop.f32.mrf.mxu1  ;;  %v4054_v51 = vld [vmem:[#allocation2 + $0xac] sm:$0xf] }
 0x116   : > { %14626 = vmatprep.mubr.bf16.mxu1 %v13273_v31  ;;  %v4189_v31 = vrot.slane %v4048_v9, 5  ;;  %v4051_v9 = vld [vmem:[#allocation2 + $0xa0] sm:$0xf]  ;;  %v3548_v36 = vrot.slane %v3546_v15, 4  ;;  %v3554_v7 = vrot.slane %v3552_v20, 5  ;;  %v3560_v26 = vshll.u32 %v3235_v13, 16 }
 0x117   : > { %14703 = vmatpush3.bf16.msra.mxu1 %v15354_v62  ;;  %14582 = vmatprep.mubr.bf16.mxu0 %v13219_v40  ;;  %v3531_v62 = vsel %vm15702_vm6, %v3526_v33, %v3530_v5  ;;  %v3557_v5 = vshrl.u32 %v3235_v13, 16  ;;  %v3539_v47 = vor.u32 %v3538_v60, %v3535_v19  ;;  %v3566_v45 = vshll.u32 %v3236_v23, 16  ;;  %v16613_v40 = vpop.f32.mrf.mxu0  ;;  %v16615_v13 = vpop.f32.mrf.mxu1  ;;  %v3239_v19 = vld [vmem:[#allocation2 + $0xb8] sm:$0xf]  ;;  %v3240_v15 = vld [vmem:[#allocation2 + $0xbc] sm:$0x1] }
 0x118   : > { %14704 = vmatprep.subr.bf16.mxu1 %v15355_v0  ;;  %v16599_v11 = vsel %vm16069_vm13, %v13244_v50, %v4189_v31  ;;  %v4191_v34 = vrot.slane %v4189_v31, 4  ;;  %v13220_v2 = vcombine.low %v3521_v52, %v3531_v62  ;;  %v3570_v4 = vshrl.u32 %v3236_v23, 16 }
 0x119   : > { %v3559_v17 = vrot.slane %v3557_v5, 4  ;;  %v3576_v50 = vshll.u32 %v3237_v12, 16  ;;  %v13245_v61 = vrot.slane %v4050_v10, 9  ;;  %v3540_v52 = vrot.slane %v3539_v47, 4  ;;  %v3241_v5 = vld [vmem:[#allocation2 + $0xc0] sm:$0xf] }
 0x11a   : > { %v4193_v24 = vsel %vm16069_vm13, %v4191_v34, %v4192_v44  ;;  %14583 = vmatmul.mubr.bf16.gmra.mxu0 %v13220_v2  ;;  %v3562_v27 = vrot.slane %v3560_v26, 5  ;;  %v3568_v31 = vrot.slane %v3566_v45, 5  ;;  %v3572_v33 = vrot.slane %v3570_v4, 4  ;;  %v3238_v34 = vld [vmem:[#allocation2 + $0xb4] sm:$0xf] }
 0x11b   : > { %14705 = vmatpush3.bf16.msra.mxu1 %v15355_v0  ;;  %v13276_v58 = vcombine.low %v16599_v11, %v4193_v24  ;;  %v3549_v0 = vor.u32 %v3548_v36, %v3544_v32  ;;  %v3578_v8 = vrot.slane %v3576_v50, 5  ;;  %v4199_v44 = vrot.slane %v4052_v46, 5 }
 0x11c   : > { %v3563_v25 = vor.u32 %v3562_v27, %v3559_v17  ;;  %v3573_v23 = vor.u32 %v3572_v33, %v3568_v31  ;;  %v13246_v11 = vrot.slane %v4053_v3, 9  ;;  %v4203_v62 = vrot.slane %v4054_v51, 5  ;;  %v16629_v3 = vpop.f32.mrf.mxu1  ;;  %v3242_v51 = vld [vmem:[#allocation2 + $0xc4] sm:$0xf] }
 0x11d   : > { %14627 = vmatmul.mubr.bf16.gmra.mxu1 %v13274_v6  ;;  %v3550_v30 = vrot.slane %v3549_v0, 4  ;;  %v4196_v6 = vrot.slane %v4051_v9, 5  ;;  %v4206_v60 = vrot.slane %v4055_v29, 5  ;;  %v3584_v4 = vshll.u32 %v3238_v34, 16  ;;  %v4056_v29 = vld [vmem:[#allocation2 + $0xb4] sm:$0xe] }
 0x11e   : > { %14630 = vmatprep.mubr.bf16.mxu1 %v13275_v42  ;;  %v3545_v42 = vsel %vm15702_vm6, %v3540_v52, %v3544_v32  ;;  %v3564_v2 = vrot.slane %v3563_v25, 4  ;;  %v3574_v24 = vrot.slane %v3573_v23, 4  ;;  %v844_v32 = vld [vmem:[#allocation2 + $0xc8] sm:$0x1]  ;;  %v4204_v46 = vsel %vm16069_vm13, %v13246_v11, %v4203_v62  ;;  %v4057_v52 = vld [vmem:[#allocation2 + $0xb8] sm:$0xf]  ;;  %v16643_v11 = vpop.f32.mrf.mxu1 }
 0x11f   : > { %v3555_v28 = vsel %vm15702_vm6, %v3550_v30, %v3554_v7  ;;  %v4197_v55 = vsel %vm16069_vm13, %v13245_v61, %v4196_v6  ;;  %v4198_v12 = vrot.slane %v4196_v6, 4  ;;  %v16623_v20 = vpop.f32.mrf.mxu0  ;;  %v4205_v36 = vrot.slane %v4203_v62, 4  ;;  %v4058_v6 = vld [vmem:[#allocation2 + $0xbc] sm:$0x1]  ;;  %v4059_v23 = vld [vmem:[#allocation2 + $0xc0] sm:$0xe] }
 0x120   : > { %v13221_v10 = vcombine.low %v3545_v42, %v3555_v28  ;;  %v3581_v7 = vshrl.u32 %v3238_v34, 16  ;;  %v3569_v47 = vsel %vm15702_vm6, %v3564_v2, %v3568_v31  ;;  %v3579_v26 = vsel %vm15702_vm6, %v3574_v24, %v3578_v8  ;;  %19606 = vst [vmem:[#allocation12_spill] sm:$0xff] %v16643_v11  ;;  %v4060_v62 = vld [vmem:[#allocation2 + $0xc4] sm:$0xf] }
 0x121   : > { %v4200_v9 = vsel %vm16069_vm13, %v4198_v12, %v4199_v44  ;;  %v13222_v0 = vcombine.low %v3569_v47, %v3579_v26  ;;  %v4207_v17 = vsel %vm16069_vm13, %v4205_v36, %v4206_v60  ;;  %v3590_v61 = vshll.u32 %v3239_v19, 16  ;;  %v16637_v27 = vpop.f32.mrf.mxu0 }
 0x122   : > { %14586 = vmatprep.mubr.bf16.mxu0 %v13221_v10  ;;  %v13277_v45 = vcombine.low %v4197_v55, %v4200_v9  ;;  %v3583_v50 = vrot.slane %v3581_v7, 4  ;;  %v3586_v33 = vrot.slane %v3584_v4, 5  ;;  %v3594_v31 = vshrl.u32 %v3239_v19, 16 }
 0x123   : > { %v3600_v30 = vshll.u32 %v3240_v15, 16  ;;  %14587 = vmatmul.mubr.bf16.gmra.mxu0 %v13222_v0  ;;  %v3592_v8 = vrot.slane %v3590_v61, 5  ;;  %v845_v44 = vsel %vm15708_vm8, %v680_v1, %v844_v32  ;;  %v3605_v42 = vshrl.u32 %v3241_v5, 16  ;;  %v16645_v24 = vpop.f32.mrf.mxu0 }
 0x124   : > { %v3608_v25 = vshll.u32 %v3241_v5, 16  ;;  %v3587_v34 = vor.u32 %v3586_v33, %v3583_v50  ;;  %v3596_v28 = vrot.slane %v3594_v31, 4  ;;  %846 = vst [vmem:[#allocation2 + $0xc8] sm:$0x1] %v845_v44  ;;  %v3614_v12 = vshll.u32 %v3242_v51, 16 }
 0x125   : > { %14631 = vmatmul.mubr.bf16.gmra.mxu1 %v13276_v58  ;;  %v13278_v58 = vcombine.low %v4204_v46, %v4207_v17  ;;  %v3602_v55 = vrot.slane %v3600_v30, 5  ;;  %v3607_v19 = vrot.slane %v3605_v42, 4  ;;  %v3618_v10 = vshrl.u32 %v3242_v51, 16  ;;  %v16657_v61 = vpop.f32.mrf.mxu0 }
 0x126   : > { %14634 = vmatprep.mubr.bf16.mxu1 %v13277_v45  ;;  %v3610_v15 = vrot.slane %v3608_v25, 5  ;;  %v13247_v2 = vrot.slane %v4056_v29, 9  ;;  %v3588_v53 = vrot.slane %v3587_v34, 4  ;;  %v3597_v60 = vor.u32 %v3596_v28, %v3592_v8  ;;  %19607 = vst [vmem:[#allocation13_spill] sm:$0xff] %v16657_v61  ;;  %v5060_v28 = vld [vmem:[#allocation2 + $0x1c] sm:$0xf] }
 0x127   : > { %v3616_v1 = vrot.slane %v3614_v12, 5  ;;  %v4210_v32 = vrot.slane %v4057_v52, 5  ;;  %v3620_v46 = vrot.slane %v3618_v10, 4  ;;  %v4213_v36 = vrot.slane %v4058_v6, 5  ;;  %v16675_v12 = vpop.f32.mrf.mxu0 }
 0x128   : > { %v3611_v9 = vor.u32 %v3610_v15, %v3607_v19  ;;  %v13248_v7 = vrot.slane %v4059_v23, 9  ;;  %v3593_v47 = vsel %vm15702_vm6, %v3588_v53, %v3592_v8  ;;  %v3598_v26 = vrot.slane %v3597_v60, 4  ;;  %v5063_v53 = vld [vmem:[#allocation2 + $0x28] sm:$0xf] }
 0x129   : > { %v4211_v45 = vsel %vm16069_vm13, %v13247_v2, %v4210_v32  ;;  %v4212_v4 = vrot.slane %v4210_v32, 4  ;;  %v3621_v0 = vor.u32 %v3620_v46, %v3616_v1  ;;  %v4217_v17 = vrot.slane %v4060_v62, 5  ;;  %v5062_v2 = vld [vmem:[#allocation2 + $0x24] sm:$0xf] }
 0x12a   : > { %v3612_v51 = vrot.slane %v3611_v9, 4  ;;  %v16655_v50 = vadd.f32 %v16542_v48, %v16498_v38  ;;  %v3603_v29 = vsel %vm15702_vm6, %v3598_v26, %v3602_v55  ;;  %v16665_v33 = vadd.f32 %v16571_v39, %v16511_v57  ;;  %v5061_v57 = vld [vmem:[#allocation2 + $0x20] sm:$0x1]  ;;  %v15356_v26 = vld [vmem:[#allocation2 + $0x18] sm:$0xff]  }
 0x12b   : > { %v16647_v5 = vpop.f32.mrf.mxu1  ;;  %v4214_v52 = vsel %vm16069_vm13, %v4212_v4, %v4213_v36  ;;  %v16669_v31 = vadd.f32 %v16578_v63, %v16525_v56  ;;  %v13223_v30 = vcombine.low %v3593_v47, %v3603_v29  ;;  %v3243_v38 = vld [vmem:[#allocation2 + $0xc8] sm:$0x1]  ;;  %v3622_v48 = vrot.slane %v3621_v0, 4  ;;  %v5064_v36 = vld [vmem:[#allocation2 + $0x2c] sm:$0x1] }
 0x12c   : > { %v13279_v6 = vcombine.low %v4211_v45, %v4214_v52  ;;  %v4061_v8 = vld [vmem:[#allocation2 + $0xc8] sm:$0x1]  ;;  %v3624_v42 = vshll.u32 %v3243_v38, 16  ;;  %v4218_v25 = vsel %vm16069_vm13, %v13248_v7, %v4217_v17  ;;  %v4219_v23 = vrot.slane %v4217_v17, 4  ;;  %v16685_v52 = vpop.f32.mrf.mxu0 }
 0x12d   : > { %14635 = vmatmul.mubr.bf16.gmra.mxu1 %v13278_v58  ;;  %v5059_v58 = vld [vmem:[#allocation2 + $0x18] sm:$0xf]  ;;  %v16671_v44 = vpop.f32.mrf.mxu1  ;;  %v4220_v34 = vrot.slane %v4061_v8, 5  ;;  %14590 = vmatprep.mubr.bf16.mxu0 %v13223_v30  ;;  %v5117_v63 = vshll.u32 %v5060_v28, 16  ;;  %v5121_v55 = vshrl.u32 %v5060_v28, 16  ;;  %v3617_v62 = vsel %vm15702_vm6, %v3612_v51, %v3616_v1 }
 0x12e   : > { %14638 = vmatprep.mubr.bf16.mxu1 %v13279_v6  ;;  %v5108_v39 = vshrl.u32 %v5059_v58, 16  ;;  %v5111_v56 = vshll.u32 %v5059_v58, 16  ;;  %v3626_v19 = vrot.slane %v3624_v42, 5  ;;  %v5127_v10 = vshll.u32 %v5061_v57, 16 }
 0x12f   : > { %v4221_v15 = vsel %vm16069_vm13, %v4219_v23, %v4220_v34  ;;  %v5119_v46 = vrot.slane %v5117_v63, 5  ;;  %v16681_v7 = vpop.f32.mrf.mxu1  ;;  %v5123_v45 = vrot.slane %v5121_v55, 4  ;;  %v5132_v4 = vshrl.u32 %v5062_v2, 16 }
 0x130   : > { %v13280_v60 = vcombine.low %v4218_v25, %v4221_v15  ;;  %v5110_v32 = vrot.slane %v5108_v39, 4  ;;  %v5113_v9 = vrot.slane %v5111_v56, 5  ;;  %v3627_v47 = vsel %vm15702_vm6, %v3622_v48, %v3626_v19  ;;  %v15357_v56 = vld [vmem:[#allocation2 + $0x24] sm:$0xff]   ;;  %v5066_v19 = vld [vmem:[#allocation2 + $0x34] sm:$0xf] }
 0x131   : > { %v5129_v1 = vrot.slane %v5127_v10, 5  ;;  %v13224_v51 = vcombine.low %v3617_v62, %v3627_v47  ;;  %v5135_v17 = vshll.u32 %v5062_v2, 16  ;;  %v5141_v29 = vshll.u32 %v5063_v53, 16  ;;  %v16691_v23 = vpop.f32.mrf.mxu1  ;;  %v5065_v62 = vld [vmem:[#allocation2 + $0x30] sm:$0xf] }
 0x132   : > { %v5114_v0 = vor.u32 %v5113_v9, %v5110_v32  ;;  %v5124_v58 = vor.u32 %v5123_v45, %v5119_v46  ;;  %v5134_v30 = vrot.slane %v5132_v4, 4  ;;  %v5145_v38 = vshrl.u32 %v5063_v53, 16  ;;  %19608 = vst [vmem:[#allocation14_spill] sm:$0xff] %v16691_v23  ;;  %v5067_v15 = vld [vmem:[#allocation2 + $0x38] sm:$0x1] }
 0x133   : > { %v5151_v6 = vshll.u32 %v5064_v36, 16  ;;  %14591 = vmatmul.mubr.bf16.gmra.mxu0 %v13224_v51  ;;  %v5137_v42 = vrot.slane %v5135_v17, 5  ;;  %v5143_v25 = vrot.slane %v5141_v29, 5  ;;  %v16689_v48 = vadd.f32 %v16608_v59, %v16573_v16  ;;  %v16703_v59 = vpop.f32.mrf.mxu0  ;;  %v5068_v53 = vld [vmem:[#allocation2 + $0x3c] sm:$0xf] }
 0x134   : > { %v5115_v8 = vrot.slane %v5114_v0, 4  ;;  %14658 = vmatprep.mubr.bf16.mxu0 %v15356_v26  ;;  %v5125_v34 = vrot.slane %v5124_v58, 4  ;;  %v5147_v28 = vrot.slane %v5145_v38, 4  ;;  %v16695_v39 = vadd.f32 %v16615_v13, %v16589_v14  ;;  %v5070_v26 = vld [vmem:[#allocation2 + $0x44] sm:$0x1]  ;;  %v15361_v0 = vld [vmem:[%s19573_s1 + $0x230] sm:$0xff]  }
 0x135   : > { %14639 = vmatmul.mubr.bf16.gmra.mxu1 %v13280_v60  ;;  %v5153_v57 = vrot.slane %v5151_v6, 5  ;;  %v5138_v55 = vor.u32 %v5137_v42, %v5134_v30  ;;  %v16701_v16 = vadd.f32 %v16629_v3, %v16603_v22  ;;  %v5156_v14 = vshrl.u32 %v5065_v62, 16  ;;  %v5069_v60 = vld [vmem:[#allocation2 + $0x40] sm:$0xf]  ;;  %v16707_v45 = vpop.f32.mrf.mxu1  ;;  %v16714_v30 = vpop.f32.mrf.mxu0 }
 0x136   : > { %v5120_v63 = vsel %vm15702_vm6, %v5115_v8, %v5119_v46  ;;  %v5130_v10 = vsel %vm15702_vm6, %v5125_v34, %v5129_v1  ;;  %v5148_v2 = vor.u32 %v5147_v28, %v5143_v25  ;;  %v5159_v13 = vshll.u32 %v5065_v62, 16  ;;  %v15359_v46 = vld [vmem:[#allocation2 + $0x30] sm:$0xff]  }
 0x137   : > { %v13345_v32 = vcombine.low %v5120_v63, %v5130_v10  ;;  %v5139_v9 = vrot.slane %v5138_v55, 4  ;;  %v5165_v36 = vshll.u32 %v5066_v19, 16  ;;  %v5169_v47 = vshrl.u32 %v5066_v19, 16  ;;  %v16718_v55 = vpop.f32.mrf.mxu1 }
 0x138   : > { %v5149_v22 = vrot.slane %v5148_v2, 4  ;;  %v5158_v3 = vrot.slane %v5156_v14, 4  ;;  %v5161_v4 = vrot.slane %v5159_v13, 5  ;;  %v5175_v51 = vshll.u32 %v5067_v15, 16  ;;  %v5071_v2 = vld [vmem:[#allocation2 + $0x48] sm:$0xf] }
 0x139   : > { %14706 = vmatprep.mubr.bf16.mxu1 %v13345_v32  ;;  %v5144_v1 = vsel %vm15702_vm6, %v5139_v9, %v5143_v25  ;;  %v5167_v17 = vrot.slane %v5165_v36, 5  ;;  %v5171_v29 = vrot.slane %v5169_v47, 4  ;;  %v5180_v58 = vshrl.u32 %v5068_v53, 16 }
 0x13a   : > { %v5154_v38 = vsel %vm15702_vm6, %v5149_v22, %v5153_v57  ;;  %v5162_v6 = vor.u32 %v5161_v4, %v5158_v3  ;;  %v5177_v8 = vrot.slane %v5175_v51, 5  ;;  %v5183_v42 = vshll.u32 %v5068_v53, 16  ;;  %v15360_v57 = vld [vmem:[#allocation2 + $0x3c] sm:$0xff]   ;;  %v15364_v53 = vld [vmem:[%s19573_s1 + $0x228] sm:$0xff]  }
 0x13b   : > { %14659 = vmatmul.mubr.bf16.vlgmr.msra.gmra.mxu0 %v15357_v56  ;;  %v13346_v34 = vcombine.low %v5144_v1, %v5154_v38  ;;  %v5172_v28 = vor.u32 %v5171_v29, %v5167_v17  ;;  %v5182_v63 = vrot.slane %v5180_v58, 4  ;;  %v5189_v25 = vshll.u32 %v5069_v60, 16  ;;  %v5075_v1 = vld [vmem:[#allocation2 + $0x58] sm:$0xf] }
 0x13c   : > { %14739 = vmatpush3.bf16.msra.mxu0 %v16547_v18  ;;  %14662 = vmatprep.mubr.bf16.mxu0 %v15359_v46  ;;  %v5163_v62 = vrot.slane %v5162_v6, 4  ;;  %v5185_v19 = vrot.slane %v5183_v42, 5  ;;  %v5193_v15 = vshrl.u32 %v5069_v60, 16  ;;  %v5199_v10 = vshll.u32 %v5070_v26, 16  ;;  %v5072_v18 = vld [vmem:[#allocation2 + $0x4c] sm:$0xf] }
 0x13d   : > { %14707 = vmatmul.mubr.bf16.vlgmr.msra.gmra.mxu1 %v13346_v34  ;;  %14740 = vmatprep.subr.bf16.mxu0 %v15361_v0  ;;  %v5173_v14 = vrot.slane %v5172_v28, 4  ;;  %v5191_v13 = vrot.slane %v5189_v25, 5  ;;  %v16723_v56 = vadd.f32 %v16647_v5, %v16623_v20  ;;  %v16730_v32 = vadd.f32 %v16671_v44, %v16637_v27  ;;  %v15362_v26 = vld [vmem:[#allocation2 + $0x48] sm:$0xff]   ;;  %v5073_v20 = vld [vmem:[#allocation2 + $0x50] sm:$0x1]  ;;  %v15367_v27 = vld [vmem:[%s19573_s1 + $0x220] sm:$0xff]   ;;  %v16741_v44 = vpop.f32.mrf.mxu1 }
 0x13e   : > { %v5168_v9 = vsel %vm15702_vm6, %v5163_v62, %v5167_v17  ;;  %v5186_v46 = vor.u32 %v5185_v19, %v5182_v63  ;;  %v5195_v36 = vrot.slane %v5193_v15, 4  ;;  %v5201_v47 = vrot.slane %v5199_v10, 5  ;;  %v5074_v5 = vld [vmem:[#allocation2 + $0x54] sm:$0xf]  ;;  %v5076_v63 = vld [vmem:[#allocation2 + $0x5c] sm:$0x1] }
 0x13f   : > { %v5178_v22 = vsel %vm15702_vm6, %v5173_v14, %v5177_v8  ;;  %v5204_v3 = vshrl.u32 %v5071_v2, 16  ;;  %v5207_v4 = vshll.u32 %v5071_v2, 16  ;;  %v5213_v51 = vshll.u32 %v5072_v18, 16 }
 0x140   : > { %v16732_v60 = vpop.f32.mrf.mxu0  ;;  %v13347_v17 = vcombine.low %v5168_v9, %v5178_v22  ;;  %14741 = vmatpush3.bf16.msra.mxu0 %v15361_v0  ;;  %v5187_v29 = vrot.slane %v5186_v46, 4  ;;  %v5196_v58 = vor.u32 %v5195_v36, %v5191_v13  ;;  %v5217_v38 = vshrl.u32 %v5072_v18, 16  ;;  %v16747_v18 = vpop.f32.mrf.mxu1 }
 0x141   : > { %14742 = vmatprep.subr.bf16.mxu0 %v15364_v53  ;;  %v5206_v42 = vrot.slane %v5204_v3, 4  ;;  %v5209_v8 = vrot.slane %v5207_v4, 5  ;;  %v5215_v34 = vrot.slane %v5213_v51, 5  ;;  %v5223_v28 = vshll.u32 %v5073_v20, 16  ;;  %v5077_v51 = vld [vmem:[#allocation2 + $0x60] sm:$0xf] }
 0x142   : > { %v16743_v6 = vpop.f32.mrf.mxu0  ;;  %14710 = vmatprep.mubr.bf16.mxu1 %v13347_v17  ;;  %v5192_v25 = vsel %vm15702_vm6, %v5187_v29, %v5191_v13  ;;  %v5197_v62 = vrot.slane %v5196_v58, 4  ;;  %v5219_v19 = vrot.slane %v5217_v38, 4  ;;  %v5228_v15 = vshrl.u32 %v5074_v5, 16  ;;  %v15363_v17 = vld [vmem:[#allocation2 + $0x54] sm:$0xff]  }
 0x143   : > { %14663 = vmatmul.mubr.bf16.gmra.mxu0 %v15360_v57  ;;  %v5210_v0 = vor.u32 %v5209_v8, %v5206_v42  ;;  %v5225_v10 = vrot.slane %v5223_v28, 5  ;;  %v5231_v2 = vshll.u32 %v5074_v5, 16  ;;  %v5237_v14 = vshll.u32 %v5075_v1, 16  ;;  %v15370_v5 = vld [vmem:[%s19573_s1 + $0x218] sm:$0xff]   ;;  %v15365_v42 = vld [vmem:[#allocation2 + $0x60] sm:$0xff]  }
 0x144   : > { %v5202_v9 = vsel %vm15702_vm6, %v5197_v62, %v5201_v47  ;;  %14666 = vmatprep.mubr.bf16.mxu0 %v15362_v26  ;;  %v5220_v46 = vor.u32 %v5219_v19, %v5215_v34  ;;  %14743 = vmatpush3.bf16.msra.mxu0 %v15364_v53  ;;  %v5230_v36 = vrot.slane %v5228_v15, 4  ;;  %v5241_v20 = vshrl.u32 %v5075_v1, 16  ;;  %v16751_v22 = vpop.f32.mrf.mxu0  ;;  %v5078_v1 = vld [vmem:[#allocation2 + $0x64] sm:$0xf]  ;;  %v5079_v28 = vld [vmem:[#allocation2 + $0x68] sm:$0x1] }
 0x145   : > { %v13348_v13 = vcombine.low %v5192_v25, %v5202_v9  ;;  %v5211_v3 = vrot.slane %v5210_v0, 4  ;;  %v5233_v4 = vrot.slane %v5231_v2, 5  ;;  %v5239_v57 = vrot.slane %v5237_v14, 5  ;;  %14744 = vmatprep.subr.bf16.mxu0 %v15367_v27  ;;  %v5080_v25 = vld [vmem:[#allocation2 + $0x6c] sm:$0xf] }
 0x146   : > { %v5221_v29 = vrot.slane %v5220_v46, 4  ;;  %v5243_v47 = vrot.slane %v5241_v20, 4  ;;  %v5247_v26 = vshll.u32 %v5076_v63, 16  ;;  %v16758_v53 = vadd.f32 %v16681_v7, %v16645_v24  ;;  %v5081_v15 = vld [vmem:[#allocation2 + $0x70] sm:$0xf]  ;;  %v16770_v0 = vpop.f32.mrf.mxu0 }
 0x147   : > { %14711 = vmatmul.mubr.bf16.gmra.mxu1 %v13348_v13  ;;  %v5216_v58 = vsel %vm15702_vm6, %v5211_v3, %v5215_v34  ;;  %v5234_v38 = vor.u32 %v5233_v4, %v5230_v36  ;;  %v16764_v8 = vadd.f32 %v16707_v45, %v16675_v12  ;;  %v5252_v19 = vshrl.u32 %v5077_v51, 16  ;;  %19609 = vst [vmem:[#allocation15_spill] sm:$0xff] %v16770_v0  ;;  %v5082_v12 = vld [vmem:[#allocation2 + $0x74] sm:$0x1] }
 0x148   : > { %v5226_v63 = vsel %vm15702_vm6, %v5221_v29, %v5225_v10  ;;  %v5244_v24 = vor.u32 %v5243_v47, %v5239_v57  ;;  %v5249_v7 = vrot.slane %v5247_v26, 5  ;;  %14745 = vmatpush3.bf16.msra.mxu0 %v15367_v27  ;;  %v5255_v14 = vshll.u32 %v5077_v51, 16  ;;  %v15373_v45 = vld [vmem:[%s19573_s1 + $0x210] sm:$0xff]  }
 0x149   : > { %v13349_v34 = vcombine.low %v5216_v58, %v5226_v63  ;;  %v5235_v2 = vrot.slane %v5234_v38, 4  ;;  %v5261_v9 = vshll.u32 %v5078_v1, 16  ;;  %14746 = vmatprep.subr.bf16.mxu0 %v15370_v5  ;;  %v5254_v36 = vrot.slane %v5252_v19, 4  ;;  %v5083_v63 = vld [vmem:[#allocation2 + $0x78] sm:$0xf] }
 0x14a   : > { %v5245_v46 = vrot.slane %v5244_v24, 4  ;;  %v5265_v10 = vshrl.u32 %v5078_v1, 16  ;;  %v5271_v20 = vshll.u32 %v5079_v28, 16  ;;  %v5257_v3 = vrot.slane %v5255_v14, 5  ;;  %v16785_v58 = vpop.f32.mrf.mxu0  ;;  %v5084_v19 = vld [vmem:[#allocation2 + $0x7c] sm:$0xf] }
 0x14b   : > { %14667 = vmatmul.mubr.bf16.gmra.mxu0 %v15363_v17  ;;  %14714 = vmatprep.mubr.bf16.mxu1 %v13349_v34  ;;  %v5240_v27 = vsel %vm15702_vm6, %v5235_v2, %v5239_v57  ;;  %v5263_v4 = vrot.slane %v5261_v9, 5  ;;  %v16781_v51 = vadd.f32 %v16718_v55, %v16685_v52  ;;  %v5276_v1 = vshrl.u32 %v5080_v25, 16  ;;  %v15376_v52 = vld [vmem:[%s19573_s1 + $0x208] sm:$0xff]  }
 0x14c   : > { %v16766_v62 = vpop.f32.mrf.mxu1  ;;  %v5250_v29 = vsel %vm15702_vm6, %v5245_v46, %v5249_v7  ;;  %14670 = vmatprep.mubr.bf16.mxu0 %v15365_v42  ;;  %v5267_v47 = vrot.slane %v5265_v10, 4  ;;  %v5273_v26 = vrot.slane %v5271_v20, 5  ;;  %14747 = vmatpush3.bf16.msra.mxu0 %v15370_v5  ;;  %v5258_v38 = vor.u32 %v5257_v3, %v5254_v36  ;;  %v15366_v5 = vld [vmem:[#allocation2 + $0x6c] sm:$0xff]   ;;  %v5085_v46 = vld [vmem:[#allocation2 + $0x80] sm:$0x1]  ;;  %v16800_v3 = vpop.f32.mrf.mxu0 }
 0x14d   : > { %v13350_v17 = vcombine.low %v5240_v27, %v5250_v29  ;;  %v5279_v28 = vshll.u32 %v5080_v25, 16  ;;  %v5285_v57 = vshll.u32 %v5081_v15, 16  ;;  %14748 = vmatprep.subr.bf16.mxu0 %v15373_v45  ;;  %v5278_v24 = vrot.slane %v5276_v1, 4  ;;  %v5086_v27 = vld [vmem:[#allocation2 + $0x84] sm:$0xf] }
 0x14e   : > { %v16775_v13 = vpop.f32.mrf.mxu1  ;;  %v5268_v55 = vor.u32 %v5267_v47, %v5263_v4  ;;  %v5289_v7 = vshrl.u32 %v5081_v15, 16  ;;  %v5295_v42 = vshll.u32 %v5082_v12, 16  ;;  %v5259_v2 = vrot.slane %v5258_v38, 4  ;;  %v15368_v12 = vld [vmem:[#allocation2 + $0x78] sm:$0xff]   ;;  %v5087_v38 = vld [vmem:[#allocation2 + $0x88] sm:$0xf] }
 0x14f   : > { %14715 = vmatmul.mubr.bf16.gmra.mxu1 %v13350_v17  ;;  %v5281_v14 = vrot.slane %v5279_v28, 5  ;;  %v5287_v9 = vrot.slane %v5285_v57, 5  ;;  %v16794_v25 = vadd.f32 %v16741_v44, %v16703_v59  ;;  %v16798_v15 = vadd.f32 %v16747_v18, %v16714_v30  ;;  %v15379_v30 = vld [vmem:[%s19573_s1 + $0x200] sm:$0xff]  }
 0x150   : > { %v16790_v34 = vpop.f32.mrf.mxu1  ;;  %v5269_v36 = vrot.slane %v5268_v55, 4  ;;  %v5291_v10 = vrot.slane %v5289_v7, 4  ;;  %v5297_v20 = vrot.slane %v5295_v42, 5  ;;  %14749 = vmatpush3.bf16.msra.mxu0 %v15373_v45  ;;  %v5264_v29 = vsel %vm15702_vm6, %v5259_v2, %v5263_v4  ;;  %v16815_v2 = vpop.f32.mrf.mxu0 }
 0x151   : > { %v5282_v47 = vor.u32 %v5281_v14, %v5278_v24  ;;  %v16806_v59 = vadd.f32 %v16766_v62, %v16732_v60  ;;  %v5300_v44 = vshrl.u32 %v5083_v63, 16  ;;  %14750 = vmatprep.subr.bf16.mxu0 %v15376_v52  ;;  %v5303_v1 = vshll.u32 %v5083_v63, 16  ;;  %v5088_v14 = vld [vmem:[#allocation2 + $0x8c] sm:$0x1] }
 0x152   : > { %v5274_v18 = vsel %vm15702_vm6, %v5269_v36, %v5273_v26  ;;  %v5292_v45 = vor.u32 %v5291_v10, %v5287_v9  ;;  %v5309_v17 = vshll.u32 %v5084_v19, 16  ;;  %v16813_v28 = vpop.f32.mrf.mxu1  ;;  %v5313_v62 = vshrl.u32 %v5084_v19, 16  ;;  %v15369_v10 = vld [vmem:[#allocation2 + $0x84] sm:$0xff]   ;;  %v16825_v43 = vpop.f32.mrf.mxu0 }
 0x153   : > { %19610 = vst [vmem:[#allocation16_spill] sm:$0xff] %v16813_v28  ;;  %14671 = vmatmul.mubr.bf16.gmra.mxu0 %v15366_v5  ;;  %v13351_v4 = vcombine.low %v5264_v29, %v5274_v18  ;;  %v5283_v57 = vrot.slane %v5282_v47, 4  ;;  %v5302_v60 = vrot.slane %v5300_v44, 4  ;;  %v5305_v24 = vrot.slane %v5303_v1, 5  ;;  %v5089_v1 = vld [vmem:[#allocation2 + $0x90] sm:$0xf] }
 0x154   : > { %v5293_v55 = vrot.slane %v5292_v45, 4  ;;  %14674 = vmatprep.mubr.bf16.mxu0 %v15368_v12  ;;  %v5311_v7 = vrot.slane %v5309_v17, 5  ;;  %v5319_v42 = vshll.u32 %v5085_v46, 16  ;;  %14751 = vmatpush3.bf16.msra.mxu0 %v15376_v52  ;;  %v5315_v63 = vrot.slane %v5313_v62, 4  ;;  %v15371_v52 = vld [vmem:[#allocation2 + $0x90] sm:$0xff]   ;;  %19611 = vst [vmem:[#allocation17_spill] sm:$0xff] %v16825_v43 }
 0x155   : > { %14718 = vmatprep.mubr.bf16.mxu1 %v13351_v4  ;;  %v5288_v26 = vsel %vm15702_vm6, %v5283_v57, %v5287_v9  ;;  %v16821_v5 = vadd.f32 %v16775_v13, %v16743_v6  ;;  %v5324_v36 = vshrl.u32 %v5086_v27, 16  ;;  %14752 = vmatprep.subr.bf16.mxu0 %v15379_v30  ;;  %v5306_v46 = vor.u32 %v5305_v24, %v5302_v60  ;;  %v5090_v17 = vld [vmem:[#allocation2 + $0x94] sm:$0xf]  ;;  %v5091_v62 = vld [vmem:[#allocation2 + $0x98] sm:$0x1] }
 0x156   : > { %v5298_v19 = vsel %vm15702_vm6, %v5293_v55, %v5297_v20  ;;  %v5321_v12 = vrot.slane %v5319_v42, 5  ;;  %v5327_v29 = vshll.u32 %v5086_v27, 16  ;;  %v14440_v47 = vpop.f32.mrf.mxu1  ;;  %v5316_v18 = vor.u32 %v5315_v63, %v5311_v7 }
 0x157   : > { %v13352_v44 = vcombine.low %v5288_v26, %v5298_v19  ;;  %v5326_v9 = vrot.slane %v5324_v36, 4  ;;  %v5333_v45 = vshll.u32 %v5087_v38, 16  ;;  %v5307_v6 = vrot.slane %v5306_v46, 4 }
 0x158   : > { %v5329_v13 = vrot.slane %v5327_v29, 5  ;;  %v5337_v4 = vshrl.u32 %v5087_v38, 16  ;;  %v5343_v57 = vshll.u32 %v5088_v14, 16  ;;  %14753 = vmatpush3.bf16.msra.mxu0 %v15379_v30  ;;  %v5317_v20 = vrot.slane %v5316_v18, 4  ;;  %v2038_v63 = vpop.f32.mrf.mxu1  ;;  %v5092_v29 = vld [vmem:[#allocation2 + $0x9c] sm:$0xf] }
 0x159   : > { %14719 = vmatmul.mubr.bf16.gmra.mxu1 %v13352_v44  ;;  %v5335_v60 = vrot.slane %v5333_v45, 5  ;;  %v16829_v27 = vadd.f32 %v16790_v34, %v16751_v22  ;;  %v5312_v55 = vsel %vm15702_vm6, %v5307_v6, %v5311_v7  ;;  %v16836_v30 = vadd.f32 %v14440_v47, %v16785_v58  ;;  %v5094_v6 = vld [vmem:[#allocation2 + $0xa4] sm:$0x1] }
 0x15a   : > { %v5330_v24 = vor.u32 %v5329_v13, %v5326_v9  ;;  %v5339_v42 = vrot.slane %v5337_v4, 4  ;;  %v5345_v26 = vrot.slane %v5343_v57, 5  ;;  %v5322_v38 = vsel %vm15702_vm6, %v5317_v20, %v5321_v12  ;;  %v14441_v13 = vpop.f32.mrf.mxu1  ;;  %v15372_v4 = vld [vmem:[#allocation2 + $0x9c] sm:$0xff]  }
 0x15b   : > { %14675 = vmatmul.mubr.bf16.gmra.mxu0 %v15369_v10  ;;  %v5348_v14 = vshrl.u32 %v5089_v1, 16  ;;  %v5351_v36 = vshll.u32 %v5089_v1, 16  ;;  %v13353_v19 = vcombine.low %v5312_v55, %v5322_v38  ;;  %v5357_v34 = vshll.u32 %v5090_v17, 16  ;;  %v5093_v10 = vld [vmem:[#allocation2 + $0xa0] sm:$0xf] }
 0x15c   : > { %v5331_v46 = vrot.slane %v5330_v24, 4  ;;  %v5340_v22 = vor.u32 %v5339_v42, %v5335_v60  ;;  %14678 = vmatprep.mubr.bf16.mxu0 %v15371_v52  ;;  %v5361_v9 = vshrl.u32 %v5090_v17, 16  ;;  %v5367_v45 = vshll.u32 %v5091_v62, 16  ;;  %v5095_v62 = vld [vmem:[#allocation2 + $0xa8] sm:$0xf] }
 0x15d   : > { %v5350_v44 = vrot.slane %v5348_v14, 4  ;;  %v5353_v18 = vrot.slane %v5351_v36, 5  ;;  %14722 = vmatprep.mubr.bf16.mxu1 %v13353_v19  ;;  %v5359_v47 = vrot.slane %v5357_v34, 5  ;;  %v16841_v1 = vadd.f32 %v2038_v63, %v16800_v3  ;;  %v15374_v14 = vld [vmem:[#allocation2 + $0xa8] sm:$0xff]  }
 0x15e   : > { %v5336_v12 = vsel %vm15702_vm6, %v5331_v46, %v5335_v60  ;;  %v5341_v58 = vrot.slane %v5340_v22, 4  ;;  %v5363_v20 = vrot.slane %v5361_v9, 4  ;;  %v5369_v55 = vrot.slane %v5367_v45, 5  ;;  %v5096_v36 = vld [vmem:[#allocation2 + $0xac] sm:$0xf]  ;;  %v16849_v45 = vpop.f32.mrf.mxu1 }
 0x15f   : > { %v5354_v57 = vor.u32 %v5353_v18, %v5350_v44  ;;  %v5372_v17 = vshrl.u32 %v5092_v29, 16  ;;  %v5375_v42 = vshll.u32 %v5092_v29, 16  ;;  %v5381_v60 = vshll.u32 %v5093_v10, 16  ;;  %19612 = vst [vmem:[#allocation18_spill] sm:$0xff] %v16849_v45 }
 0x160   : > { %v5346_v24 = vsel %vm15702_vm6, %v5341_v58, %v5345_v26  ;;  %v5385_v38 = vshrl.u32 %v5093_v10, 16  ;;  %v5364_v46 = vor.u32 %v5363_v20, %v5359_v47  ;;  %v5391_v9 = vshll.u32 %v5094_v6, 16  ;;  %v5097_v20 = vld [vmem:[#allocation2 + $0xb0] sm:$0x1] }
 0x161   : > { %v14396_v7 = vpop.f32.mrf.mxu0  ;;  %v13354_v63 = vcombine.low %v5336_v12, %v5346_v24  ;;  %v5355_v19 = vrot.slane %v5354_v57, 4  ;;  %v5374_v22 = vrot.slane %v5372_v17, 4  ;;  %v5377_v34 = vrot.slane %v5375_v42, 5 }
 0x162   : > { %v5383_v44 = vrot.slane %v5381_v60, 5  ;;  %v5387_v18 = vrot.slane %v5385_v38, 4  ;;  %v5365_v29 = vrot.slane %v5364_v46, 4  ;;  %v16856_v10 = vadd.f32 %v14441_v13, %v16815_v2  ;;  %v5098_v38 = vld [vmem:[#allocation2 + $0xb4] sm:$0xf] }
 0x163   : > { %v16843_v52 = vpop.f32.mrf.mxu0  ;;  %14723 = vmatmul.mubr.bf16.gmra.mxu1 %v13354_v63  ;;  %14679 = vmatmul.mubr.bf16.gmra.mxu0 %v15372_v4  ;;  %v5360_v26 = vsel %vm15702_vm6, %v5355_v19, %v5359_v47  ;;  %v5378_v12 = vor.u32 %v5377_v34, %v5374_v22  ;;  %v5393_v57 = vrot.slane %v5391_v9, 5  ;;  %v5396_v17 = vshrl.u32 %v5095_v62, 16 }
 0x164   : > { %v5388_v58 = vor.u32 %v5387_v18, %v5383_v44  ;;  %14682 = vmatprep.mubr.bf16.mxu0 %v15374_v14  ;;  %v5370_v24 = vsel %vm15702_vm6, %v5365_v29, %v5369_v55  ;;  %v5399_v42 = vshll.u32 %v5095_v62, 16  ;;  %v5405_v4 = vshll.u32 %v5096_v36, 16  ;;  %v15375_v14 = vld [vmem:[#allocation2 + $0xb4] sm:$0xff]   ;;  %v5100_v29 = vld [vmem:[#allocation2 + $0xbc] sm:$0x1] }
 0x165   : > { %v16847_v3 = vpop.f32.mrf.mxu0  ;;  %v5409_v60 = vshrl.u32 %v5096_v36, 16  ;;  %v13355_v47 = vcombine.low %v5360_v26, %v5370_v24  ;;  %v5379_v63 = vrot.slane %v5378_v12, 4  ;;  %v5398_v13 = vrot.slane %v5396_v17, 4 }
 0x166   : > { %v5389_v19 = vrot.slane %v5388_v58, 4  ;;  %v5401_v34 = vrot.slane %v5399_v42, 5  ;;  %v5407_v18 = vrot.slane %v5405_v4, 5  ;;  %v5415_v36 = vshll.u32 %v5097_v20, 16  ;;  %v15377_v58 = vld [vmem:[#allocation2 + $0xc0] sm:$0xff]  }
 0x167   : > { %v16851_v54 = vpop.f32.mrf.mxu0  ;;  %v5411_v9 = vrot.slane %v5409_v60, 4  ;;  %14726 = vmatprep.mubr.bf16.mxu1 %v13355_v47  ;;  %v5384_v55 = vsel %vm15702_vm6, %v5379_v63, %v5383_v44  ;;  %v5420_v12 = vshrl.u32 %v5098_v38, 16  ;;  %v5101_v60 = vld [vmem:[#allocation2 + $0xc0] sm:$0xf]  ;;  %v5423_v44 = vshll.u32 %v5098_v38, 16 }
 0x168   : > { %19613 = vst [vmem:[#allocation19_spill] sm:$0xff] %v16851_v54  ;;  %v5394_v62 = vsel %vm15702_vm6, %v5389_v19, %v5393_v57  ;;  %v5402_v24 = vor.u32 %v5401_v34, %v5398_v13  ;;  %v5417_v47 = vrot.slane %v5415_v36, 5  ;;  %v5429_v63 = vshll.u32 %v5099_v49, 16 }
 0x169   : > { %v16858_v6 = vpop.f32.mrf.mxu0  ;;  %v5412_v42 = vor.u32 %v5411_v9, %v5407_v18  ;;  %v5433_v45 = vshrl.u32 %v5099_v49, 16  ;;  %v5439_v43 = vshll.u32 %v5100_v29, 16  ;;  %v5102_v9 = vld [vmem:[#allocation2 + $0xc4] sm:$0xf]  ;;  %v5444_v38 = vshrl.u32 %v5101_v60, 16 }
 0x16a   : > { %v5403_v20 = vrot.slane %v5402_v24, 4  ;;  %v5431_v13 = vrot.slane %v5429_v63, 5  ;;  %v5104_v29 = vld [vmem:[#allocation2 + $0xcc] sm:$0xf]  ;;  %v5453_v63 = vshll.u32 %v5102_v9, 16 }
 0x16b   : > { %v16862_v46 = vpop.f32.mrf.mxu0  ;;  %14683 = vmatmul.mubr.bf16.gmra.mxu0 %v15375_v14  ;;  %v5413_v19 = vrot.slane %v5412_v42, 4  ;;  %v5435_v49 = vrot.slane %v5433_v45, 4  ;;  %v15378_v42 = vld [vmem:[#allocation2 + $0xcc] sm:$0xff]   ;;  %v5468_v28 = vshrl.u32 %v5104_v29, 16 }
 0x16c   : > { %14686 = vmatprep.mubr.bf16.mxu0 %v15377_v58  ;;  %v5408_v36 = vsel %vm15702_vm6, %v5403_v20, %v5407_v18 }
 0x16d   : > { %v14444_v2 = vpop.f32.mrf.mxu1  ;;  %v16870_v17 = vpop.f32.mrf.mxu0  ;;  %v5418_v14 = vsel %vm15702_vm6, %v5413_v19, %v5417_v47  ;;  %v5436_v58 = vor.u32 %v5435_v49, %v5431_v13  ;;  %v5471_v47 = vshll.u32 %v5104_v29, 16  ;;  %v5106_v49 = vld [vmem:[#allocation2 + $0xd4] sm:$0x1] }
 0x16e   : > { %v16864_v22 = vadd.f32 %v14444_v2, %v14396_v7  ;;  %v13356_v7 = vcombine.low %v5384_v55, %v5394_v62  ;;  %v5422_v2 = vrot.slane %v5420_v12, 4  ;;  %v5425_v55 = vrot.slane %v5423_v44, 5 }
 0x16f   : > { %v2054_v26 = vpop.f32.mrf.mxu1  ;;  %v16875_v57 = vpop.f32.mrf.mxu0  ;;  %v13357_v12 = vcombine.low %v5408_v36, %v5418_v14  ;;  %v5447_v44 = vshll.u32 %v5101_v60, 16  ;;  %v5437_v19 = vrot.slane %v5436_v58, 4  ;;  %v5473_v58 = vrot.slane %v5471_v47, 5 }
 0x170   : > { %v16873_v4 = vadd.f32 %v2054_v26, %v16843_v52  ;;  %19614 = vst [vmem:[#allocation20_spill] sm:$0xff] %v16875_v57  ;;  %14727 = vmatmul.mubr.bf16.gmra.mxu1 %v13356_v7  ;;  %v5103_v26 = vld [vmem:[#allocation2 + $0xc8] sm:$0x1]  ;;  %v5426_v7 = vor.u32 %v5425_v55, %v5422_v2  ;;  %v5457_v57 = vshrl.u32 %v5102_v9, 16  ;;  %v5455_v55 = vrot.slane %v5453_v63, 5 }
 0x171   : > { %v14445_v54 = vpop.f32.mrf.mxu1  ;;  %v16882_v62 = vpop.f32.mrf.mxu0  ;;  %14730 = vmatprep.mubr.bf16.mxu1 %v13357_v12  ;;  %v5463_v20 = vshll.u32 %v5103_v26, 16  ;;  %v5470_v12 = vrot.slane %v5468_v28, 4 }
 0x172   : > { %v16878_v34 = vadd.f32 %v14445_v54, %v16847_v3  ;;  %v5441_v54 = vrot.slane %v5439_v43, 5  ;;  %v5446_v3 = vrot.slane %v5444_v38, 4  ;;  %v5449_v43 = vrot.slane %v5447_v44, 5  ;;  %v5105_v38 = vld [vmem:[#allocation2 + $0xd0] sm:$0xf] }
 0x173   : > { %v16880_v52 = vpop.f32.mrf.mxu1  ;;  %v16888_v24 = vpop.f32.mrf.mxu0  ;;  %v5459_v36 = vrot.slane %v5457_v57, 4  ;;  %v5465_v9 = vrot.slane %v5463_v20, 5  ;;  %14687 = vmatmul.mubr.bf16.gmra.mxu0 %v15378_v42  ;;  %v5877_v44 = vld [vmem:[#allocation2 + $0x18] sm:$0xe]  ;;  %v5481_v57 = vshrl.u32 %v5105_v38, 16  ;;  %v5474_v0 = vor.u32 %v5473_v58, %v5470_v12 }
 0x174   : > { %19615 = vst [vmem:[#allocation21_spill] sm:$0xff] %v16880_v52  ;;  %v5427_v52 = vrot.slane %v5426_v7, 4  ;;  %v5442_v29 = vsel %vm15702_vm6, %v5437_v19, %v5441_v54  ;;  %v5450_v7 = vor.u32 %v5449_v43, %v5446_v3  ;;  %v5878_v54 = vld [vmem:[#allocation2 + $0x1c] sm:$0xf]  ;;  %v5879_v3 = vld [vmem:[#allocation2 + $0x20] sm:$0x1] }
 0x175   : > { %v14448_v18 = vpop.f32.mrf.mxu1  ;;  %v16890_v45 = vpop.f32.mrf.mxu0  ;;  %v5483_v47 = vrot.slane %v5481_v57, 4  ;;  %v13369_v43 = vrot.slane %v5877_v44, 9  ;;  %v5881_v12 = vld [vmem:[#allocation2 + $0x28] sm:$0xf]  ;;  %v5978_v58 = vrot.slane %v5879_v3, 5 }
 0x176   : > { %v16893_v2 = vadd.f32 %v14448_v18, %v16858_v6  ;;  %v5432_v60 = vsel %vm15702_vm6, %v5427_v52, %v5431_v13  ;;  %v5460_v18 = vor.u32 %v5459_v36, %v5455_v55  ;;  %v5477_v13 = vshll.u32 %v5105_v38, 16 }
 0x177   : > { %v2070_v14 = vpop.f32.mrf.mxu1  ;;  %v16897_v26 = vpop.f32.mrf.mxu0  ;;  %v13358_v63 = vcombine.low %v5432_v60, %v5442_v29  ;;  %v5451_v28 = vrot.slane %v5450_v7, 4  ;;  %v5880_v60 = vld [vmem:[#allocation2 + $0x24] sm:$0xe]  ;;  %v5975_v7 = vrot.slane %v5878_v54, 5 }
 0x178   : > { %19616 = vst [vmem:[#allocation22_spill] sm:$0xff] %v16897_v26  ;;  %v16902_v6 = vadd.f32 %v2070_v14, %v16862_v46  ;;  %v5487_v26 = vshll.u32 %v5106_v49, 16  ;;  %v5461_v46 = vrot.slane %v5460_v18, 4  ;;  %v5479_v42 = vrot.slane %v5477_v13, 5 }
 0x179   : > { %v14449_v52 = vpop.f32.mrf.mxu1  ;;  %v16904_v20 = vpop.f32.mrf.mxu0  ;;  %14731 = vmatmul.mubr.bf16.gmra.mxu1 %v13358_v63  ;;  %v5456_v36 = vsel %vm15702_vm6, %v5451_v28, %v5455_v55  ;;  %v5475_v14 = vrot.slane %v5474_v0, 4  ;;  %v5882_v63 = vld [vmem:[#allocation2 + $0x2c] sm:$0x1]  ;;  %v13370_v55 = vrot.slane %v5880_v60, 9  ;;  %v5977_v28 = vrot.slane %v5975_v7, 4 }
 0x17a   : > { %v16907_v23 = vadd.f32 %v14449_v52, %v16870_v17  ;;  %v5489_v49 = vrot.slane %v5487_v26, 5  ;;  %v5466_v17 = vsel %vm15702_vm6, %v5461_v46, %v5465_v9  ;;  %v5484_v29 = vor.u32 %v5483_v47, %v5479_v42 }
 0x17b   : > { %v16909_v19 = vpop.f32.mrf.mxu1  ;;  %v16911_v38 = vpop.f32.mrf.mxu0  ;;  %v13359_v57 = vcombine.low %v5456_v36, %v5466_v17  ;;  %v5480_v44 = vsel %vm15702_vm6, %v5475_v14, %v5479_v42  ;;  %v2684_v52 = vadd.f32 %v16882_v62, %v16655_v50  ;;  %v5976_v26 = vsel %vm16069_vm13, %v13369_v43, %v5975_v7  ;;  %v5883_v62 = vld [vmem:[#allocation2 + $0x30] sm:$0xe]  ;;  %v5884_v42 = vld [vmem:[#allocation2 + $0x34] sm:$0xf] }
 0x17c   : > { %19617 = vst [vmem:[#allocation23_spill] sm:$0xff] %v16909_v19  ;;  %v5485_v0 = vrot.slane %v5484_v29, 4  ;;  %v5982_v9 = vrot.slane %v5881_v12, 5  ;;  %v5985_v3 = vrot.slane %v5882_v63, 5  ;;  %v2682_v47 = vadd.f32 %v16888_v24, %v16665_v33  ;;  %v5885_v29 = vld [vmem:[#allocation2 + $0x38] sm:$0x1] }
 0x17d   : > { %v14516_v18 = vpop.f32.mrf.mxu1  ;;  %v14473_v13 = vpop.f32.mrf.mxu0  ;;  %14734 = vmatprep.mubr.bf16.mxu1 %v13359_v57  ;;  %v2685_v50 = vadd.f32 %v16890_v45, %v16669_v31  ;;  %v5979_v60 = vsel %vm16069_vm13, %v5977_v28, %v5978_v58  ;;  %v5886_v31 = vld [vmem:[#allocation2 + $0x3c] sm:$0xe]  ;;  %v5887_v45 = vld [vmem:[#allocation2 + $0x40] sm:$0xf]  ;;  %v13371_v57 = vrot.slane %v5883_v62, 9  ;;  %v5989_v58 = vrot.slane %v5884_v42, 5 }
 0x17e   : > { %v16927_v36 = vadd.f32 %v14516_v18, %v2684_v52  ;;  %v5490_v43 = vsel %vm15702_vm6, %v5485_v0, %v5489_v49  ;;  %v5983_v14 = vsel %vm16069_vm13, %v13370_v55, %v5982_v9  ;;  %v5984_v12 = vrot.slane %v5982_v9, 4  ;;  %v5888_v55 = vld [vmem:[#allocation2 + $0x44] sm:$0x1]  ;;  %v5889_v9 = vld [vmem:[#allocation2 + $0x48] sm:$0xe] }
 0x17f   : > { %v3005_v46 = vpop.f32.mrf.mxu1  ;;  %v16923_v54 = vpop.f32.mrf.mxu0  ;;  %v13360_v24 = vcombine.low %v5480_v44, %v5490_v43  ;;  %v13401_v7 = vcombine.low %v5976_v26, %v5979_v60  ;;  %v5992_v44 = vrot.slane %v5885_v29, 5  ;;  %v2688_v26 = vadd.f32 %v16904_v20, %v16689_v48  ;;  %v5890_v42 = vld [vmem:[#allocation2 + $0x4c] sm:$0xf]  ;;  %v5891_v48 = vld [vmem:[#allocation2 + $0x50] sm:$0x1] }
 0x180   : > { %19618 = vst [vmem:[#allocation24_spill] sm:$0xff] %v16923_v54  ;;  %v16937_v63 = vadd.f32 %v3005_v46, %v2682_v47  ;;  %v5986_v18 = vsel %vm16069_vm13, %v5984_v12, %v5985_v3  ;;  %v5990_v46 = vsel %vm16069_vm13, %v13371_v57, %v5989_v58  ;;  %v5991_v3 = vrot.slane %v5989_v58, 4  ;;  %v5892_v20 = vld [vmem:[#allocation2 + $0x54] sm:$0xe] }
 0x181   : > { %v14517_v17 = vpop.f32.mrf.mxu1  ;;  %v14476_v33 = vpop.f32.mrf.mxu0  ;;  %14735 = vmatmul.mubr.bf16.gmra.mxu1 %v13360_v24  ;;  %14754 = vmatprep.mubr.bf16.mxu0 %v13401_v7  ;;  %v13402_v28 = vcombine.low %v5983_v14, %v5986_v18  ;;  %v13372_v47 = vrot.slane %v5886_v31, 9  ;;  %v5999_v60 = vrot.slane %v5888_v55, 5  ;;  %v2686_v12 = vadd.f32 %v16911_v38, %v16695_v39  ;;  %v5894_v18 = vld [vmem:[#allocation2 + $0x5c] sm:$0x1] }
 0x182   : > { %v16941_v49 = vadd.f32 %v14517_v17, %v2685_v50  ;;  %v5996_v50 = vrot.slane %v5887_v45, 5  ;;  %v2689_v17 = vadd.f32 %v14473_v13, %v16701_v16  ;;  %v5993_v29 = vsel %vm16069_vm13, %v5991_v3, %v5992_v44  ;;  %v5893_v45 = vld [vmem:[#allocation2 + $0x58] sm:$0xf]  ;;  %v5895_v16 = vld [vmem:[#allocation2 + $0x60] sm:$0xe] }
 0x183   : > { %v16943_v52 = vpop.f32.mrf.mxu1  ;;  %v2587_v0 = vpop.f32.mrf.mxu0  ;;  %14755 = vmatmul.mubr.bf16.vlgmr.msra.gmra.mxu0 %v13402_v28  ;;  %v13403_v58 = vcombine.low %v5990_v46, %v5993_v29  ;;  %v13373_v38 = vrot.slane %v5889_v9, 9  ;;  %v6003_v55 = vrot.slane %v5890_v42, 5  ;;  %v5896_v13 = vld [vmem:[#allocation2 + $0x64] sm:$0xf]  ;;  %v2692_v3 = vadd.f32 %v14476_v33, %v16723_v56  ;;  %v16969_v42 = vld [vmem:[#allocation2 + $0x70] sm:$0xf] }
 0x184   : > { %19619 = vst [vmem:[#allocation25_spill] sm:$0xff] %v16943_v52  ;;  %v5997_v24 = vsel %vm16069_vm13, %v13372_v47, %v5996_v50  ;;  %v5998_v7 = vrot.slane %v5996_v50, 4  ;;  %v13374_v47 = vrot.slane %v5892_v20, 9  ;;  %v5897_v50 = vld [vmem:[#allocation2 + $0x68] sm:$0x1]  ;;  %v6013_v29 = vrot.slane %v5894_v18, 5 }
 0x185   : > { %v14520_v62 = vpop.f32.mrf.mxu1  ;;  %v14477_v43 = vpop.f32.mrf.mxu0  ;;  %14758 = vmatprep.mubr.bf16.mxu0 %v13403_v58  ;;  %v6004_v9 = vsel %vm16069_vm13, %v13373_v38, %v6003_v55  ;;  %v6005_v46 = vrot.slane %v6003_v55, 4  ;;  %v6017_v38 = vrot.slane %v5896_v13, 5  ;;  %v5900_v55 = vld [vmem:[#allocation2 + $0x74] sm:$0x1]  ;;  %v6024_v13 = vrot.slane %v16969_v42, 5 }
 0x186   : > { %v16951_v14 = vadd.f32 %v14520_v62, %v2688_v26  ;;  %v6000_v28 = vsel %vm16069_vm13, %v5998_v7, %v5999_v60  ;;  %v6006_v26 = vrot.slane %v5891_v48, 5  ;;  %v6010_v60 = vrot.slane %v5893_v45, 5 }
 0x187   : > { %v3021_v31 = vpop.f32.mrf.mxu1  ;;  %v16958_v57 = vpop.f32.mrf.mxu0  ;;  %v13404_v52 = vcombine.low %v5997_v24, %v6000_v28  ;;  %v2690_v48 = vadd.f32 %v2587_v0, %v16730_v32  ;;  %v2693_v56 = vadd.f32 %v14477_v43, %v16758_v53  ;;  %v5898_v24 = vld [vmem:[#allocation2 + $0x6c] sm:$0xe]  ;;  %v6020_v32 = vrot.slane %v5897_v50, 5  ;;  %v5902_v0 = vld [vmem:[#allocation2 + $0x7c] sm:$0xf] }
 0x188   : > { %19620 = vst [vmem:[#allocation26_spill] sm:$0xff] %v16958_v57  ;;  %v16960_v39 = vadd.f32 %v3021_v31, %v2686_v12  ;;  %v6007_v20 = vsel %vm16069_vm13, %v6005_v46, %v6006_v26  ;;  %v6012_v31 = vrot.slane %v6010_v60, 4  ;;  %v6011_v45 = vsel %vm16069_vm13, %v13374_v47, %v6010_v60 }
 0x189   : > { %v14521_v44 = vpop.f32.mrf.mxu1  ;;  %v14480_v62 = vpop.f32.mrf.mxu0  ;;  %v13405_v7 = vcombine.low %v6004_v9, %v6007_v20  ;;  %v5901_v9 = vld [vmem:[#allocation2 + $0x78] sm:$0xe] }
 0x18a   : > { %v16965_v57 = vadd.f32 %v14521_v44, %v2689_v17  ;;  %v13375_v17 = vrot.slane %v5895_v16, 9  ;;  %v2696_v53 = vadd.f32 %v14480_v62, %v16764_v8  ;;  %v6014_v43 = vsel %vm16069_vm13, %v6012_v31, %v6013_v29  ;;  %v16990_v8 = vld [vmem:[#allocation2 + $0x88] sm:$0xf] }
 0x18b   : > { %v16971_v12 = vpop.f32.mrf.mxu1  ;;  %v2603_v33 = vpop.f32.mrf.mxu0  ;;  %14759 = vmatmul.mubr.bf16.gmra.mxu0 %v13404_v52  ;;  %v6019_v44 = vrot.slane %v6017_v38, 4  ;;  %v5903_v52 = vld [vmem:[#allocation2 + $0x80] sm:$0x1]  ;;  %v13406_v50 = vcombine.low %v6011_v45, %v6014_v43  ;;  %v13376_v29 = vrot.slane %v5898_v24, 9  ;;  %v6027_v31 = vrot.slane %v5900_v55, 5 }
 0x18c   : > { %19621 = vst [vmem:[#allocation27_spill] sm:$0xff] %v16971_v12  ;;  %14762 = vmatprep.mubr.bf16.mxu0 %v13405_v7  ;;  %v2694_v47 = vadd.f32 %v2603_v33, %v16781_v51  ;;  %v17000_v51 = vld [vmem:[#allocation2 + $0x94] sm:$0xf]  ;;  %v6031_v45 = vrot.slane %v5902_v0, 5  ;;  %v6038_v55 = vrot.slane %v16990_v8, 5 }
 0x18d   : > { %v14524_v58 = vpop.f32.mrf.mxu1  ;;  %v14481_v28 = vpop.f32.mrf.mxu0  ;;  %v6021_v60 = vsel %vm16069_vm13, %v6019_v44, %v6020_v32  ;;  %v6025_v0 = vsel %vm16069_vm13, %v13376_v29, %v6024_v13  ;;  %v17024_v8 = vld [vmem:[#allocation2 + $0xa0] sm:$0xf]  ;;  %v17031_v29 = vld [vmem:[#allocation2 + $0xa4] sm:$0x1] }
 0x18e   : > { %v16979_v18 = vadd.f32 %v14524_v58, %v2692_v3  ;;  %v6018_v3 = vsel %vm16069_vm13, %v13375_v17, %v6017_v38  ;;  %v2697_v42 = vadd.f32 %v14481_v28, %v16794_v25  ;;  %v5904_v17 = vld [vmem:[#allocation2 + $0x84] sm:$0xe]  ;;  %v13377_v25 = vrot.slane %v5901_v9, 9 }
 0x18f   : > { %v3037_v16 = vpop.f32.mrf.mxu1  ;;  %v2606_v26 = vpop.f32.mrf.mxu0  ;;  %v13407_v33 = vcombine.low %v6018_v3, %v6021_v60  ;;  %v6034_v28 = vrot.slane %v5903_v52, 5  ;;  %v17022_v3 = vld [vmem:[#allocation2 + $0x98] sm:$0x1] }
 0x190   : > { %v16985_v46 = vadd.f32 %v3037_v16, %v2690_v48  ;;  %v6026_v48 = vrot.slane %v6024_v13, 4  ;;  %v16998_v58 = vadd.f32 %v2606_v26, %v16798_v15  ;;  %v6033_v16 = vrot.slane %v6031_v45, 4  ;;  %v17011_v26 = vld [vmem:[#allocation2 + $0x90] sm:$0xe]  ;;  %v17029_v13 = vld [vmem:[#allocation2 + $0x9c] sm:$0xe] }
 0x191   : > { %v14525_v62 = vpop.f32.mrf.mxu1  ;;  %v14484_v20 = vpop.f32.mrf.mxu0 }
 0x192   : > { %v16995_v7 = vadd.f32 %v14525_v62, %v2693_v56  ;;  %19622 = vst [vmem:[#allocation28_spill] sm:$0xff] %v16998_v58  ;;  %v17005_v32 = vadd.f32 %v14484_v20, %v16806_v59  ;;  %v5906_v56 = vld [vmem:[#allocation2 + $0x8c] sm:$0x1]  ;;  %v6028_v59 = vsel %vm16069_vm13, %v6026_v48, %v6027_v31  ;;  %v13378_v62 = vrot.slane %v5904_v17, 9  ;;  %v17041_v31 = vld [vmem:[#allocation2 + $0xa8] sm:$0xe] }
 0x193   : > { %v17002_v38 = vpop.f32.mrf.mxu1  ;;  %v2619_v24 = vpop.f32.mrf.mxu0  ;;  %14763 = vmatmul.mubr.bf16.gmra.mxu0 %v13406_v50  ;;  %v6045_v50 = vrot.slane %v17000_v51, 5  ;;  %v6035_v48 = vsel %vm16069_vm13, %v6033_v16, %v6034_v28  ;;  %v17043_v17 = vld [vmem:[#allocation2 + $0xb0] sm:$0x1]  ;;  %v17045_v58 = vld [vmem:[#allocation2 + $0xb8] sm:$0xf] }
 0x194   : > { %19623 = vst [vmem:[#allocation29_spill] sm:$0xff] %v17002_v38  ;;  %v17009_v15 = vadd.f32 %v2619_v24, %v16821_v5  ;;  %14766 = vmatprep.mubr.bf16.mxu0 %v13407_v33  ;;  %v13408_v33 = vcombine.low %v6025_v0, %v6028_v59  ;;  %v6040_v24 = vrot.slane %v6038_v55, 4  ;;  %v17052_v28 = vld [vmem:[#allocation2 + $0xb4] sm:$0xe]  ;;  %v6048_v59 = vrot.slane %v17022_v3, 5 }
 0x195   : > { %v14528_v43 = vpop.f32.mrf.mxu1  ;;  %v14485_v44 = vpop.f32.mrf.mxu0  ;;  %v6047_v0 = vrot.slane %v6045_v50, 4 }
 0x196   : > { %v17017_v9 = vadd.f32 %v14528_v43, %v2696_v53  ;;  %v17020_v52 = vadd.f32 %v14485_v44, %v16829_v27  ;;  %v17033_v53 = vld [vmem:[#allocation2 + $0xac] sm:$0xf]  ;;  %v6032_v27 = vsel %vm16069_vm13, %v13377_v25, %v6031_v45  ;;  %v6041_v43 = vrot.slane %v5906_v56, 5 }
 0x197   : > { %v3053_v5 = vpop.f32.mrf.mxu1  ;;  %v17026_v60 = vpop.f32.mrf.mxu0  ;;  %v13409_v16 = vcombine.low %v6032_v27, %v6035_v48  ;;  %v6059_v12 = vrot.slane %v17033_v53, 5  ;;  %v17066_v27 = vld [vmem:[#allocation2 + $0xc4] sm:$0xf] }
 0x198   : > { %19624 = vst [vmem:[#allocation30_spill] sm:$0xff] %v17026_v60  ;;  %v17035_v20 = vadd.f32 %v3053_v5, %v2694_v47  ;;  %v13379_v47 = vrot.slane %v17011_v26, 9  ;;  %v13380_v26 = vrot.slane %v17029_v13, 9  ;;  %v6042_v48 = vsel %vm16069_vm13, %v6040_v24, %v6041_v43  ;;  %v17075_v13 = vld [vmem:[#allocation2 + $0xcc] sm:$0xe] }
 0x199   : > { %v14529_v51 = vpop.f32.mrf.mxu1  ;;  %v14488_v44 = vpop.f32.mrf.mxu0  ;;  %v19626_v60 = vrot.slane %v17024_v8, 5  ;;  %v17084_v43 = vld [vmem:[#allocation2 + $0xd0] sm:$0xf]  ;;  %v6061_v19 = vrot.slane %v6059_v12, 4  ;;  %v6073_v11 = vrot.slane %v17066_v27, 5 }
 0x19a   : > { %v17047_v38 = vadd.f32 %v14529_v51, %v2697_v42  ;;  %v2704_v45 = vadd.f32 %v14488_v44, %v16836_v30  ;;  %v6039_v42 = vsel %vm16069_vm13, %v13378_v62, %v6038_v55  ;;  %v6055_v30 = vrot.slane %v17031_v29, 5  ;;  %v17062_v51 = vld [vmem:[#allocation2 + $0xbc] sm:$0x1]  ;;  %v17064_v44 = vld [vmem:[#allocation2 + $0xc0] sm:$0xe] }
 0x19b   : > { %v17054_v5 = vpop.f32.mrf.mxu1  ;;  %v2635_v56 = vpop.f32.mrf.mxu0  ;;  %v6062_v55 = vrot.slane %v17043_v17, 5  ;;  %v17073_v62 = vld [vmem:[#allocation2 + $0xc8] sm:$0x1]  ;;  %14767 = vmatmul.mubr.bf16.gmra.mxu0 %v13408_v33  ;;  %v6054_v54 = vrot.slane %v19626_v60, 4  ;;  %v13382_v33 = vrot.slane %v17052_v28, 9 }
 0x19c   : > { %19625 = vst [vmem:[#allocation31_spill] sm:$0xff] %v17054_v5  ;;  %v2702_v25 = vadd.f32 %v2635_v56, %v16841_v1  ;;  %v13381_v5 = vrot.slane %v17041_v31, 9  ;;  %v6066_v1 = vrot.slane %v17045_v58, 5  ;;  %v17086_v31 = vld [vmem:[#allocation2 + $0xd4] sm:$0x1]  ;;  %14770 = vmatprep.mubr.bf16.mxu0 %v13409_v16  ;;  %v6049_v58 = vsel %vm16069_vm13, %v6047_v0, %v6048_v59 }
 0x19d   : > { %v14532_v3 = vpop.f32.mrf.mxu1  ;;  %v14489_v53 = vpop.f32.mrf.mxu0  ;;  %v6069_v16 = vrot.slane %v17062_v51, 5  ;;  %v6083_v51 = vrot.slane %v17086_v31, 5 }
 0x19e   : > { %v17078_v29 = vadd.f32 %v14532_v3, %v17005_v32  ;;  %v2705_v24 = vadd.f32 %v14489_v53, %v16856_v10  ;;  %v13410_v32 = vcombine.low %v6039_v42, %v6042_v48  ;;  %v6046_v10 = vsel %vm16069_vm13, %v13379_v47, %v6045_v50 }
 0x19f   : > { %v3069_v17 = vpop.f32.mrf.mxu1  ;;  %v17088_v56 = vpop.f32.mrf.mxu0  ;;  %v6068_v61 = vrot.slane %v6066_v1, 4  ;;  %v6076_v42 = vrot.slane %v17073_v62, 5  ;;  %v13384_v50 = vrot.slane %v17075_v13, 9  ;;  %v13411_v47 = vcombine.low %v6046_v10, %v6049_v58 }
 0x1a0   : > { %19627 = vst [vmem:[#allocation32_spill] sm:$0xff] %v17088_v56  ;;  %v17092_v3 = vadd.f32 %v3069_v17, %v17009_v15  ;;  %v13383_v56 = vrot.slane %v17064_v44, 9  ;;  %v6080_v48 = vrot.slane %v17084_v43, 5  ;;  %v19628_v58 = vrot.slane %v17024_v8, 5 }
 0x1a1   : > { %v14533_v60 = vpop.f32.mrf.mxu1  ;;  %v14492_v53 = vpop.f32.mrf.mxu0 }
 0x1a2   : > { %v17102_v28 = vadd.f32 %v14533_v60, %v17020_v52  ;;  %v2708_v15 = vadd.f32 %v14492_v53, %v16864_v22  ;;  %v6075_v52 = vrot.slane %v6073_v11, 4  ;;  %v15380_v22 = vld [vmem:[%s19575_s3 + $0x38] sm:$0xff]   ;;  %v6053_v43 = vsel %vm16069_vm13, %v13380_v26, %v19628_v58 }
 0x1a3   : > { %v17107_v0 = vpop.f32.mrf.mxu1  ;;  %v2651_v59 = vpop.f32.mrf.mxu0  ;;  %14771 = vmatmul.mubr.bf16.gmra.mxu0 %v13410_v32  ;;  %14786 = vmatprep.subr.bf16.mxu1 %v15380_v22 }
 0x1a4   : > { %v2706_v44 = vadd.f32 %v2651_v59, %v16873_v4  ;;  %14774 = vmatprep.mubr.bf16.mxu0 %v13411_v47  ;;  %v6056_v4 = vsel %vm16069_vm13, %v6054_v54, %v6055_v30  ;;  %14787 = vmatpush3.bf16.msra.mxu1 %v15380_v22 }
 0x1a5   : > { %v14536_v27 = vpop.f32.mrf.mxu1  ;;  %v14493_v17 = vpop.f32.mrf.mxu0  ;;  %v13412_v47 = vcombine.low %v6053_v43, %v6056_v4 }
 0x1a6   : > { %v17115_v62 = vadd.f32 %v14536_v27, %v2704_v45  ;;  %v2709_v10 = vadd.f32 %v14493_v17, %v16878_v34  ;;  %v6060_v45 = vsel %vm16069_vm13, %v13381_v5, %v6059_v12  ;;  %v6063_v34 = vsel %vm16069_vm13, %v6061_v19, %v6062_v55 }
 0x1a7   : > { %v3085_v31 = vpop.f32.mrf.mxu1  ;;  %v17124_v60 = vpop.f32.mrf.mxu0  ;;  %v13413_v30 = vcombine.low %v6060_v45, %v6063_v34  ;;  %v6067_v5 = vsel %vm16069_vm13, %v13382_v33, %v6066_v1 }
 0x1a8   : > { %v17126_v53 = vadd.f32 %v3085_v31, %v2702_v25 }
 0x1a9   : > { %v14537_v8 = vpop.f32.mrf.mxu1  ;;  %v14496_v32 = vpop.f32.mrf.mxu0 }
 0x1aa   : > { %v17132_v26 = vadd.f32 %v14537_v8, %v2705_v24  ;;  %v2712_v54 = vadd.f32 %v14496_v32, %v16893_v2  ;;  %v6070_v2 = vsel %vm16069_vm13, %v6068_v61, %v6069_v16  ;;  %v6082_v24 = vrot.slane %v6080_v48, 4  ;;  %v15382_v32 = vld [vmem:[%s19575_s3 + $0x28] sm:$0xff]  }
 0x1ab   : > { %v17135_v59 = vpop.f32.mrf.mxu1  ;;  %v2667_v27 = vpop.f32.mrf.mxu0  ;;  %14775 = vmatmul.mubr.bf16.gmra.mxu0 %v13412_v47  ;;  %v13414_v61 = vcombine.low %v6067_v5, %v6070_v2 }
 0x1ac   : > { %v2710_v25 = vadd.f32 %v2667_v27, %v16902_v6  ;;  %14778 = vmatprep.mubr.bf16.mxu0 %v13413_v30  ;;  %v15381_v6 = vld [vmem:[%s19575_s3 + $0x30] sm:$0xff]  }
 0x1ad   : > { %v14540_v17 = vpop.f32.mrf.mxu1  ;;  %v14497_v58 = vpop.f32.mrf.mxu0  ;;  %14788 = vmatprep.subr.bf16.mxu1 %v15381_v6 }
 0x1ae   : > { %v17138_v12 = vadd.f32 %v14540_v17, %v2708_v15  ;;  %v2713_v19 = vadd.f32 %v14497_v58, %v16907_v23  ;;  %v6074_v23 = vsel %vm16069_vm13, %v13383_v56, %v6073_v11  ;;  %v6077_v15 = vsel %vm16069_vm13, %v6075_v52, %v6076_v42  ;;  %14789 = vmatpush3.bf16.msra.mxu1 %v15381_v6 }
 0x1af   : > { %v3101_v55 = vpop.f32.mrf.mxu1  ;;  %v17145_v22 = vpop.f32.mrf.mxu0  ;;  %v13415_v31 = vcombine.low %v6074_v23, %v6077_v15  ;;  %14790 = vmatprep.subr.bf16.mxu1 %v15382_v32 }
 0x1b0   : > { %v17150_v43 = vadd.f32 %v3101_v55, %v2706_v44 }
 0x1b1   : > { %v14541_v1 = vpop.f32.mrf.mxu1  ;;  %v14564_v33 = vpop.f32.mrf.mxu0 }
 0x1b2   : > { %v17156_v16 = vadd.f32 %v14541_v1, %v2709_v10  ;;  %v17159_v4 = vadd.f32 %v14564_v33, %v16927_v36  ;;  %v6081_v36 = vsel %vm16069_vm13, %v13384_v50, %v6080_v48  ;;  %v6084_v10 = vsel %vm16069_vm13, %v6082_v24, %v6083_v51  ;;  %14791 = vmatpush3.bf16.msra.mxu1 %v15382_v32 }
 0x1b3   : > { %v17161_v45 = vpop.f32.mrf.mxu1  ;;  %v3823_v44 = vpop.f32.mrf.mxu0  ;;  %14779 = vmatmul.mubr.bf16.gmra.mxu0 %v13414_v61  ;;  %v13416_v30 = vcombine.low %v6081_v36, %v6084_v10 }
 0x1b4   : > { %v17164_v34 = vadd.f32 %v3823_v44, %v16937_v63  ;;  %14782 = vmatprep.mubr.bf16.mxu0 %v13415_v31 }
 0x1b5   : > { %v14544_v11 = vpop.f32.mrf.mxu1  ;;  %v14565_v56 = vpop.f32.mrf.mxu0 }
 0x1b6   : > { %v17166_v42 = vadd.f32 %v14544_v11, %v2712_v54  ;;  %v17169_v52 = vadd.f32 %v14565_v56, %v16941_v49 }
 0x1b7   : > { %v3117_v8 = vpop.f32.mrf.mxu1  ;;  %v17177_v63 = vpop.f32.mrf.mxu0 }
 0x1b8   : > { %v17182_v47 = vadd.f32 %v3117_v8, %v2710_v25 }
 0x1b9   : > { %v14545_v49 = vpop.f32.mrf.mxu1  ;;  %v14568_v54 = vpop.f32.mrf.mxu0 }
 0x1ba   : > { %v17184_v13 = vadd.f32 %v14545_v49, %v2713_v19  ;;  %v17187_v50 = vadd.f32 %v14568_v54, %v16951_v14 }
 0x1bb   : > { %v17189_v48 = vpop.f32.mrf.mxu1  ;;  %v3839_v51 = vpop.f32.mrf.mxu0  ;;  %14783 = vmatmul.mubr.bf16.gmra.mxu0 %v13416_v30 }
 0x1bc   : > { %v17192_v27 = vadd.f32 %v3839_v51, %v16960_v39  ;;  %v15383_v39 = vld [vmem:[%s19575_s3 + $0x20] sm:$0xff]  }
 0x1bd   : > { %v17194_v17 = vpop.f32.mrf.mxu1  ;;  %v14569_v25 = vpop.f32.mrf.mxu0  ;;  %14792 = vmatprep.subr.bf16.mxu1 %v15383_v39 }
 0x1be   : > { %19629 = vst [vmem:[#allocation33_spill] sm:$0xff] %v17192_v27  ;;  %v3957_v58 = vadd.f32 %v14569_v25, %v16965_v57  ;;  %14793 = vmatpush3.bf16.msra.mxu1 %v15383_v39 }
 0x1bf   : > { %v17197_v5 = vpop.f32.mrf.mxu1  ;;  %v17199_v19 = vpop.f32.mrf.mxu0 }
 0x1c1   : > { %v17201_v2 = vpop.f32.mrf.mxu1  ;;  %v14572_v14 = vpop.f32.mrf.mxu0 }
 0x1c2   : > { %v3960_v55 = vadd.f32 %v14572_v14, %v16979_v18 }
 0x1c3   : > { %v17207_v24 = vpop.f32.mrf.mxu1  ;;  %v3855_v6 = vpop.f32.mrf.mxu0 }
 0x1c4   : > { %v3958_v23 = vadd.f32 %v3855_v6, %v16985_v46 }
 0x1c5   : > { %v17210_v57 = vpop.f32.mrf.mxu1  ;;  %v14573_v15 = vpop.f32.mrf.mxu0 }
 0x1c6   : > { %v3961_v1 = vadd.f32 %v14573_v15, %v16995_v7 }
 0x1c7   : > { %v17213_v33 = vpop.f32.mrf.mxu1  ;;  %v17215_v61 = vpop.f32.mrf.mxu0 }
 0x1c8   : > { %19630 = vst [vmem:[#allocation34_spill] sm:$0xff] %v17213_v33 }
 0x1c9   : > { %v14617_v18 = vpop.f32.mrf.mxu1  ;;  %v14576_v31 = vpop.f32.mrf.mxu0 }
 0x1ca   : > { %v17217_v44 = vadd.f32 %v14617_v18, %v3957_v58  ;;  %v3964_v11 = vadd.f32 %v14576_v31, %v17017_v9  ;;  %v15386_v9 = vld [vmem:[%s19575_s3 + $0x78] sm:$0xff]  }
 0x1cb   : > { %v17220_v56 = vpop.f32.mrf.mxu1  ;;  %v3871_v46 = vpop.f32.mrf.mxu0  ;;  %14834 = vmatprep.subr.bf16.mxu0 %v15386_v9 }
 0x1cc   : > { %19631 = vst [vmem:[#allocation35_spill] sm:$0xff] %v17220_v56  ;;  %v3962_v36 = vadd.f32 %v3871_v46, %v17035_v20  ;;  %14835 = vmatpush3.bf16.msra.mxu0 %v15386_v9 }
 0x1cd   : > { %v14620_v10 = vpop.f32.mrf.mxu1  ;;  %v14577_v8 = vpop.f32.mrf.mxu0 }
 0x1ce   : > { %v17223_v32 = vadd.f32 %v14620_v10, %v3960_v55  ;;  %v3965_v7 = vadd.f32 %v14577_v8, %v17047_v38  ;;  %v15385_v8 = vld [vmem:[%s19575_s3 + $0x10] sm:$0xff]  }
 0x1cf   : > { %v4449_v49 = vpop.f32.mrf.mxu1  ;;  %v17226_v54 = vpop.f32.mrf.mxu0 }
 0x1d0   : > { %v17228_v30 = vadd.f32 %v4449_v49, %v3958_v23  ;;  %v15387_v23 = vld [vmem:[%s19575_s3 + $0x70] sm:$0xff]  }
 0x1d1   : > { %v14621_v51 = vpop.f32.mrf.mxu1  ;;  %v14580_v25 = vpop.f32.mrf.mxu0  ;;  %14836 = vmatprep.subr.bf16.mxu0 %v15387_v23 }
 0x1d2   : > { %v17233_v58 = vadd.f32 %v14621_v51, %v3961_v1  ;;  %v3968_v20 = vadd.f32 %v14580_v25, %v17078_v29  ;;  %v15384_v29 = vld [vmem:[%s19575_s3 + $0x18] sm:$0xff]   ;;  %14837 = vmatpush3.bf16.msra.mxu0 %v15387_v23  ;;  %v15388_v23 = vld [vmem:[%s19575_s3 + $0x8] sm:$0xff]  }
 0x1d3   : > { %v17236_v14 = vpop.f32.mrf.mxu1  ;;  %v3887_v55 = vpop.f32.mrf.mxu0  ;;  %14794 = vmatprep.subr.bf16.mxu1 %v15384_v29 }
 0x1d4   : > { %19632 = vst [vmem:[#allocation36_spill] sm:$0xff] %v17236_v14  ;;  %v3966_v38 = vadd.f32 %v3887_v55, %v17092_v3  ;;  %14795 = vmatpush3.bf16.msra.mxu1 %v15384_v29  ;;  %v15390_v55 = vld [vmem:[%s19575_s3 + $0x60] sm:$0xff]  }
 0x1d5   : > { %v14624_v39 = vpop.f32.mrf.mxu1  ;;  %v14581_v6 = vpop.f32.mrf.mxu0  ;;  %14796 = vmatprep.subr.bf16.mxu1 %v15385_v8 }
 0x1d6   : > { %v17242_v15 = vadd.f32 %v14624_v39, %v3964_v11  ;;  %v3969_v1 = vadd.f32 %v14581_v6, %v17102_v28  ;;  %v15389_v28 = vld [vmem:[%s19575_s3 + $0x68] sm:$0xff]  }
 0x1d7   : > { %v4465_v18 = vpop.f32.mrf.mxu1  ;;  %v17250_v46 = vpop.f32.mrf.mxu0  ;;  %14838 = vmatprep.subr.bf16.mxu0 %v15389_v28 }
 0x1d8   : > { %v17248_v31 = vadd.f32 %v4465_v18, %v3962_v36  ;;  %19633 = vst [vmem:[#allocation37_spill] sm:$0xff] %v17250_v46  ;;  %14839 = vmatpush3.bf16.msra.mxu0 %v15389_v28  ;;  %14797 = vmatpush3.bf16.msra.mxu1 %v15385_v8  ;;  %v15392_v8 = vld [vmem:[%s19575_s3 + $0x58] sm:$0xff]  }
 0x1d9   : > { %v14625_v3 = vpop.f32.mrf.mxu1  ;;  %14840 = vmatprep.subr.bf16.mxu0 %v15390_v55  ;;  %14798 = vmatprep.subr.bf16.mxu1 %v15388_v23 }
 0x1da   : > { %v17252_v10 = vadd.f32 %v14625_v3, %v3965_v7  ;;  %v14584_v49 = vpop.f32.mrf.mxu0 }
 0x1db   : > { %v17257_v11 = vpop.f32.mrf.mxu1  ;;  %v3972_v7 = vadd.f32 %v14584_v49, %v17115_v62 }
 0x1dc   : > { %19634 = vst [vmem:[#allocation38_spill] sm:$0xff] %v17257_v11  ;;  %v3903_v9 = vpop.f32.mrf.mxu0  ;;  %14841 = vmatpush3.bf16.msra.mxu0 %v15390_v55  ;;  %14799 = vmatpush3.bf16.msra.mxu1 %v15388_v23  ;;  %v15393_v23 = vld [vmem:[%s19575_s3 + $0x50] sm:$0xff]   ;;  %v7585_v11 = vld [vmem:[#allocation2 + $0x8] sm:$0x1] }
 0x1dd   : > { %v14628_v36 = vpop.f32.mrf.mxu1  ;;  %v3970_v6 = vadd.f32 %v3903_v9, %v17126_v53  ;;  %14842 = vmatprep.subr.bf16.mxu0 %v15392_v8 }
 0x1de   : > { %v17262_v51 = vadd.f32 %v14628_v36, %v3968_v20  ;;  %v14585_v20 = vpop.f32.mrf.mxu0 }
 0x1df   : > { %v4481_v25 = vpop.f32.mrf.mxu1  ;;  %v3973_v62 = vadd.f32 %v14585_v20, %v17132_v26  ;;  %v15391_v26 = vld [vmem:[%s19575_s3] sm:$0xff]  }
 0x1e0   : > { %v17268_v39 = vadd.f32 %v4481_v25, %v3966_v38  ;;  %v17279_v38 = vpop.f32.mrf.mxu0  ;;  %14843 = vmatpush3.bf16.msra.mxu0 %v15392_v8  ;;  %14800 = vmatprep.subr.bf16.mxu1 %v15391_v26 }
 0x1e1   : > { %v14629_v29 = vpop.f32.mrf.mxu1  ;;  %19636 = vst [vmem:[#allocation40_spill] sm:$0xff] %v17279_v38  ;;  %14801 = vmatpush3.bf16.msra.mxu1 %v15391_v26  ;;  %14844 = vmatprep.subr.bf16.mxu0 %v15393_v23  ;;  %v7584_v26 = vld [vmem:[#allocation2 + $0x4] sm:$0xf] }
 0x1e2   : > { %v17274_v18 = vadd.f32 %v14629_v29, %v3969_v1 }
 0x1e3   : > { %v17277_v3 = vpop.f32.mrf.mxu1  ;;  %v14588_v1 = vpop.f32.mrf.mxu0 }
 0x1e4   : > { %19635 = vst [vmem:[#allocation39_spill] sm:$0xff] %v17277_v3  ;;  %v3976_v9 = vadd.f32 %v14588_v1, %v17138_v12  ;;  %14845 = vmatpush3.bf16.msra.mxu0 %v15393_v23  ;;  %v15398_v1 = vld [vmem:[%s19575_s3 + $0x48] sm:$0xff]   ;;  %v7641_v23 = vshll.u32 %v7584_v26, 16 }
 0x1e5   : > { %v14632_v28 = vpop.f32.mrf.mxu1  ;;  %14846 = vmatprep.subr.bf16.mxu0 %v15398_v1 }
 0x1e6   : > { %v17281_v53 = vadd.f32 %v14632_v28, %v3972_v7  ;;  %v3919_v7 = vpop.f32.mrf.mxu0  ;;  %v15394_v28 = vld [vmem:[#allocation2] sm:$0xff]   ;;  %v7643_v3 = vrot.slane %v7641_v23, 5 }
 0x1e7   : > { %v4497_v36 = vpop.f32.mrf.mxu1  ;;  %v3974_v29 = vadd.f32 %v3919_v7, %v17150_v43  ;;  %14802 = vmatprep.mubr.bf16.mxu1 %v15394_v28  ;;  %v7583_v43 = vld [vmem:[#allocation2] sm:$0xf]  ;;  %v7645_v28 = vshrl.u32 %v7584_v26, 16 }
 0x1e8   : > { %v17286_v49 = vadd.f32 %v4497_v36, %v3970_v6  ;;  %v14589_v20 = vpop.f32.mrf.mxu0  ;;  %14847 = vmatpush3.bf16.msra.mxu0 %v15398_v1 }
 0x1e9   : > { %v14633_v25 = vpop.f32.mrf.mxu1  ;;  %v3977_v12 = vadd.f32 %v14589_v20, %v17156_v16  ;;  %v7635_v16 = vshll.u32 %v7583_v43, 16  ;;  %v15399_v20 = vld [vmem:[%s19575_s3 + $0x40] sm:$0xff]  }
 0x1ea   : > { %v17292_v55 = vadd.f32 %v14633_v25, %v3973_v62  ;;  %14848 = vmatprep.subr.bf16.mxu0 %v15399_v20 }
 0x1eb   : > { %v17297_v6 = vpop.f32.mrf.mxu1 }
 0x1ec   : > { %19637 = vst [vmem:[#allocation41_spill] sm:$0xff] %v17297_v6  ;;  %v7632_v6 = vshrl.u32 %v7583_v43, 16  ;;  %14849 = vmatpush3.bf16.msra.mxu0 %v15399_v20  ;;  %v7651_v43 = vshll.u32 %v7585_v11, 16 }
 0x1ed   : > { %v14636_v36 = vpop.f32.mrf.mxu1 }
 0x1ee   : > { %v17301_v62 = vadd.f32 %v14636_v36, %v3976_v9  ;;  %v17315_v36 = vpop.f32.mrf.mxu0  ;;  %v7653_v33 = vrot.slane %v7651_v43, 5 }
 0x1ef   : > { %v4513_v8 = vpop.f32.mrf.mxu1  ;;  %19639 = vst [vmem:[#allocation43_spill] sm:$0xff] %v17315_v36 }
 0x1f0   : > { %v17306_v25 = vadd.f32 %v4513_v8, %v3974_v29  ;;  %v7634_v29 = vrot.slane %v7632_v6, 4  ;;  %v7637_v8 = vrot.slane %v7635_v16, 5 }
 0x1f1   : > { %v14637_v21 = vpop.f32.mrf.mxu1 }
 0x1f2   : > { %v17308_v7 = vadd.f32 %v14637_v21, %v3977_v12  ;;  %v7647_v21 = vrot.slane %v7645_v28, 4  ;;  %v7638_v1 = vor.u32 %v7637_v8, %v7634_v29 }
 0x1f3   : > { %v17310_v9 = vpop.f32.mrf.mxu1  ;;  %v14592_v56 = vpop.f32.mrf.mxu0 }
 0x1f4   : > { %19638 = vst [vmem:[#allocation42_spill] sm:$0xff] %v17310_v9  ;;  %v7648_v14 = vor.u32 %v7647_v21, %v7643_v3  ;;  %v7639_v38 = vrot.slane %v7638_v1, 4  ;;  %v3980_v27 = vadd.f32 %v14592_v56, %v17166_v42 }
 0x1f5   : > { %v14640_v12 = vpop.f32.mrf.mxu1  ;;  %v3935_v46 = vpop.f32.mrf.mxu0 }
 0x1f6   : > { %v7649_v26 = vrot.slane %v7648_v14, 4  ;;  %v7644_v6 = vsel %vm15702_vm6, %v7639_v38, %v7643_v3  ;;  %v3978_v16 = vadd.f32 %v3935_v46, %v17182_v47  ;;  %v17321_v23 = vadd.f32 %v14640_v12, %v3980_v27  ;;  %v17337_v47 = vld [vmem:[%s19575_s3 + $0xb8] sm:$0xff]  }
 0x1f7   : > { %v4529_v9 = vpop.f32.mrf.mxu1  ;;  %v14593_v20 = vpop.f32.mrf.mxu0  ;;  %19640 = vst [vmem:[#allocation44_spill] sm:$0xff] %v17337_v47  ;;  %14882 = vmatprep.subr.bf16.mxu1 %v17337_v47 }
 0x1f8   : > { %v7654_v11 = vsel %vm15702_vm6, %v7649_v26, %v7653_v33  ;;  %v3981_v29 = vadd.f32 %v14593_v20, %v17184_v13  ;;  %v17326_v8 = vadd.f32 %v4529_v9, %v3978_v16 }
 0x1f9   : > { %v14641_v36 = vpop.f32.mrf.mxu1  ;;  %v13498_v28 = vcombine.low %v7644_v6, %v7654_v11  ;;  %v17328_v42 = vpop.f32.mrf.mxu0 }
 0x1fa   : > { %v17332_v14 = vadd.f32 %v14641_v36, %v3981_v29 }
 0x1fb   : > { %v17330_v56 = vpop.f32.mrf.mxu1  ;;  %14850 = vmatprep.mubr.bf16.mxu0 %v13498_v28  ;;  %v17339_v27 = vpop.f32.mrf.mxu0 }
 0x1fd   : > { %v17342_v33 = vpop.f32.mrf.mxu0  ;;  %v17344_v13 = vpop.f32.mrf.mxu1 }
 0x1ff   : > { %v17346_v46 = vpop.f32.mrf.mxu0  ;;  %v17348_v3 = vpop.f32.mrf.mxu1 }
 0x201   : > { %v17350_v38 = vpop.f32.mrf.mxu0  ;;  %v17352_v9 = vpop.f32.mrf.mxu1 }
 0x203   : > { %v17354_v36 = vpop.f32.mrf.mxu0  ;;  %v17356_v21 = vpop.f32.mrf.mxu1 }
 0x205   : > { %v17358_v12 = vpop.f32.mrf.mxu0 }
 0x207   : > { %v17360_v1 = vpop.f32.mrf.mxu1  ;;  %v14665_v43 = vpop.f32.mrf.mxu0 }
 0x208   : > { %19641 = vst [vmem:[#allocation45_spill] sm:$0xff] %v17360_v1  ;;  %v17363_v26 = vadd.f32 %v14665_v43, %v17217_v44 }
 0x209   : > { %v17365_v6 = vpop.f32.mrf.mxu1  ;;  %v17367_v16 = vpop.f32.mrf.mxu0 }
 0x20a   : > { %19642 = vst [vmem:[#allocation46_spill] sm:$0xff] %v17363_v26  ;;  %19643 = vst [vmem:[#allocation47_spill] sm:$0xff] %v17365_v6 }
 0x20b   : > { %v17369_v11 = vpop.f32.mrf.mxu1  ;;  %v14668_v20 = vpop.f32.mrf.mxu0 }
 0x20c   : > { %19644 = vst [vmem:[#allocation48_spill] sm:$0xff] %v17369_v11  ;;  %v17372_v28 = vadd.f32 %v14668_v20, %v17223_v32 }
 0x20d   : > { %v17374_v29 = vpop.f32.mrf.mxu1  ;;  %v4900_v37 = vpop.f32.mrf.mxu0 }
 0x20e   : > { %19645 = vst [vmem:[#allocation49_spill] sm:$0xff] %v17372_v28  ;;  %v17377_v47 = vadd.f32 %v4900_v37, %v17228_v30 }
 0x20f   : > { %v17379_v1 = vpop.f32.mrf.mxu1  ;;  %v14669_v44 = vpop.f32.mrf.mxu0 }
 0x210   : > { %19646 = vst [vmem:[#allocation50_spill] sm:$0xff] %v17377_v47  ;;  %v17382_v43 = vadd.f32 %v14669_v44, %v17233_v58 }
 0x211   : > { %v17384_v26 = vpop.f32.mrf.mxu1  ;;  %v17386_v6 = vpop.f32.mrf.mxu0 }
 0x212   : > { %19647 = vst [vmem:[#allocation51_spill] sm:$0xff] %v17382_v43  ;;  %19648 = vst [vmem:[#allocation52_spill] sm:$0xff] %v17384_v26 }
 0x213   : > { %v17388_v11 = vpop.f32.mrf.mxu1  ;;  %v14672_v32 = vpop.f32.mrf.mxu0 }
 0x214   : > { %19649 = vst [vmem:[#allocation53_spill] sm:$0xff] %v17388_v11  ;;  %v17391_v20 = vadd.f32 %v14672_v32, %v17242_v15 }
 0x215   : > { %v17393_v28 = vpop.f32.mrf.mxu1  ;;  %v4916_v37 = vpop.f32.mrf.mxu0 }
 0x216   : > { %19650 = vst [vmem:[#allocation54_spill] sm:$0xff] %v17391_v20  ;;  %19651 = vst [vmem:[#allocation55_spill] sm:$0xff] %v17393_v28  ;;  %v17396_v30 = vadd.f32 %v4916_v37, %v17248_v31  ;;  %v19689_v28 = vld [vmem:[#allocation30_spill] sm:$0xff] }
 0x217   : > { %v14673_v47 = vpop.f32.mrf.mxu0 }
 0x218   : > { %19652 = vst [vmem:[#allocation56_spill] sm:$0xff] %v17396_v30  ;;  %v17399_v58 = vadd.f32 %v14673_v47, %v17252_v10 }
 0x219   : > { %v17401_v44 = vpop.f32.mrf.mxu1  ;;  %v17403_v43 = vpop.f32.mrf.mxu0 }
 0x21a   : > { %19653 = vst [vmem:[#allocation57_spill] sm:$0xff] %v17399_v58  ;;  %19654 = vst [vmem:[#allocation58_spill] sm:$0xff] %v17401_v44 }
 0x21b   : > { %v17405_v26 = vpop.f32.mrf.mxu1  ;;  %v14676_v11 = vpop.f32.mrf.mxu0 }
 0x21c   : > { %19655 = vst [vmem:[#allocation59_spill] sm:$0xff] %v17405_v26  ;;  %v17408_v15 = vadd.f32 %v14676_v11, %v17262_v51 }
 0x21d   : > { %v17410_v32 = vpop.f32.mrf.mxu1  ;;  %v4932_v20 = vpop.f32.mrf.mxu0 }
 0x21e   : > { %19656 = vst [vmem:[#allocation60_spill] sm:$0xff] %v17408_v15  ;;  %19657 = vst [vmem:[#allocation61_spill] sm:$0xff] %v17410_v32  ;;  %v17413_v31 = vadd.f32 %v4932_v20, %v17268_v39  ;;  %v19686_v32 = vld [vmem:[#allocation23_spill] sm:$0xff] }
 0x21f   : > { %v17415_v37 = vpop.f32.mrf.mxu1  ;;  %v14677_v10 = vpop.f32.mrf.mxu0 }
 0x220   : > { %19658 = vst [vmem:[#allocation62_spill] sm:$0xff] %v17413_v31  ;;  %19659 = vst [vmem:[#allocation63_spill] sm:$0xff] %v17415_v37  ;;  %v17418_v47 = vadd.f32 %v14677_v10, %v17274_v18 }
 0x221   : > { %v17420_v58 = vpop.f32.mrf.mxu0 }
 0x222   : > { %19660 = vst [vmem:[#allocation64_spill] sm:$0xff] %v17418_v47  ;;  %19661 = vst [vmem:[#allocation65_spill] sm:$0xff] %v17420_v58 }
 0x223   : > { %v17422_v30 = vpop.f32.mrf.mxu1  ;;  %v14680_v26 = vpop.f32.mrf.mxu0 }
 0x224   : > { %19662 = vst [vmem:[#allocation66_spill] sm:$0xff] %v17422_v30  ;;  %v17425_v51 = vadd.f32 %v14680_v26, %v17281_v53 }
 0x225   : > { %v17427_v11 = vpop.f32.mrf.mxu1  ;;  %v4948_v15 = vpop.f32.mrf.mxu0 }
 0x226   : > { %19663 = vst [vmem:[#allocation67_spill] sm:$0xff] %v17425_v51  ;;  %19664 = vst [vmem:[#allocation68_spill] sm:$0xff] %v17427_v11  ;;  %v17430_v39 = vadd.f32 %v4948_v15, %v17286_v49  ;;  %v2086_v49 = vadd.f32 %v16595_v35, %v16559_v41  ;;  %v19681_v35 = vld [vmem:[#allocation17_spill] sm:$0xff] }
 0x227   : > { %v17432_v20 = vpop.f32.mrf.mxu1  ;;  %v14681_v31 = vpop.f32.mrf.mxu0 }
 0x228   : > { %19665 = vst [vmem:[#allocation69_spill] sm:$0xff] %v17430_v39  ;;  %19666 = vst [vmem:[#allocation70_spill] sm:$0xff] %v17432_v20  ;;  %v17435_v18 = vadd.f32 %v14681_v31, %v17292_v55  ;;  %v19674_v55 = vld [vmem:[#allocation12_spill] sm:$0xff] }
 0x229   : > { %v17437_v10 = vpop.f32.mrf.mxu1  ;;  %v17439_v47 = vpop.f32.mrf.mxu0  ;;  %v2090_v31 = vadd.f32 %v19674_v55, %v16613_v40  ;;  %v19685_v55 = vld [vmem:[#allocation20_spill] sm:$0xff] }
 0x22a   : > { %19667 = vst [vmem:[#allocation71_spill] sm:$0xff] %v17435_v18  ;;  %19668 = vst [vmem:[#allocation72_spill] sm:$0xff] %v17437_v10  ;;  %v19675_v18 = vld [vmem:[#allocation13_spill] sm:$0xff]  ;;  %v19676_v10 = vld [vmem:[#allocation14_spill] sm:$0xff] }
 0x22b   : > { %19669 = vst [vmem:[#allocation73_spill] sm:$0xff] %v17439_v47  ;;  %v14684_v53 = vpop.f32.mrf.mxu0  ;;  %v2094_v20 = vadd.f32 %v19676_v10, %v19675_v18  ;;  %v2114_v18 = vadd.f32 %v19686_v32, %v19685_v55  ;;  %v19687_v10 = vld [vmem:[#allocation24_spill] sm:$0xff]  ;;  %v19693_v55 = vld [vmem:[#allocation29_spill] sm:$0xff] }
 0x22c   : > { %v17444_v26 = vadd.f32 %v14684_v53, %v17301_v62  ;;  %v19679_v53 = vld [vmem:[#allocation15_spill] sm:$0xff] }
 0x22d   : > { %v4964_v39 = vpop.f32.mrf.mxu0 }
 0x22e   : > { %19671 = vst [vmem:[#allocation75_spill] sm:$0xff] %v17444_v26  ;;  %v17451_v51 = vadd.f32 %v4964_v39, %v17306_v25  ;;  %v19680_v26 = vld [vmem:[#allocation16_spill] sm:$0xff]  ;;  %v19683_v39 = vld [vmem:[#allocation19_spill] sm:$0xff] }
 0x22f   : > { %v14685_v62 = vpop.f32.mrf.mxu0  ;;  %v2102_v41 = vadd.f32 %v19680_v26, %v19679_v53  ;;  %v19690_v53 = vld [vmem:[#allocation32_spill] sm:$0xff] }
 0x230   : > { %v17441_v30 = vpop.f32.mrf.mxu1  ;;  %19673 = vst [vmem:[#allocation77_spill] sm:$0xff] %v17451_v51  ;;  %v17465_v25 = vadd.f32 %v14685_v62, %v17308_v7  ;;  %v19684_v51 = vld [vmem:[#allocation21_spill] sm:$0xff] }
 0x231   : > { %19670 = vst [vmem:[#allocation74_spill] sm:$0xff] %v17441_v30  ;;  %v19677_v30 = vld [vmem:[#allocation22_spill] sm:$0xff]  ;;  %v2110_v40 = vadd.f32 %v19684_v51, %v19683_v39  ;;  %v17473_v44 = vpop.f32.mrf.mxu0  ;;  %v2699_v26 = vadd.f32 %v19689_v28, %v2102_v41  ;;  %v19691_v7 = vld [vmem:[#allocation25_spill] sm:$0xff]  ;;  %v2711_v51 = vadd.f32 %v17145_v22, %v2114_v18 }
 0x232   : > { %v17448_v15 = vpop.f32.mrf.mxu1  ;;  %v2683_v11 = vadd.f32 %v19677_v30, %v2086_v49  ;;  %v2687_v30 = vadd.f32 %v19687_v10, %v2090_v31  ;;  %v19688_v49 = vld [vmem:[#allocation26_spill] sm:$0xff]  ;;  %v19692_v31 = vld [vmem:[#allocation27_spill] sm:$0xff] }
 0x233   : > { %19672 = vst [vmem:[#allocation76_spill] sm:$0xff] %v17448_v15  ;;  %v19682_v15 = vld [vmem:[#allocation18_spill] sm:$0xff]  ;;  %v14688_v39 = vpop.f32.mrf.mxu0  ;;  %v3161_v18 = vadd.f32 %v17189_v48, %v2711_v51  ;;  %v19701_v51 = vld [vmem:[#allocation35_spill] sm:$0xff] }
 0x234   : > { %v17458_v47 = vpop.f32.mrf.mxu1  ;;  %v2106_v37 = vadd.f32 %v19682_v15, %v19681_v35  ;;  %v3133_v62 = vadd.f32 %v19691_v7, %v2683_v11  ;;  %v2707_v35 = vadd.f32 %v17124_v60, %v2110_v40  ;;  %v17483_v32 = vadd.f32 %v14688_v39, %v17321_v23 }
 0x235   : > { %19678 = vst [vmem:[#allocation12_spill] sm:$0xff] %v17458_v47  ;;  %v2691_v47 = vadd.f32 %v19688_v49, %v2094_v20  ;;  %v3137_v20 = vadd.f32 %v19692_v31, %v2687_v30  ;;  %v4980_v41 = vpop.f32.mrf.mxu0  ;;  %v19695_v49 = vld [vmem:[#allocation31_spill] sm:$0xff]  ;;  %v3149_v11 = vadd.f32 %v17107_v0, %v2699_v26  ;;  %v4544_v0 = vadd.f32 %v17197_v5, %v17164_v34  ;;  %v19697_v34 = vld [vmem:[#allocation33_spill] sm:$0xff]  ;;  %v19698_v5 = vld [vmem:[#allocation34_spill] sm:$0xff] }
 0x236   : > { %v2703_v58 = vadd.f32 %v19690_v53, %v2106_v37  ;;  %v17477_v15 = vpop.f32.mrf.mxu1  ;;  %v3951_v28 = vadd.f32 %v17177_v63, %v3133_v62  ;;  %v19694_v37 = vld [vmem:[#allocation28_spill] sm:$0xff]  ;;  %v17495_v22 = vadd.f32 %v4980_v41, %v17326_v8  ;;  %v3157_v23 = vadd.f32 %v17161_v45, %v2707_v35 }
 0x237   : > { %v3141_v10 = vadd.f32 %v19693_v55, %v2691_v47  ;;  %v3145_v53 = vadd.f32 %v19695_v49, %v19694_v37  ;;  %v4546_v63 = vadd.f32 %v17194_v17, %v17159_v4  ;;  %v3955_v47 = vadd.f32 %v17199_v19, %v3137_v20  ;;  %v14689_v30 = vpop.f32.mrf.mxu0  ;;  %v19696_v19 = vld [vmem:[#allocation37_spill] sm:$0xff]  ;;  %v19704_v37 = vld [vmem:[#allocation39_spill] sm:$0xff] }
 0x238   : > { %v3153_v60 = vadd.f32 %v17135_v59, %v2703_v58  ;;  %v4547_v59 = vadd.f32 %v17201_v2, %v17169_v52  ;;  %v17510_v45 = vadd.f32 %v14689_v30, %v17332_v14  ;;  %v4545_v48 = vadd.f32 %v17207_v24, %v3951_v28  ;;  %v19699_v52 = vld [vmem:[#allocation40_spill] sm:$0xff]  ;;  %v19707_v30 = vld [vmem:[#allocation45_spill] sm:$0xff] }
 0x239   : > { %v17492_v40 = vpop.f32.mrf.mxu1  ;;  %v3959_v58 = vadd.f32 %v17215_v61, %v3141_v10  ;;  %v4550_v4 = vadd.f32 %v17210_v57, %v17187_v50  ;;  %v3963_v17 = vadd.f32 %v17226_v54, %v3145_v53  ;;  %v3967_v26 = vadd.f32 %v19696_v19, %v3149_v11  ;;  %v19700_v61 = vld [vmem:[#allocation43_spill] sm:$0xff]  ;;  %v19702_v54 = vld [vmem:[#allocation36_spill] sm:$0xff]  ;;  %v19705_v11 = vld [vmem:[#allocation41_spill] sm:$0xff] }
 0x23a   : > { %v4548_v7 = vadd.f32 %v19698_v5, %v19697_v34  ;;  %v3971_v2 = vadd.f32 %v19699_v52, %v3153_v60  ;;  %v3975_v62 = vadd.f32 %v19700_v61, %v3157_v23  ;;  %v3979_v35 = vadd.f32 %v17328_v42, %v3161_v18  ;;  %v19703_v42 = vld [vmem:[#allocation38_spill] sm:$0xff]  ;;  %v17567_v5 = vld [vmem:[%s19574_s2] ss:$0 sm:$0xff] }
 0x23b   : > { %v17507_v8 = vpop.f32.mrf.mxu1  ;;  %v4549_v24 = vadd.f32 %v19701_v51, %v3955_v47  ;;  %v4997_v39 = vadd.f32 %v17339_v27, %v4546_v63  ;;  %v4995_v50 = vadd.f32 %v17342_v33, %v4544_v0  ;;  %v4998_v57 = vadd.f32 %v17346_v46, %v4547_v59  ;;  %v4983_v27 = vpop.f32.mrf.mxu0  ;;  %v19706_v60 = vld [vmem:[#allocation42_spill] sm:$0xff]  ;;  %v19708_v59 = vld [vmem:[#allocation47_spill] sm:$0xff] }
 0x23c   : > { %v4553_v31 = vadd.f32 %v19702_v54, %v3959_v58  ;;  %v4996_v20 = vadd.f32 %v17350_v38, %v4545_v48  ;;  %v5001_v55 = vadd.f32 %v17354_v36, %v4550_v4  ;;  %v4999_v10 = vadd.f32 %v17358_v12, %v4548_v7  ;;  %v19709_v48 = vld [vmem:[#allocation46_spill] sm:$0xff]  ;;  %v19715_v7 = vld [vmem:[#allocation51_spill] sm:$0xff]  ;;  %v19723_v54 = vld [vmem:[#allocation61_spill] sm:$0xff] }
 0x23d   : > { %v17522_v14 = vpop.f32.mrf.mxu1  ;;  %v4557_v41 = vadd.f32 %v19703_v42, %v3963_v17  ;;  %v4561_v49 = vadd.f32 %v19704_v37, %v3967_v26  ;;  %v5000_v53 = vadd.f32 %v17367_v16, %v4549_v24  ;;  %v4565_v33 = vadd.f32 %v19705_v11, %v3971_v2  ;;  %v19717_v2 = vld [vmem:[#allocation55_spill] sm:$0xff]  ;;  %v19718_v61 = vld [vmem:[#allocation54_spill] sm:$0xff]  ;;  %v19720_v24 = vld [vmem:[#allocation56_spill] sm:$0xff] }
 0x23e   : > { %v4569_v46 = vadd.f32 %v19706_v60, %v3975_v62  ;;  %v4573_v23 = vadd.f32 %v17330_v56, %v3979_v35  ;;  %v5004_v38 = vadd.f32 %v17386_v6, %v4553_v31  ;;  %v5815_v36 = vadd.f32 %v17344_v13, %v4997_v39  ;;  %v19710_v56 = vld [vmem:[#allocation48_spill] sm:$0xff]  ;;  %v19712_v6 = vld [vmem:[#allocation50_spill] sm:$0xff]  ;;  %v19721_v39 = vld [vmem:[#allocation59_spill] sm:$0xff] }
 0x23f   : > { %v5785_v28 = vpop.f32.mrf.mxu1  ;;  %v5813_v12 = vadd.f32 %v17348_v3, %v4995_v50  ;;  %v5816_v18 = vadd.f32 %v17352_v9, %v4998_v57  ;;  %v5008_v63 = vadd.f32 %v17403_v43, %v4557_v41  ;;  %v5814_v16 = vadd.f32 %v17356_v21, %v4996_v20  ;;  %v19711_v3 = vld [vmem:[#allocation49_spill] sm:$0xff]  ;;  %v19713_v43 = vld [vmem:[#allocation52_spill] sm:$0xff]  ;;  %v19719_v62 = vld [vmem:[#allocation58_spill] sm:$0xff] }
 0x240   : > { %v5819_v0 = vadd.f32 %v19707_v30, %v5001_v55  ;;  %v17546_v58 = vadd.f32 %v19708_v59, %v4999_v10  ;;  %v17550_v4 = vadd.f32 %v19710_v56, %v19709_v48  ;;  %v17553_v13 = vadd.f32 %v17374_v29, %v5000_v53  ;;  %v19714_v21 = vld [vmem:[#allocation65_spill] sm:$0xff]  ;;  %v19724_v20 = vld [vmem:[#allocation63_spill] sm:$0xff]  ;;  %v19726_v37 = vld [vmem:[#allocation60_spill] sm:$0xff] }
 0x241   : > { %v14736_v47 = vpop.f32.mrf.mxu1  ;;  %v17557_v9 = vadd.f32 %v17379_v1, %v19711_v3  ;;  %v17561_v17 = vadd.f32 %v19713_v43, %v19712_v6  ;;  %v5012_v19 = vadd.f32 %v19714_v21, %v4561_v49  ;;  %v19716_v29 = vld [vmem:[#allocation53_spill] sm:$0xff]  ;;  %v17574_v1 = vadd.f32 %v19717_v2, %v5004_v38  ;;  %v19727_v49 = vld [vmem:[#allocation66_spill] sm:$0xff]  ;;  %v19729_v60 = vld [vmem:[#allocation68_spill] sm:$0xff] }
 0x242   : > { %v17571_v52 = vadd.f32 %v19716_v29, %v19715_v7  ;;  %v17578_v35 = vadd.f32 %v19719_v62, %v19718_v61  ;;  %v17582_v50 = vadd.f32 %v19721_v39, %v19720_v24  ;;  %v19722_v57 = vld [vmem:[#allocation57_spill] sm:$0xff]  ;;  %v17589_v55 = vadd.f32 %v19724_v20, %v5008_v63  ;;  %v19728_v11 = vld [vmem:[#allocation62_spill] sm:$0xff]  ;;  %v19730_v48 = vld [vmem:[#allocation64_spill] sm:$0xff] }
 0x243   : > { %v5798_v26 = vpop.f32.mrf.mxu1  ;;  %v14756_v34 = vpop.f32.mrf.mxu0  ;;  %v17586_v31 = vadd.f32 %v19723_v54, %v19722_v57  ;;  %v19725_v10 = vld [vmem:[#allocation73_spill] sm:$0xff]  ;;  %v17594_v53 = vadd.f32 %v19727_v49, %v19726_v37  ;;  %v17598_v38 = vadd.f32 %v19729_v60, %v19728_v11  ;;  %v19731_v56 = vld [vmem:[#allocation70_spill] sm:$0xff]  ;;  %v19732_v63 = vld [vmem:[#allocation72_spill] sm:$0xff] }
 0x244   : > { %v6409_v51 = vadd.f32 %v14756_v34, %v5815_v36  ;;  %v5016_v42 = vadd.f32 %v19725_v10, %v4565_v33  ;;  %v17603_v3 = vadd.f32 %v19731_v56, %v19730_v48  ;;  %v17606_v6 = vadd.f32 %v19732_v63, %v5012_v19  ;;  %v19733_v33 = vld [vmem:[#allocation67_spill] sm:$0xff]  ;;  %v19734_v43 = vld [vmem:[#allocation74_spill] sm:$0xff]  ;;  %v19735_v29 = vld [vmem:[#allocation69_spill] sm:$0xff] }
 0x245   : > { %v6280_v41 = vpop.f32.mrf.mxu0  ;;  %v14737_v36 = vpop.f32.mrf.mxu1  ;;  %v17610_v21 = vadd.f32 %v19734_v43, %v19733_v33  ;;  %v5020_v34 = vadd.f32 %v17473_v44, %v4569_v46  ;;  %v19736_v2 = vld [vmem:[#allocation76_spill] sm:$0xff]  ;;  %v19737_v24 = vld [vmem:[#allocation71_spill] sm:$0xff]  ;;  %v5024_v44 = vadd.f32 %v4983_v27, %v4573_v23 }
 0x246   : > { %v6512_v30 = vadd.f32 %v17567_v5, %v6409_v51  ;;  %v6407_v59 = vadd.f32 %v6280_v41, %v5813_v12  ;;  %v17615_v61 = vadd.f32 %v19736_v2, %v19735_v29  ;;  %v19738_v39 = vld [vmem:[#allocation12_spill] sm:$0xff]  ;;  %v17623_v19 = vadd.f32 %v17477_v15, %v5016_v42  ;;  %v19739_v54 = vld [vmem:[#allocation75_spill] sm:$0xff] }
 0x247   : > { %v14757_v7 = vpop.f32.mrf.mxu0  ;;  %v17620_v57 = vadd.f32 %v19738_v39, %v19737_v24  ;;  %v17627_v20 = vadd.f32 %v17492_v40, %v19739_v54  ;;  %v5801_v10 = vpop.f32.mrf.mxu1  ;;  %v17636_v15 = vadd.f32 %v17522_v14, %v17465_v25  ;;  %v17638_v42 = vadd.f32 %v5785_v28, %v5020_v34  ;;  %v17646_v23 = vld [vmem:[%s19575_s3 + $0xf8] sm:$0xff]  }
 0x248   : > { %v6544_v62 = vmax.f32 %v6512_v30, 0.0  ;;  %v6510_v12 = vadd.f32 %v17567_v5, %v6407_v59  ;;  %v6410_v51 = vadd.f32 %v14757_v7, %v5816_v18  ;;  %v19740_v18 = vld [vmem:[#allocation77_spill] sm:$0xff]  ;;  %v17641_v40 = vadd.f32 %v14736_v47, %v17483_v32  ;;  %14930 = vmatprep.subr.bf16.mxu0 %v17646_v23 }
 0x249   : > { %v6283_v46 = vpop.f32.mrf.mxu0  ;;  %v17632_v60 = vadd.f32 %v17507_v8, %v19740_v18  ;;  %v17652_v25 = vadd.f32 %v14737_v36, %v17510_v45  ;;  %v17654_v14 = vadd.f32 %v5801_v10, %v5024_v44 }
 0x24a   : > { %v13891_v41 = vpack.c.bf16 %v6544_v62, %v6544_v62  ;;  %v6542_v37 = vmax.f32 %v6510_v12, 0.0  ;;  %v6513_v49 = vadd.f32 %v17567_v5, %v6410_v51  ;;  %v6408_v11 = vadd.f32 %v6283_v46, %v5814_v16 }
 0x24b   : > { %v14760_v27 = vpop.f32.mrf.mxu0  ;;  %v17649_v16 = vadd.f32 %v5798_v26, %v17495_v22  ;;  %v6997_v22 = vld [vmem:[#allocation2 + $0x18] sm:$0xf] }
 0x24c   : > { %v6688_v8 = vshrl.u32 %v13891_v41, 16  ;;  %v13889_v30 = vpack.c.bf16 %v6542_v37, %v6542_v37  ;;  %v6545_v59 = vmax.f32 %v6513_v49, 0.0  ;;  %v6511_v32 = vadd.f32 %v17567_v5, %v6408_v11 }
 0x24d   : > { %v6413_v28 = vadd.f32 %v14760_v27, %v5819_v0  ;;  %v6296_v47 = vpop.f32.mrf.mxu0  ;;  %v6691_v56 = vshll.u32 %v13891_v41, 16  ;;  %v6990_v0 = vld [vmem:[#allocation2 + $0xc] sm:$0xf] }
 0x24e   : > { %v6690_v48 = vrot.slane %v6688_v8, 7  ;;  %v6671_v63 = vshrl.u32 %v13889_v30, 16  ;;  %v13892_v33 = vpack.c.bf16 %v6545_v59, %v6545_v59  ;;  %v6674_v26 = vshll.u32 %v13889_v30, 16 }
 0x24f   : > { %v6543_v43 = vmax.f32 %v6511_v32, 0.0  ;;  %v6516_v34 = vadd.f32 %v17567_v5, %v6413_v28  ;;  %v6411_v45 = vadd.f32 %v6296_v47, %v17546_v58  ;;  %v14761_v36 = vpop.f32.mrf.mxu0  ;;  %v7001_v58 = vld [vmem:[#allocation2 + $0x20] sm:$0x1] }
 0x250   : > { %v6693_v7 = vor.u32 %v6691_v56, %v6690_v48  ;;  %v6694_v29 = vrot.slane %v6690_v48, 4  ;;  %v6673_v2 = vrot.slane %v6671_v63, 7  ;;  %v6696_v62 = vshrl.u32 %v13892_v33, 16 }
 0x251   : > { %v6699_v12 = vshll.u32 %v13892_v33, 16  ;;  %v13890_v51 = vpack.c.bf16 %v6543_v43, %v6543_v43  ;;  %v6548_v24 = vmax.f32 %v6516_v34, 0.0  ;;  %v6514_v39 = vadd.f32 %v17567_v5, %v6411_v45  ;;  %v6299_v54 = vpop.f32.mrf.mxu0  ;;  %v6994_v45 = vld [vmem:[#allocation2 + $0x14] sm:$0x1] }
 0x252   : > { %v6998_v46 = vsel %vm15718_vm9, %v6693_v7, %v6997_v22  ;;  %v6676_v10 = vor.u32 %v6674_v26, %v6673_v2  ;;  %v6677_v41 = vrot.slane %v6673_v2, 4  ;;  %v6698_v37 = vrot.slane %v6696_v62, 7 }
 0x253   : > { %6999 = vst [vmem:[#allocation2 + $0x18] sm:$0xf] %v6998_v46  ;;  %v6679_v49 = vshrl.u32 %v13890_v51, 16  ;;  %v6682_v11 = vshll.u32 %v13890_v51, 16  ;;  %v13895_v18 = vpack.c.bf16 %v6548_v24, %v6548_v24  ;;  %v6546_v27 = vmax.f32 %v6514_v39, 0.0  ;;  %v14764_v8 = vpop.f32.mrf.mxu0 }
 0x254   : > { %v6991_v30 = vsel %vm15718_vm9, %v6676_v10, %v6990_v0  ;;  %v6701_v59 = vor.u32 %v6699_v12, %v6698_v37  ;;  %v6703_v32 = vrot.slane %v6698_v37, 4  ;;  %v6414_v28 = vadd.f32 %v14761_v36, %v17550_v4  ;;  %v7011_v51 = vld [vmem:[#allocation2 + $0x30] sm:$0xf] }
 0x255   : > { %6992 = vst [vmem:[#allocation2 + $0xc] sm:$0xf] %v6991_v30  ;;  %v6681_v47 = vrot.slane %v6679_v49, 7  ;;  %v6722_v48 = vshrl.u32 %v13895_v18, 16  ;;  %v6725_v56 = vshll.u32 %v13895_v18, 16  ;;  %v13893_v63 = vpack.c.bf16 %v6546_v27, %v6546_v27  ;;  %v6312_v33 = vpop.f32.mrf.mxu0 }
 0x256   : > { %v6702_v26 = vsel %vm15726_vm10, %v6694_v29, %v6701_v59  ;;  %v7002_v34 = vsel %vm15708_vm8, %v6703_v32, %v7001_v58  ;;  %v6517_v7 = vadd.f32 %v17567_v5, %v6414_v28  ;;  %v6412_v2 = vadd.f32 %v6299_v54, %v17553_v13 }
 0x257   : > { %7003 = vst [vmem:[#allocation2 + $0x20] sm:$0x1] %v7002_v34  ;;  %7000 = vst [vmem:[#allocation2 + $0x1c] sm:$0xf] %v6702_v26  ;;  %v6684_v4 = vor.u32 %v6682_v11, %v6681_v47  ;;  %v6686_v36 = vrot.slane %v6681_v47, 4  ;;  %v6724_v62 = vrot.slane %v6722_v48, 7  ;;  %v14765_v12 = vpop.f32.mrf.mxu0  ;;  %v6417_v46 = vadd.f32 %v14764_v8, %v17557_v9 }
 0x258   : > { %v6705_v0 = vshrl.u32 %v13893_v63, 16  ;;  %v6708_v24 = vshll.u32 %v13893_v63, 16  ;;  %v6549_v39 = vmax.f32 %v6517_v7, 0.0  ;;  %v6515_v29 = vadd.f32 %v17567_v5, %v6412_v2  ;;  %v7004_v8 = vld [vmem:[#allocation2 + $0x24] sm:$0xf] }
 0x259   : > { %v6685_v10 = vsel %vm15726_vm10, %v6677_v41, %v6684_v4  ;;  %v6995_v13 = vsel %vm15708_vm8, %v6686_v36, %v6994_v45  ;;  %v6727_v54 = vor.u32 %v6725_v56, %v6724_v62  ;;  %v6728_v37 = vrot.slane %v6724_v62, 4  ;;  %v6315_v58 = vpop.f32.mrf.mxu0  ;;  %v7015_v2 = vld [vmem:[#allocation2 + $0x38] sm:$0x1] }
 0x25a   : > { %6993 = vst [vmem:[#allocation2 + $0x10] sm:$0xf] %v6685_v10  ;;  %6996 = vst [vmem:[#allocation2 + $0x14] sm:$0x1] %v6995_v13  ;;  %v17678_v49 = vrot.slane %v6705_v0, 7  ;;  %v13896_v11 = vpack.c.bf16 %v6549_v39, %v6549_v39  ;;  %v6547_v18 = vmax.f32 %v6515_v29, 0.0  ;;  %v6520_v27 = vadd.f32 %v17567_v5, %v6417_v46 }
 0x25b   : > { %v7012_v9 = vsel %vm15718_vm9, %v6727_v54, %v7011_v51  ;;  %v6415_v41 = vadd.f32 %v6312_v33, %v17561_v17  ;;  %v6418_v30 = vadd.f32 %v14765_v12, %v17571_v52  ;;  %v6416_v59 = vadd.f32 %v6315_v58, %v17574_v1  ;;  %v14768_v32 = vpop.f32.mrf.mxu0  ;;  %v15401_v46 = vld [vmem:[%s19575_s3 + $0xb0] sm:$0xff]  }
 0x25c   : > { %7013 = vst [vmem:[#allocation2 + $0x30] sm:$0xf] %v7012_v9  ;;  %v6710_v28 = vor.u32 %v6708_v24, %v17678_v49  ;;  %v6711_v47 = vrot.slane %v17678_v49, 4  ;;  %v6730_v48 = vshrl.u32 %v13896_v11, 16  ;;  %v6733_v56 = vshll.u32 %v13896_v11, 16 }
 0x25d   : > { %v13894_v63 = vpack.c.bf16 %v6547_v18, %v6547_v18  ;;  %v6552_v26 = vmax.f32 %v6520_v27, 0.0  ;;  %v6518_v34 = vadd.f32 %v17567_v5, %v6415_v41  ;;  %v6521_v45 = vadd.f32 %v17567_v5, %v6418_v30  ;;  %v6328_v7 = vpop.f32.mrf.mxu0  ;;  %v7008_v27 = vld [vmem:[#allocation2 + $0x2c] sm:$0x1] }
 0x25e   : > { %v7005_v17 = vsel %vm15718_vm9, %v6710_v28, %v7004_v8  ;;  %v6732_v52 = vrot.slane %v6730_v48, 7  ;;  %v6519_v1 = vadd.f32 %v17567_v5, %v6416_v59  ;;  %v6421_v33 = vadd.f32 %v14768_v32, %v17578_v35  ;;  %v15397_v41 = vld [vmem:[#allocation2 + $0x18] sm:$0xff]  }
 0x25f   : > { %7006 = vst [vmem:[#allocation2 + $0x24] sm:$0xf] %v7005_v17  ;;  %v6713_v4 = vshrl.u32 %v13894_v63, 16  ;;  %v6716_v36 = vshll.u32 %v13894_v63, 16  ;;  %v13899_v62 = vpack.c.bf16 %v6552_v26, %v6552_v26  ;;  %v6550_v0 = vmax.f32 %v6518_v34, 0.0  ;;  %v14769_v12 = vpop.f32.mrf.mxu0 }
 0x260   : > { %v6735_v51 = vor.u32 %v6733_v56, %v6732_v52  ;;  %v6737_v24 = vrot.slane %v6732_v52, 4  ;;  %v6553_v39 = vmax.f32 %v6521_v45, 0.0  ;;  %v6551_v29 = vmax.f32 %v6519_v1, 0.0  ;;  %v7025_v56 = vld [vmem:[#allocation2 + $0x48] sm:$0xf]  ;;  %v19744_v45 = vld [vmem:[#allocation44_spill] sm:$0xff] }
 0x261   : > { %v6715_v10 = vrot.slane %v6713_v4, 7  ;;  %v6756_v13 = vshrl.u32 %v13899_v62, 16  ;;  %v6759_v54 = vshll.u32 %v13899_v62, 16  ;;  %v13897_v58 = vpack.c.bf16 %v6550_v0, %v6550_v0  ;;  %v17697_v35 = vpop.f32.mrf.mxu0  ;;  %v15395_v49 = vld [vmem:[#allocation2 + $0xc] sm:$0xff]  }
 0x262   : > { %v6736_v11 = vsel %vm15726_vm10, %v6728_v37, %v6735_v51  ;;  %v7016_v18 = vsel %vm15708_vm8, %v6737_v24, %v7015_v2  ;;  %v13900_v9 = vpack.c.bf16 %v6553_v39, %v6553_v39  ;;  %v13898_v8 = vpack.c.bf16 %v6551_v29, %v6551_v29  ;;  %14803 = vmatmul.mubr.bf16.vlgmr.msra.gmra.mxu1 %v15395_v49  ;;  %v15404_v4 = vld [vmem:[%s19575_s3 + $0xa8] sm:$0xff]   ;;  %v7018_v39 = vld [vmem:[#allocation2 + $0x3c] sm:$0xf]  ;;  %v7029_v29 = vld [vmem:[#allocation2 + $0x50] sm:$0x1] }
 0x263   : > { %7017 = vst [vmem:[#allocation2 + $0x38] sm:$0x1] %v7016_v18  ;;  %7014 = vst [vmem:[#allocation2 + $0x34] sm:$0xf] %v6736_v11  ;;  %v6718_v30 = vor.u32 %v6716_v36, %v6715_v10  ;;  %v6720_v59 = vrot.slane %v6715_v10, 4  ;;  %v6758_v32 = vrot.slane %v6756_v13, 7  ;;  %v14772_v48 = vpop.f32.mrf.mxu0  ;;  %14806 = vmatprep.mubr.bf16.mxu1 %v15397_v41  ;;  %14883 = vmatpush3.bf16.msra.mxu1 %v19744_v45 }
 0x264   : > { %v6739_v28 = vshrl.u32 %v13897_v58, 16  ;;  %v6742_v63 = vshll.u32 %v13897_v58, 16  ;;  %v6764_v26 = vshrl.u32 %v13900_v9, 16  ;;  %v6767_v34 = vshll.u32 %v13900_v9, 16  ;;  %14884 = vmatprep.subr.bf16.mxu1 %v15401_v46 }
 0x265   : > { %v6747_v37 = vshrl.u32 %v13898_v8, 16  ;;  %v6719_v17 = vsel %vm15726_vm10, %v6711_v47, %v6718_v30  ;;  %v7009_v52 = vsel %vm15708_vm8, %v6720_v59, %v7008_v27  ;;  %v6761_v1 = vor.u32 %v6759_v54, %v6758_v32  ;;  %v6344_v24 = vpop.f32.mrf.mxu0  ;;  %v7022_v27 = vld [vmem:[#allocation2 + $0x44] sm:$0x1] }
 0x266   : > { %v6762_v2 = vrot.slane %v6758_v32, 4  ;;  %7010 = vst [vmem:[#allocation2 + $0x2c] sm:$0x1] %v7009_v52  ;;  %7007 = vst [vmem:[#allocation2 + $0x28] sm:$0xf] %v6719_v17  ;;  %v6741_v36 = vrot.slane %v6739_v28, 7  ;;  %v6524_v10 = vadd.f32 %v17567_v5, %v6421_v33  ;;  %v6419_v13 = vadd.f32 %v6328_v7, %v17582_v50 }
 0x267   : > { %v6766_v62 = vrot.slane %v6764_v26, 7  ;;  %v6749_v0 = vrot.slane %v6747_v37, 7  ;;  %v6750_v51 = vshll.u32 %v13898_v8, 16  ;;  %v7026_v47 = vsel %vm15718_vm9, %v6761_v1, %v7025_v56  ;;  %14885 = vmatpush3.bf16.msra.mxu1 %v15401_v46  ;;  %v15407_v33 = vld [vmem:[%s19575_s3 + $0xa0] sm:$0xff]   ;;  %v14773_v46 = vpop.f32.mrf.mxu0 }
 0x268   : > { %v6422_v54 = vadd.f32 %v14769_v12, %v17586_v31  ;;  %7027 = vst [vmem:[#allocation2 + $0x48] sm:$0xf] %v7026_v47  ;;  %v6744_v58 = vor.u32 %v6742_v63, %v6741_v36  ;;  %v6745_v49 = vrot.slane %v6741_v36, 4  ;;  %v6556_v41 = vmax.f32 %v6524_v10, 0.0  ;;  %14886 = vmatprep.subr.bf16.mxu1 %v15404_v4  ;;  %v15410_v36 = vld [vmem:[%s19575_s3 + $0x98] sm:$0xff]  }
 0x269   : > { %v6769_v11 = vor.u32 %v6767_v34, %v6766_v62  ;;  %v6771_v18 = vrot.slane %v6766_v62, 4  ;;  %v6752_v9 = vor.u32 %v6750_v51, %v6749_v0  ;;  %v6754_v8 = vrot.slane %v6749_v0, 4 }
 0x26a   : > { %v6522_v30 = vadd.f32 %v17567_v5, %v6419_v13  ;;  %v7019_v50 = vsel %vm15718_vm9, %v6744_v58, %v7018_v39  ;;  %v6525_v12 = vadd.f32 %v17567_v5, %v6422_v54  ;;  %v13903_v28 = vpack.c.bf16 %v6556_v41, %v6556_v41  ;;  %v7032_v58 = vld [vmem:[#allocation2 + $0x54] sm:$0xf] }
 0x26b   : > { %v6770_v31 = vsel %vm15726_vm10, %v6762_v2, %v6769_v11  ;;  %v7030_v7 = vsel %vm15708_vm8, %v6771_v18, %v7029_v29  ;;  %7020 = vst [vmem:[#allocation2 + $0x3c] sm:$0xf] %v7019_v50  ;;  %v6753_v59 = vsel %vm15726_vm10, %v6745_v49, %v6752_v9  ;;  %v7023_v32 = vsel %vm15708_vm8, %v6754_v8, %v7022_v27  ;;  %v6347_v11 = vpop.f32.mrf.mxu0  ;;  %v15413_v18 = vld [vmem:[%s19575_s3 + $0x90] sm:$0xff]  }
 0x26c   : > { %7031 = vst [vmem:[#allocation2 + $0x50] sm:$0x1] %v7030_v7  ;;  %7028 = vst [vmem:[#allocation2 + $0x4c] sm:$0xf] %v6770_v31  ;;  %v6554_v56 = vmax.f32 %v6522_v30, 0.0  ;;  %v6557_v63 = vmax.f32 %v6525_v12, 0.0  ;;  %v6420_v26 = vadd.f32 %v17697_v35, %v17589_v55  ;;  %v6425_v34 = vadd.f32 %v14772_v48, %v17594_v53  ;;  %14887 = vmatpush3.bf16.msra.mxu1 %v15404_v4 }
 0x26d   : > { %7024 = vst [vmem:[#allocation2 + $0x44] sm:$0x1] %v7023_v32  ;;  %7021 = vst [vmem:[#allocation2 + $0x40] sm:$0xf] %v6753_v59  ;;  %v6423_v37 = vadd.f32 %v6344_v24, %v17598_v38  ;;  %v6790_v45 = vshrl.u32 %v13903_v28, 16  ;;  %v6793_v17 = vshll.u32 %v13903_v28, 16  ;;  %v6426_v1 = vadd.f32 %v14773_v46, %v17603_v3  ;;  %14888 = vmatprep.subr.bf16.mxu1 %v15407_v33 }
 0x26e   : > { %v13901_v52 = vpack.c.bf16 %v6554_v56, %v6554_v56  ;;  %v15400_v2 = vld [vmem:[#allocation2 + $0x24] sm:$0xff]   ;;  %v13904_v62 = vpack.c.bf16 %v6557_v63, %v6557_v63  ;;  %v6523_v0 = vadd.f32 %v17567_v5, %v6420_v26  ;;  %v6528_v55 = vadd.f32 %v17567_v5, %v6425_v34  ;;  %v15402_v38 = vld [vmem:[#allocation2 + $0x30] sm:$0xff]   ;;  %v7039_v3 = vld [vmem:[#allocation2 + $0x60] sm:$0xf] }
 0x26f   : > { %v6526_v53 = vadd.f32 %v17567_v5, %v6423_v37  ;;  %v6792_v35 = vrot.slane %v6790_v45, 7  ;;  %v6529_v51 = vadd.f32 %v17567_v5, %v6426_v1  ;;  %14807 = vmatmul.mubr.bf16.gmra.mxu1 %v15400_v2  ;;  %v7043_v31 = vld [vmem:[#allocation2 + $0x68] sm:$0x1]  ;;  %v7036_v63 = vld [vmem:[#allocation2 + $0x5c] sm:$0x1]  ;;  %v14776_v45 = vpop.f32.mrf.mxu0 }
 0x270   : > { %v6773_v48 = vshrl.u32 %v13901_v52, 16  ;;  %v6776_v4 = vshll.u32 %v13901_v52, 16  ;;  %v6798_v24 = vshrl.u32 %v13904_v62, 16  ;;  %v6801_v47 = vshll.u32 %v13904_v62, 16  ;;  %14810 = vmatprep.mubr.bf16.mxu1 %v15402_v38  ;;  %14889 = vmatpush3.bf16.msra.mxu1 %v15407_v33  ;;  %v15418_v52 = vld [vmem:[%s19575_s3 + $0x88] sm:$0xff]  }
 0x271   : > { %v6555_v39 = vmax.f32 %v6523_v0, 0.0  ;;  %v6560_v29 = vmax.f32 %v6528_v55, 0.0  ;;  %v6795_v10 = vor.u32 %v6793_v17, %v6792_v35  ;;  %v6796_v13 = vrot.slane %v6792_v35, 4  ;;  %14890 = vmatprep.subr.bf16.mxu1 %v15410_v36  ;;  %v7586_v17 = vld [vmem:[#allocation2 + $0xc] sm:$0xf] }
 0x272   : > { %v6775_v54 = vrot.slane %v6773_v48, 7  ;;  %v6558_v49 = vmax.f32 %v6526_v53, 0.0  ;;  %v6800_v27 = vrot.slane %v6798_v24, 7  ;;  %v6561_v41 = vmax.f32 %v6529_v51, 0.0  ;;  %v7053_v62 = vld [vmem:[#allocation2 + $0x78] sm:$0xf] }
 0x273   : > { %v13902_v9 = vpack.c.bf16 %v6555_v39, %v6555_v39  ;;  %v13907_v8 = vpack.c.bf16 %v6560_v29, %v6560_v29  ;;  %v7040_v30 = vsel %vm15718_vm9, %v6795_v10, %v7039_v3  ;;  %v15405_v55 = vld [vmem:[#allocation2 + $0x48] sm:$0xff]   ;;  %v15423_v51 = vld [vmem:[%s19575_s3 + $0x80] sm:$0xff]   ;;  %v7587_v39 = vld [vmem:[#allocation2 + $0x10] sm:$0xf]  ;;  %v7656_v29 = vshrl.u32 %v7586_v17, 16 }
 0x274   : > { %v6778_v50 = vor.u32 %v6776_v4, %v6775_v54  ;;  %v6779_v33 = vrot.slane %v6775_v54, 4  ;;  %v13905_v7 = vpack.c.bf16 %v6558_v49, %v6558_v49  ;;  %v15403_v12 = vld [vmem:[#allocation2 + $0x3c] sm:$0xff]   ;;  %7041 = vst [vmem:[#allocation2 + $0x60] sm:$0xf] %v7040_v30  ;;  %v6803_v46 = vor.u32 %v6801_v47, %v6800_v27  ;;  %14891 = vmatpush3.bf16.msra.mxu1 %v15410_v36  ;;  %v7046_v35 = vld [vmem:[#allocation2 + $0x6c] sm:$0xf] }
 0x275   : > { %v6805_v59 = vrot.slane %v6800_v27, 4  ;;  %v6781_v32 = vshrl.u32 %v13902_v9, 16  ;;  %v6784_v28 = vshll.u32 %v13902_v9, 16  ;;  %v6824_v26 = vshrl.u32 %v13907_v8, 16  ;;  %14892 = vmatprep.subr.bf16.mxu1 %v15413_v18  ;;  %v6360_v9 = vpop.f32.mrf.mxu0 }
 0x276   : > { %v7033_v56 = vsel %vm15718_vm9, %v6778_v50, %v7032_v58  ;;  %v6827_v34 = vshll.u32 %v13907_v8, 16  ;;  %v6807_v37 = vshrl.u32 %v13905_v7, 16  ;;  %v6804_v1 = vsel %vm15726_vm10, %v6796_v13, %v6803_v46  ;;  %v15426_v46 = vld [vmem:[%s19575_s3 + $0x138] sm:$0xff]  }
 0x277   : > { %7034 = vst [vmem:[#allocation2 + $0x54] sm:$0xf] %v7033_v56  ;;  %v7044_v2 = vsel %vm15708_vm8, %v6805_v59, %v7043_v31  ;;  %v6783_v36 = vrot.slane %v6781_v32, 7  ;;  %v6810_v0 = vshll.u32 %v13905_v7, 16  ;;  %7042 = vst [vmem:[#allocation2 + $0x64] sm:$0xf] %v6804_v1  ;;  %v13908_v48 = vpack.c.bf16 %v6561_v41, %v6561_v41  ;;  %14811 = vmatmul.mubr.bf16.gmra.mxu1 %v15403_v12 }
 0x278   : > { %7045 = vst [vmem:[#allocation2 + $0x68] sm:$0x1] %v7044_v2  ;;  %v6826_v53 = vrot.slane %v6824_v26, 7  ;;  %v17757_v38 = vrot.slane %v6807_v37, 7  ;;  %v6424_v4 = vadd.f32 %v6347_v11, %v17606_v6  ;;  %v6429_v47 = vadd.f32 %v14776_v45, %v17610_v21  ;;  %14814 = vmatprep.mubr.bf16.mxu1 %v15405_v55  ;;  %14893 = vmatpush3.bf16.msra.mxu1 %v15413_v18  ;;  %v7588_v21 = vld [vmem:[#allocation2 + $0x14] sm:$0x1]  ;;  %v17779_v45 = vpop.f32.mrf.mxu0 }
 0x279   : > { %v6786_v3 = vor.u32 %v6784_v28, %v6783_v36  ;;  %v6788_v24 = vrot.slane %v6783_v36, 4  ;;  %14894 = vmatprep.subr.bf16.mxu1 %v15418_v52  ;;  %v6832_v11 = vshrl.u32 %v13908_v48, 16  ;;  %v6835_v27 = vshll.u32 %v13908_v48, 16  ;;  %v7057_v41 = vld [vmem:[#allocation2 + $0x80] sm:$0x1] }
 0x27a   : > { %v6829_v10 = vor.u32 %v6827_v34, %v6826_v53  ;;  %v6830_v13 = vrot.slane %v6826_v53, 4  ;;  %v6812_v54 = vor.u32 %v6810_v0, %v17757_v38  ;;  %v6813_v58 = vrot.slane %v17757_v38, 4 }
 0x27b   : > { %v6787_v6 = vsel %vm15726_vm10, %v6779_v33, %v6786_v3  ;;  %v7037_v49 = vsel %vm15708_vm8, %v6788_v24, %v7036_v63  ;;  %v6527_v30 = vadd.f32 %v17567_v5, %v6424_v4  ;;  %v6532_v50 = vadd.f32 %v17567_v5, %v6429_v47  ;;  %v7050_v47 = vld [vmem:[#allocation2 + $0x74] sm:$0x1] }
 0x27c   : > { %7038 = vst [vmem:[#allocation2 + $0x5c] sm:$0x1] %v7037_v49  ;;  %7035 = vst [vmem:[#allocation2 + $0x58] sm:$0xf] %v6787_v6  ;;  %v7054_v18 = vsel %vm15718_vm9, %v6829_v10, %v7053_v62  ;;  %v7047_v8 = vsel %vm15718_vm9, %v6812_v54, %v7046_v35  ;;  %v6834_v33 = vrot.slane %v6832_v11, 7  ;;  %v7658_v31 = vrot.slane %v7656_v29, 4  ;;  %14895 = vmatpush3.bf16.msra.mxu1 %v15418_v52  ;;  %v6363_v6 = vpop.f32.mrf.mxu0 }
 0x27d   : > { %7055 = vst [vmem:[#allocation2 + $0x78] sm:$0xf] %v7054_v18  ;;  %7048 = vst [vmem:[#allocation2 + $0x6c] sm:$0xf] %v7047_v8  ;;  %v7659_v7 = vshll.u32 %v7586_v17, 16  ;;  %v7665_v12 = vshll.u32 %v7587_v39, 16  ;;  %14896 = vmatprep.subr.bf16.mxu1 %v15423_v51  ;;  %v6427_v53 = vadd.f32 %v6360_v9, %v17615_v61  ;;  %v6430_v38 = vadd.f32 %v17779_v45, %v17620_v57 }
 0x27e   : > { %v6559_v59 = vmax.f32 %v6527_v30, 0.0  ;;  %v6564_v32 = vmax.f32 %v6532_v50, 0.0  ;;  %v7669_v28 = vshrl.u32 %v7587_v39, 16  ;;  %v7675_v56 = vshll.u32 %v7588_v21, 16  ;;  %v7589_v52 = vld [vmem:[#allocation2 + $0x18] sm:$0xf] }
 0x27f   : > { %v6837_v63 = vor.u32 %v6835_v27, %v6834_v33  ;;  %v6839_v26 = vrot.slane %v6834_v33, 4  ;;  %v7661_v34 = vrot.slane %v7659_v7, 5  ;;  %v7667_v37 = vrot.slane %v7665_v12, 5  ;;  %v7590_v35 = vld [vmem:[#allocation2 + $0x1c] sm:$0xf]  ;;  %v15408_v11 = vld [vmem:[#allocation2 + $0x60] sm:$0xff]  }
 0x280   : > { %v13906_v1 = vpack.c.bf16 %v6559_v59, %v6559_v59  ;;  %v13911_v2 = vpack.c.bf16 %v6564_v32, %v6564_v32  ;;  %v7671_v17 = vrot.slane %v7669_v28, 4  ;;  %v7677_v36 = vrot.slane %v7675_v56, 5  ;;  %14897 = vmatpush3.bf16.msra.mxu1 %v15423_v51  ;;  %v7067_v39 = vld [vmem:[#allocation2 + $0x90] sm:$0xf]  ;;  %v7591_v32 = vld [vmem:[#allocation2 + $0x20] sm:$0x1] }
 0x281   : > { %v6838_v62 = vsel %vm15726_vm10, %v6830_v13, %v6837_v63  ;;  %v7058_v0 = vsel %vm15708_vm8, %v6839_v26, %v7057_v41  ;;  %v7662_v55 = vor.u32 %v7661_v34, %v7658_v31  ;;  %14978 = vmatprep.subr.bf16.mxu1 %v15426_v46  ;;  %v6530_v13 = vadd.f32 %v17567_v5, %v6427_v53  ;;  %v15416_v12 = vld [vmem:[%s19575_s3 + $0xf0] sm:$0xff]   ;;  %v14780_v63 = vpop.f32.mrf.mxu0  ;;  %v7592_v26 = vld [vmem:[#allocation2 + $0x24] sm:$0xf]  ;;  %v7593_v57 = vld [vmem:[#allocation2 + $0x28] sm:$0xf] }
 0x282   : > { %7059 = vst [vmem:[#allocation2 + $0x80] sm:$0x1] %v7058_v0  ;;  %7056 = vst [vmem:[#allocation2 + $0x7c] sm:$0xf] %v6838_v62  ;;  %v6815_v48 = vshrl.u32 %v13906_v1, 16  ;;  %v6818_v4 = vshll.u32 %v13906_v1, 16  ;;  %v7672_v10 = vor.u32 %v7671_v17, %v7667_v37 }
 0x283   : > { %v6858_v3 = vshrl.u32 %v13911_v2, 16  ;;  %v6861_v24 = vshll.u32 %v13911_v2, 16  ;;  %v7663_v29 = vrot.slane %v7662_v55, 4  ;;  %v7680_v54 = vshrl.u32 %v7589_v52, 16  ;;  %v15406_v49 = vld [vmem:[#allocation2 + $0x54] sm:$0xff]  }
 0x284   : > { %v6817_v61 = vrot.slane %v6815_v48, 7  ;;  %v7683_v51 = vshll.u32 %v7589_v52, 16  ;;  %v7689_v21 = vshll.u32 %v7590_v35, 16  ;;  %v7673_v8 = vrot.slane %v7672_v10, 4  ;;  %14815 = vmatmul.mubr.bf16.gmra.mxu1 %v15406_v49  ;;  %v7594_v49 = vld [vmem:[#allocation2 + $0x2c] sm:$0x1] }
 0x285   : > { %v17787_v27 = vrot.slane %v6858_v3, 7  ;;  %v7668_v18 = vsel %vm15702_vm6, %v7663_v29, %v7667_v37  ;;  %v6562_v41 = vmax.f32 %v6530_v13, 0.0  ;;  %v7682_v30 = vrot.slane %v7680_v54, 4  ;;  %14818 = vmatprep.mubr.bf16.mxu1 %v15408_v11 }
 0x286   : > { %v6820_v50 = vor.u32 %v6818_v4, %v6817_v61  ;;  %v6822_v33 = vrot.slane %v6817_v61, 4  ;;  %v7678_v46 = vsel %vm15702_vm6, %v7673_v8, %v7677_v36  ;;  %v7685_v28 = vrot.slane %v7683_v51, 5  ;;  %v15421_v8 = vld [vmem:[%s19575_s3 + $0xe0] sm:$0xff]  }
 0x287   : > { %v6863_v31 = vor.u32 %v6861_v24, %v17787_v27  ;;  %v6864_v7 = vrot.slane %v17787_v27, 4  ;;  %v13909_v59 = vpack.c.bf16 %v6562_v41, %v6562_v41  ;;  %v7691_v56 = vrot.slane %v7689_v21, 5  ;;  %v7060_v24 = vld [vmem:[#allocation2 + $0x84] sm:$0xf] }
 0x288   : > { %v6821_v34 = vsel %vm15726_vm10, %v6813_v58, %v6820_v50  ;;  %v7051_v37 = vsel %vm15708_vm8, %v6822_v33, %v7050_v47  ;;  %v13499_v2 = vcombine.low %v7668_v18, %v7678_v46  ;;  %v7686_v52 = vor.u32 %v7685_v28, %v7682_v30  ;;  %v6376_v18 = vpop.f32.mrf.mxu0 }
 0x289   : > { %v7068_v1 = vsel %vm15718_vm9, %v6863_v31, %v7067_v39  ;;  %7052 = vst [vmem:[#allocation2 + $0x74] sm:$0x1] %v7051_v37  ;;  %7049 = vst [vmem:[#allocation2 + $0x70] sm:$0xf] %v6821_v34  ;;  %v6841_v17 = vshrl.u32 %v13909_v59, 16  ;;  %v6844_v36 = vshll.u32 %v13909_v59, 16  ;;  %v6428_v58 = vadd.f32 %v6363_v6, %v17623_v19 }
 0x28a   : > { %7069 = vst [vmem:[#allocation2 + $0x90] sm:$0xf] %v7068_v1  ;;  %v7693_v62 = vshrl.u32 %v7590_v35, 16  ;;  %14851 = vmatmul.mubr.bf16.vlgmr.msra.gmra.mxu0 %v13499_v2  ;;  %v7699_v0 = vshll.u32 %v7591_v32, 16  ;;  %v6433_v55 = vadd.f32 %v14780_v63, %v17627_v20  ;;  %v7687_v48 = vrot.slane %v7686_v52, 4  ;;  %v15420_v19 = vld [vmem:[%s19575_s3 + $0xe8] sm:$0xff]  }
 0x28b   : > { %v17810_v53 = vrot.slane %v6841_v17, 7  ;;  %v7704_v3 = vshrl.u32 %v7592_v26, 16  ;;  %14931 = vmatpush3.bf16.msra.mxu0 %v17646_v23  ;;  %v6533_v35 = vadd.f32 %v17567_v5, %v6430_v38  ;;  %v6531_v39 = vadd.f32 %v17567_v5, %v6428_v58  ;;  %v17832_v37 = vld [vmem:[#allocation2 + $0x30] sm:$0xf]  ;;  %v7071_v1 = vld [vmem:[#allocation2 + $0x98] sm:$0x1] }
 0x28c   : > { %v7695_v4 = vrot.slane %v7693_v62, 4  ;;  %v7701_v47 = vrot.slane %v7699_v0, 5  ;;  %v6536_v29 = vadd.f32 %v17567_v5, %v6433_v55  ;;  %14932 = vmatprep.subr.bf16.mxu0 %v15416_v12  ;;  %v7692_v23 = vsel %vm15702_vm6, %v7687_v48, %v7691_v56  ;;  %v7064_v17 = vld [vmem:[#allocation2 + $0x8c] sm:$0x1]  ;;  %v14781_v0 = vpop.f32.mrf.mxu0  ;;  %v15424_v38 = vld [vmem:[%s19575_s3 + $0xd8] sm:$0xff]  }
 0x28d   : > { %v6846_v20 = vor.u32 %v6844_v36, %v17810_v53  ;;  %v6847_v45 = vrot.slane %v17810_v53, 4  ;;  %v6565_v13 = vmax.f32 %v6533_v35, 0.0  ;;  %v6563_v54 = vmax.f32 %v6531_v39, 0.0  ;;  %v7081_v48 = vld [vmem:[#allocation2 + $0xa8] sm:$0xf] }
 0x28e   : > { %v7696_v10 = vor.u32 %v7695_v4, %v7691_v56  ;;  %v6568_v6 = vmax.f32 %v6536_v29, 0.0  ;;  %v7706_v11 = vrot.slane %v7704_v3, 4  ;;  %v7707_v51 = vshll.u32 %v7592_v26, 16  ;;  %v15411_v56 = vld [vmem:[#allocation2 + $0x78] sm:$0xff]   ;;  %v17867_v53 = vld [vmem:[%s19574_s2] ss:$0 sm:$0xff] }
 0x28f   : > { %v7061_v5 = vsel %vm15718_vm9, %v6846_v20, %v7060_v24  ;;  %v7713_v21 = vshll.u32 %v7593_v57, 16  ;;  %14933 = vmatpush3.bf16.msra.mxu0 %v15416_v12  ;;  %v13912_v41 = vpack.c.bf16 %v6565_v13, %v6565_v13  ;;  %v13910_v30 = vpack.c.bf16 %v6563_v54, %v6563_v54 }
 0x290   : > { %v7697_v61 = vrot.slane %v7696_v10, 4  ;;  %7062 = vst [vmem:[#allocation2 + $0x84] sm:$0xf] %v7061_v5  ;;  %v13915_v50 = vpack.c.bf16 %v6568_v6, %v6568_v6  ;;  %v7717_v33 = vshrl.u32 %v7593_v57, 16  ;;  %v15409_v31 = vld [vmem:[#allocation2 + $0x6c] sm:$0xff]   ;;  %14934 = vmatprep.subr.bf16.mxu0 %v15420_v19  ;;  %v7709_v59 = vrot.slane %v7707_v51, 5 }
 0x291   : > { %v17830_v32 = vrot.slane %v7713_v21, 5  ;;  %v7723_v28 = vshll.u32 %v7594_v49, 16  ;;  %v6866_v63 = vshrl.u32 %v13912_v41, 16  ;;  %v6869_v26 = vshll.u32 %v13912_v41, 16  ;;  %14819 = vmatmul.mubr.bf16.gmra.mxu1 %v15409_v31  ;;  %v7597_v49 = vld [vmem:[#allocation2 + $0x38] sm:$0x1] }
 0x292   : > { %v7702_v46 = vsel %vm15702_vm6, %v7697_v61, %v7701_v47  ;;  %v6849_v34 = vshrl.u32 %v13910_v30, 16  ;;  %v6852_v2 = vshll.u32 %v13910_v30, 16  ;;  %v6892_v36 = vshrl.u32 %v13915_v50, 16  ;;  %14822 = vmatprep.mubr.bf16.mxu1 %v15411_v56  ;;  %v15425_v21 = vld [vmem:[%s19575_s3 + $0xd0] sm:$0xff]  }
 0x293   : > { %v13500_v12 = vcombine.low %v7692_v23, %v7702_v46  ;;  %v6895_v52 = vshll.u32 %v13915_v50, 16  ;;  %v7710_v62 = vor.u32 %v7709_v59, %v7706_v11  ;;  %14935 = vmatpush3.bf16.msra.mxu0 %v15420_v19  ;;  %v6868_v58 = vrot.slane %v6866_v63, 7  ;;  %v7596_v23 = vld [vmem:[#allocation2 + $0x34] sm:$0xf]  ;;  %v6379_v11 = vpop.f32.mrf.mxu0 }
 0x294   : > { %v6851_v55 = vrot.slane %v6849_v34, 7  ;;  %v7719_v4 = vrot.slane %v7717_v33, 4  ;;  %v7725_v3 = vrot.slane %v7723_v28, 5  ;;  %14936 = vmatprep.subr.bf16.mxu0 %v15421_v8  ;;  %v17837_v24 = vrot.slane %v6892_v36, 7  ;;  %v15427_v34 = vld [vmem:[%s19575_s3 + $0xc8] sm:$0xff]  }
 0x295   : > { %14854 = vmatprep.mubr.bf16.mxu0 %v13500_v12  ;;  %v7711_v47 = vrot.slane %v7710_v62, 4  ;;  %v6431_v35 = vadd.f32 %v6376_v18, %v17632_v60  ;;  %v7728_v39 = vshrl.u32 %v17832_v37, 16  ;;  %v6871_v29 = vor.u32 %v6869_v26, %v6868_v58  ;;  %v14784_v28 = vpop.f32.mrf.mxu0 }
 0x296   : > { %v6873_v57 = vrot.slane %v6868_v58, 4  ;;  %v6854_v19 = vor.u32 %v6852_v2, %v6851_v55  ;;  %v6856_v20 = vrot.slane %v6851_v55, 4  ;;  %v6897_v10 = vor.u32 %v6895_v52, %v17837_v24 }
 0x297   : > { %v6898_v13 = vrot.slane %v17837_v24, 4  ;;  %v7716_v54 = vsel %vm15702_vm6, %v7711_v47, %v17830_v32  ;;  %v7720_v6 = vor.u32 %v7719_v4, %v17830_v32  ;;  %14937 = vmatpush3.bf16.msra.mxu0 %v15421_v8  ;;  %v6872_v60 = vsel %vm15726_vm10, %v6864_v7, %v6871_v29  ;;  %v17870_v8 = vld [vmem:[#allocation2 + $0x3c] sm:$0xf] }
 0x298   : > { %v7072_v5 = vsel %vm15708_vm8, %v6873_v57, %v7071_v1  ;;  %v6855_v61 = vsel %vm15726_vm10, %v6847_v45, %v6854_v19  ;;  %v7065_v51 = vsel %vm15708_vm8, %v6856_v20, %v7064_v17  ;;  %14938 = vmatprep.subr.bf16.mxu0 %v15424_v38  ;;  %7070 = vst [vmem:[#allocation2 + $0x94] sm:$0xf] %v6872_v60  ;;  %v7730_v18 = vrot.slane %v7728_v39, 4 }
 0x299   : > { %7073 = vst [vmem:[#allocation2 + $0x98] sm:$0x1] %v7072_v5  ;;  %7066 = vst [vmem:[#allocation2 + $0x8c] sm:$0x1] %v7065_v51  ;;  %v7082_v27 = vsel %vm15718_vm9, %v6897_v10, %v7081_v48  ;;  %v7721_v7 = vrot.slane %v7720_v6, 4  ;;  %v6534_v45 = vadd.f32 %v17867_v53, %v6431_v35  ;;  %v7731_v41 = vshll.u32 %v17832_v37, 16 }
 0x29a   : > { %7063 = vst [vmem:[#allocation2 + $0x88] sm:$0xf] %v6855_v61  ;;  %7083 = vst [vmem:[#allocation2 + $0xa8] sm:$0xf] %v7082_v27  ;;  %v7737_v30 = vshll.u32 %v7596_v23, 16  ;;  %v7741_v50 = vshrl.u32 %v7596_v23, 16  ;;  %v6434_v59 = vadd.f32 %v14781_v0, %v17636_v15  ;;  %v6432_v32 = vadd.f32 %v6379_v11, %v17638_v42 }
 0x29b   : > { %v7747_v33 = vshll.u32 %v7597_v49, 16  ;;  %v7726_v31 = vsel %vm15702_vm6, %v7721_v7, %v7725_v3  ;;  %v6566_v46 = vmax.f32 %v6534_v45, 0.0  ;;  %14939 = vmatpush3.bf16.msra.mxu0 %v15424_v38  ;;  %v7733_v12 = vrot.slane %v7731_v41, 5  ;;  %v17882_v15 = vld [vmem:[#allocation2 + $0x40] sm:$0xf] }
 0x29c   : > { %v13501_v56 = vcombine.low %v7716_v54, %v7726_v31  ;;  %v7739_v63 = vrot.slane %v7737_v30, 5  ;;  %v7743_v26 = vrot.slane %v7741_v50, 4  ;;  %14940 = vmatprep.subr.bf16.mxu0 %v15425_v21  ;;  %v6537_v2 = vadd.f32 %v17867_v53, %v6434_v59  ;;  %v15429_v0 = vld [vmem:[%s19575_s3 + $0xc0] sm:$0xff]   ;;  %v7074_v23 = vld [vmem:[#allocation2 + $0x9c] sm:$0xf] }
 0x29d   : > { %v13913_v37 = vpack.c.bf16 %v6566_v46, %v6566_v46  ;;  %v7749_v1 = vrot.slane %v7747_v33, 5  ;;  %v6535_v17 = vadd.f32 %v17867_v53, %v6432_v32  ;;  %v7734_v42 = vor.u32 %v7733_v12, %v7730_v18  ;;  %v7600_v45 = vld [vmem:[#allocation2 + $0x44] sm:$0x1]  ;;  %v6392_v18 = vpop.f32.mrf.mxu0  ;;  %v7085_v50 = vld [vmem:[#allocation2 + $0xb0] sm:$0x1] }
 0x29e   : > { %14855 = vmatmul.mubr.bf16.gmra.mxu0 %v13501_v56  ;;  %v7744_v36 = vor.u32 %v7743_v26, %v7739_v63  ;;  %v6437_v52 = vadd.f32 %v14784_v28, %v17641_v40  ;;  %v7752_v62 = vshrl.u32 %v17870_v8, 16  ;;  %v6569_v55 = vmax.f32 %v6537_v2, 0.0  ;;  %v7078_v59 = vld [vmem:[#allocation2 + $0xa4] sm:$0x1]  ;;  %v7095_v26 = vld [vmem:[#allocation2 + $0xc0] sm:$0xf] }
 0x29f   : > { %v6875_v38 = vshrl.u32 %v13913_v37, 16  ;;  %v6878_v58 = vshll.u32 %v13913_v37, 16  ;;  %v6567_v48 = vmax.f32 %v6535_v17, 0.0  ;;  %14941 = vmatpush3.bf16.msra.mxu0 %v15425_v21  ;;  %v7735_v4 = vrot.slane %v7734_v42, 4  ;;  %v15414_v20 = vld [vmem:[#allocation2 + $0x90] sm:$0xff]  }
 0x2a0   : > { %v7745_v3 = vrot.slane %v7744_v36, 4  ;;  %v6540_v47 = vadd.f32 %v17867_v53, %v6437_v52  ;;  %v7754_v35 = vrot.slane %v7752_v62, 4  ;;  %14942 = vmatprep.subr.bf16.mxu0 %v15427_v34  ;;  %v13916_v40 = vpack.c.bf16 %v6569_v55, %v6569_v55  ;;  %v7602_v52 = vld [vmem:[#allocation2 + $0x4c] sm:$0xf]  ;;  %v14785_v62 = vpop.f32.mrf.mxu0 }
 0x2a1   : > { %v15412_v39 = vld [vmem:[#allocation2 + $0x84] sm:$0xff]   ;;  %v6877_v29 = vrot.slane %v6875_v38, 7  ;;  %v13914_v57 = vpack.c.bf16 %v6567_v48, %v6567_v48  ;;  %v7755_v19 = vshll.u32 %v17870_v8, 16  ;;  %v7740_v10 = vsel %vm15702_vm6, %v7735_v4, %v7739_v63  ;;  %v17899_v8 = vld [vmem:[%s19575_s3 + $0x178] sm:$0xff]  }
 0x2a2   : > { %v7750_v54 = vsel %vm15702_vm6, %v7745_v3, %v7749_v1  ;;  %v6572_v6 = vmax.f32 %v6540_v47, 0.0  ;;  %v7761_v49 = vshll.u32 %v17882_v15, 16  ;;  %14823 = vmatmul.mubr.bf16.gmra.mxu1 %v15412_v39  ;;  %v6900_v61 = vshrl.u32 %v13916_v40, 16  ;;  %v7601_v1 = vld [vmem:[#allocation2 + $0x48] sm:$0xf] }
 0x2a3   : > { %v6880_v11 = vor.u32 %v6878_v58, %v6877_v29  ;;  %v6881_v60 = vrot.slane %v6877_v29, 4  ;;  %v13502_v5 = vcombine.low %v7740_v10, %v7750_v54  ;;  %14826 = vmatprep.mubr.bf16.mxu1 %v15414_v20  ;;  %14943 = vmatpush3.bf16.msra.mxu0 %v15427_v34  ;;  %v6903_v51 = vshll.u32 %v13916_v40, 16  ;;  %v6395_v20 = vpop.f32.mrf.mxu0 }
 0x2a4   : > { %v6883_v21 = vshrl.u32 %v13914_v57, 16  ;;  %v6886_v27 = vshll.u32 %v13914_v57, 16  ;;  %v13919_v7 = vpack.c.bf16 %v6572_v6, %v6572_v6  ;;  %14944 = vmatprep.subr.bf16.mxu0 %v15429_v0  ;;  %v6902_v30 = vrot.slane %v6900_v61, 7 }
 0x2a5   : > { %v7075_v41 = vsel %vm15718_vm9, %v6880_v11, %v7074_v23  ;;  %14858 = vmatprep.mubr.bf16.mxu0 %v13502_v5  ;;  %v7757_v33 = vrot.slane %v7755_v19, 5  ;;  %v7763_v31 = vrot.slane %v7761_v49, 5  ;;  %v7765_v56 = vshrl.u32 %v17882_v15, 16 }
 0x2a6   : > { %7076 = vst [vmem:[#allocation2 + $0x9c] sm:$0xf] %v7075_v41  ;;  %v6885_v46 = vrot.slane %v6883_v21, 7  ;;  %v6926_v32 = vshrl.u32 %v13919_v7, 16  ;;  %v6929_v28 = vshll.u32 %v13919_v7, 16  ;;  %v6905_v12 = vor.u32 %v6903_v51, %v6902_v30 }
 0x2a7   : > { %v6907_v63 = vrot.slane %v6902_v30, 4  ;;  %v7758_v34 = vor.u32 %v7757_v33, %v7754_v35  ;;  %v7771_v37 = vshll.u32 %v7600_v45, 16  ;;  %14945 = vmatpush3.bf16.msra.mxu0 %v15429_v0  ;;  %v7767_v36 = vrot.slane %v7765_v56, 4  ;;  %v7603_v0 = vld [vmem:[#allocation2 + $0x50] sm:$0x1] }
 0x2a8   : > { %v6888_v2 = vor.u32 %v6886_v27, %v6885_v46  ;;  %v6890_v17 = vrot.slane %v6885_v46, 4  ;;  %v17904_v42 = vrot.slane %v6926_v32, 7  ;;  %15026 = vmatprep.subr.bf16.mxu0 %v17899_v8  ;;  %v6906_v15 = vsel %vm15726_vm10, %v6898_v13, %v6905_v12  ;;  %v7605_v7 = vld [vmem:[#allocation2 + $0x58] sm:$0xf] }
 0x2a9   : > { %v7086_v38 = vsel %vm15708_vm8, %v6907_v63, %v7085_v50  ;;  %v7759_v58 = vrot.slane %v7758_v34, 4  ;;  %v7773_v55 = vrot.slane %v7771_v37, 5  ;;  %7084 = vst [vmem:[#allocation2 + $0xac] sm:$0xf] %v6906_v15  ;;  %v7768_v47 = vor.u32 %v7767_v36, %v7763_v31  ;;  %v7088_v36 = vld [vmem:[#allocation2 + $0xb4] sm:$0xf] }
 0x2aa   : > { %7087 = vst [vmem:[#allocation2 + $0xb0] sm:$0x1] %v7086_v38  ;;  %v6889_v48 = vsel %vm15726_vm10, %v6881_v60, %v6888_v2  ;;  %v7079_v4 = vsel %vm15708_vm8, %v6890_v17, %v7078_v59  ;;  %v6931_v3 = vor.u32 %v6929_v28, %v17904_v42  ;;  %v6932_v24 = vrot.slane %v17904_v42, 4  ;;  %v7606_v15 = vld [vmem:[#allocation2 + $0x5c] sm:$0x1] }
 0x2ab   : > { %7080 = vst [vmem:[#allocation2 + $0xa4] sm:$0x1] %v7079_v4  ;;  %7077 = vst [vmem:[#allocation2 + $0xa0] sm:$0xf] %v6889_v48  ;;  %v7764_v13 = vsel %vm15702_vm6, %v7759_v58, %v7763_v31  ;;  %v6435_v35 = vadd.f32 %v6392_v18, %v17649_v16  ;;  %v7776_v39 = vshrl.u32 %v7601_v1, 16  ;;  %v7779_v40 = vshll.u32 %v7601_v1, 16 }
 0x2ac   : > { %v7096_v29 = vsel %vm15718_vm9, %v6931_v3, %v7095_v26  ;;  %v7785_v57 = vshll.u32 %v7602_v52, 16  ;;  %v7789_v19 = vshrl.u32 %v7602_v52, 16  ;;  %v7769_v23 = vrot.slane %v7768_v47, 4  ;;  %v7604_v16 = vld [vmem:[#allocation2 + $0x54] sm:$0xf] }
 0x2ad   : > { %7097 = vst [vmem:[#allocation2 + $0xc0] sm:$0xf] %v7096_v29  ;;  %v6538_v10 = vadd.f32 %v17867_v53, %v6435_v35  ;;  %v7778_v54 = vrot.slane %v7776_v39, 4  ;;  %v7795_v6 = vshll.u32 %v7603_v0, 16  ;;  %v7781_v49 = vrot.slane %v7779_v40, 5 }
 0x2ae   : > { %v7787_v11 = vrot.slane %v7785_v57, 5  ;;  %v7791_v60 = vrot.slane %v7789_v19, 4  ;;  %v6438_v5 = vadd.f32 %v14785_v62, %v17652_v25  ;;  %v7774_v61 = vsel %vm15702_vm6, %v7769_v23, %v7773_v55  ;;  %v7607_v4 = vld [vmem:[#allocation2 + $0x60] sm:$0xf]  ;;  %v7099_v47 = vld [vmem:[#allocation2 + $0xc8] sm:$0x1] }
 0x2af   : > { %v6570_v51 = vmax.f32 %v6538_v10, 0.0  ;;  %v7797_v21 = vrot.slane %v7795_v6, 5  ;;  %v6436_v27 = vadd.f32 %v6395_v20, %v17654_v14  ;;  %v13503_v45 = vcombine.low %v7764_v13, %v7774_v61  ;;  %v7092_v40 = vld [vmem:[#allocation2 + $0xbc] sm:$0x1]  ;;  %v7608_v23 = vld [vmem:[#allocation2 + $0x64] sm:$0xf] }
 0x2b0   : > { %v7782_v18 = vor.u32 %v7781_v49, %v7778_v54  ;;  %v7792_v41 = vor.u32 %v7791_v60, %v7787_v11  ;;  %v6541_v30 = vadd.f32 %v17867_v53, %v6438_v5  ;;  %v7800_v31 = vshrl.u32 %v7604_v16, 16  ;;  %v15419_v2 = vld [vmem:[#allocation2 + $0xa8] sm:$0xff]  }
 0x2b1   : > { %v13917_v50 = vpack.c.bf16 %v6570_v51, %v6570_v51  ;;  %v6539_v33 = vadd.f32 %v17867_v53, %v6436_v27  ;;  %v7803_v46 = vshll.u32 %v7604_v16, 16  ;;  %14859 = vmatmul.mubr.bf16.gmra.mxu0 %v13503_v45  ;;  %v7809_v28 = vshll.u32 %v7605_v7, 16  ;;  %v7609_v6 = vld [vmem:[#allocation2 + $0x68] sm:$0x1]  ;;  %v7610_v45 = vld [vmem:[#allocation2 + $0x6c] sm:$0xf] }
 0x2b2   : > { %v7783_v25 = vrot.slane %v7782_v18, 4  ;;  %v7793_v59 = vrot.slane %v7792_v41, 4  ;;  %v6573_v32 = vmax.f32 %v6541_v30, 0.0  ;;  %v7802_v14 = vrot.slane %v7800_v31, 4  ;;  %v15417_v26 = vld [vmem:[#allocation2 + $0x9c] sm:$0xff]  }
 0x2b3   : > { %v6909_v56 = vshrl.u32 %v13917_v50, 16  ;;  %v6912_v12 = vshll.u32 %v13917_v50, 16  ;;  %v6571_v63 = vmax.f32 %v6539_v33, 0.0  ;;  %v7805_v53 = vrot.slane %v7803_v46, 5  ;;  %14827 = vmatmul.mubr.bf16.gmra.mxu1 %v15417_v26  ;;  %v7614_v26 = vld [vmem:[#allocation2 + $0x7c] sm:$0xf] }
 0x2b4   : > { %v7788_v34 = vsel %vm15702_vm6, %v7783_v25, %v7787_v11  ;;  %v7798_v37 = vsel %vm15702_vm6, %v7793_v59, %v7797_v21  ;;  %v13920_v1 = vpack.c.bf16 %v6573_v32, %v6573_v32  ;;  %v7811_v38 = vrot.slane %v7809_v28, 5  ;;  %14830 = vmatprep.mubr.bf16.mxu1 %v15419_v2  ;;  %v7611_v25 = vld [vmem:[#allocation2 + $0x70] sm:$0xf]  ;;  %v7612_v32 = vld [vmem:[#allocation2 + $0x74] sm:$0x1] }
 0x2b5   : > { %v6911_v17 = vrot.slane %v6909_v56, 7  ;;  %v13504_v52 = vcombine.low %v7788_v34, %v7798_v37  ;;  %v13918_v62 = vpack.c.bf16 %v6571_v63, %v6571_v63  ;;  %v7806_v0 = vor.u32 %v7805_v53, %v7802_v14  ;;  %v7613_v56 = vld [vmem:[#allocation2 + $0x78] sm:$0xf]  ;;  %v7615_v53 = vld [vmem:[#allocation2 + $0x80] sm:$0x1] }
 0x2b6   : > { %v6934_v58 = vshrl.u32 %v13920_v1, 16  ;;  %v6937_v55 = vshll.u32 %v13920_v1, 16  ;;  %v7813_v48 = vshrl.u32 %v7605_v7, 16  ;;  %v7819_v20 = vshll.u32 %v7606_v15, 16 }
 0x2b7   : > { %v6914_v3 = vor.u32 %v6912_v12, %v6911_v17  ;;  %v6915_v13 = vrot.slane %v6911_v17, 4  ;;  %14862 = vmatprep.mubr.bf16.mxu0 %v13504_v52  ;;  %v6917_v35 = vshrl.u32 %v13918_v62, 16  ;;  %v6920_v39 = vshll.u32 %v13918_v62, 16 }
 0x2b8   : > { %v6936_v29 = vrot.slane %v6934_v58, 7  ;;  %v7807_v57 = vrot.slane %v7806_v0, 4  ;;  %v7815_v19 = vrot.slane %v7813_v48, 4  ;;  %v7824_v49 = vshrl.u32 %v7607_v4, 16 }
 0x2b9   : > { %v7089_v10 = vsel %vm15718_vm9, %v6914_v3, %v7088_v36  ;;  %v6919_v54 = vrot.slane %v6917_v35, 7  ;;  %v7827_v11 = vshll.u32 %v7607_v4, 16  ;;  %v7821_v27 = vrot.slane %v7819_v20, 5 }
 0x2ba   : > { %7090 = vst [vmem:[#allocation2 + $0xb4] sm:$0xf] %v7089_v10  ;;  %v6939_v60 = vor.u32 %v6937_v55, %v6936_v29  ;;  %v6941_v5 = vrot.slane %v6936_v29, 4  ;;  %v7812_v16 = vsel %vm15702_vm6, %v7807_v57, %v7811_v38  ;;  %v7816_v61 = vor.u32 %v7815_v19, %v7811_v38  ;;  %v7616_v55 = vld [vmem:[#allocation2 + $0x84] sm:$0xf] }
 0x2bb   : > { %v6922_v51 = vor.u32 %v6920_v39, %v6919_v54  ;;  %v6924_v21 = vrot.slane %v6919_v54, 4  ;;  %v7826_v7 = vrot.slane %v7824_v49, 4  ;;  %v7829_v30 = vrot.slane %v7827_v11, 5  ;;  %v7618_v11 = vld [vmem:[#allocation2 + $0x8c] sm:$0x1] }
 0x2bc   : > { %v6940_v44 = vsel %vm15726_vm10, %v6932_v24, %v6939_v60  ;;  %v7100_v18 = vsel %vm15708_vm8, %v6941_v5, %v7099_v47  ;;  %v7817_v41 = vrot.slane %v7816_v61, 4  ;;  %v7833_v31 = vshll.u32 %v7608_v23, 16 }
 0x2bd   : > { %7098 = vst [vmem:[#allocation2 + $0xc4] sm:$0xf] %v6940_v44  ;;  %7101 = vst [vmem:[#allocation2 + $0xc8] sm:$0x1] %v7100_v18  ;;  %v6923_v50 = vsel %vm15726_vm10, %v6915_v13, %v6922_v51  ;;  %v7093_v33 = vsel %vm15708_vm8, %v6924_v21, %v7092_v40  ;;  %v7837_v46 = vshrl.u32 %v7608_v23, 16  ;;  %v7830_v24 = vor.u32 %v7829_v30, %v7826_v7 }
 0x2be   : > { %7094 = vst [vmem:[#allocation2 + $0xbc] sm:$0x1] %v7093_v33  ;;  %7091 = vst [vmem:[#allocation2 + $0xb8] sm:$0xf] %v6923_v50  ;;  %v7822_v42 = vsel %vm15702_vm6, %v7817_v41, %v7821_v27  ;;  %v7843_v59 = vshll.u32 %v7609_v6, 16  ;;  %v7848_v28 = vshrl.u32 %v7610_v45, 16 }
 0x2bf   : > { %v13505_v12 = vcombine.low %v7812_v16, %v7822_v42  ;;  %v7835_v63 = vrot.slane %v7833_v31, 5  ;;  %v7839_v22 = vrot.slane %v7837_v46, 4  ;;  %v7851_v14 = vshll.u32 %v7610_v45, 16  ;;  %v7617_v13 = vld [vmem:[#allocation2 + $0x88] sm:$0xf] }
 0x2c0   : > { %v7831_v43 = vrot.slane %v7830_v24, 4  ;;  %v7845_v34 = vrot.slane %v7843_v59, 5  ;;  %v7850_v37 = vrot.slane %v7848_v28, 4  ;;  %v7857_v1 = vshll.u32 %v7611_v25, 16  ;;  %v7619_v51 = vld [vmem:[#allocation2 + $0x90] sm:$0xf] }
 0x2c1   : > { %14863 = vmatmul.mubr.bf16.gmra.mxu0 %v13505_v12  ;;  %v7840_v2 = vor.u32 %v7839_v22, %v7835_v63  ;;  %v7853_v17 = vrot.slane %v7851_v14, 5  ;;  %v7861_v36 = vshrl.u32 %v7611_v25, 16  ;;  %v7867_v52 = vshll.u32 %v7612_v32, 16  ;;  %v7620_v44 = vld [vmem:[#allocation2 + $0x94] sm:$0xf] }
 0x2c2   : > { %v7836_v62 = vsel %vm15702_vm6, %v7831_v43, %v7835_v63  ;;  %v7859_v15 = vrot.slane %v7857_v1, 5  ;;  %v7872_v38 = vshrl.u32 %v7613_v56, 16  ;;  %v7875_v58 = vshll.u32 %v7613_v56, 16  ;;  %v7621_v32 = vld [vmem:[#allocation2 + $0x98] sm:$0x1] }
 0x2c3   : > { %v7841_v0 = vrot.slane %v7840_v2, 4  ;;  %v7854_v48 = vor.u32 %v7853_v17, %v7850_v37  ;;  %v7863_v4 = vrot.slane %v7861_v36, 4  ;;  %v7869_v3 = vrot.slane %v7867_v52, 5  ;;  %v7622_v14 = vld [vmem:[#allocation2 + $0x9c] sm:$0xf] }
 0x2c4   : > { %v7874_v47 = vrot.slane %v7872_v38, 4  ;;  %v7877_v35 = vrot.slane %v7875_v58, 5  ;;  %v7881_v39 = vshll.u32 %v7614_v26, 16  ;;  %v7885_v29 = vshrl.u32 %v7614_v26, 16  ;;  %v7623_v1 = vld [vmem:[#allocation2 + $0xa0] sm:$0xf] }
 0x2c5   : > { %v7846_v40 = vsel %vm15702_vm6, %v7841_v0, %v7845_v34  ;;  %v7855_v57 = vrot.slane %v7854_v48, 4  ;;  %v7864_v19 = vor.u32 %v7863_v4, %v7859_v15  ;;  %v7891_v20 = vshll.u32 %v7615_v53, 16  ;;  %v15422_v23 = vld [vmem:[#allocation2 + $0xb4] sm:$0xff]   ;;  %v7624_v48 = vld [vmem:[#allocation2 + $0xa4] sm:$0x1] }
 0x2c6   : > { %v13506_v10 = vcombine.low %v7836_v62, %v7846_v40  ;;  %v7878_v54 = vor.u32 %v7877_v35, %v7874_v47  ;;  %v7883_v6 = vrot.slane %v7881_v39, 5  ;;  %v7887_v49 = vrot.slane %v7885_v29, 4  ;;  %14831 = vmatmul.mubr.bf16.gmra.mxu1 %v15422_v23  ;;  %v7626_v29 = vld [vmem:[#allocation2 + $0xac] sm:$0xf]  ;;  %v8401_v23 = vld [vmem:[#allocation2] sm:$0xe] }
 0x2c7   : > { %v7860_v60 = vsel %vm15702_vm6, %v7855_v57, %v7859_v15  ;;  %v7865_v5 = vrot.slane %v7864_v19, 4  ;;  %v7893_v16 = vrot.slane %v7891_v20, 5  ;;  %v7896_v61 = vshrl.u32 %v7616_v55, 16 }
 0x2c8   : > { %14866 = vmatprep.mubr.bf16.mxu0 %v13506_v10  ;;  %v7879_v21 = vrot.slane %v7878_v54, 4  ;;  %v7888_v27 = vor.u32 %v7887_v49, %v7883_v6  ;;  %v7899_v7 = vshll.u32 %v7616_v55, 16  ;;  %v7905_v45 = vshll.u32 %v7617_v13, 16 }
 0x2c9   : > { %v7870_v18 = vsel %vm15702_vm6, %v7865_v5, %v7869_v3  ;;  %v7898_v41 = vrot.slane %v7896_v61, 4  ;;  %v7909_v30 = vshrl.u32 %v7617_v13, 16  ;;  %v7915_v50 = vshll.u32 %v7618_v11, 16  ;;  %v7625_v3 = vld [vmem:[#allocation2 + $0xa8] sm:$0xf] }
 0x2ca   : > { %v13507_v33 = vcombine.low %v7860_v60, %v7870_v18  ;;  %v7884_v31 = vsel %vm15702_vm6, %v7879_v21, %v7883_v6  ;;  %v7889_v46 = vrot.slane %v7888_v27, 4  ;;  %v7901_v25 = vrot.slane %v7899_v7, 5  ;;  %v8402_v11 = vld [vmem:[#allocation2 + $0x4] sm:$0xf] }
 0x2cb   : > { %v7907_v42 = vrot.slane %v7905_v45, 5  ;;  %v7911_v24 = vrot.slane %v7909_v30, 4  ;;  %v7917_v59 = vrot.slane %v7915_v50, 5  ;;  %v7920_v28 = vshrl.u32 %v7619_v51, 16 }
 0x2cc   : > { %14867 = vmatmul.mubr.bf16.gmra.mxu0 %v13507_v33  ;;  %v7894_v56 = vsel %vm15702_vm6, %v7889_v46, %v7893_v16  ;;  %v7902_v12 = vor.u32 %v7901_v25, %v7898_v41  ;;  %v7923_v63 = vshll.u32 %v7619_v51, 16  ;;  %v7929_v22 = vshll.u32 %v7620_v44, 16  ;;  %v7627_v16 = vld [vmem:[#allocation2 + $0xb0] sm:$0x1]  ;;  %v8404_v33 = vld [vmem:[#allocation2 + $0xc] sm:$0xe] }
 0x2cd   : > { %v13508_v26 = vcombine.low %v7884_v31, %v7894_v56  ;;  %v7912_v43 = vor.u32 %v7911_v24, %v7907_v42  ;;  %v7922_v34 = vrot.slane %v7920_v28, 4  ;;  %v7933_v37 = vshrl.u32 %v7620_v44, 16  ;;  %v8403_v44 = vld [vmem:[#allocation2 + $0x8] sm:$0x1]  ;;  %v8405_v31 = vld [vmem:[#allocation2 + $0x10] sm:$0xf] }
 0x2ce   : > { %v7903_v53 = vrot.slane %v7902_v12, 4  ;;  %v7925_v2 = vrot.slane %v7923_v63, 5  ;;  %v7931_v17 = vrot.slane %v7929_v22, 5  ;;  %v7939_v36 = vshll.u32 %v7621_v32, 16  ;;  %v8406_v12 = vld [vmem:[#allocation2 + $0x14] sm:$0x1] }
 0x2cf   : > { %14870 = vmatprep.mubr.bf16.mxu0 %v13508_v26  ;;  %v7913_v52 = vrot.slane %v7912_v43, 4  ;;  %v7935_v62 = vrot.slane %v7933_v37, 4  ;;  %v7944_v15 = vshrl.u32 %v7622_v14, 16  ;;  %v7947_v38 = vshll.u32 %v7622_v14, 16  ;;  %v7628_v43 = vld [vmem:[#allocation2 + $0xb4] sm:$0xf] }
 0x2d0   : > { %v7908_v58 = vsel %vm15702_vm6, %v7903_v53, %v7907_v42  ;;  %v7926_v55 = vor.u32 %v7925_v2, %v7922_v34  ;;  %v7941_v0 = vrot.slane %v7939_v36, 5  ;;  %v7953_v4 = vshll.u32 %v7623_v1, 16 }
 0x2d1   : > { %v7918_v13 = vsel %vm15702_vm6, %v7913_v52, %v7917_v59  ;;  %v7936_v47 = vor.u32 %v7935_v62, %v7931_v17  ;;  %v7946_v35 = vrot.slane %v7944_v15, 4  ;;  %v7949_v39 = vrot.slane %v7947_v38, 5  ;;  %v7630_v38 = vld [vmem:[#allocation2 + $0xbc] sm:$0x1] }
 0x2d2   : > { %v13509_v40 = vcombine.low %v7908_v58, %v7918_v13  ;;  %v7927_v57 = vrot.slane %v7926_v55, 4  ;;  %v7955_v19 = vrot.slane %v7953_v4, 5  ;;  %v7957_v20 = vshrl.u32 %v7623_v1, 16  ;;  %v8407_v4 = vld [vmem:[#allocation2 + $0x18] sm:$0xe] }
 0x2d3   : > { %v7937_v10 = vrot.slane %v7936_v47, 4  ;;  %v7950_v54 = vor.u32 %v7949_v39, %v7946_v35  ;;  %v7963_v6 = vshll.u32 %v7624_v48, 16  ;;  %v7968_v49 = vshrl.u32 %v7625_v3, 16 }
 0x2d4   : > { %14871 = vmatmul.mubr.bf16.gmra.mxu0 %v13509_v40  ;;  %v7932_v60 = vsel %vm15702_vm6, %v7927_v57, %v7931_v17  ;;  %v7959_v5 = vrot.slane %v7957_v20, 4  ;;  %v7971_v61 = vshll.u32 %v7625_v3, 16  ;;  %v7977_v51 = vshll.u32 %v7626_v29, 16  ;;  %v7629_v17 = vld [vmem:[#allocation2 + $0xb8] sm:$0xf] }
 0x2d5   : > { %v7942_v21 = vsel %vm15702_vm6, %v7937_v10, %v7941_v0  ;;  %v7951_v27 = vrot.slane %v7950_v54, 4  ;;  %v7965_v7 = vrot.slane %v7963_v6, 5  ;;  %v7970_v45 = vrot.slane %v7968_v49, 4  ;;  %v8408_v3 = vld [vmem:[#allocation2 + $0x1c] sm:$0xf]  ;;  %v15430_v10 = vld [vmem:[%s19575_s3 + $0x130] sm:$0xff]  }
 0x2d6   : > { %v13510_v18 = vcombine.low %v7932_v60, %v7942_v21  ;;  %v7960_v41 = vor.u32 %v7959_v5, %v7955_v19  ;;  %v7973_v30 = vrot.slane %v7971_v61, 5  ;;  %v7979_v50 = vrot.slane %v7977_v51, 5  ;;  %v8411_v60 = vld [vmem:[#allocation2 + $0x28] sm:$0xf]  ;;  %v8412_v5 = vld [vmem:[#allocation2 + $0x2c] sm:$0x1] }
 0x2d7   : > { %v7956_v46 = vsel %vm15702_vm6, %v7951_v27, %v7955_v19  ;;  %v7981_v25 = vshrl.u32 %v7626_v29, 16  ;;  %v7987_v42 = vshll.u32 %v7627_v16, 16  ;;  %v13522_v24 = vrot.slane %v8401_v23, 9  ;;  %v8409_v29 = vld [vmem:[#allocation2 + $0x20] sm:$0x1] }
 0x2d8   : > { %14874 = vmatprep.mubr.bf16.mxu0 %v13510_v18  ;;  %v7961_v59 = vrot.slane %v7960_v41, 4  ;;  %v7974_v32 = vor.u32 %v7973_v30, %v7970_v45  ;;  %v8499_v28 = vrot.slane %v8402_v11, 5  ;;  %v8502_v56 = vrot.slane %v8403_v44, 5  ;;  %v8410_v23 = vld [vmem:[#allocation2 + $0x24] sm:$0xe]  ;;  %v15501_v30 = vld [vmem:[%s19575_s3 + $0x138] sm:$0xff]  }
 0x2d9   : > { %v7983_v63 = vrot.slane %v7981_v25, 4  ;;  %v7989_v22 = vrot.slane %v7987_v42, 5  ;;  %v13523_v14 = vrot.slane %v8404_v33, 9  ;;  %v8506_v26 = vrot.slane %v8405_v31, 5  ;;  %v8413_v21 = vld [vmem:[#allocation2 + $0x30] sm:$0xe] }
 0x2da   : > { %v7966_v34 = vsel %vm15702_vm6, %v7961_v59, %v7965_v7  ;;  %v7975_v37 = vrot.slane %v7974_v32, 4  ;;  %v8500_v53 = vsel %vm16069_vm13, %v13522_v24, %v8499_v28  ;;  %v8501_v2 = vrot.slane %v8499_v28, 4  ;;  %v8414_v27 = vld [vmem:[#allocation2 + $0x34] sm:$0xf]  ;;  %v15433_v32 = vld [vmem:[%s19575_s3 + $0x128] sm:$0xff]  }
 0x2db   : > { %v13511_v36 = vcombine.low %v7956_v46, %v7966_v34  ;;  %v7984_v52 = vor.u32 %v7983_v63, %v7979_v50  ;;  %v8507_v62 = vsel %vm16069_vm13, %v13523_v14, %v8506_v26  ;;  %v8508_v15 = vrot.slane %v8506_v26, 4  ;;  %v8415_v46 = vld [vmem:[#allocation2 + $0x38] sm:$0x1]  ;;  %v8417_v14 = vld [vmem:[#allocation2 + $0x40] sm:$0xf] }
 0x2dc   : > { %v7980_v58 = vsel %vm15702_vm6, %v7975_v37, %v7979_v50  ;;  %v8503_v55 = vsel %vm16069_vm13, %v8501_v2, %v8502_v56  ;;  %v8509_v0 = vrot.slane %v8406_v12, 5  ;;  %v7992_v48 = vshrl.u32 %v7628_v43, 16  ;;  %v8420_v2 = vld [vmem:[#allocation2 + $0x4c] sm:$0xf] }
 0x2dd   : > { %14875 = vmatmul.mubr.bf16.gmra.mxu0 %v13511_v36  ;;  %v7985_v13 = vrot.slane %v7984_v52, 4  ;;  %v13554_v47 = vcombine.low %v8500_v53, %v8503_v55  ;;  %v7995_v35 = vshll.u32 %v7628_v43, 16  ;;  %v8001_v39 = vshll.u32 %v7629_v17, 16  ;;  %v8418_v53 = vld [vmem:[#allocation2 + $0x44] sm:$0x1]  ;;  %v15428_v52 = vld [vmem:[#allocation2 + $0xc] sm:$0xff]  }
 0x2de   : > { %v8510_v40 = vsel %vm16069_vm13, %v8508_v15, %v8509_v0  ;;  %v7994_v57 = vrot.slane %v7992_v48, 4  ;;  %v8005_v19 = vshrl.u32 %v7629_v17, 16  ;;  %v8011_v20 = vshll.u32 %v7630_v38, 16  ;;  %v8419_v38 = vld [vmem:[#allocation2 + $0x48] sm:$0xe] }
 0x2df   : > { %v7990_v54 = vsel %vm15702_vm6, %v7985_v13, %v7989_v22  ;;  %14898 = vmatprep.mubr.bf16.mxu1 %v13554_v47  ;;  %v13555_v6 = vcombine.low %v8507_v62, %v8510_v40  ;;  %v7997_v49 = vrot.slane %v7995_v35, 5  ;;  %v8003_v11 = vrot.slane %v8001_v39, 5  ;;  %v8416_v22 = vld [vmem:[#allocation2 + $0x3c] sm:$0xe]  ;;  %v8422_v55 = vld [vmem:[#allocation2 + $0x54] sm:$0xe] }
 0x2e0   : > { %v13512_v16 = vcombine.low %v7980_v58, %v7990_v54  ;;  %v8007_v61 = vrot.slane %v8005_v19, 4  ;;  %v8013_v51 = vrot.slane %v8011_v20, 5  ;;  %v13524_v45 = vrot.slane %v8407_v4, 9  ;;  %v8421_v58 = vld [vmem:[#allocation2 + $0x50] sm:$0x1]  ;;  %v15436_v35 = vld [vmem:[%s19575_s3 + $0x120] sm:$0xff]  }
 0x2e1   : > { %14899 = vmatmul.mubr.bf16.vlgmr.msra.gmra.mxu1 %v13555_v6  ;;  %v7998_v7 = vor.u32 %v7997_v49, %v7994_v57  ;;  %v8513_v44 = vrot.slane %v8408_v3, 5  ;;  %v8516_v18 = vrot.slane %v8409_v29, 5  ;;  %v13525_v50 = vrot.slane %v8410_v23, 9  ;;  %v8423_v13 = vld [vmem:[#allocation2 + $0x58] sm:$0xf] }
 0x2e2   : > { %14878 = vmatprep.mubr.bf16.mxu0 %v13512_v16  ;;  %v8008_v41 = vor.u32 %v8007_v61, %v8003_v11  ;;  %14979 = vmatpush3.bf16.msra.mxu1 %v15501_v30  ;;  %v8520_v33 = vrot.slane %v8411_v60, 5  ;;  %v8523_v31 = vrot.slane %v8412_v5, 5  ;;  %v13526_v24 = vrot.slane %v8413_v21, 9  ;;  %v8424_v47 = vld [vmem:[#allocation2 + $0x5c] sm:$0x1] }
 0x2e3   : > { %v7999_v25 = vrot.slane %v7998_v7, 4  ;;  %v8515_v42 = vrot.slane %v8513_v44, 4  ;;  %14980 = vmatprep.subr.bf16.mxu1 %v15430_v10  ;;  %v8527_v59 = vrot.slane %v8414_v27, 5  ;;  %v8514_v56 = vsel %vm16069_vm13, %v13524_v45, %v8513_v44  ;;  %v8425_v57 = vld [vmem:[#allocation2 + $0x60] sm:$0xe] }
 0x2e4   : > { %v8009_v28 = vrot.slane %v8008_v41, 4  ;;  %v8521_v12 = vsel %vm16069_vm13, %v13525_v50, %v8520_v33  ;;  %v8522_v63 = vrot.slane %v8520_v33, 4  ;;  %v8530_v37 = vrot.slane %v8415_v46, 5  ;;  %v8426_v19 = vld [vmem:[#allocation2 + $0x64] sm:$0xf]  ;;  %v15439_v50 = vld [vmem:[%s19575_s3 + $0x118] sm:$0xff]  }
 0x2e5   : > { %v8004_v26 = vsel %vm15702_vm6, %v7999_v25, %v8003_v11  ;;  %v8517_v43 = vsel %vm16069_vm13, %v8515_v42, %v8516_v18  ;;  %v8529_v34 = vrot.slane %v8527_v59, 4  ;;  %v8528_v15 = vsel %vm16069_vm13, %v13526_v24, %v8527_v59  ;;  %v8427_v54 = vld [vmem:[#allocation2 + $0x68] sm:$0x1]  ;;  %v8428_v5 = vld [vmem:[#allocation2 + $0x6c] sm:$0xe] }
 0x2e6   : > { %v8014_v17 = vsel %vm15702_vm6, %v8009_v28, %v8013_v51  ;;  %v13556_v36 = vcombine.low %v8514_v56, %v8517_v43  ;;  %v8524_v62 = vsel %vm16069_vm13, %v8522_v63, %v8523_v31  ;;  %14981 = vmatpush3.bf16.msra.mxu1 %v15430_v10  ;;  %v8534_v3 = vrot.slane %v8417_v14, 5  ;;  %v8429_v16 = vld [vmem:[#allocation2 + $0x70] sm:$0xf]  ;;  %v8430_v7 = vld [vmem:[#allocation2 + $0x74] sm:$0x1]  ;;  %v15431_v31 = vld [vmem:[#allocation2 + $0x18] sm:$0xff]  }
 0x2e7   : > { %v13513_v0 = vcombine.low %v8004_v26, %v8014_v17  ;;  %v13557_v48 = vcombine.low %v8521_v12, %v8524_v62  ;;  %v8531_v4 = vsel %vm16069_vm13, %v8529_v34, %v8530_v37  ;;  %14982 = vmatprep.subr.bf16.mxu1 %v15433_v32  ;;  %v13527_v29 = vrot.slane %v8416_v22, 9  ;;  %v8431_v45 = vld [vmem:[#allocation2 + $0x78] sm:$0xe]  ;;  %v8432_v33 = vld [vmem:[#allocation2 + $0x7c] sm:$0xf]  ;;  %v15432_v28 = vld [vmem:[#allocation2 + $0x24] sm:$0xff]  }
 0x2e8   : > { %14902 = vmatprep.mubr.bf16.mxu1 %v13556_v36  ;;  %v13558_v39 = vcombine.low %v8528_v15, %v8531_v4  ;;  %v8541_v40 = vrot.slane %v8420_v2, 5  ;;  %v8536_v20 = vrot.slane %v8534_v3, 4  ;;  %v8537_v23 = vrot.slane %v8418_v53, 5  ;;  %v8433_v59 = vld [vmem:[#allocation2 + $0x80] sm:$0x1]  ;;  %v15442_v2 = vld [vmem:[%s19575_s3 + $0x110] sm:$0xff]  }
 0x2e9   : > { %14879 = vmatmul.mubr.bf16.gmra.mxu0 %v13513_v0  ;;  %14903 = vmatmul.mubr.bf16.gmra.mxu1 %v13557_v48  ;;  %v13528_v10 = vrot.slane %v8419_v38, 9  ;;  %v8535_v6 = vsel %vm16069_vm13, %v13527_v29, %v8534_v3  ;;  %v8544_v11 = vrot.slane %v8421_v58, 5  ;;  %v8548_v60 = vrot.slane %v8423_v13, 5  ;;  %v8435_v14 = vld [vmem:[#allocation2 + $0x88] sm:$0xf]  ;;  %v15446_v58 = vld [vmem:[%s19575_s3 + $0x170] sm:$0xff]  }
 0x2ea   : > { %14946 = vmatprep.mubr.bf16.mxu0 %v15428_v52  ;;  %14906 = vmatprep.mubr.bf16.mxu1 %v13558_v39  ;;  %v8543_v49 = vrot.slane %v8541_v40, 4  ;;  %v8538_v61 = vsel %vm16069_vm13, %v8536_v20, %v8537_v23  ;;  %v13529_v21 = vrot.slane %v8422_v55, 9  ;;  %v8555_v27 = vrot.slane %v8426_v19, 5  ;;  %v8437_v26 = vld [vmem:[#allocation2 + $0x90] sm:$0xe]  ;;  %v18067_v19 = vld [vmem:[%s19575_s3 + $0x108] sm:$0xff]  }
 0x2eb   : > { %v8542_v51 = vsel %vm16069_vm13, %v13528_v10, %v8541_v40  ;;  %14983 = vmatpush3.bf16.msra.mxu1 %v15433_v32  ;;  %v8550_v18 = vrot.slane %v8548_v60, 4  ;;  %v8551_v41 = vrot.slane %v8424_v47, 5  ;;  %v13530_v30 = vrot.slane %v8425_v57, 9  ;;  %v8434_v32 = vld [vmem:[#allocation2 + $0x84] sm:$0xe] }
 0x2ec   : > { %v8545_v44 = vsel %vm16069_vm13, %v8543_v49, %v8544_v11  ;;  %14984 = vmatprep.subr.bf16.mxu1 %v15436_v35  ;;  %v13559_v46 = vcombine.low %v8535_v6, %v8538_v61  ;;  %v18028_v25 = vsel %vm16069_vm13, %v13529_v21, %v8548_v60  ;;  %v8557_v42 = vrot.slane %v8555_v27, 4  ;;  %v8438_v17 = vld [vmem:[#allocation2 + $0x94] sm:$0xf]  ;;  %v8436_v38 = vld [vmem:[#allocation2 + $0x8c] sm:$0x1] }
 0x2ed   : > { %v8558_v24 = vrot.slane %v8427_v54, 5  ;;  %v13560_v56 = vcombine.low %v8542_v51, %v8545_v44  ;;  %v18032_v12 = vsel %vm16069_vm13, %v8550_v18, %v8551_v41  ;;  %v18036_v63 = vsel %vm16069_vm13, %v13530_v30, %v8555_v27  ;;  %v8439_v3 = vld [vmem:[#allocation2 + $0x98] sm:$0x1]  ;;  %v8440_v13 = vld [vmem:[#allocation2 + $0x9c] sm:$0xe]  ;;  %v15449_v11 = vld [vmem:[%s19575_s3 + $0x168] sm:$0xff]  }
 0x2ee   : > { %v8562_v22 = vrot.slane %v8429_v16, 5  ;;  %v13531_v34 = vrot.slane %v8428_v5, 9  ;;  %v8565_v37 = vrot.slane %v8430_v7, 5  ;;  %v8569_v53 = vrot.slane %v8432_v33, 5  ;;  %v8441_v40 = vld [vmem:[#allocation2 + $0xa0] sm:$0xf] }
 0x2ef   : > { %v18040_v43 = vsel %vm16069_vm13, %v8557_v42, %v8558_v24  ;;  %14985 = vmatpush3.bf16.msra.mxu1 %v15436_v35  ;;  %v13561_v36 = vcombine.low %v18028_v25, %v18032_v12  ;;  %v13532_v62 = vrot.slane %v8431_v45, 9  ;;  %v8572_v15 = vrot.slane %v8433_v59, 5  ;;  %v8442_v57 = vld [vmem:[#allocation2 + $0xa4] sm:$0x1]  ;;  %v8443_v20 = vld [vmem:[#allocation2 + $0xa8] sm:$0xe] }
 0x2f0   : > { %v8564_v52 = vrot.slane %v8562_v22, 4  ;;  %14986 = vmatprep.subr.bf16.mxu1 %v15439_v50  ;;  %v13562_v55 = vcombine.low %v18036_v63, %v18040_v43  ;;  %v18054_v0 = vsel %vm16069_vm13, %v13531_v34, %v8562_v22  ;;  %v8571_v48 = vrot.slane %v8569_v53, 4  ;;  %v8444_v49 = vld [vmem:[#allocation2 + $0xac] sm:$0xf]  ;;  %v8445_v51 = vld [vmem:[#allocation2 + $0xb0] sm:$0x1] }
 0x2f1   : > { %14947 = vmatmul.mubr.bf16.vlgmr.msra.gmra.mxu0 %v15431_v31  ;;  %14907 = vmatmul.mubr.bf16.gmra.mxu1 %v13559_v46  ;;  %v8576_v4 = vrot.slane %v8435_v14, 5  ;;  %v18062_v35 = vsel %vm16069_vm13, %v13532_v62, %v8569_v53  ;;  %v13533_v39 = vrot.slane %v8434_v32, 9  ;;  %v8583_v29 = vrot.slane %v8438_v17, 5  ;;  %v9445_v21 = vld [vmem:[#allocation2 + $0xc] sm:$0xf]  ;;  %v15434_v41 = vld [vmem:[#allocation2 + $0x30] sm:$0xff]  }
 0x2f2   : > { %14950 = vmatprep.mubr.bf16.mxu0 %v15432_v28  ;;  %14910 = vmatprep.mubr.bf16.mxu1 %v13560_v56  ;;  %v18058_v47 = vsel %vm16069_vm13, %v8564_v52, %v8565_v37  ;;  %v18071_v23 = vsel %vm16069_vm13, %v8571_v48, %v8572_v15  ;;  %v8579_v54 = vrot.slane %v8436_v38, 5  ;;  %v13534_v6 = vrot.slane %v8437_v26, 9  ;;  %v8447_v44 = vld [vmem:[#allocation2 + $0xb8] sm:$0xf]  ;;  %v9446_v18 = vld [vmem:[#allocation2 + $0x10] sm:$0xf] }
 0x2f3   : > { %14987 = vmatpush3.bf16.msra.mxu1 %v15439_v50  ;;  %v8578_v10 = vrot.slane %v8576_v4, 4  ;;  %15027 = vmatpush3.bf16.msra.mxu0 %v17899_v8  ;;  %v13563_v60 = vcombine.low %v18054_v0, %v18058_v47  ;;  %v18081_v5 = vsel %vm16069_vm13, %v13533_v39, %v8576_v4  ;;  %v8585_v16 = vrot.slane %v8583_v29, 4  ;;  %v8446_v46 = vld [vmem:[#allocation2 + $0xb4] sm:$0xe]  ;;  %v15435_v42 = vld [vmem:[#allocation2 + $0x3c] sm:$0xff]  }
 0x2f4   : > { %14988 = vmatprep.subr.bf16.mxu1 %v15442_v2  ;;  %v8586_v61 = vrot.slane %v8439_v3, 5  ;;  %15028 = vmatprep.subr.bf16.mxu0 %v15446_v58  ;;  %v13564_v8 = vcombine.low %v18062_v35, %v18071_v23  ;;  %v18091_v7 = vsel %vm16069_vm13, %v13534_v6, %v8583_v29  ;;  %v8590_v45 = vrot.slane %v8441_v40, 5  ;;  %v8448_v56 = vld [vmem:[#allocation2 + $0xbc] sm:$0x1]  ;;  %v15451_v34 = vld [vmem:[%s19575_s3 + $0x160] sm:$0xff]  }
 0x2f5   : > { %v18087_v27 = vsel %vm16069_vm13, %v8578_v10, %v8579_v54  ;;  %v13535_v50 = vrot.slane %v8440_v13, 9  ;;  %v8593_v33 = vrot.slane %v8442_v57, 5  ;;  %v8597_v31 = vrot.slane %v8444_v49, 5  ;;  %v15452_v53 = vld [vmem:[%s19575_s3 + $0x100] sm:$0xff]   ;;  %v9448_v38 = vld [vmem:[#allocation2 + $0x18] sm:$0xf] }
 0x2f6   : > { %v18095_v30 = vsel %vm16069_vm13, %v8585_v16, %v8586_v61  ;;  %v13565_v24 = vcombine.low %v18081_v5, %v18087_v27  ;;  %v8592_v59 = vrot.slane %v8590_v45, 4  ;;  %v13536_v32 = vrot.slane %v8443_v20, 9  ;;  %v9449_v48 = vld [vmem:[#allocation2 + $0x1c] sm:$0xf]  ;;  %v9450_v10 = vld [vmem:[#allocation2 + $0x20] sm:$0x1] }
 0x2f7   : > { %14989 = vmatpush3.bf16.msra.mxu1 %v15442_v2  ;;  %15029 = vmatpush3.bf16.msra.mxu0 %v15446_v58  ;;  %v8600_v28 = vrot.slane %v8445_v51, 5  ;;  %v13566_v22 = vcombine.low %v18091_v7, %v18095_v30  ;;  %v18103_v14 = vsel %vm16069_vm13, %v13535_v50, %v8590_v45  ;;  %v8599_v26 = vrot.slane %v8597_v31, 4  ;;  %v9447_v2 = vld [vmem:[#allocation2 + $0x14] sm:$0x1]  ;;  %v15454_v29 = vld [vmem:[%s19575_s3 + $0x158] sm:$0xff]  }
 0x2f8   : > { %14990 = vmatprep.subr.bf16.mxu1 %v18067_v19  ;;  %15030 = vmatprep.subr.bf16.mxu0 %v15449_v11  ;;  %v8604_v37 = vrot.slane %v8447_v44, 5  ;;  %v18117_v17 = vsel %vm16069_vm13, %v8592_v59, %v8593_v33  ;;  %v9494_v52 = vshrl.u32 %v9445_v21, 16  ;;  %v9497_v62 = vshll.u32 %v9445_v21, 16  ;;  %v18141_v57 = vld [vmem:[%s19575_s3 + $0x1b8] sm:$0xff]   ;;  %v9451_v49 = vld [vmem:[#allocation2 + $0x24] sm:$0xf] }
 0x2f9   : > { %14951 = vmatmul.mubr.bf16.gmra.mxu0 %v15434_v41  ;;  %14911 = vmatmul.mubr.bf16.gmra.mxu1 %v13561_v36  ;;  %v9503_v15 = vshll.u32 %v9446_v18, 16  ;;  %v13567_v58 = vcombine.low %v18103_v14, %v18117_v17  ;;  %v18126_v25 = vsel %vm16069_vm13, %v13536_v32, %v8597_v31  ;;  %v13537_v12 = vrot.slane %v8446_v46, 9  ;;  %v9452_v45 = vld [vmem:[#allocation2 + $0x28] sm:$0xf]  ;;  %v15438_v44 = vld [vmem:[#allocation2 + $0x54] sm:$0xff]  }
 0x2fa   : > { %14954 = vmatprep.mubr.bf16.mxu0 %v15435_v42  ;;  %14914 = vmatprep.mubr.bf16.mxu1 %v13562_v55  ;;  %v8607_v36 = vrot.slane %v8448_v56, 5  ;;  %v18130_v4 = vsel %vm16069_vm13, %v8599_v26, %v8600_v28  ;;  %v8606_v3 = vrot.slane %v8604_v37, 4  ;;  %v9496_v63 = vrot.slane %v9494_v52, 4  ;;  %v9453_v31 = vld [vmem:[#allocation2 + $0x2c] sm:$0x1]  ;;  %v15456_v42 = vld [vmem:[%s19575_s3 + $0x150] sm:$0xff]  }
 0x2fb   : > { %14991 = vmatpush3.bf16.msra.mxu1 %v18067_v19  ;;  %15031 = vmatpush3.bf16.msra.mxu0 %v15449_v11  ;;  %v9499_v43 = vrot.slane %v9497_v62, 5  ;;  %v18133_v55 = vrot.slane %v9503_v15, 5  ;;  %v9507_v13 = vshrl.u32 %v9446_v18, 16  ;;  %v9513_v39 = vshll.u32 %v9447_v2, 16  ;;  %v15437_v11 = vld [vmem:[#allocation2 + $0x48] sm:$0xff]  }
 0x2fc   : > { %15032 = vmatprep.subr.bf16.mxu0 %v15451_v34  ;;  %14992 = vmatprep.subr.bf16.mxu1 %v15452_v53  ;;  %v9518_v40 = vshrl.u32 %v9448_v38, 16  ;;  %v18145_v19 = vsel %vm16069_vm13, %v13537_v12, %v8604_v37  ;;  %v9521_v54 = vshll.u32 %v9448_v38, 16  ;;  %v9527_v6 = vshll.u32 %v9449_v48, 16  ;;  %v18160_v56 = vld [vmem:[#allocation2 + $0xc] sm:$0xe] }
 0x2fd   : > { %v9500_v20 = vor.u32 %v9499_v43, %v9496_v63  ;;  %v13568_v16 = vcombine.low %v18126_v25, %v18130_v4  ;;  %v9509_v61 = vrot.slane %v9507_v13, 4  ;;  %v9531_v21 = vshrl.u32 %v9449_v48, 16  ;;  %v10264_v38 = vld [vmem:[#allocation2 + $0x10] sm:$0xf]  ;;  %v10265_v35 = vld [vmem:[#allocation2 + $0x14] sm:$0x1] }
 0x2fe   : > { %v9520_v51 = vrot.slane %v9518_v40, 4  ;;  %v18151_v18 = vsel %vm16069_vm13, %v8606_v3, %v8607_v36  ;;  %v9515_v41 = vrot.slane %v9513_v39, 5  ;;  %v9523_v50 = vrot.slane %v9521_v54, 5  ;;  %v15459_v36 = vld [vmem:[%s19575_s3 + $0x148] sm:$0xff]   ;;  %v9454_v23 = vld [vmem:[#allocation2 + $0x30] sm:$0xf] }
 0x2ff   : > { %15033 = vmatpush3.bf16.msra.mxu0 %v15451_v34  ;;  %14993 = vmatpush3.bf16.msra.mxu1 %v15452_v53  ;;  %v18153_v33 = vrot.slane %v9527_v6, 5  ;;  %v9510_v46 = vor.u32 %v9509_v61, %v18133_v55  ;;  %v9533_v59 = vrot.slane %v9531_v21, 4  ;;  %v9542_v32 = vshrl.u32 %v9451_v49, 16  ;;  %v15440_v43 = vld [vmem:[#allocation2 + $0x60] sm:$0xff]   ;;  %v10267_v5 = vld [vmem:[#allocation2 + $0x1c] sm:$0xf] }
 0x300   : > { %15034 = vmatprep.subr.bf16.mxu0 %v15454_v29  ;;  %15074 = vmatprep.subr.bf16.mxu1 %v18141_v57  ;;  %v9545_v28 = vshll.u32 %v9451_v49, 16  ;;  %v9501_v26 = vrot.slane %v9500_v20, 4  ;;  %v9524_v34 = vor.u32 %v9523_v50, %v9520_v51  ;;  %v9537_v37 = vshll.u32 %v9450_v10, 16  ;;  %v9455_v20 = vld [vmem:[#allocation2 + $0x34] sm:$0xf]  ;;  %v15441_v10 = vld [vmem:[#allocation2 + $0x6c] sm:$0xff]  }
 0x301   : > { %14955 = vmatmul.mubr.bf16.gmra.mxu0 %v15437_v11  ;;  %14915 = vmatmul.mubr.bf16.gmra.mxu1 %v13563_v60  ;;  %v9551_v53 = vshll.u32 %v9452_v45, 16  ;;  %v9511_v2 = vrot.slane %v9510_v46, 4  ;;  %v9534_v52 = vor.u32 %v9533_v59, %v18153_v33  ;;  %v9544_v62 = vrot.slane %v9542_v32, 4  ;;  %v15460_v61 = vld [vmem:[%s19575_s3 + $0x140] sm:$0xff]   ;;  %v9456_v51 = vld [vmem:[#allocation2 + $0x38] sm:$0x1] }
 0x302   : > { %14958 = vmatprep.mubr.bf16.mxu0 %v15438_v44  ;;  %14918 = vmatprep.mubr.bf16.mxu1 %v13564_v8  ;;  %v9547_v15 = vrot.slane %v9545_v28, 5  ;;  %v13569_v12 = vcombine.low %v18145_v19, %v18151_v18  ;;  %v9525_v0 = vrot.slane %v9524_v34, 4  ;;  %v9555_v60 = vshrl.u32 %v9452_v45, 16  ;;  %v9458_v59 = vld [vmem:[#allocation2 + $0x40] sm:$0xf] }
 0x303   : > { %15035 = vmatpush3.bf16.msra.mxu0 %v15454_v29  ;;  %v18171_v47 = vrot.slane %v9551_v53, 5  ;;  %v9516_v8 = vsel %vm15702_vm6, %v9511_v2, %v9515_v41  ;;  %v9535_v48 = vrot.slane %v9534_v52, 4  ;;  %v9561_v63 = vshll.u32 %v9453_v31, 16 }
 0x304   : > { %15036 = vmatprep.subr.bf16.mxu0 %v15456_v42  ;;  %v9548_v3 = vor.u32 %v9547_v15, %v9544_v62  ;;  %v9506_v13 = vsel %vm15702_vm6, %v9501_v26, %v18133_v55  ;;  %v9539_v39 = vrot.slane %v9537_v37, 5  ;;  %v9557_v29 = vrot.slane %v9555_v60, 4  ;;  %v9457_v55 = vld [vmem:[#allocation2 + $0x3c] sm:$0xf]  ;;  %v9459_v26 = vld [vmem:[#allocation2 + $0x44] sm:$0x1] }
 0x305   : > { %v13658_v40 = vrot.slane %v18160_v56, 9  ;;  %v18182_v54 = vcombine.low %v9506_v13, %v9516_v8  ;;  %v9530_v6 = vsel %vm15702_vm6, %v9525_v0, %v18153_v33  ;;  %v10361_v11 = vrot.slane %v10264_v38, 5  ;;  %v18217_v38 = vld [vmem:[%s19575_s3 + $0x1f8] sm:$0xff]   ;;  %v15445_v8 = vld [vmem:[#allocation2 + $0x84] sm:$0xff]  }
 0x306   : > { %v9549_v49 = vrot.slane %v9548_v3, 4  ;;  %v9540_v21 = vsel %vm15702_vm6, %v9535_v48, %v9539_v39  ;;  %v9558_v45 = vor.u32 %v9557_v29, %v18171_v47  ;;  %v9566_v44 = vshrl.u32 %v9454_v23, 16  ;;  %v15443_v0 = vld [vmem:[#allocation2 + $0x78] sm:$0xff]  }
 0x307   : > { %15037 = vmatpush3.bf16.msra.mxu0 %v15456_v42  ;;  %v9569_v41 = vshll.u32 %v9454_v23, 16  ;;  %v9563_v50 = vrot.slane %v9561_v63, 5  ;;  %v10363_v31 = vrot.slane %v10361_v11, 4  ;;  %v10364_v33 = vrot.slane %v10265_v35, 5  ;;  %v10266_v23 = vld [vmem:[#allocation2 + $0x18] sm:$0xe] }
 0x308   : > { %15038 = vmatprep.subr.bf16.mxu0 %v15459_v36  ;;  %v9575_v46 = vshll.u32 %v9455_v20, 16  ;;  %v9559_v32 = vrot.slane %v9558_v45, 4  ;;  %v9568_v42 = vrot.slane %v9566_v44, 4  ;;  %v9579_v56 = vshrl.u32 %v9455_v20, 16  ;;  %v9460_v45 = vld [vmem:[#allocation2 + $0x48] sm:$0xf] }
 0x309   : > { %14959 = vmatmul.mubr.bf16.gmra.mxu0 %v15440_v43  ;;  %14919 = vmatmul.mubr.bf16.gmra.mxu1 %v13565_v24  ;;  %v9571_v28 = vrot.slane %v9569_v41, 5  ;;  %v18199_v34 = vcombine.low %v9530_v6, %v9540_v21  ;;  %v9554_v37 = vsel %vm15702_vm6, %v9549_v49, %v18171_v47  ;;  %v9590_v2 = vshrl.u32 %v9457_v55, 16  ;;  %v10268_v43 = vld [vmem:[#allocation2 + $0x20] sm:$0x1]  ;;  %v10270_v6 = vld [vmem:[#allocation2 + $0x28] sm:$0xf] }
 0x30a   : > { %14962 = vmatprep.mubr.bf16.mxu0 %v15441_v10  ;;  %14922 = vmatprep.mubr.bf16.mxu1 %v13566_v22  ;;  %v9577_v53 = vrot.slane %v9575_v46, 5  ;;  %v18206_v27 = vsel %vm16069_vm13, %v10363_v31, %v10364_v33  ;;  %v9581_v52 = vrot.slane %v9579_v56, 4  ;;  %v9585_v62 = vshll.u32 %v9456_v51, 16  ;;  %v10269_v10 = vld [vmem:[#allocation2 + $0x24] sm:$0xe] }
 0x30b   : > { %15039 = vmatpush3.bf16.msra.mxu0 %v15459_v36  ;;  %v9572_v24 = vor.u32 %v9571_v28, %v9568_v42  ;;  %v9564_v7 = vsel %vm15702_vm6, %v9559_v32, %v9563_v50  ;;  %v18212_v30 = vsel %vm16069_vm13, %v13658_v40, %v10361_v11  ;;  %v9592_v22 = vrot.slane %v9590_v2, 4  ;;  %v10271_v21 = vld [vmem:[#allocation2 + $0x2c] sm:$0x1] }
 0x30c   : > { %15040 = vmatprep.subr.bf16.mxu0 %v15460_v61  ;;  %v9593_v15 = vshll.u32 %v9457_v55, 16  ;;  %v9582_v60 = vor.u32 %v9581_v52, %v9577_v53  ;;  %v9599_v36 = vshll.u32 %v9458_v59, 16  ;;  %v9603_v35 = vshrl.u32 %v9458_v59, 16  ;;  %v9461_v31 = vld [vmem:[#allocation2 + $0x4c] sm:$0xf] }
 0x30d   : > { %v9573_v47 = vrot.slane %v9572_v24, 4  ;;  %v13690_v48 = vcombine.low %v18212_v30, %v18206_v27  ;;  %v9609_v63 = vshll.u32 %v9459_v26, 16  ;;  %v10368_v13 = vrot.slane %v10267_v5, 5  ;;  %v9463_v59 = vld [vmem:[#allocation2 + $0x54] sm:$0xf] }
 0x30e   : > { %v9595_v3 = vrot.slane %v9593_v15, 5  ;;  %v9583_v39 = vrot.slane %v9582_v60, 4  ;;  %v9587_v29 = vrot.slane %v9585_v62, 5  ;;  %v9601_v40 = vrot.slane %v9599_v36, 5  ;;  %v9464_v24 = vld [vmem:[#allocation2 + $0x58] sm:$0xf] }
 0x30f   : > { %15041 = vmatpush3.bf16.msra.mxu0 %v15460_v61  ;;  %v9605_v20 = vrot.slane %v9603_v35, 4  ;;  %v18221_v49 = vcombine.low %v9554_v37, %v9564_v7  ;;  %v13659_v51 = vrot.slane %v10266_v23, 9  ;;  %v10370_v55 = vrot.slane %v10368_v13, 4  ;;  %v9465_v15 = vld [vmem:[#allocation2 + $0x5c] sm:$0x1] }
 0x310   : > { %v9596_v11 = vor.u32 %v9595_v3, %v9592_v22  ;;  %15122 = vmatprep.subr.bf16.mxu0 %v18217_v38  ;;  %v9578_v61 = vsel %vm15702_vm6, %v9573_v47, %v9577_v53  ;;  %v9588_v44 = vsel %vm15702_vm6, %v9583_v39, %v9587_v29  ;;  %v10371_v50 = vrot.slane %v10268_v43, 5  ;;  %v10272_v23 = vld [vmem:[#allocation2 + $0x30] sm:$0xe]  ;;  %v15450_v3 = vld [vmem:[#allocation2 + $0x9c] sm:$0xff]   ;;  %v10274_v29 = vld [vmem:[#allocation2 + $0x38] sm:$0x1] }
 0x311   : > { %14963 = vmatmul.mubr.bf16.gmra.mxu0 %v15443_v0  ;;  %14923 = vmatmul.mubr.bf16.gmra.mxu1 %v13567_v58  ;;  %v9606_v41 = vor.u32 %v9605_v20, %v9601_v40  ;;  %v9611_v46 = vrot.slane %v9609_v63, 5  ;;  %v18236_v14 = vsel %vm16069_vm13, %v13659_v51, %v10368_v13  ;;  %v10375_v17 = vrot.slane %v10270_v6, 5  ;;  %v9462_v58 = vld [vmem:[#allocation2 + $0x50] sm:$0x1]  ;;  %v10275_v51 = vld [vmem:[#allocation2 + $0x3c] sm:$0xe] }
 0x312   : > { %14966 = vmatprep.mubr.bf16.mxu0 %v15445_v8  ;;  %14926 = vmatprep.mubr.bf16.mxu1 %v13568_v16  ;;  %v9597_v33 = vrot.slane %v9596_v11, 4  ;;  %v18240_v42 = vsel %vm16069_vm13, %v10370_v55, %v10371_v50  ;;  %v9614_v28 = vshrl.u32 %v9460_v45, 16  ;;  %v9617_v56 = vshll.u32 %v9460_v45, 16  ;;  %v15448_v0 = vld [vmem:[#allocation2 + $0x90] sm:$0xff]  }
 0x313   : > { %v9607_v32 = vrot.slane %v9606_v41, 4  ;;  %v18242_v26 = vcombine.low %v9578_v61, %v9588_v44  ;;  %v13660_v25 = vrot.slane %v10269_v10, 9  ;;  %v10377_v4 = vrot.slane %v10375_v17, 4  ;;  %v10273_v8 = vld [vmem:[#allocation2 + $0x34] sm:$0xf] }
 0x314   : > { %v10378_v16 = vrot.slane %v10271_v21, 5  ;;  %v9602_v37 = vsel %vm15702_vm6, %v9597_v33, %v9601_v40  ;;  %v9616_v53 = vrot.slane %v9614_v28, 4  ;;  %v9619_v2 = vrot.slane %v9617_v56, 5  ;;  %v10276_v40 = vld [vmem:[#allocation2 + $0x40] sm:$0xf] }
 0x315   : > { %v9623_v5 = vshll.u32 %v9461_v31, 16  ;;  %v9612_v52 = vsel %vm15702_vm6, %v9607_v32, %v9611_v46  ;;  %v13691_v62 = vcombine.low %v18236_v14, %v18240_v42  ;;  %v9627_v22 = vshrl.u32 %v9461_v31, 16  ;;  %v9466_v44 = vld [vmem:[#allocation2 + $0x60] sm:$0xf]  ;;  %v9467_v56 = vld [vmem:[#allocation2 + $0x64] sm:$0xf] }
 0x316   : > { %v18252_v7 = vsel %vm16069_vm13, %v10377_v4, %v10378_v16  ;;  %v9620_v47 = vor.u32 %v9619_v2, %v9616_v53  ;;  %v9633_v36 = vshll.u32 %v9462_v58, 16  ;;  %v9638_v35 = vshrl.u32 %v9463_v59, 16  ;;  %v15461_v4 = vld [vmem:[%s19575_s3 + $0x1b0] sm:$0xff]   ;;  %v9468_v2 = vld [vmem:[#allocation2 + $0x68] sm:$0x1] }
 0x317   : > { %v9625_v60 = vrot.slane %v9623_v5, 5  ;;  %v18256_v63 = vsel %vm16069_vm13, %v13660_v25, %v10375_v17  ;;  %v9629_v43 = vrot.slane %v9627_v22, 4  ;;  %v9641_v13 = vshll.u32 %v9463_v59, 16  ;;  %v10277_v17 = vld [vmem:[#allocation2 + $0x44] sm:$0x1]  ;;  %v15455_v25 = vld [vmem:[#allocation2 + $0xb4] sm:$0xff]  }
 0x318   : > { %v9647_v39 = vshll.u32 %v9464_v24, 16  ;;  %v18261_v20 = vcombine.low %v9602_v37, %v9612_v52  ;;  %v9621_v10 = vrot.slane %v9620_v47, 4  ;;  %v9640_v6 = vrot.slane %v9638_v35, 4  ;;  %v9470_v47 = vld [vmem:[#allocation2 + $0x70] sm:$0xf] }
 0x319   : > { %14967 = vmatmul.mubr.bf16.gmra.mxu0 %v15448_v0  ;;  %14927 = vmatmul.mubr.bf16.gmra.mxu1 %v13569_v12  ;;  %v9651_v11 = vshrl.u32 %v9464_v24, 16  ;;  %v13692_v55 = vcombine.low %v18256_v63, %v18252_v7  ;;  %v9630_v21 = vor.u32 %v9629_v43, %v9625_v60  ;;  %v9643_v45 = vrot.slane %v9641_v13, 5  ;;  %v9469_v0 = vld [vmem:[#allocation2 + $0x6c] sm:$0xf] }
 0x31a   : > { %14970 = vmatprep.mubr.bf16.mxu0 %v15450_v3  ;;  %14994 = vmatprep.mubr.bf16.mxu1 %v18182_v54  ;;  %v18266_v61 = vrot.slane %v9647_v39, 5  ;;  %v9635_v41 = vrot.slane %v9633_v36, 5  ;;  %v9657_v18 = vshll.u32 %v9465_v15, 16  ;;  %v10382_v12 = vrot.slane %v10273_v8, 5  ;;  %v15453_v54 = vld [vmem:[#allocation2 + $0xa8] sm:$0xff]  }
 0x31b   : > { %v9653_v19 = vrot.slane %v9651_v11, 4  ;;  %v9626_v50 = vsel %vm15702_vm6, %v9621_v10, %v9625_v60  ;;  %v9631_v31 = vrot.slane %v9630_v21, 4  ;;  %v9644_v33 = vor.u32 %v9643_v45, %v9640_v6  ;;  %v9471_v10 = vld [vmem:[#allocation2 + $0x74] sm:$0x1]  ;;  %v15462_v45 = vld [vmem:[%s19575_s3 + $0x1a8] sm:$0xff]  }
 0x31c   : > { %v13661_v46 = vrot.slane %v10272_v23, 9  ;;  %v10384_v59 = vrot.slane %v10382_v12, 4  ;;  %v10385_v32 = vrot.slane %v10274_v29, 5  ;;  %v10389_v28 = vrot.slane %v10276_v40, 5  ;;  %v10287_v42 = vld [vmem:[#allocation2 + $0x6c] sm:$0xe] }
 0x31d   : > { %v9654_v58 = vor.u32 %v9653_v19, %v18266_v61  ;;  %v9636_v16 = vsel %vm15702_vm6, %v9631_v31, %v9635_v41  ;;  %v18276_v37 = vrot.slane %v9644_v33, 4  ;;  %v13662_v53 = vrot.slane %v10275_v51, 9 }
 0x31e   : > { %v9662_v5 = vshrl.u32 %v9466_v44, 16  ;;  %v9659_v52 = vrot.slane %v9657_v18, 5  ;;  %v18280_v22 = vsel %vm16069_vm13, %v13661_v46, %v10382_v12  ;;  %v18284_v15 = vsel %vm16069_vm13, %v10384_v59, %v10385_v32  ;;  %v15458_v12 = vld [vmem:[#allocation2 + $0xc0] sm:$0xff]  }
 0x31f   : > { %v9655_v24 = vrot.slane %v9654_v58, 4  ;;  %v18286_v60 = vcombine.low %v9626_v50, %v9636_v16  ;;  %v18290_v36 = vsel %vm16069_vm13, %v13662_v53, %v10389_v28  ;;  %v10391_v35 = vrot.slane %v10389_v28, 4  ;;  %v15463_v59 = vld [vmem:[%s19575_s3 + $0x1a0] sm:$0xff]   ;;  %v9472_v16 = vld [vmem:[#allocation2 + $0x78] sm:$0xf] }
 0x320   : > { %v10392_v23 = vrot.slane %v10277_v17, 5  ;;  %v9664_v8 = vrot.slane %v9662_v5, 4  ;;  %v9665_v3 = vshll.u32 %v9466_v44, 16  ;;  %v9671_v43 = vshll.u32 %v9467_v56, 16  ;;  %v10280_v17 = vld [vmem:[#allocation2 + $0x50] sm:$0x1] }
 0x321   : > { %14971 = vmatmul.mubr.bf16.gmra.mxu0 %v15453_v54  ;;  %14995 = vmatmul.mubr.bf16.vlgmr.msra.gmra.mxu1 %v18199_v34  ;;  %v9675_v13 = vshrl.u32 %v9467_v56, 16  ;;  %v9650_v39 = vsel %vm15702_vm6, %v18276_v37, %v18266_v61  ;;  %v13693_v29 = vcombine.low %v18280_v22, %v18284_v15  ;;  %v9681_v40 = vshll.u32 %v9468_v2, 16  ;;  %v10282_v54 = vld [vmem:[#allocation2 + $0x58] sm:$0xf] }
 0x322   : > { %14974 = vmatprep.mubr.bf16.mxu0 %v15455_v25  ;;  %14998 = vmatprep.mubr.bf16.mxu1 %v18221_v49  ;;  %v9686_v6 = vshrl.u32 %v9469_v0, 16  ;;  %v9660_v34 = vsel %vm15702_vm6, %v9655_v24, %v9659_v52  ;;  %v9667_v11 = vrot.slane %v9665_v3, 5  ;;  %v9673_v51 = vrot.slane %v9671_v43, 5  ;;  %v10279_v49 = vld [vmem:[#allocation2 + $0x4c] sm:$0xf]  ;;  %v18310_v18 = vpop.f32.mrf.mxu1 }
 0x323   : > { %15075 = vmatpush3.bf16.msra.mxu1 %v18141_v57  ;;  %v9677_v21 = vrot.slane %v9675_v13, 4  ;;  %v18308_v61 = vsel %vm16069_vm13, %v10391_v35, %v10392_v23  ;;  %v9689_v41 = vshll.u32 %v9469_v0, 16  ;;  %v9695_v19 = vshll.u32 %v9470_v47, 16  ;;  %v10278_v57 = vld [vmem:[#allocation2 + $0x48] sm:$0xe] }
 0x324   : > { %15076 = vmatprep.subr.bf16.mxu1 %v15461_v4  ;;  %v9688_v44 = vrot.slane %v9686_v6, 4  ;;  %v9668_v50 = vor.u32 %v9667_v11, %v9664_v8  ;;  %v9699_v33 = vshrl.u32 %v9470_v47, 16  ;;  %v9705_v46 = vshll.u32 %v9471_v10, 16  ;;  %v10281_v25 = vld [vmem:[#allocation2 + $0x54] sm:$0xe]  ;;  %v18317_v37 = vpop.f32.mrf.mxu1 }
 0x325   : > { %v9678_v31 = vor.u32 %v9677_v21, %v9673_v51  ;;  %v9683_v58 = vrot.slane %v9681_v40, 5  ;;  %v9691_v32 = vrot.slane %v9689_v41, 5  ;;  %v18315_v28 = vrot.slane %v9695_v19, 5  ;;  %v10283_v43 = vld [vmem:[#allocation2 + $0x5c] sm:$0x1] }
 0x326   : > { %v10396_v56 = vrot.slane %v10279_v49, 5  ;;  %v9669_v53 = vrot.slane %v9668_v50, 4  ;;  %v9701_v5 = vrot.slane %v9699_v33, 4  ;;  %v13663_v24 = vrot.slane %v10278_v57, 9  ;;  %v18327_v13 = vpop.f32.mrf.mxu1  ;;  %v9473_v6 = vld [vmem:[#allocation2 + $0x7c] sm:$0xf] }
 0x327   : > { %15077 = vmatpush3.bf16.msra.mxu1 %v15461_v4  ;;  %v9679_v2 = vrot.slane %v9678_v31, 4  ;;  %v18319_v52 = vcombine.low %v9650_v39, %v9660_v34  ;;  %v9692_v0 = vor.u32 %v9691_v32, %v9688_v44  ;;  %v10399_v35 = vrot.slane %v10280_v17, 5  ;;  %v9474_v34 = vld [vmem:[#allocation2 + $0x80] sm:$0x1]  ;;  %v9475_v21 = vld [vmem:[#allocation2 + $0x84] sm:$0xf] }
 0x328   : > { %15078 = vmatprep.subr.bf16.mxu1 %v15462_v45  ;;  %v10398_v47 = vrot.slane %v10396_v56, 4  ;;  %v13694_v23 = vcombine.low %v18290_v36, %v18308_v61  ;;  %v9702_v4 = vor.u32 %v9701_v5, %v18315_v28  ;;  %v9707_v3 = vrot.slane %v9705_v46, 5  ;;  %v9477_v57 = vld [vmem:[#allocation2 + $0x8c] sm:$0x1]  ;;  %v18350_v33 = vpop.f32.mrf.mxu1  ;;  %v15465_v32 = vld [vmem:[%s19575_s3 + $0x190] sm:$0xff]   ;;  %v15473_v61 = vld [vmem:[%s19575_s3 + $0x1d8] sm:$0xff]  }
 0x329   : > { %14975 = vmatmul.mubr.bf16.gmra.mxu0 %v15458_v12  ;;  %14999 = vmatmul.mubr.bf16.gmra.mxu1 %v18242_v26  ;;  %v9684_v8 = vsel %vm15702_vm6, %v9679_v2, %v9683_v58  ;;  %v9693_v39 = vrot.slane %v9692_v0, 4  ;;  %v18335_v26 = vsel %vm16069_vm13, %v13663_v24, %v10396_v56  ;;  %v10403_v10 = vrot.slane %v10282_v54, 5  ;;  %v15467_v56 = vld [vmem:[%s19575_s3 + $0x1f0] sm:$0xff]  }
 0x32a   : > { %15042 = vmatprep.mubr.bf16.mxu0 %v13690_v48  ;;  %15002 = vmatprep.mubr.bf16.mxu1 %v18261_v20  ;;  %v18339_v40 = vsel %vm16069_vm13, %v10398_v47, %v10399_v35  ;;  %v9674_v11 = vsel %vm15702_vm6, %v9669_v53, %v9673_v51  ;;  %v9703_v27 = vrot.slane %v9702_v4, 4  ;;  %v13664_v30 = vrot.slane %v10281_v25, 9  ;;  %v15464_v20 = vld [vmem:[%s19575_s3 + $0x198] sm:$0xff]   ;;  %v10284_v47 = vld [vmem:[#allocation2 + $0x60] sm:$0xe] }
 0x32b   : > { %15079 = vmatpush3.bf16.msra.mxu1 %v15462_v45  ;;  %v9710_v48 = vshrl.u32 %v9472_v16, 16  ;;  %v18346_v49 = vcombine.low %v9674_v11, %v9684_v8  ;;  %v13695_v44 = vcombine.low %v18335_v26, %v18339_v40  ;;  %v10405_v41 = vrot.slane %v10403_v10, 4  ;;  %v9476_v45 = vld [vmem:[#allocation2 + $0x88] sm:$0xf]  ;;  %v10285_v35 = vld [vmem:[#allocation2 + $0x64] sm:$0xf] }
 0x32c   : > { %15080 = vmatprep.subr.bf16.mxu1 %v15463_v59  ;;  %v9713_v19 = vshll.u32 %v9472_v16, 16  ;;  %v10406_v12 = vrot.slane %v10283_v43, 5  ;;  %v9719_v50 = vshll.u32 %v9473_v6, 16  ;;  %v9723_v31 = vshrl.u32 %v9473_v6, 16  ;;  %v10286_v43 = vld [vmem:[#allocation2 + $0x68] sm:$0x1] }
 0x32d   : > { %v9712_v51 = vrot.slane %v9710_v48, 4  ;;  %v9698_v46 = vsel %vm15702_vm6, %v9693_v39, %v18315_v28  ;;  %v9708_v17 = vsel %vm15702_vm6, %v9703_v27, %v9707_v3  ;;  %v18359_v54 = vsel %vm16069_vm13, %v13664_v30, %v10403_v10  ;;  %v10288_v30 = vld [vmem:[#allocation2 + $0x70] sm:$0xf]  ;;  %v9485_v26 = vld [vmem:[#allocation2 + $0xac] sm:$0xf] }
 0x32e   : > { %v9715_v58 = vrot.slane %v9713_v19, 5  ;;  %v9721_v25 = vrot.slane %v9719_v50, 5  ;;  %v9725_v16 = vrot.slane %v9723_v31, 4  ;;  %v9729_v28 = vshll.u32 %v9474_v34, 16  ;;  %v9478_v48 = vld [vmem:[#allocation2 + $0x90] sm:$0xf] }
 0x32f   : > { %15081 = vmatpush3.bf16.msra.mxu1 %v15463_v59  ;;  %v9734_v53 = vshrl.u32 %v9475_v21, 16  ;;  %v18369_v2 = vsel %vm16069_vm13, %v10405_v41, %v10406_v12  ;;  %v9737_v24 = vshll.u32 %v9475_v21, 16  ;;  %v9743_v0 = vshll.u32 %v9476_v45, 16  ;;  %v18375_v39 = vpop.f32.mrf.mxu1  ;;  %v15468_v21 = vld [vmem:[%s19575_s3 + $0x188] sm:$0xff]  }
 0x330   : > { %v9716_v5 = vor.u32 %v9715_v58, %v9712_v51  ;;  %15082 = vmatprep.subr.bf16.mxu1 %v15464_v20  ;;  %v9726_v59 = vor.u32 %v9725_v16, %v9721_v25  ;;  %v9747_v4 = vshrl.u32 %v9476_v45, 16  ;;  %v9753_v3 = vshll.u32 %v9477_v57, 16  ;;  %v10289_v57 = vld [vmem:[#allocation2 + $0x74] sm:$0x1] }
 0x331   : > { %15043 = vmatmul.mubr.bf16.vlgmr.msra.gmra.mxu0 %v13691_v62  ;;  %15003 = vmatmul.mubr.bf16.gmra.mxu1 %v18286_v60  ;;  %v9736_v8 = vrot.slane %v9734_v53, 4  ;;  %v13642_v10 = vcombine.low %v9698_v46, %v9708_v17  ;;  %v9739_v34 = vrot.slane %v9737_v24, 5  ;;  %v18381_v14 = vrot.slane %v9743_v0, 5  ;;  %v18397_v12 = vpop.f32.mrf.mxu1  ;;  %v9479_v17 = vld [vmem:[#allocation2 + $0x94] sm:$0xf] }
 0x332   : > { %15046 = vmatprep.mubr.bf16.mxu0 %v13692_v55  ;;  %15006 = vmatprep.mubr.bf16.mxu1 %v18319_v52  ;;  %v9717_v6 = vrot.slane %v9716_v5, 4  ;;  %v9727_v62 = vrot.slane %v9726_v59, 4  ;;  %v9731_v60 = vrot.slane %v9729_v28, 5  ;;  %v9749_v11 = vrot.slane %v9747_v4, 4  ;;  %v15470_v5 = vld [vmem:[%s19575_s3 + $0x1e0] sm:$0xff]  }
 0x333   : > { %v10410_v27 = vrot.slane %v10285_v35, 5  ;;  %15083 = vmatpush3.bf16.msra.mxu1 %v15464_v20  ;;  %15123 = vmatpush3.bf16.msra.mxu0 %v18217_v38  ;;  %v13696_v7 = vcombine.low %v18359_v54, %v18369_v2  ;;  %v9740_v63 = vor.u32 %v9739_v34, %v9736_v8  ;;  %v18386_v55 = vrot.slane %v9753_v3, 5  ;;  %v15469_v20 = vld [vmem:[%s19575_s3 + $0x1e8] sm:$0xff]   ;;  %v9480_v59 = vld [vmem:[#allocation2 + $0x98] sm:$0x1] }
 0x334   : > { %v13665_v52 = vrot.slane %v10284_v47, 9  ;;  %15084 = vmatprep.subr.bf16.mxu1 %v15465_v32  ;;  %15124 = vmatprep.subr.bf16.mxu0 %v15467_v56  ;;  %v9732_v38 = vsel %vm15702_vm6, %v9727_v62, %v9731_v60  ;;  %v9750_v41 = vor.u32 %v9749_v11, %v18381_v14  ;;  %v10413_v45 = vrot.slane %v10286_v43, 5  ;;  %v9481_v8 = vld [vmem:[#allocation2 + $0x9c] sm:$0xf]  ;;  %v9482_v43 = vld [vmem:[#allocation2 + $0xa0] sm:$0xf] }
 0x335   : > { %v10412_v19 = vrot.slane %v10410_v27, 4  ;;  %v9722_v51 = vsel %vm15702_vm6, %v9717_v6, %v9721_v25  ;;  %v9741_v50 = vrot.slane %v9740_v63, 4  ;;  %v13666_v31 = vrot.slane %v10287_v42, 9  ;;  %v15471_v25 = vld [vmem:[%s19575_s3 + $0x180] sm:$0xff]   ;;  %v18424_v6 = vpop.f32.mrf.mxu1 }
 0x336   : > { %v10417_v46 = vrot.slane %v10288_v30, 5  ;;  %v9751_v58 = vrot.slane %v9750_v41, 4  ;;  %v9758_v28 = vshrl.u32 %v9478_v48, 16  ;;  %v9761_v53 = vshll.u32 %v9478_v48, 16  ;;  %v9483_v34 = vld [vmem:[#allocation2 + $0xa4] sm:$0x1] }
 0x337   : > { %v18403_v16 = vsel %vm16069_vm13, %v10412_v19, %v10413_v45  ;;  %15085 = vmatpush3.bf16.msra.mxu1 %v15465_v32  ;;  %15125 = vmatpush3.bf16.msra.mxu0 %v15467_v56  ;;  %v18411_v24 = vcombine.low %v9722_v51, %v9732_v38  ;;  %v18415_v0 = vsel %vm16069_vm13, %v13665_v52, %v10410_v27  ;;  %v10420_v35 = vrot.slane %v10289_v57, 5  ;;  %v10291_v27 = vld [vmem:[#allocation2 + $0x7c] sm:$0xf]  ;;  %v10292_v57 = vld [vmem:[#allocation2 + $0x80] sm:$0x1] }
 0x338   : > { %v10419_v47 = vrot.slane %v10417_v46, 4  ;;  %15086 = vmatprep.subr.bf16.mxu1 %v15468_v21  ;;  %15126 = vmatprep.subr.bf16.mxu0 %v15469_v20  ;;  %v9746_v32 = vsel %vm15702_vm6, %v9741_v50, %v18381_v14  ;;  %v9760_v56 = vrot.slane %v9758_v28, 4  ;;  %v9763_v4 = vrot.slane %v9761_v53, 5  ;;  %v18450_v30 = vld [vmem:[%s19575_s3 + $0x238] sm:$0xff]   ;;  %v10294_v51 = vld [vmem:[#allocation2 + $0x88] sm:$0xf] }
 0x339   : > { %15047 = vmatmul.mubr.bf16.gmra.mxu0 %v13693_v29  ;;  %15007 = vmatmul.mubr.bf16.gmra.mxu1 %v18346_v49  ;;  %v9767_v3 = vshll.u32 %v9479_v17, 16  ;;  %v9756_v22 = vsel %vm15702_vm6, %v9751_v58, %v18386_v55  ;;  %v13697_v15 = vcombine.low %v18415_v0, %v18403_v16  ;;  %v18436_v29 = vsel %vm16069_vm13, %v13666_v31, %v10417_v46  ;;  %v9484_v58 = vld [vmem:[#allocation2 + $0xa8] sm:$0xf]  ;;  %v15474_v28 = vld [vmem:[%s19575_s3 + $0x1d0] sm:$0xff]  }
 0x33a   : > { %15050 = vmatprep.mubr.bf16.mxu0 %v13694_v23  ;;  %15010 = vmatprep.mubr.bf16.mxu1 %v13642_v10  ;;  %v9771_v49 = vshrl.u32 %v9479_v17, 16  ;;  %v9764_v14 = vor.u32 %v9763_v4, %v9760_v56  ;;  %v9777_v62 = vshll.u32 %v9480_v59, 16  ;;  %v9782_v36 = vshrl.u32 %v9481_v8, 16 }
 0x33b   : > { %v18438_v42 = vrot.slane %v9767_v3, 5  ;;  %15087 = vmatpush3.bf16.msra.mxu1 %v15468_v21  ;;  %15127 = vmatpush3.bf16.msra.mxu0 %v15469_v20  ;;  %v18445_v23 = vsel %vm16069_vm13, %v10419_v47, %v10420_v35  ;;  %v9785_v60 = vshll.u32 %v9481_v8, 16  ;;  %v9791_v11 = vshll.u32 %v9482_v43, 16  ;;  %v10290_v21 = vld [vmem:[#allocation2 + $0x78] sm:$0xe]  ;;  %v18452_v20 = vpop.f32.mrf.mxu1 }
 0x33c   : > { %v9773_v10 = vrot.slane %v9771_v49, 4  ;;  %15128 = vmatprep.subr.bf16.mxu0 %v15470_v5  ;;  %15088 = vmatprep.subr.bf16.mxu1 %v15471_v25  ;;  %v9765_v63 = vrot.slane %v9764_v14, 4  ;;  %v9784_v55 = vrot.slane %v9782_v36, 4  ;;  %v9795_v52 = vshrl.u32 %v9482_v43, 16  ;;  %v10293_v8 = vld [vmem:[#allocation2 + $0x84] sm:$0xe] }
 0x33d   : > { %v9801_v48 = vshll.u32 %v9483_v34, 16  ;;  %v13644_v38 = vcombine.low %v9746_v32, %v9756_v22  ;;  %v9787_v19 = vrot.slane %v9785_v60, 5  ;;  %v9793_v45 = vrot.slane %v9791_v11, 5  ;;  %v10295_v32 = vld [vmem:[#allocation2 + $0x8c] sm:$0x1]  ;;  %v18468_v3 = vpop.f32.mrf.mxu1 }
 0x33e   : > { %v9774_v41 = vor.u32 %v9773_v10, %v18438_v42  ;;  %v13698_v50 = vcombine.low %v18436_v29, %v18445_v23  ;;  %v9779_v31 = vrot.slane %v9777_v62, 5  ;;  %v9797_v46 = vrot.slane %v9795_v52, 4  ;;  %v15478_v10 = vld [vmem:[%s19575_s3 + $0x1c8] sm:$0xff]  }
 0x33f   : > { %v10424_v17 = vrot.slane %v10291_v27, 5  ;;  %15129 = vmatpush3.bf16.msra.mxu0 %v15470_v5  ;;  %15089 = vmatpush3.bf16.msra.mxu1 %v15471_v25  ;;  %v9770_v53 = vsel %vm15702_vm6, %v9765_v63, %v18438_v42  ;;  %v9788_v35 = vor.u32 %v9787_v19, %v9784_v55  ;;  %v13667_v59 = vrot.slane %v10290_v21, 9  ;;  %v9487_v42 = vld [vmem:[#allocation2 + $0xb4] sm:$0xf]  ;;  %v9488_v55 = vld [vmem:[#allocation2 + $0xb8] sm:$0xf] }
 0x340   : > { %v9775_v47 = vrot.slane %v9774_v41, 4  ;;  %15130 = vmatprep.subr.bf16.mxu0 %v15473_v61  ;;  %15170 = vmatprep.subr.bf16.mxu1 %v18450_v30  ;;  %v9798_v5 = vor.u32 %v9797_v46, %v9793_v45  ;;  %v9803_v25 = vrot.slane %v9801_v48, 5  ;;  %v10427_v56 = vrot.slane %v10292_v57, 5 }
 0x341   : > { %15051 = vmatmul.mubr.bf16.gmra.mxu0 %v13695_v44  ;;  %15011 = vmatmul.mubr.bf16.gmra.mxu1 %v18411_v24  ;;  %v10431_v4 = vrot.slane %v10294_v51, 5  ;;  %v9789_v22 = vrot.slane %v9788_v35, 4  ;;  %v10426_v49 = vrot.slane %v10424_v17, 4  ;;  %v9806_v40 = vshrl.u32 %v9484_v58, 16 }
 0x342   : > { %15054 = vmatprep.mubr.bf16.mxu0 %v13696_v7  ;;  %15014 = vmatprep.mubr.bf16.mxu1 %v13644_v38  ;;  %v9780_v43 = vsel %vm15702_vm6, %v9775_v47, %v9779_v31  ;;  %v9799_v44 = vrot.slane %v9798_v5, 4  ;;  %v18477_v24 = vsel %vm16069_vm13, %v13667_v59, %v10424_v17  ;;  %v13668_v34 = vrot.slane %v10293_v8, 9  ;;  %v9486_v7 = vld [vmem:[#allocation2 + $0xb0] sm:$0x1]  ;;  %v9489_v38 = vld [vmem:[#allocation2 + $0xbc] sm:$0x1] }
 0x343   : > { %v10434_v14 = vrot.slane %v10295_v32, 5  ;;  %15131 = vmatpush3.bf16.msra.mxu0 %v15473_v61  ;;  %v13645_v62 = vcombine.low %v9770_v53, %v9780_v43  ;;  %v9794_v54 = vsel %vm15702_vm6, %v9789_v22, %v9793_v45  ;;  %v10433_v2 = vrot.slane %v10431_v4, 4  ;;  %v18486_v61 = vpop.f32.mrf.mxu1  ;;  %v18496_v31 = vld [vmem:[#allocation2 + $0x94] sm:$0xf]  ;;  %v15479_v47 = vld [vmem:[%s19575_s3 + $0x1c0] sm:$0xff]  }
 0x344   : > { %v9808_v36 = vrot.slane %v9806_v40, 4  ;;  %15132 = vmatprep.subr.bf16.mxu0 %v15474_v28  ;;  %v9804_v60 = vsel %vm15702_vm6, %v9799_v44, %v9803_v25  ;;  %v9809_v11 = vshll.u32 %v9484_v58, 16  ;;  %v9815_v27 = vshll.u32 %v9485_v26, 16  ;;  %v10296_v32 = vld [vmem:[#allocation2 + $0x90] sm:$0xe] }
 0x345   : > { %v9819_v63 = vshrl.u32 %v9485_v26, 16  ;;  %v13646_v52 = vcombine.low %v9794_v54, %v9804_v60  ;;  %v18490_v48 = vsel %vm16069_vm13, %v10426_v49, %v10427_v56  ;;  %v18494_v21 = vsel %vm16069_vm13, %v13668_v34, %v10431_v4  ;;  %v10298_v5 = vld [vmem:[#allocation2 + $0x98] sm:$0x1]  ;;  %v18508_v25 = vpop.f32.mrf.mxu1  ;;  %v10300_v40 = vld [vmem:[#allocation2 + $0xa0] sm:$0xf] }
 0x346   : > { %v9830_v41 = vshrl.u32 %v9487_v42, 16  ;;  %v9811_v19 = vrot.slane %v9809_v11, 5  ;;  %v9817_v45 = vrot.slane %v9815_v27, 5  ;;  %v9825_v51 = vshll.u32 %v9486_v7, 16  ;;  %v9490_v34 = vld [vmem:[#allocation2 + $0xc0] sm:$0xf] }
 0x347   : > { %v9821_v57 = vrot.slane %v9819_v63, 4  ;;  %15133 = vmatpush3.bf16.msra.mxu0 %v15474_v28  ;;  %v18500_v46 = vsel %vm16069_vm13, %v10433_v2, %v10434_v14  ;;  %v9833_v58 = vshll.u32 %v9487_v42, 16  ;;  %v9839_v53 = vshll.u32 %v9488_v55, 16  ;;  %v10301_v54 = vld [vmem:[#allocation2 + $0xa4] sm:$0x1]  ;;  %v18520_v2 = vpop.f32.mrf.mxu1 }
 0x348   : > { %v9832_v17 = vrot.slane %v9830_v41, 4  ;;  %15134 = vmatprep.subr.bf16.mxu0 %v15478_v10  ;;  %v9812_v35 = vor.u32 %v9811_v19, %v9808_v36  ;;  %v9843_v28 = vshrl.u32 %v9488_v55, 16  ;;  %v9849_v8 = vshll.u32 %v9489_v38, 16  ;;  %v9491_v11 = vld [vmem:[#allocation2 + $0xc4] sm:$0xf] }
 0x349   : > { %15055 = vmatmul.mubr.bf16.gmra.mxu0 %v13697_v15  ;;  %15015 = vmatmul.mubr.bf16.gmra.mxu1 %v13645_v62  ;;  %v9822_v59 = vor.u32 %v9821_v57, %v9817_v45  ;;  %v13699_v56 = vcombine.low %v18477_v24, %v18490_v48  ;;  %v9835_v4 = vrot.slane %v9833_v58, 5  ;;  %v9841_v16 = vrot.slane %v9839_v53, 5  ;;  %v10299_v15 = vld [vmem:[#allocation2 + $0x9c] sm:$0xe]  ;;  %v10302_v57 = vld [vmem:[#allocation2 + $0xa8] sm:$0xe]  ;;  %v18530_v58 = vpop.f32.mrf.mxu1 }
 0x34a   : > { %15058 = vmatprep.mubr.bf16.mxu0 %v13698_v50  ;;  %15018 = vmatprep.mubr.bf16.mxu1 %v13646_v52  ;;  %v10438_v0 = vrot.slane %v18496_v31, 5  ;;  %v9813_v43 = vrot.slane %v9812_v35, 4  ;;  %v9827_v49 = vrot.slane %v9825_v51, 5  ;;  %v9845_v26 = vrot.slane %v9843_v28, 4  ;;  %v9492_v52 = vld [vmem:[#allocation2 + $0xc8] sm:$0x1] }
 0x34b   : > { %v9823_v22 = vrot.slane %v9822_v59, 4  ;;  %15135 = vmatpush3.bf16.msra.mxu0 %v15478_v10  ;;  %v13700_v44 = vcombine.low %v18494_v21, %v18500_v46  ;;  %v9836_v29 = vor.u32 %v9835_v4, %v9832_v17  ;;  %v13669_v23 = vrot.slane %v10296_v32, 9  ;;  %v10303_v17 = vld [vmem:[#allocation2 + $0xac] sm:$0xf]  ;;  %v10304_v28 = vld [vmem:[#allocation2 + $0xb0] sm:$0x1]  ;;  %v14852_v32 = vpop.f32.mrf.mxu0 }
 0x34c   : > { %v10440_v50 = vrot.slane %v10438_v0, 4  ;;  %15136 = vmatprep.subr.bf16.mxu0 %v15479_v47  ;;  %v9846_v14 = vor.u32 %v9845_v26, %v9841_v16  ;;  %v9851_v42 = vrot.slane %v9849_v8, 5  ;;  %v10441_v62 = vrot.slane %v10298_v5, 5  ;;  %v10306_v8 = vld [vmem:[#allocation2 + $0xb8] sm:$0xf] }
 0x34d   : > { %v9828_v24 = vsel %vm15702_vm6, %v9823_v22, %v9827_v49  ;;  %v9818_v7 = vsel %vm15702_vm6, %v9813_v43, %v9817_v45  ;;  %v9837_v36 = vrot.slane %v9836_v29, 4  ;;  %v13670_v10 = vrot.slane %v10299_v15, 9  ;;  %v10305_v15 = vld [vmem:[#allocation2 + $0xb4] sm:$0xe]  ;;  %v10307_v43 = vld [vmem:[#allocation2 + $0xbc] sm:$0x1] }
 0x34e   : > { %v10445_v60 = vrot.slane %v10300_v40, 5  ;;  %v13647_v27 = vcombine.low %v9818_v7, %v9828_v24  ;;  %v9847_v63 = vrot.slane %v9846_v14, 4  ;;  %v10442_v55 = vsel %vm16069_vm13, %v10440_v50, %v10441_v62  ;;  %v10309_v29 = vld [vmem:[#allocation2 + $0xc4] sm:$0xf] }
 0x34f   : > { %v9854_v48 = vshrl.u32 %v9490_v34, 16  ;;  %15137 = vmatpush3.bf16.msra.mxu0 %v15479_v47  ;;  %v9842_v21 = vsel %vm15702_vm6, %v9837_v36, %v9841_v16  ;;  %v10448_v41 = vrot.slane %v10301_v54, 5  ;;  %v9857_v19 = vshll.u32 %v9490_v34, 16  ;;  %v18540_v36 = vpop.f32.mrf.mxu0 }
 0x350   : > { %v10447_v38 = vrot.slane %v10445_v60, 4  ;;  %v9852_v45 = vsel %vm15702_vm6, %v9847_v63, %v9851_v42  ;;  %v9863_v31 = vshll.u32 %v9491_v11, 16  ;;  %v9867_v46 = vshrl.u32 %v9491_v11, 16  ;;  %v11307_v42 = vld [vmem:[#allocation2 + $0x18] sm:$0xf] }
 0x351   : > { %15059 = vmatmul.mubr.bf16.gmra.mxu0 %v13699_v56  ;;  %15019 = vmatmul.mubr.bf16.gmra.mxu1 %v13647_v27  ;;  %v9856_v51 = vrot.slane %v9854_v48, 4  ;;  %v13648_v53 = vcombine.low %v9842_v21, %v9852_v45  ;;  %v9859_v35 = vrot.slane %v9857_v19, 5  ;;  %v9873_v59 = vshll.u32 %v9492_v52, 16  ;;  %v18542_v27 = vld [vmem:[#allocation2 + $0xc8] sm:$0x1] }
 0x352   : > { %15062 = vmatprep.mubr.bf16.mxu0 %v13700_v44  ;;  %v10449_v47 = vsel %vm16069_vm13, %v10447_v38, %v10448_v41  ;;  %v10439_v5 = vsel %vm16069_vm13, %v13669_v23, %v10438_v0  ;;  %v10446_v56 = vsel %vm16069_vm13, %v13670_v10, %v10445_v60  ;;  %v9865_v4 = vrot.slane %v9863_v31, 5  ;;  %v10308_v44 = vld [vmem:[#allocation2 + $0xc0] sm:$0xe]  ;;  %v18538_v0 = vpop.f32.mrf.mxu1  ;;  %v11308_v21 = vld [vmem:[#allocation2 + $0x1c] sm:$0xf] }
 0x353   : > { %v9869_v16 = vrot.slane %v9867_v46, 4  ;;  %15022 = vmatprep.mubr.bf16.mxu1 %v13648_v53  ;;  %v13701_v22 = vcombine.low %v10439_v5, %v10442_v55  ;;  %v13702_v49 = vcombine.low %v10446_v56, %v10449_v47  ;;  %v9860_v26 = vor.u32 %v9859_v35, %v9856_v51  ;;  %v11310_v51 = vld [vmem:[#allocation2 + $0x24] sm:$0xf]  ;;  %v15472_v53 = vld [vmem:[#allocation2 + $0x18] sm:$0xff]  }
 0x354   : > { %v10452_v40 = vrot.slane %v10303_v17, 5  ;;  %v9875_v34 = vrot.slane %v9873_v59, 5  ;;  %v13671_v24 = vrot.slane %v10302_v57, 9  ;;  %v10459_v14 = vrot.slane %v10306_v8, 5  ;;  %v18556_v31 = vpop.f32.mrf.mxu1  ;;  %v11309_v59 = vld [vmem:[#allocation2 + $0x20] sm:$0x1] }
 0x355   : > { %v9870_v50 = vor.u32 %v9869_v16, %v9865_v4  ;;  %v9861_v23 = vrot.slane %v9860_v26, 4  ;;  %v10455_v54 = vrot.slane %v10304_v28, 5  ;;  %v13672_v7 = vrot.slane %v10305_v15, 9  ;;  %v18563_v28 = vpop.f32.mrf.mxu0  ;;  %v11311_v16 = vld [vmem:[#allocation2 + $0x28] sm:$0xf] }
 0x356   : > { %v10454_v62 = vrot.slane %v10452_v40, 4  ;;  %v10461_v60 = vrot.slane %v10459_v14, 4  ;;  %v10462_v11 = vrot.slane %v10307_v43, 5  ;;  %v10466_v63 = vrot.slane %v10309_v29, 5 }
 0x357   : > { %v9871_v10 = vrot.slane %v9870_v50, 4  ;;  %v10453_v55 = vsel %vm16069_vm13, %v13671_v24, %v10452_v40  ;;  %v13673_v48 = vrot.slane %v10308_v44, 9  ;;  %v11356_v38 = vshrl.u32 %v11307_v42, 16  ;;  %v18568_v24 = vpop.f32.mrf.mxu1 }
 0x358   : > { %v10456_v52 = vsel %vm16069_vm13, %v10454_v62, %v10455_v54  ;;  %v9866_v41 = vsel %vm15702_vm6, %v9861_v23, %v9865_v4  ;;  %v10460_v57 = vsel %vm16069_vm13, %v13672_v7, %v10459_v14  ;;  %v10463_v45 = vsel %vm16069_vm13, %v10461_v60, %v10462_v11  ;;  %v18570_v54 = vpop.f32.mrf.mxu0  ;;  %v11314_v60 = vld [vmem:[#allocation2 + $0x34] sm:$0xf] }
 0x359   : > { %15063 = vmatmul.mubr.bf16.gmra.mxu0 %v13701_v22  ;;  %v9876_v19 = vsel %vm15702_vm6, %v9871_v10, %v9875_v34  ;;  %v13703_v17 = vcombine.low %v10453_v55, %v10456_v52  ;;  %v18560_v47 = vsel %vm16069_vm13, %v13673_v48, %v10466_v63  ;;  %v10469_v35 = vrot.slane %v18542_v27, 5  ;;  %v11312_v22 = vld [vmem:[#allocation2 + $0x2c] sm:$0x1]  ;;  %v11313_v34 = vld [vmem:[#allocation2 + $0x30] sm:$0xf]  ;;  %v15475_v48 = vld [vmem:[#allocation2 + $0x24] sm:$0xff]  }
 0x35a   : > { %15066 = vmatprep.mubr.bf16.mxu0 %v13702_v49  ;;  %v13649_v46 = vcombine.low %v9866_v41, %v9876_v19  ;;  %v11358_v8 = vrot.slane %v11356_v38, 4  ;;  %v11359_v5 = vshll.u32 %v11307_v42, 16  ;;  %v11365_v56 = vshll.u32 %v11308_v21, 16  ;;  %v18572_v19 = vpop.f32.mrf.mxu1 }
 0x35b   : > { %v11369_v4 = vshrl.u32 %v11308_v21, 16  ;;  %v13704_v15 = vcombine.low %v10460_v57, %v10463_v45  ;;  %v18566_v43 = vadd.f32 %v14852_v32, %v18310_v18  ;;  %v11380_v49 = vshrl.u32 %v11310_v51, 16  ;;  %v15481_v45 = vld [vmem:[%s19575_s3 + $0x230] sm:$0xff]  }
 0x35c   : > { %15023 = vmatmul.mubr.bf16.gmra.mxu1 %v13649_v46  ;;  %v11383_v26 = vshll.u32 %v11310_v51, 16  ;;  %v11361_v40 = vrot.slane %v11359_v5, 5  ;;  %v11367_v44 = vrot.slane %v11365_v56, 5  ;;  %v11375_v50 = vshll.u32 %v11309_v59, 16  ;;  %v11315_v51 = vld [vmem:[#allocation2 + $0x38] sm:$0x1] }
 0x35d   : > { %15090 = vmatprep.mubr.bf16.mxu1 %v15472_v53  ;;  %v11371_v29 = vrot.slane %v11369_v4, 4  ;;  %v10468_v14 = vrot.slane %v10466_v63, 4  ;;  %v11382_v42 = vrot.slane %v11380_v49, 4  ;;  %v11389_v62 = vshll.u32 %v11311_v16, 16 }
 0x35e   : > { %v11385_v23 = vrot.slane %v11383_v26, 5  ;;  %v11362_v7 = vor.u32 %v11361_v40, %v11358_v8  ;;  %v11393_v32 = vshrl.u32 %v11311_v16, 16  ;;  %v11399_v10 = vshll.u32 %v11312_v22, 16  ;;  %v15477_v8 = vld [vmem:[#allocation2 + $0x30] sm:$0xff]   ;;  %v11316_v26 = vld [vmem:[#allocation2 + $0x3c] sm:$0xf] }
 0x35f   : > { %v11372_v18 = vor.u32 %v11371_v29, %v11367_v44  ;;  %v11391_v27 = vrot.slane %v11389_v62, 5  ;;  %v11404_v55 = vshrl.u32 %v11313_v34, 16  ;;  %v11407_v52 = vshll.u32 %v11313_v34, 16 }
 0x360   : > { %v11386_v11 = vor.u32 %v11385_v23, %v11382_v42  ;;  %v11363_v21 = vrot.slane %v11362_v7, 4  ;;  %v11377_v41 = vrot.slane %v11375_v50, 5  ;;  %v11395_v63 = vrot.slane %v11393_v32, 4  ;;  %v18590_v42 = vpop.f32.mrf.mxu1  ;;  %v11318_v32 = vld [vmem:[#allocation2 + $0x44] sm:$0x1] }
 0x361   : > { %15067 = vmatmul.mubr.bf16.gmra.mxu0 %v13703_v17  ;;  %v11373_v38 = vrot.slane %v11372_v18, 4  ;;  %v10470_v57 = vsel %vm16069_vm13, %v10468_v14, %v10469_v35  ;;  %v11406_v46 = vrot.slane %v11404_v55, 4  ;;  %v11409_v53 = vrot.slane %v11407_v52, 5  ;;  %v14856_v17 = vpop.f32.mrf.mxu0  ;;  %v11317_v14 = vld [vmem:[#allocation2 + $0x40] sm:$0xf] }
 0x362   : > { %15070 = vmatprep.mubr.bf16.mxu0 %v13704_v15  ;;  %v11413_v59 = vshll.u32 %v11314_v60, 16  ;;  %v11396_v56 = vor.u32 %v11395_v63, %v11391_v27  ;;  %v11401_v4 = vrot.slane %v11399_v10, 5  ;;  %v11417_v16 = vshrl.u32 %v11314_v60, 16  ;;  %v11319_v60 = vld [vmem:[#allocation2 + $0x48] sm:$0xf]  ;;  %v15487_v63 = vld [vmem:[%s19575_s3 + $0x220] sm:$0xff]  }
 0x363   : > { %v11378_v5 = vsel %vm15702_vm6, %v11373_v38, %v11377_v41  ;;  %v11368_v35 = vsel %vm15702_vm6, %v11363_v21, %v11367_v44  ;;  %v11387_v15 = vrot.slane %v11386_v11, 4  ;;  %v11410_v22 = vor.u32 %v11409_v53, %v11406_v46  ;;  %v11320_v52 = vld [vmem:[#allocation2 + $0x4c] sm:$0xf]  ;;  %v11321_v46 = vld [vmem:[#allocation2 + $0x50] sm:$0x1] }
 0x364   : > { %15091 = vmatmul.mubr.bf16.vlgmr.msra.gmra.mxu1 %v15475_v48  ;;  %v18583_v49 = vrot.slane %v11413_v59, 5  ;;  %v11397_v40 = vrot.slane %v11396_v56, 4  ;;  %v11419_v29 = vrot.slane %v11417_v16, 4  ;;  %v11423_v50 = vshll.u32 %v11315_v51, 16 }
 0x365   : > { %15094 = vmatprep.mubr.bf16.mxu1 %v15477_v8  ;;  %15171 = vmatpush3.bf16.msra.mxu1 %v18450_v30  ;;  %v18588_v34 = vadd.f32 %v18540_v36, %v18317_v37  ;;  %v13705_v44 = vcombine.low %v18560_v47, %v10470_v57  ;;  %v13770_v23 = vcombine.low %v11368_v35, %v11378_v5  ;;  %v15484_v30 = vld [vmem:[%s19575_s3 + $0x228] sm:$0xff]   ;;  %v8226_v37 = vpop.f32.mrf.mxu0  ;;  %v11411_v18 = vrot.slane %v11410_v22, 4  ;;  %v18611_v57 = vpop.f32.mrf.mxu1 }
 0x366   : > { %15172 = vmatprep.subr.bf16.mxu1 %v15481_v45  ;;  %v18595_v62 = vadd.f32 %v18563_v28, %v18327_v13  ;;  %v18601_v7 = vadd.f32 %v14856_v17, %v18375_v39  ;;  %v11402_v36 = vsel %vm15702_vm6, %v11397_v40, %v11401_v4  ;;  %v11420_v47 = vor.u32 %v11419_v29, %v18583_v49  ;;  %v15480_v39 = vld [vmem:[#allocation2 + $0x3c] sm:$0xff]   ;;  %v15482_v8 = vld [vmem:[#allocation2 + $0x48] sm:$0xff]  }
 0x367   : > { %v11428_v10 = vshrl.u32 %v11316_v26, 16  ;;  %v11392_v13 = vsel %vm15702_vm6, %v11387_v15, %v11391_v27  ;;  %v11425_v28 = vrot.slane %v11423_v50, 5  ;;  %v11431_v11 = vshll.u32 %v11316_v26, 16  ;;  %v14857_v17 = vpop.f32.mrf.mxu0 }
 0x368   : > { %v11437_v55 = vshll.u32 %v11317_v14, 16  ;;  %v13771_v48 = vcombine.low %v11392_v13, %v11402_v36  ;;  %v11421_v21 = vrot.slane %v11420_v47, 4  ;;  %v11441_v41 = vshrl.u32 %v11317_v14, 16  ;;  %v11322_v14 = vld [vmem:[#allocation2 + $0x54] sm:$0xf] }
 0x369   : > { %15071 = vmatmul.mubr.bf16.gmra.mxu0 %v13705_v44  ;;  %15173 = vmatpush3.bf16.msra.mxu1 %v15481_v45  ;;  %v11430_v38 = vrot.slane %v11428_v10, 4  ;;  %v11433_v27 = vrot.slane %v11431_v11, 5  ;;  %v11452_v53 = vshrl.u32 %v11319_v60, 16  ;;  %v11455_v59 = vshll.u32 %v11319_v60, 16  ;;  %v18620_v44 = vpop.f32.mrf.mxu1  ;;  %v18628_v47 = vpop.f32.mrf.mxu0  ;;  %v15483_v11 = vld [vmem:[#allocation2 + $0x54] sm:$0xff]  }
 0x36a   : > { %15138 = vmatprep.mubr.bf16.mxu0 %v13770_v23  ;;  %15174 = vmatprep.subr.bf16.mxu1 %v15484_v30  ;;  %v11439_v51 = vrot.slane %v11437_v55, 5  ;;  %v11416_v45 = vsel %vm15702_vm6, %v11411_v18, %v18583_v49  ;;  %v11443_v5 = vrot.slane %v11441_v41, 4  ;;  %v11447_v56 = vshll.u32 %v11318_v32, 16  ;;  %v11323_v32 = vld [vmem:[#allocation2 + $0x58] sm:$0xf] }
 0x36b   : > { %v11461_v4 = vshll.u32 %v11320_v52, 16  ;;  %v11426_v16 = vsel %vm15702_vm6, %v11421_v21, %v11425_v28  ;;  %v11434_v35 = vor.u32 %v11433_v27, %v11430_v38  ;;  %v11454_v15 = vrot.slane %v11452_v53, 4  ;;  %v11324_v21 = vld [vmem:[#allocation2 + $0x5c] sm:$0x1]  ;;  %v11325_v27 = vld [vmem:[#allocation2 + $0x60] sm:$0xf] }
 0x36c   : > { %15095 = vmatmul.mubr.bf16.gmra.mxu1 %v15480_v39  ;;  %v11457_v22 = vrot.slane %v11455_v59, 5  ;;  %v11444_v26 = vor.u32 %v11443_v5, %v11439_v51  ;;  %v11465_v29 = vshrl.u32 %v11320_v52, 16  ;;  %v11471_v50 = vshll.u32 %v11321_v46, 16  ;;  %v18638_v46 = vpop.f32.mrf.mxu1  ;;  %v15485_v5 = vld [vmem:[#allocation2 + $0x60] sm:$0xff]  }
 0x36d   : > { %15098 = vmatprep.mubr.bf16.mxu1 %v15482_v8  ;;  %15175 = vmatpush3.bf16.msra.mxu1 %v15484_v30  ;;  %v18618_v40 = vrot.slane %v11461_v4, 5  ;;  %v11435_v49 = vrot.slane %v11434_v35, 4  ;;  %v18623_v36 = vadd.f32 %v8226_v37, %v18397_v12  ;;  %v18626_v18 = vadd.f32 %v14857_v17, %v18424_v6  ;;  %v15490_v30 = vld [vmem:[%s19575_s3 + $0x218] sm:$0xff]  }
 0x36e   : > { %v11458_v23 = vor.u32 %v11457_v22, %v11454_v15  ;;  %15176 = vmatprep.subr.bf16.mxu1 %v15487_v63  ;;  %v13772_v10 = vcombine.low %v11416_v45, %v11426_v16  ;;  %v11445_v60 = vrot.slane %v11444_v26, 4  ;;  %v11449_v13 = vrot.slane %v11447_v56, 5  ;;  %v11326_v45 = vld [vmem:[#allocation2 + $0x64] sm:$0xf] }
 0x36f   : > { %v11467_v28 = vrot.slane %v11465_v29, 4  ;;  %v11440_v12 = vsel %vm15702_vm6, %v11435_v49, %v11439_v51  ;;  %v11473_v37 = vrot.slane %v11471_v50, 5  ;;  %v11476_v55 = vshrl.u32 %v11322_v14, 16  ;;  %v11327_v49 = vld [vmem:[#allocation2 + $0x68] sm:$0x1] }
 0x370   : > { %v11479_v6 = vshll.u32 %v11322_v14, 16  ;;  %v11450_v52 = vsel %vm15702_vm6, %v11445_v60, %v11449_v13  ;;  %v11485_v38 = vshll.u32 %v11323_v32, 16  ;;  %v11489_v41 = vshrl.u32 %v11323_v32, 16 }
 0x371   : > { %15139 = vmatmul.mubr.bf16.vlgmr.msra.gmra.mxu0 %v13771_v48  ;;  %v11468_v39 = vor.u32 %v11467_v28, %v18618_v40  ;;  %15177 = vmatpush3.bf16.msra.mxu1 %v15487_v63  ;;  %v13773_v53 = vcombine.low %v11440_v12, %v11450_v52  ;;  %v11459_v59 = vrot.slane %v11458_v23, 4  ;;  %v14860_v51 = vpop.f32.mrf.mxu0  ;;  %v11478_v17 = vrot.slane %v11476_v55, 4  ;;  %v15493_v48 = vld [vmem:[%s19575_s3 + $0x210] sm:$0xff]   ;;  %v15496_v12 = vld [vmem:[%s19575_s3 + $0x208] sm:$0xff]  }
 0x372   : > { %15142 = vmatprep.mubr.bf16.mxu0 %v13772_v10  ;;  %v11481_v8 = vrot.slane %v11479_v6, 5  ;;  %15178 = vmatprep.subr.bf16.mxu1 %v15490_v30  ;;  %v18644_v4 = vadd.f32 %v14860_v51, %v18468_v3  ;;  %v11487_v63 = vrot.slane %v11485_v38, 5  ;;  %v11491_v16 = vrot.slane %v11489_v41, 4  ;;  %v18648_v10 = vpop.f32.mrf.mxu1  ;;  %v11329_v41 = vld [vmem:[#allocation2 + $0x70] sm:$0xf] }
 0x373   : > { %v11469_v56 = vrot.slane %v11468_v39, 4  ;;  %v11495_v15 = vshll.u32 %v11324_v21, 16  ;;  %v11500_v22 = vshrl.u32 %v11325_v27, 16  ;;  %v11503_v26 = vshll.u32 %v11325_v27, 16  ;;  %v8242_v29 = vpop.f32.mrf.mxu0 }
 0x374   : > { %15099 = vmatmul.mubr.bf16.gmra.mxu1 %v15483_v11  ;;  %v11482_v35 = vor.u32 %v11481_v8, %v11478_v17  ;;  %v11492_v14 = vor.u32 %v11491_v16, %v11487_v63  ;;  %v11509_v23 = vshll.u32 %v11326_v45, 16  ;;  %v11513_v32 = vshrl.u32 %v11326_v45, 16  ;;  %v11331_v17 = vld [vmem:[#allocation2 + $0x78] sm:$0xf]  ;;  %v18664_v8 = vpop.f32.mrf.mxu1  ;;  %v15486_v45 = vld [vmem:[#allocation2 + $0x6c] sm:$0xff]  }
 0x375   : > { %15102 = vmatprep.mubr.bf16.mxu1 %v15485_v5  ;;  %v11474_v50 = vsel %vm15702_vm6, %v11469_v56, %v11473_v37  ;;  %15179 = vmatpush3.bf16.msra.mxu1 %v15490_v30  ;;  %v11464_v3 = vsel %vm15702_vm6, %v11459_v59, %v18618_v40  ;;  %v11497_v13 = vrot.slane %v11495_v15, 5  ;;  %v11502_v28 = vrot.slane %v11500_v22, 4  ;;  %v14861_v11 = vpop.f32.mrf.mxu0  ;;  %v11328_v30 = vld [vmem:[#allocation2 + $0x6c] sm:$0xf]  ;;  %v15488_v5 = vld [vmem:[#allocation2 + $0x78] sm:$0xff]  }
 0x376   : > { %v11483_v60 = vrot.slane %v11482_v35, 4  ;;  %15180 = vmatprep.subr.bf16.mxu1 %v15493_v48  ;;  %v11493_v37 = vrot.slane %v11492_v14, 4  ;;  %v11505_v55 = vrot.slane %v11503_v26, 5  ;;  %v11511_v6 = vrot.slane %v11509_v23, 5  ;;  %v11330_v22 = vld [vmem:[#allocation2 + $0x74] sm:$0x1] }
 0x377   : > { %v11515_v52 = vrot.slane %v11513_v32, 4  ;;  %v13774_v39 = vcombine.low %v11464_v3, %v11474_v50  ;;  %v11519_v21 = vshll.u32 %v11327_v49, 16  ;;  %v18657_v38 = vadd.f32 %v8242_v29, %v18486_v61  ;;  %v11332_v23 = vld [vmem:[#allocation2 + $0x7c] sm:$0xf]  ;;  %v18675_v3 = vpop.f32.mrf.mxu0 }
 0x378   : > { %v18660_v40 = vadd.f32 %v14861_v11, %v18508_v25  ;;  %v11498_v27 = vsel %vm15702_vm6, %v11493_v37, %v11497_v13  ;;  %v11506_v59 = vor.u32 %v11505_v55, %v11502_v28  ;;  %v11488_v61 = vsel %vm15702_vm6, %v11483_v60, %v11487_v63  ;;  %v11333_v28 = vld [vmem:[#allocation2 + $0x80] sm:$0x1]  ;;  %v11334_v11 = vld [vmem:[#allocation2 + $0x84] sm:$0xf]  ;;  %v18677_v37 = vpop.f32.mrf.mxu1 }
 0x379   : > { %15143 = vmatmul.mubr.bf16.gmra.mxu0 %v13773_v53  ;;  %v11516_v51 = vor.u32 %v11515_v52, %v11511_v6  ;;  %v11521_v56 = vrot.slane %v11519_v21, 5  ;;  %v11524_v16 = vshrl.u32 %v11328_v30, 16  ;;  %v11527_v25 = vshll.u32 %v11328_v30, 16  ;;  %15181 = vmatpush3.bf16.msra.mxu1 %v15493_v48  ;;  %v15499_v53 = vld [vmem:[%s19575_s3 + $0x200] sm:$0xff]  }
 0x37a   : > { %15146 = vmatprep.mubr.bf16.mxu0 %v13774_v39  ;;  %v11507_v35 = vrot.slane %v11506_v59, 4  ;;  %v11533_v26 = vshll.u32 %v11329_v41, 16  ;;  %v11537_v29 = vshrl.u32 %v11329_v41, 16  ;;  %15182 = vmatprep.subr.bf16.mxu1 %v15496_v12  ;;  %v13775_v50 = vcombine.low %v11488_v61, %v11498_v27 }
 0x37b   : > { %v11517_v15 = vrot.slane %v11516_v51, 4  ;;  %v11526_v14 = vrot.slane %v11524_v16, 4  ;;  %v11529_v49 = vrot.slane %v11527_v25, 5  ;;  %v11548_v63 = vshrl.u32 %v11331_v17, 16 }
 0x37c   : > { %15103 = vmatmul.mubr.bf16.gmra.mxu1 %v15486_v45  ;;  %v11512_v48 = vsel %vm15702_vm6, %v11507_v35, %v11511_v6  ;;  %v11535_v60 = vrot.slane %v11533_v26, 5  ;;  %v11539_v13 = vrot.slane %v11537_v29, 4  ;;  %v11543_v30 = vshll.u32 %v11330_v22, 16  ;;  %v18679_v26 = vpop.f32.mrf.mxu1 }
 0x37d   : > { %15106 = vmatprep.mubr.bf16.mxu1 %v15488_v5  ;;  %v11522_v32 = vsel %vm15702_vm6, %v11517_v15, %v11521_v56  ;;  %v11530_v52 = vor.u32 %v11529_v49, %v11526_v14  ;;  %v11550_v39 = vrot.slane %v11548_v63, 4  ;;  %15183 = vmatpush3.bf16.msra.mxu1 %v15496_v12  ;;  %v11551_v41 = vshll.u32 %v11331_v17, 16  ;;  %v11335_v15 = vld [vmem:[#allocation2 + $0x88] sm:$0xf]  ;;  %v11336_v14 = vld [vmem:[#allocation2 + $0x8c] sm:$0x1] }
 0x37e   : > { %v13776_v55 = vcombine.low %v11512_v48, %v11522_v32  ;;  %v11540_v21 = vor.u32 %v11539_v13, %v11535_v60  ;;  %v11557_v27 = vshll.u32 %v11332_v23, 16  ;;  %v11561_v6 = vshrl.u32 %v11332_v23, 16  ;;  %15184 = vmatprep.subr.bf16.mxu1 %v15499_v53  ;;  %v15489_v12 = vld [vmem:[#allocation2 + $0x84] sm:$0xff]  }
 0x37f   : > { %v11531_v59 = vrot.slane %v11530_v52, 4  ;;  %v11567_v51 = vshll.u32 %v11333_v28, 16  ;;  %v11572_v45 = vshrl.u32 %v11334_v11, 16  ;;  %v11575_v5 = vshll.u32 %v11334_v11, 16  ;;  %v11337_v28 = vld [vmem:[#allocation2 + $0x90] sm:$0xf] }
 0x380   : > { %v11541_v56 = vrot.slane %v11540_v21, 4  ;;  %v11553_v16 = vrot.slane %v11551_v41, 5  ;;  %v11559_v25 = vrot.slane %v11557_v27, 5  ;;  %v11563_v35 = vrot.slane %v11561_v6, 4  ;;  %v18691_v41 = vpop.f32.mrf.mxu1 }
 0x381   : > { %15147 = vmatmul.mubr.bf16.gmra.mxu0 %v13775_v50  ;;  %v14864_v61 = vpop.f32.mrf.mxu0  ;;  %v11536_v22 = vsel %vm15702_vm6, %v11531_v59, %v11535_v60  ;;  %v11545_v29 = vrot.slane %v11543_v30, 5  ;;  %v11574_v49 = vrot.slane %v11572_v45, 4  ;;  %15185 = vmatpush3.bf16.msra.mxu1 %v15499_v53  ;;  %v15491_v50 = vld [vmem:[#allocation2 + $0x90] sm:$0xff]   ;;  %v11569_v48 = vrot.slane %v11567_v51, 5 }
 0x382   : > { %15150 = vmatprep.mubr.bf16.mxu0 %v13776_v55  ;;  %v18682_v17 = vadd.f32 %v14864_v61, %v18530_v58  ;;  %v11554_v23 = vor.u32 %v11553_v16, %v11550_v39  ;;  %v11564_v63 = vor.u32 %v11563_v35, %v11559_v25  ;;  %v11577_v13 = vrot.slane %v11575_v5, 5  ;;  %v11338_v51 = vld [vmem:[#allocation2 + $0x94] sm:$0xf]  ;;  %v11339_v16 = vld [vmem:[#allocation2 + $0x98] sm:$0x1] }
 0x383   : > { %v8258_v32 = vpop.f32.mrf.mxu0  ;;  %v11546_v11 = vsel %vm15702_vm6, %v11541_v56, %v11545_v29  ;;  %v11581_v55 = vshll.u32 %v11335_v15, 16  ;;  %v11585_v60 = vshrl.u32 %v11335_v15, 16  ;;  %v11591_v39 = vshll.u32 %v11336_v14, 16  ;;  %v11340_v35 = vld [vmem:[#allocation2 + $0x9c] sm:$0xf] }
 0x384   : > { %15107 = vmatmul.mubr.bf16.gmra.mxu1 %v15489_v12  ;;  %v18689_v58 = vadd.f32 %v8258_v32, %v18538_v0  ;;  %v11555_v52 = vrot.slane %v11554_v23, 4  ;;  %v11565_v30 = vrot.slane %v11564_v63, 4  ;;  %v11578_v21 = vor.u32 %v11577_v13, %v11574_v49  ;;  %v11341_v49 = vld [vmem:[#allocation2 + $0xa0] sm:$0xf]  ;;  %v18704_v63 = vpop.f32.mrf.mxu1  ;;  %v15494_v32 = vld [vmem:[#allocation2 + $0xa8] sm:$0xff]  }
 0x385   : > { %15110 = vmatprep.mubr.bf16.mxu1 %v15491_v50  ;;  %v14865_v53 = vpop.f32.mrf.mxu0  ;;  %v11583_v6 = vrot.slane %v11581_v55, 5  ;;  %v11587_v59 = vrot.slane %v11585_v60, 4  ;;  %v11596_v45 = vshrl.u32 %v11337_v28, 16  ;;  %v13777_v5 = vcombine.low %v11536_v22, %v11546_v11 }
 0x386   : > { %v18694_v27 = vadd.f32 %v14865_v53, %v18556_v31  ;;  %v11560_v0 = vsel %vm15702_vm6, %v11555_v52, %v11559_v25  ;;  %v11570_v61 = vsel %vm15702_vm6, %v11565_v30, %v11569_v48  ;;  %v11579_v56 = vrot.slane %v11578_v21, 4  ;;  %v15492_v48 = vld [vmem:[#allocation2 + $0x9c] sm:$0xff]   ;;  %v11342_v21 = vld [vmem:[#allocation2 + $0xa4] sm:$0x1] }
 0x387   : > { %v13778_v15 = vcombine.low %v11560_v0, %v11570_v61  ;;  %v18700_v12 = vpop.f32.mrf.mxu0  ;;  %v11588_v29 = vor.u32 %v11587_v59, %v11583_v6  ;;  %v11593_v31 = vrot.slane %v11591_v39, 5  ;;  %v11598_v14 = vrot.slane %v11596_v45, 4 }
 0x388   : > { %v11584_v22 = vsel %vm15702_vm6, %v11579_v56, %v11583_v6  ;;  %v11599_v50 = vshll.u32 %v11337_v28, 16  ;;  %v11605_v23 = vshll.u32 %v11338_v51, 16  ;;  %v11609_v25 = vshrl.u32 %v11338_v51, 16 }
 0x389   : > { %15151 = vmatmul.mubr.bf16.gmra.mxu0 %v13777_v5  ;;  %v11589_v13 = vrot.slane %v11588_v29, 4  ;;  %v11615_v11 = vshll.u32 %v11339_v16, 16  ;;  %v11620_v55 = vshrl.u32 %v11340_v35, 16  ;;  %v11623_v60 = vshll.u32 %v11340_v35, 16  ;;  %v11343_v5 = vld [vmem:[#allocation2 + $0xa8] sm:$0xf]  ;;  %v18711_v35 = vpop.f32.mrf.mxu1 }
 0x38a   : > { %15154 = vmatprep.mubr.bf16.mxu0 %v13778_v15  ;;  %v11601_v52 = vrot.slane %v11599_v50, 5  ;;  %v11607_v30 = vrot.slane %v11605_v23, 5  ;;  %v11611_v53 = vrot.slane %v11609_v25, 4  ;;  %v11629_v39 = vshll.u32 %v11341_v49, 16 }
 0x38b   : > { %v11594_v28 = vsel %vm15702_vm6, %v11589_v13, %v11593_v31  ;;  %v11617_v6 = vrot.slane %v11615_v11, 5  ;;  %v11622_v51 = vrot.slane %v11620_v55, 4  ;;  %v11625_v45 = vrot.slane %v11623_v60, 5  ;;  %v11344_v11 = vld [vmem:[#allocation2 + $0xac] sm:$0xf] }
 0x38c   : > { %15111 = vmatmul.mubr.bf16.gmra.mxu1 %v15492_v48  ;;  %v14868_v59 = vpop.f32.mrf.mxu0  ;;  %v13779_v61 = vcombine.low %v11584_v22, %v11594_v28  ;;  %v11602_v56 = vor.u32 %v11601_v52, %v11598_v14  ;;  %v11612_v16 = vor.u32 %v11611_v53, %v11607_v30  ;;  %v11631_v50 = vrot.slane %v11629_v39, 5  ;;  %v11345_v60 = vld [vmem:[#allocation2 + $0xb0] sm:$0x1]  ;;  %v18727_v39 = vpop.f32.mrf.mxu1  ;;  %v15495_v28 = vld [vmem:[#allocation2 + $0xb4] sm:$0xff]  }
 0x38d   : > { %v18709_v0 = vadd.f32 %v14868_v59, %v18572_v19  ;;  %15114 = vmatprep.mubr.bf16.mxu1 %v15494_v32  ;;  %v11626_v29 = vor.u32 %v11625_v45, %v11622_v51  ;;  %v11633_v23 = vshrl.u32 %v11341_v49, 16  ;;  %v11639_v25 = vshll.u32 %v11342_v21, 16 }
 0x38e   : > { %v8274_v15 = vpop.f32.mrf.mxu0  ;;  %v11603_v48 = vrot.slane %v11602_v56, 4  ;;  %v11613_v31 = vrot.slane %v11612_v16, 4  ;;  %v11644_v55 = vshrl.u32 %v11343_v5, 16  ;;  %v18718_v19 = vadd.f32 %v18570_v54, %v18350_v33  ;;  %v11346_v33 = vld [vmem:[#allocation2 + $0xb4] sm:$0xf] }
 0x38f   : > { %v18714_v13 = vadd.f32 %v8274_v15, %v18590_v42  ;;  %v11627_v22 = vrot.slane %v11626_v29, 4  ;;  %v11635_v32 = vrot.slane %v11633_v23, 4  ;;  %v11647_v52 = vshll.u32 %v11343_v5, 16  ;;  %v11347_v23 = vld [vmem:[#allocation2 + $0xb8] sm:$0xf] }
 0x390   : > { %v14869_v14 = vpop.f32.mrf.mxu0  ;;  %v11608_v49 = vsel %vm15702_vm6, %v11603_v48, %v11607_v30  ;;  %v11618_v53 = vsel %vm15702_vm6, %v11613_v31, %v11617_v6  ;;  %v11646_v21 = vrot.slane %v11644_v55, 4  ;;  %v11641_v45 = vrot.slane %v11639_v25, 5 }
 0x391   : > { %15155 = vmatmul.mubr.bf16.gmra.mxu0 %v13779_v61  ;;  %v18725_v42 = vadd.f32 %v14869_v14, %v18611_v57  ;;  %v13780_v54 = vcombine.low %v11608_v49, %v11618_v53  ;;  %v11636_v51 = vor.u32 %v11635_v32, %v11631_v50  ;;  %v11649_v5 = vrot.slane %v11647_v52, 5  ;;  %v15497_v61 = vld [vmem:[#allocation2 + $0xc0] sm:$0xff]   ;;  %v11348_v52 = vld [vmem:[#allocation2 + $0xbc] sm:$0x1] }
 0x392   : > { %v18729_v59 = vpop.f32.mrf.mxu0  ;;  %v11632_v30 = vsel %vm15702_vm6, %v11627_v22, %v11631_v50  ;;  %v11653_v56 = vshll.u32 %v11344_v11, 16  ;;  %v11657_v6 = vshrl.u32 %v11344_v11, 16  ;;  %v11663_v16 = vshll.u32 %v11345_v60, 16  ;;  %v18736_v50 = vpop.f32.mrf.mxu1 }
 0x393   : > { %15158 = vmatprep.mubr.bf16.mxu0 %v13780_v54  ;;  %v11637_v15 = vrot.slane %v11636_v51, 4  ;;  %v11650_v29 = vor.u32 %v11649_v5, %v11646_v21  ;;  %v11668_v48 = vshrl.u32 %v11346_v33, 16  ;;  %v11671_v31 = vshll.u32 %v11346_v33, 16  ;;  %v12125_v21 = vld [vmem:[#allocation2 + $0x18] sm:$0xe] }
 0x394   : > { %15115 = vmatmul.mubr.bf16.gmra.mxu1 %v15495_v28  ;;  %v14872_v57 = vpop.f32.mrf.mxu0  ;;  %v11655_v25 = vrot.slane %v11653_v56, 5  ;;  %v11659_v14 = vrot.slane %v11657_v6, 4  ;;  %v11665_v32 = vrot.slane %v11663_v16, 5  ;;  %v15498_v28 = vld [vmem:[#allocation2 + $0xcc] sm:$0xff]   ;;  %v11677_v51 = vshll.u32 %v11347_v23, 16 }
 0x395   : > { %v18734_v55 = vadd.f32 %v14872_v57, %v18638_v46  ;;  %15118 = vmatprep.mubr.bf16.mxu1 %v15497_v61  ;;  %v11642_v11 = vsel %vm15702_vm6, %v11637_v15, %v11641_v45  ;;  %v11651_v22 = vrot.slane %v11650_v29, 4  ;;  %v11670_v49 = vrot.slane %v11668_v48, 4  ;;  %v12126_v5 = vld [vmem:[#allocation2 + $0x1c] sm:$0xf]  ;;  %v12127_v57 = vld [vmem:[#allocation2 + $0x20] sm:$0x1] }
 0x396   : > { %v8290_v60 = vpop.f32.mrf.mxu0  ;;  %v11673_v53 = vrot.slane %v11671_v31, 5  ;;  %v13781_v54 = vcombine.low %v11632_v30, %v11642_v11  ;;  %v11660_v33 = vor.u32 %v11659_v14, %v11655_v25  ;;  %v11681_v16 = vshrl.u32 %v11347_v23, 16  ;;  %v11349_v15 = vld [vmem:[#allocation2 + $0xc0] sm:$0xf]  ;;  %v18748_v31 = vpop.f32.mrf.mxu1 }
 0x397   : > { %v18741_v46 = vadd.f32 %v8290_v60, %v18648_v10  ;;  %v11656_v61 = vsel %vm15702_vm6, %v11651_v22, %v11655_v25  ;;  %v11687_v45 = vshll.u32 %v11348_v52, 16  ;;  %v11679_v48 = vrot.slane %v11677_v51, 5  ;;  %v11350_v22 = vld [vmem:[#allocation2 + $0xc4] sm:$0xf] }
 0x398   : > { %v14873_v56 = vpop.f32.mrf.mxu0  ;;  %v11674_v6 = vor.u32 %v11673_v53, %v11670_v49  ;;  %v11661_v29 = vrot.slane %v11660_v33, 4  ;;  %v13794_v10 = vrot.slane %v12125_v21, 9  ;;  %v11683_v60 = vrot.slane %v11681_v16, 4  ;;  %v11351_v53 = vld [vmem:[#allocation2 + $0xc8] sm:$0x1] }
 0x399   : > { %19747 = vst [vmem:[#allocation13_spill] sm:$0xff] %v18741_v46  ;;  %15159 = vmatmul.mubr.bf16.gmra.mxu0 %v13781_v54  ;;  %v18746_v30 = vadd.f32 %v14873_v56, %v18664_v8  ;;  %v11689_v46 = vrot.slane %v11687_v45, 5  ;;  %v12223_v25 = vrot.slane %v12126_v5, 5  ;;  %v12226_v49 = vrot.slane %v12127_v57, 5  ;;  %v12128_v5 = vld [vmem:[#allocation2 + $0x24] sm:$0xe] }
 0x39a   : > { %v8293_v14 = vpop.f32.mrf.mxu0  ;;  %v11675_v11 = vrot.slane %v11674_v6, 4  ;;  %v11666_v23 = vsel %vm15702_vm6, %v11661_v29, %v11665_v32  ;;  %v11692_v8 = vshrl.u32 %v11349_v15, 16  ;;  %v11684_v33 = vor.u32 %v11683_v60, %v11679_v48 }
 0x39b   : > { %v18753_v52 = vadd.f32 %v8293_v14, %v18677_v37  ;;  %v13782_v54 = vcombine.low %v11656_v61, %v11666_v23  ;;  %v12224_v51 = vsel %vm16069_vm13, %v13794_v10, %v12223_v25  ;;  %v12225_v6 = vrot.slane %v12223_v25, 4  ;;  %v18759_v37 = vpop.f32.mrf.mxu1  ;;  %v12129_v14 = vld [vmem:[#allocation2 + $0x28] sm:$0xf]  ;;  %v12130_v25 = vld [vmem:[#allocation2 + $0x2c] sm:$0x1] }
 0x39c   : > { %15119 = vmatmul.mubr.bf16.gmra.mxu1 %v15498_v28  ;;  %v11680_v21 = vsel %vm15702_vm6, %v11675_v11, %v11679_v48  ;;  %v11694_v16 = vrot.slane %v11692_v8, 4  ;;  %v11695_v32 = vshll.u32 %v11349_v15, 16  ;;  %v11701_v45 = vshll.u32 %v11350_v22, 16 }
 0x39d   : > { %19748 = vst [vmem:[#allocation14_spill] sm:$0xff] %v18753_v52  ;;  %v14876_v56 = vpop.f32.mrf.mxu0  ;;  %15162 = vmatprep.mubr.bf16.mxu0 %v13782_v54  ;;  %v11685_v28 = vrot.slane %v11684_v33, 4  ;;  %v11705_v61 = vshrl.u32 %v11350_v22, 16  ;;  %v11711_v29 = vshll.u32 %v11351_v53, 16  ;;  %v12227_v48 = vsel %vm16069_vm13, %v12225_v6, %v12226_v49  ;;  %v11353_v6 = vld [vmem:[#allocation2 + $0xd0] sm:$0xf] }
 0x39e   : > { %v18762_v57 = vadd.f32 %v14876_v56, %v18679_v26  ;;  %v11697_v10 = vrot.slane %v11695_v32, 5  ;;  %v11703_v11 = vrot.slane %v11701_v45, 5  ;;  %v13795_v23 = vrot.slane %v12128_v5, 9  ;;  %v11352_v26 = vld [vmem:[#allocation2 + $0xcc] sm:$0xf] }
 0x39f   : > { %v8306_v60 = vpop.f32.mrf.mxu0  ;;  %v11690_v15 = vsel %vm15702_vm6, %v11685_v28, %v11689_v46  ;;  %v13826_v8 = vcombine.low %v12224_v51, %v12227_v48  ;;  %v11707_v54 = vrot.slane %v11705_v61, 4  ;;  %v11713_v52 = vrot.slane %v11711_v29, 5  ;;  %v11354_v48 = vld [vmem:[#allocation2 + $0xd4] sm:$0x1] }
 0x3a0   : > { %19749 = vst [vmem:[#allocation22_spill] sm:$0xff] %v18762_v57  ;;  %v13783_v56 = vcombine.low %v11680_v21, %v11690_v15  ;;  %v11698_v33 = vor.u32 %v11697_v10, %v11694_v16  ;;  %v18769_v22 = vadd.f32 %v8306_v60, %v18691_v41  ;;  %v12230_v49 = vrot.slane %v12129_v14, 5  ;;  %v12131_v15 = vld [vmem:[#allocation2 + $0x30] sm:$0xe] }
 0x3a1   : > { %v14877_v53 = vpop.f32.mrf.mxu0  ;;  %v14900_v57 = vpop.f32.mrf.mxu1  ;;  %15186 = vmatprep.mubr.bf16.mxu1 %v13826_v8  ;;  %v11708_v32 = vor.u32 %v11707_v54, %v11703_v11  ;;  %v12233_v51 = vrot.slane %v12130_v25, 5  ;;  %v11716_v28 = vshrl.u32 %v11352_v26, 16  ;;  %v11725_v10 = vshll.u32 %v11353_v6, 16 }
 0x3a2   : > { %v18772_v5 = vadd.f32 %v14877_v53, %v18704_v63  ;;  %v18775_v46 = vadd.f32 %v14900_v57, %v18566_v43  ;;  %15163 = vmatmul.mubr.bf16.gmra.mxu0 %v13783_v56  ;;  %v11699_v45 = vrot.slane %v11698_v33, 4  ;;  %v12231_v41 = vsel %vm16069_vm13, %v13795_v23, %v12230_v49  ;;  %v12132_v23 = vld [vmem:[#allocation2 + $0x34] sm:$0xf] }
 0x3a3   : > { %v8309_v21 = vpop.f32.mrf.mxu0  ;;  %v12232_v16 = vrot.slane %v12230_v49, 4  ;;  %v8804_v61 = vpop.f32.mrf.mxu1  ;;  %v11709_v29 = vrot.slane %v11708_v32, 4  ;;  %v11719_v63 = vshll.u32 %v11352_v26, 16  ;;  %v11718_v60 = vrot.slane %v11716_v28, 4  ;;  %v12133_v32 = vld [vmem:[#allocation2 + $0x38] sm:$0x1] }
 0x3a4   : > { %v18780_v14 = vadd.f32 %v8309_v21, %v18711_v35  ;;  %v11704_v43 = vsel %vm15702_vm6, %v11699_v45, %v11703_v11  ;;  %v11729_v25 = vshrl.u32 %v11353_v6, 16  ;;  %v11727_v33 = vrot.slane %v11725_v10, 5 }
 0x3a5   : > { %v12234_v57 = vsel %vm16069_vm13, %v12232_v16, %v12233_v51  ;;  %v14901_v8 = vpop.f32.mrf.mxu1  ;;  %v11714_v54 = vsel %vm15702_vm6, %v11709_v29, %v11713_v52  ;;  %v11721_v35 = vrot.slane %v11719_v63, 5  ;;  %v18790_v26 = vadd.f32 %v18628_v47, %v18452_v20  ;;  %v12135_v52 = vld [vmem:[#allocation2 + $0x40] sm:$0xf]  ;;  %v12134_v63 = vld [vmem:[#allocation2 + $0x3c] sm:$0xe] }
 0x3a6   : > { %v13827_v56 = vcombine.low %v12231_v41, %v12234_v57  ;;  %v13784_v53 = vcombine.low %v11704_v43, %v11714_v54  ;;  %v11731_v11 = vrot.slane %v11729_v25, 4  ;;  %v11735_v49 = vshll.u32 %v11354_v48, 16 }
 0x3a7   : > { %v8807_v51 = vpop.f32.mrf.mxu1  ;;  %v11722_v6 = vor.u32 %v11721_v35, %v11718_v60  ;;  %v13796_v45 = vrot.slane %v12131_v15, 9  ;;  %v12237_v21 = vrot.slane %v12132_v23, 5  ;;  %v18793_v16 = vadd.f32 %v8804_v61, %v18588_v34  ;;  %v12136_v61 = vld [vmem:[#allocation2 + $0x44] sm:$0x1] }
 0x3a8   : > { %15187 = vmatmul.mubr.bf16.vlgmr.msra.gmra.mxu1 %v13827_v56  ;;  %15166 = vmatprep.mubr.bf16.mxu0 %v13784_v53  ;;  %v11732_v28 = vor.u32 %v11731_v11, %v11727_v33  ;;  %v11737_v29 = vrot.slane %v11735_v49, 5  ;;  %v18796_v20 = vadd.f32 %v14901_v8, %v18595_v62  ;;  %v18799_v47 = vadd.f32 %v8807_v51, %v18718_v19  ;;  %v12138_v19 = vld [vmem:[#allocation2 + $0x4c] sm:$0xf]  ;;  %v12137_v53 = vld [vmem:[#allocation2 + $0x48] sm:$0xe] }
 0x3a9   : > { %v14880_v41 = vpop.f32.mrf.mxu0  ;;  %v14904_v48 = vpop.f32.mrf.mxu1  ;;  %v11723_v43 = vrot.slane %v11722_v6, 4  ;;  %v12239_v57 = vrot.slane %v12237_v21, 4  ;;  %v12240_v34 = vrot.slane %v12133_v32, 5  ;;  %v12238_v25 = vsel %vm16069_vm13, %v13796_v45, %v12237_v21  ;;  %v12139_v6 = vld [vmem:[#allocation2 + $0x50] sm:$0x1] }
 0x3aa   : > { %v18802_v10 = vadd.f32 %v14880_v41, %v18727_v39  ;;  %v11733_v60 = vrot.slane %v11732_v28, 4  ;;  %v18807_v62 = vadd.f32 %v14904_v48, %v18601_v7  ;;  %v12244_v23 = vrot.slane %v12135_v52, 5  ;;  %v12141_v41 = vld [vmem:[#allocation2 + $0x58] sm:$0xf] }
 0x3ab   : > { %v8322_v15 = vpop.f32.mrf.mxu0  ;;  %v8820_v8 = vpop.f32.mrf.mxu1  ;;  %v11728_v54 = vsel %vm15702_vm6, %v11723_v43, %v11727_v33  ;;  %v12241_v39 = vsel %vm16069_vm13, %v12239_v57, %v12240_v34  ;;  %v13797_v35 = vrot.slane %v12134_v63, 9  ;;  %v12247_v51 = vrot.slane %v12136_v61, 5 }
 0x3ac   : > { %v18814_v56 = vadd.f32 %v8322_v15, %v18736_v50  ;;  %v11738_v11 = vsel %vm15702_vm6, %v11733_v60, %v11737_v29  ;;  %v13828_v49 = vcombine.low %v12238_v25, %v12241_v39  ;;  %v12246_v32 = vrot.slane %v12244_v23, 4  ;;  %v12142_v60 = vld [vmem:[#allocation2 + $0x5c] sm:$0x1]  ;;  %v12144_v25 = vld [vmem:[#allocation2 + $0x64] sm:$0xf] }
 0x3ad   : > { %v14881_v7 = vpop.f32.mrf.mxu0  ;;  %v14905_v45 = vpop.f32.mrf.mxu1  ;;  %v13785_v21 = vcombine.low %v11728_v54, %v11738_v11  ;;  %v12245_v52 = vsel %vm16069_vm13, %v13797_v35, %v12244_v23  ;;  %v12251_v50 = vrot.slane %v12138_v19, 5  ;;  %v13798_v29 = vrot.slane %v12137_v53, 9  ;;  %v12143_v54 = vld [vmem:[#allocation2 + $0x60] sm:$0xe]  ;;  %v12145_v53 = vld [vmem:[#allocation2 + $0x68] sm:$0x1] }
 0x3ae   : > { %v18819_v33 = vadd.f32 %v14881_v7, %v18748_v31  ;;  %15190 = vmatprep.mubr.bf16.mxu1 %v13828_v49  ;;  %v12248_v9 = vsel %vm16069_vm13, %v12246_v32, %v12247_v51  ;;  %v18826_v48 = vadd.f32 %v8820_v8, %v18623_v36  ;;  %v18829_v63 = vadd.f32 %v14905_v45, %v18626_v18  ;;  %v12140_v36 = vld [vmem:[#allocation2 + $0x54] sm:$0xe] }
 0x3af   : > { %v8325_v28 = vpop.f32.mrf.mxu0  ;;  %v8823_v43 = vpop.f32.mrf.mxu1  ;;  %15167 = vmatmul.mubr.bf16.gmra.mxu0 %v13785_v21  ;;  %v13829_v57 = vcombine.low %v12245_v52, %v12248_v9  ;;  %v12253_v34 = vrot.slane %v12251_v50, 4  ;;  %v12254_v61 = vrot.slane %v12139_v6, 5  ;;  %v12258_v8 = vrot.slane %v12141_v41, 5 }
 0x3b0   : > { %v18832_v31 = vadd.f32 %v8325_v28, %v18759_v37  ;;  %v18835_v23 = vadd.f32 %v8823_v43, %v18790_v26  ;;  %v12252_v37 = vsel %vm16069_vm13, %v13798_v29, %v12251_v50  ;;  %v18847_v26 = vld [vmem:[#allocation2 + $0x70] sm:$0xf]  ;;  %v12261_v32 = vrot.slane %v12142_v60, 5  ;;  %v12150_v43 = vld [vmem:[#allocation2 + $0x7c] sm:$0xf] }
 0x3b1   : > { %v14948_v15 = vpop.f32.mrf.mxu0  ;;  %v14908_v19 = vpop.f32.mrf.mxu1  ;;  %15191 = vmatmul.mubr.bf16.gmra.mxu1 %v13829_v57  ;;  %v12255_v39 = vsel %vm16069_vm13, %v12253_v34, %v12254_v61  ;;  %v12260_v7 = vrot.slane %v12258_v8, 4  ;;  %v12265_v51 = vrot.slane %v12144_v25, 5  ;;  %v13799_v45 = vrot.slane %v12140_v36, 9 }
 0x3b2   : > { %v18838_v18 = vadd.f32 %v14948_v15, %v18775_v46  ;;  %v18845_v35 = vadd.f32 %v14908_v19, %v18644_v4  ;;  %v13830_v11 = vcombine.low %v12252_v37, %v12255_v39  ;;  %v13800_v21 = vrot.slane %v12143_v54, 9 }
 0x3b3   : > { %v9254_v49 = vpop.f32.mrf.mxu0  ;;  %v8836_v6 = vpop.f32.mrf.mxu1  ;;  %v12262_v50 = vsel %vm16069_vm13, %v12260_v7, %v12261_v32  ;;  %v12267_v41 = vrot.slane %v12265_v51, 4  ;;  %v12268_v28 = vrot.slane %v12145_v53, 5  ;;  %v12272_v29 = vrot.slane %v18847_v26, 5 }
 0x3b4   : > { %v18850_v46 = vadd.f32 %v9254_v49, %v18793_v16  ;;  %v18853_v52 = vadd.f32 %v8836_v6, %v18657_v38  ;;  %15194 = vmatprep.mubr.bf16.mxu1 %v13830_v11  ;;  %v8346_v16 = vadd.f32 %v18675_v3, %v18520_v2  ;;  %v12259_v61 = vsel %vm16069_vm13, %v13799_v45, %v12258_v8  ;;  %v12151_v8 = vld [vmem:[#allocation2 + $0x80] sm:$0x1]  ;;  %v12146_v11 = vld [vmem:[#allocation2 + $0x6c] sm:$0xe]  ;;  %v18883_v49 = vld [vmem:[#allocation2 + $0x88] sm:$0xf] }
 0x3b5   : > { %v14949_v4 = vpop.f32.mrf.mxu0  ;;  %v14909_v9 = vpop.f32.mrf.mxu1  ;;  %v12266_v60 = vsel %vm16069_vm13, %v13800_v21, %v12265_v51  ;;  %v12269_v25 = vsel %vm16069_vm13, %v12267_v41, %v12268_v28  ;;  %v13831_v2 = vcombine.low %v12259_v61, %v12262_v50  ;;  %v12274_v39 = vrot.slane %v12272_v29, 4  ;;  %v12156_v45 = vld [vmem:[#allocation2 + $0x94] sm:$0xf] }
 0x3b6   : > { %v18861_v57 = vadd.f32 %v14949_v4, %v18796_v20  ;;  %v18864_v38 = vadd.f32 %v14909_v9, %v18660_v40  ;;  %v12148_v20 = vld [vmem:[#allocation2 + $0x74] sm:$0x1]  ;;  %v12279_v40 = vrot.slane %v12150_v43, 5  ;;  %v13832_v54 = vcombine.low %v12266_v60, %v12269_v25 }
 0x3b7   : > { %v9257_v34 = vpop.f32.mrf.mxu0  ;;  %v8839_v15 = vpop.f32.mrf.mxu1  ;;  %v12275_v32 = vrot.slane %v12148_v20, 5  ;;  %v8350_v21 = vadd.f32 %v18700_v12, %v18568_v24  ;;  %v13801_v41 = vrot.slane %v12146_v11, 9  ;;  %v12154_v20 = vld [vmem:[#allocation2 + $0x8c] sm:$0x1]  ;;  %v12155_v11 = vld [vmem:[#allocation2 + $0x90] sm:$0xe] }
 0x3b8   : > { %v18873_v19 = vadd.f32 %v9257_v34, %v18799_v47  ;;  %v18875_v3 = vadd.f32 %v8839_v15, %v8346_v16  ;;  %v12149_v47 = vld [vmem:[#allocation2 + $0x78] sm:$0xe]  ;;  %v12281_v51 = vrot.slane %v12279_v40, 4  ;;  %v12286_v16 = vrot.slane %v18883_v49, 5  ;;  %v12159_v49 = vld [vmem:[#allocation2 + $0xa0] sm:$0xf] }
 0x3b9   : > { %v14952_v36 = vpop.f32.mrf.mxu0  ;;  %v14912_v37 = vpop.f32.mrf.mxu1  ;;  %15195 = vmatmul.mubr.bf16.gmra.mxu1 %v13831_v2  ;;  %v12276_v28 = vsel %vm16069_vm13, %v12274_v39, %v12275_v32  ;;  %v13802_v9 = vrot.slane %v12149_v47, 9  ;;  %v12273_v61 = vsel %vm16069_vm13, %v13801_v41, %v12272_v29  ;;  %v13804_v41 = vrot.slane %v12155_v11, 9  ;;  %v12165_v11 = vld [vmem:[#allocation2 + $0xb8] sm:$0xf] }
 0x3ba   : > { %v18878_v53 = vadd.f32 %v14952_v36, %v18807_v62  ;;  %v18881_v26 = vadd.f32 %v14912_v37, %v18682_v17  ;;  %15198 = vmatprep.mubr.bf16.mxu1 %v13832_v54  ;;  %v12282_v62 = vrot.slane %v12151_v8, 5  ;;  %v13833_v15 = vcombine.low %v12273_v61, %v12276_v28  ;;  %v12152_v37 = vld [vmem:[#allocation2 + $0x84] sm:$0xe]  ;;  %v12157_v8 = vld [vmem:[#allocation2 + $0x98] sm:$0x1] }
 0x3bb   : > { %v9270_v7 = vpop.f32.mrf.mxu0  ;;  %v8852_v6 = vpop.f32.mrf.mxu1  ;;  %v12288_v39 = vrot.slane %v12286_v16, 4 }
 0x3bc   : > { %v18888_v4 = vadd.f32 %v9270_v7, %v18826_v48  ;;  %v18891_v17 = vadd.f32 %v8852_v6, %v18689_v58  ;;  %v12283_v24 = vsel %vm16069_vm13, %v12281_v51, %v12282_v62  ;;  %v12293_v58 = vrot.slane %v12156_v45, 5  ;;  %v12162_v51 = vld [vmem:[#allocation2 + $0xac] sm:$0xf] }
 0x3bd   : > { %v14953_v50 = vpop.f32.mrf.mxu0  ;;  %v14913_v43 = vpop.f32.mrf.mxu1  ;;  %v12289_v7 = vrot.slane %v12154_v20, 5  ;;  %v8354_v6 = vadd.f32 %v18729_v59, %v18620_v44  ;;  %v13803_v62 = vrot.slane %v12152_v37, 9  ;;  %v12163_v37 = vld [vmem:[#allocation2 + $0xb0] sm:$0x1] }
 0x3be   : > { %v18897_v34 = vadd.f32 %v14953_v50, %v18829_v63  ;;  %v18902_v12 = vadd.f32 %v14913_v43, %v18694_v27  ;;  %v12280_v63 = vsel %vm16069_vm13, %v13802_v9, %v12279_v40  ;;  %v12295_v47 = vrot.slane %v12293_v58, 4 }
 0x3bf   : > { %v9273_v48 = vpop.f32.mrf.mxu0  ;;  %v8855_v60 = vpop.f32.mrf.mxu1  ;;  %v13834_v54 = vcombine.low %v12280_v63, %v12283_v24  ;;  %v12290_v50 = vsel %vm16069_vm13, %v12288_v39, %v12289_v7  ;;  %v12300_v9 = vrot.slane %v12159_v49, 5  ;;  %v12287_v24 = vsel %vm16069_vm13, %v13803_v62, %v12286_v16  ;;  %v12160_v63 = vld [vmem:[#allocation2 + $0xa4] sm:$0x1]  ;;  %v12161_v39 = vld [vmem:[#allocation2 + $0xa8] sm:$0xe] }
 0x3c0   : > { %v18907_v25 = vadd.f32 %v9273_v48, %v18835_v23  ;;  %v18911_v2 = vadd.f32 %v8855_v60, %v8350_v21  ;;  %v12296_v21 = vrot.slane %v12157_v8, 5  ;;  %v13835_v60 = vcombine.low %v12287_v24, %v12290_v50 }
 0x3c1   : > { %v14956_v36 = vpop.f32.mrf.mxu0  ;;  %v14916_v27 = vpop.f32.mrf.mxu1  ;;  %15199 = vmatmul.mubr.bf16.gmra.mxu1 %v13833_v15  ;;  %v12314_v50 = vrot.slane %v12165_v11, 5  ;;  %v12164_v11 = vld [vmem:[#allocation2 + $0xb4] sm:$0xe] }
 0x3c2   : > { %v18914_v29 = vadd.f32 %v14956_v36, %v18845_v35  ;;  %v18917_v23 = vadd.f32 %v14916_v27, %v18709_v0  ;;  %15202 = vmatprep.mubr.bf16.mxu1 %v13834_v54  ;;  %v12297_v44 = vsel %vm16069_vm13, %v12295_v47, %v12296_v21  ;;  %v12158_v54 = vld [vmem:[#allocation2 + $0x9c] sm:$0xe]  ;;  %v12302_v27 = vrot.slane %v12300_v9, 4 }
 0x3c3   : > { %v9286_v40 = vpop.f32.mrf.mxu0  ;;  %v8868_v32 = vpop.f32.mrf.mxu1  ;;  %v12303_v47 = vrot.slane %v12160_v63, 5  ;;  %v13805_v21 = vrot.slane %v12158_v54, 9  ;;  %v19751_v63 = vld [vmem:[#allocation14_spill] sm:$0xff] }
 0x3c4   : > { %v18922_v45 = vadd.f32 %v9286_v40, %v18853_v52  ;;  %v18925_v35 = vadd.f32 %v8868_v32, %v18714_v13  ;;  %v12307_v52 = vrot.slane %v12162_v51, 5  ;;  %v12168_v40 = vld [vmem:[#allocation2 + $0xc4] sm:$0xf]  ;;  %v12310_v32 = vrot.slane %v12163_v37, 5  ;;  %v19750_v51 = vld [vmem:[#allocation13_spill] sm:$0xff] }
 0x3c5   : > { %v14957_v0 = vpop.f32.mrf.mxu0  ;;  %v14917_v28 = vpop.f32.mrf.mxu1  ;;  %v12301_v24 = vsel %vm16069_vm13, %v13805_v21, %v12300_v9  ;;  %v12316_v37 = vrot.slane %v12314_v50, 4 }
 0x3c6   : > { %v18930_v43 = vadd.f32 %v14957_v0, %v18864_v38  ;;  %v18935_v59 = vadd.f32 %v14917_v28, %v18725_v42  ;;  %v12294_v38 = vsel %vm16069_vm13, %v13804_v41, %v12293_v58  ;;  %v12309_v8 = vrot.slane %v12307_v52, 4 }
 0x3c7   : > { %v9289_v13 = vpop.f32.mrf.mxu0  ;;  %v8871_v48 = vpop.f32.mrf.mxu1  ;;  %v13836_v36 = vcombine.low %v12294_v38, %v12297_v44  ;;  %v13806_v0 = vrot.slane %v12161_v39, 9  ;;  %v12321_v44 = vrot.slane %v12168_v40, 5  ;;  %v12169_v39 = vld [vmem:[#allocation2 + $0xc8] sm:$0x1] }
 0x3c8   : > { %v18940_v61 = vadd.f32 %v9289_v13, %v18875_v3  ;;  %v18944_v15 = vadd.f32 %v8871_v48, %v8354_v6  ;;  %v12311_v28 = vsel %vm16069_vm13, %v12309_v8, %v12310_v32  ;;  %v19752_v8 = vld [vmem:[#allocation22_spill] sm:$0xff] }
 0x3c9   : > { %v14960_v20 = vpop.f32.mrf.mxu0  ;;  %v14920_v42 = vpop.f32.mrf.mxu1  ;;  %15203 = vmatmul.mubr.bf16.gmra.mxu1 %v13835_v60 }
 0x3ca   : > { %v18947_v16 = vadd.f32 %v14960_v20, %v18881_v26  ;;  %v18950_v3 = vadd.f32 %v14920_v42, %v18734_v55  ;;  %15206 = vmatprep.mubr.bf16.mxu1 %v13836_v36  ;;  %v12304_v55 = vsel %vm16069_vm13, %v12302_v27, %v12303_v47  ;;  %v12166_v36 = vld [vmem:[#allocation2 + $0xbc] sm:$0x1]  ;;  %v12171_v42 = vld [vmem:[#allocation2 + $0xd0] sm:$0xf] }
 0x3cb   : > { %v9302_v58 = vpop.f32.mrf.mxu0  ;;  %v8884_v49 = vpop.f32.mrf.mxu1  ;;  %v13837_v38 = vcombine.low %v12301_v24, %v12304_v55  ;;  %v12328_v32 = vrot.slane %v12171_v42, 5  ;;  %v12170_v55 = vld [vmem:[#allocation2 + $0xcc] sm:$0xe] }
 0x3cc   : > { %v18953_v7 = vadd.f32 %v9302_v58, %v18891_v17  ;;  %v18956_v6 = vadd.f32 %v8884_v49, %v19750_v51  ;;  %v12323_v58 = vrot.slane %v12321_v44, 4  ;;  %v12167_v49 = vld [vmem:[#allocation2 + $0xc0] sm:$0xe] }
 0x3cd   : > { %v14961_v26 = vpop.f32.mrf.mxu0  ;;  %v14921_v62 = vpop.f32.mrf.mxu1  ;;  %v12330_v42 = vrot.slane %v12328_v32, 4 }
 0x3ce   : > { %v18961_v41 = vadd.f32 %v14961_v26, %v18902_v12  ;;  %v18966_v17 = vadd.f32 %v14921_v62, %v18746_v30  ;;  %v12308_v12 = vsel %vm16069_vm13, %v13806_v0, %v12307_v52  ;;  %v12317_v52 = vrot.slane %v12166_v36, 5  ;;  %v12172_v0 = vld [vmem:[#allocation2 + $0xd4] sm:$0x1] }
 0x3cf   : > { %v9305_v13 = vpop.f32.mrf.mxu0  ;;  %v8887_v48 = vpop.f32.mrf.mxu1  ;;  %v13838_v30 = vcombine.low %v12308_v12, %v12311_v28  ;;  %v12324_v26 = vrot.slane %v12169_v39, 5  ;;  %v13807_v62 = vrot.slane %v12164_v11, 9  ;;  %v13809_v36 = vrot.slane %v12170_v55, 9 }
 0x3d0   : > { %v18971_v60 = vadd.f32 %v9305_v13, %v18911_v2  ;;  %v8952_v20 = vadd.f32 %v8887_v48, %v19751_v63  ;;  %v12318_v28 = vsel %vm16069_vm13, %v12316_v37, %v12317_v52  ;;  %v13808_v48 = vrot.slane %v12167_v49, 9 }
 0x3d1   : > { %v14964_v54 = vpop.f32.mrf.mxu0  ;;  %v14924_v27 = vpop.f32.mrf.mxu1  ;;  %15207 = vmatmul.mubr.bf16.gmra.mxu1 %v13837_v38  ;;  %v12325_v38 = vsel %vm16069_vm13, %v12323_v58, %v12324_v26 }
 0x3d2   : > { %v18977_v9 = vadd.f32 %v14964_v54, %v18917_v23  ;;  %v8957_v2 = vadd.f32 %v14924_v27, %v19752_v8  ;;  %15210 = vmatprep.mubr.bf16.mxu1 %v13838_v30  ;;  %v12331_v54 = vrot.slane %v12172_v0, 5 }
 0x3d3   : > { %v9318_v47 = vpop.f32.mrf.mxu0  ;;  %v8900_v40 = vpop.f32.mrf.mxu1 }
 0x3d4   : > { %v18981_v51 = vadd.f32 %v9318_v47, %v18925_v35  ;;  %v8955_v21 = vadd.f32 %v8900_v40, %v18769_v22  ;;  %v12315_v22 = vsel %vm16069_vm13, %v13807_v62, %v12314_v50  ;;  %v12332_v47 = vsel %vm16069_vm13, %v12330_v42, %v12331_v54 }
 0x3d5   : > { %v14965_v23 = vpop.f32.mrf.mxu0  ;;  %v14925_v13 = vpop.f32.mrf.mxu1  ;;  %v13839_v27 = vcombine.low %v12315_v22, %v12318_v28 }
 0x3d6   : > { %v18987_v24 = vadd.f32 %v14965_v23, %v18935_v59  ;;  %v8958_v35 = vadd.f32 %v14925_v13, %v18772_v5  ;;  %v12322_v59 = vsel %vm16069_vm13, %v13808_v48, %v12321_v44 }
 0x3d7   : > { %v9321_v12 = vpop.f32.mrf.mxu0  ;;  %v8903_v63 = vpop.f32.mrf.mxu1  ;;  %v13840_v8 = vcombine.low %v12322_v59, %v12325_v38 }
 0x3d8   : > { %v18995_v30 = vadd.f32 %v9321_v12, %v18944_v15  ;;  %v8956_v37 = vadd.f32 %v8903_v63, %v18780_v14  ;;  %v12329_v15 = vsel %vm16069_vm13, %v13809_v36, %v12328_v32 }
 0x3d9   : > { %v14968_v39 = vpop.f32.mrf.mxu0  ;;  %v14928_v5 = vpop.f32.mrf.mxu1  ;;  %15211 = vmatmul.mubr.bf16.gmra.mxu1 %v13839_v27 }
 0x3da   : > { %v19001_v11 = vadd.f32 %v14968_v39, %v18950_v3  ;;  %v8961_v50 = vadd.f32 %v14928_v5, %v18802_v10  ;;  %15214 = vmatprep.mubr.bf16.mxu1 %v13840_v8  ;;  %v13841_v10 = vcombine.low %v12329_v15, %v12332_v47 }
 0x3db   : > { %v9334_v58 = vpop.f32.mrf.mxu0  ;;  %v8916_v44 = vpop.f32.mrf.mxu1 }
 0x3dc   : > { %v19009_v14 = vadd.f32 %v9334_v58, %v18956_v6  ;;  %v8959_v52 = vadd.f32 %v8916_v44, %v18814_v56 }
 0x3dd   : > { %v14969_v49 = vpop.f32.mrf.mxu0  ;;  %v14929_v40 = vpop.f32.mrf.mxu1 }
 0x3de   : > { %v19013_v3 = vadd.f32 %v14969_v49, %v18966_v17  ;;  %v8962_v26 = vadd.f32 %v14929_v40, %v18819_v33 }
 0x3df   : > { %v9337_v55 = vpop.f32.mrf.mxu0  ;;  %v8919_v0 = vpop.f32.mrf.mxu1 }
 0x3e0   : > { %v19016_v32 = vadd.f32 %v9337_v55, %v8952_v20  ;;  %v8960_v1 = vadd.f32 %v8919_v0, %v18832_v31 }
 0x3e1   : > { %v14972_v23 = vpop.f32.mrf.mxu0  ;;  %v14996_v62 = vpop.f32.mrf.mxu1  ;;  %15215 = vmatmul.mubr.bf16.gmra.mxu1 %v13841_v10 }
 0x3e2   : > { %v19019_v6 = vadd.f32 %v14972_v23, %v8957_v2  ;;  %v19022_v56 = vadd.f32 %v14996_v62, %v18838_v18 }
 0x3e3   : > { %v9350_v28 = vpop.f32.mrf.mxu0  ;;  %v10072_v17 = vpop.f32.mrf.mxu1 }
 0x3e4   : > { %v19024_v13 = vadd.f32 %v9350_v28, %v8955_v21  ;;  %v19027_v33 = vadd.f32 %v10072_v17, %v18850_v46 }
 0x3e5   : > { %v14973_v48 = vpop.f32.mrf.mxu0  ;;  %v14997_v20 = vpop.f32.mrf.mxu1 }
 0x3e6   : > { %v19029_v38 = vadd.f32 %v14973_v48, %v8958_v35  ;;  %v19032_v31 = vadd.f32 %v14997_v20, %v18861_v57 }
 0x3e7   : > { %v9353_v12 = vpop.f32.mrf.mxu0  ;;  %v10075_v2 = vpop.f32.mrf.mxu1 }
 0x3e8   : > { %v19034_v22 = vadd.f32 %v9353_v12, %v8956_v37  ;;  %v19037_v18 = vadd.f32 %v10075_v2, %v18873_v19 }
 0x3e9   : > { %v14976_v63 = vpop.f32.mrf.mxu0  ;;  %v15000_v21 = vpop.f32.mrf.mxu1 }
 0x3ea   : > { %v19039_v36 = vadd.f32 %v14976_v63, %v8961_v50  ;;  %v19042_v46 = vadd.f32 %v15000_v21, %v18878_v53 }
 0x3eb   : > { %v9366_v42 = vpop.f32.mrf.mxu0  ;;  %v10088_v35 = vpop.f32.mrf.mxu1 }
 0x3ec   : > { %v19044_v54 = vadd.f32 %v9366_v42, %v8959_v52  ;;  %v19047_v57 = vadd.f32 %v10088_v35, %v18888_v4 }
 0x3ed   : > { %v14977_v27 = vpop.f32.mrf.mxu0  ;;  %v15001_v59 = vpop.f32.mrf.mxu1 }
 0x3ee   : > { %v19049_v37 = vadd.f32 %v14977_v27, %v8962_v26  ;;  %v19052_v19 = vadd.f32 %v15001_v59, %v18897_v34 }
 0x3ef   : > { %v9369_v39 = vpop.f32.mrf.mxu0  ;;  %v10091_v8 = vpop.f32.mrf.mxu1 }
 0x3f0   : > { %v19054_v5 = vadd.f32 %v9369_v39, %v8960_v1  ;;  %v19057_v53 = vadd.f32 %v10091_v8, %v18907_v25 }
 0x3f1   : > { %v19059_v50 = vpop.f32.mrf.mxu0  ;;  %v15004_v58 = vpop.f32.mrf.mxu1 }
 0x3f2   : > { %v19062_v4 = vadd.f32 %v15004_v58, %v18914_v29 }
 0x3f3   : > { %v19064_v15 = vpop.f32.mrf.mxu0  ;;  %v10104_v47 = vpop.f32.mrf.mxu1 }
 0x3f4   : > { %v19067_v44 = vadd.f32 %v10104_v47, %v18922_v45 }
 0x3f5   : > { %v19069_v34 = vpop.f32.mrf.mxu0  ;;  %v15005_v52 = vpop.f32.mrf.mxu1 }
 0x3f6   : > { %v19072_v49 = vadd.f32 %v15005_v52, %v18930_v43 }
 0x3f7   : > { %v19074_v25 = vpop.f32.mrf.mxu0  ;;  %v10107_v40 = vpop.f32.mrf.mxu1 }
 0x3f8   : > { %v19077_v10 = vadd.f32 %v10107_v40, %v18940_v61 }
 0x3f9   : > { %v19079_v29 = vpop.f32.mrf.mxu0  ;;  %v15008_v26 = vpop.f32.mrf.mxu1 }
 0x3fa   : > { %v19082_v55 = vadd.f32 %v15008_v26, %v18947_v16 }
 0x3fb   : > { %v19084_v45 = vpop.f32.mrf.mxu0  ;;  %v10120_v0 = vpop.f32.mrf.mxu1 }
 0x3fc   : > { %v19087_v1 = vadd.f32 %v10120_v0, %v18953_v7 }
 0x3fd   : > { %v19089_v43 = vpop.f32.mrf.mxu0  ;;  %v15009_v23 = vpop.f32.mrf.mxu1 }
 0x3fe   : > { %v19092_v62 = vadd.f32 %v15009_v23, %v18961_v41 }
 0x3ff   : > { %v19094_v61 = vpop.f32.mrf.mxu0  ;;  %v10123_v28 = vpop.f32.mrf.mxu1 }
 0x400   : > { %v19097_v17 = vadd.f32 %v10123_v28, %v18971_v60 }
 0x401   : > { %v19099_v16 = vpop.f32.mrf.mxu0  ;;  %v15012_v48 = vpop.f32.mrf.mxu1 }
 0x402   : > { %19753 = vst [vmem:[#allocation15_spill] sm:$0xff] %v19097_v17  ;;  %v19102_v20 = vadd.f32 %v15012_v48, %v18977_v9 }
 0x403   : > { %v19104_v7 = vpop.f32.mrf.mxu0  ;;  %v10136_v12 = vpop.f32.mrf.mxu1 }
 0x404   : > { %19754 = vst [vmem:[#allocation16_spill] sm:$0xff] %v19102_v20  ;;  %v19107_v2 = vadd.f32 %v10136_v12, %v18981_v51 }
 0x405   : > { %v19109_v41 = vpop.f32.mrf.mxu0  ;;  %v15013_v63 = vpop.f32.mrf.mxu1 }
 0x406   : > { %19755 = vst [vmem:[#allocation17_spill] sm:$0xff] %v19107_v2  ;;  %v19112_v21 = vadd.f32 %v15013_v63, %v18987_v24 }
 0x407   : > { %v19114_v60 = vpop.f32.mrf.mxu0  ;;  %v10139_v42 = vpop.f32.mrf.mxu1 }
 0x408   : > { %19756 = vst [vmem:[#allocation18_spill] sm:$0xff] %v19112_v21  ;;  %v19117_v35 = vadd.f32 %v10139_v42, %v18995_v30 }
 0x409   : > { %v19119_v9 = vpop.f32.mrf.mxu0  ;;  %v15016_v27 = vpop.f32.mrf.mxu1 }
 0x40a   : > { %19757 = vst [vmem:[#allocation19_spill] sm:$0xff] %v19117_v35  ;;  %v19122_v59 = vadd.f32 %v15016_v27, %v19001_v11 }
 0x40b   : > { %v19124_v51 = vpop.f32.mrf.mxu0  ;;  %v10152_v39 = vpop.f32.mrf.mxu1 }
 0x40c   : > { %19758 = vst [vmem:[#allocation21_spill] sm:$0xff] %v19122_v59  ;;  %v19127_v8 = vadd.f32 %v10152_v39, %v19009_v14 }
 0x40d   : > { %v19129_v24 = vpop.f32.mrf.mxu0  ;;  %v15017_v58 = vpop.f32.mrf.mxu1 }
 0x40e   : > { %19759 = vst [vmem:[#allocation20_spill] sm:$0xff] %v19127_v8  ;;  %19760 = vst [vmem:[#allocation23_spill] sm:$0xff] %v19129_v24  ;;  %v19132_v47 = vadd.f32 %v15017_v58, %v19013_v3 }
 0x40f   : > { %v19134_v30 = vpop.f32.mrf.mxu0  ;;  %v10155_v52 = vpop.f32.mrf.mxu1 }
 0x410   : > { %19761 = vst [vmem:[#allocation24_spill] sm:$0xff] %v19132_v47  ;;  %19762 = vst [vmem:[#allocation26_spill] sm:$0xff] %v19134_v30  ;;  %v19137_v40 = vadd.f32 %v10155_v52, %v19016_v32 }
 0x411   : > { %v19139_v11 = vpop.f32.mrf.mxu0  ;;  %v15020_v26 = vpop.f32.mrf.mxu1 }
 0x412   : > { %19763 = vst [vmem:[#allocation30_spill] sm:$0xff] %v19137_v40  ;;  %19764 = vst [vmem:[#allocation32_spill] sm:$0xff] %v19139_v11  ;;  %v19142_v0 = vadd.f32 %v15020_v26, %v19019_v6 }
 0x413   : > { %v19144_v14 = vpop.f32.mrf.mxu0  ;;  %v10168_v23 = vpop.f32.mrf.mxu1 }
 0x414   : > { %19765 = vst [vmem:[#allocation25_spill] sm:$0xff] %v19142_v0  ;;  %19766 = vst [vmem:[#allocation27_spill] sm:$0xff] %v19144_v14  ;;  %v19147_v28 = vadd.f32 %v10168_v23, %v19024_v13 }
 0x415   : > { %v19149_v3 = vpop.f32.mrf.mxu0  ;;  %v15021_v48 = vpop.f32.mrf.mxu1 }
 0x416   : > { %19767 = vst [vmem:[#allocation29_spill] sm:$0xff] %v19147_v28  ;;  %19768 = vst [vmem:[#allocation28_spill] sm:$0xff] %v19149_v3  ;;  %v19152_v12 = vadd.f32 %v15021_v48, %v19029_v38 }
 0x417   : > { %v19154_v32 = vpop.f32.mrf.mxu0  ;;  %v10171_v63 = vpop.f32.mrf.mxu1 }
 0x418   : > { %19769 = vst [vmem:[#allocation31_spill] sm:$0xff] %v19152_v12  ;;  %19770 = vst [vmem:[#allocation37_spill] sm:$0xff] %v19154_v32  ;;  %v19157_v42 = vadd.f32 %v10171_v63, %v19034_v22 }
 0x419   : > { %v19159_v6 = vpop.f32.mrf.mxu0 }
 0x41a   : > { %19771 = vst [vmem:[#allocation33_spill] sm:$0xff] %v19157_v42  ;;  %19772 = vst [vmem:[#allocation34_spill] sm:$0xff] %v19159_v6 }
 0x41b   : > { %v19161_v27 = vpop.f32.mrf.mxu0 }
 0x41c   : > { %19773 = vst [vmem:[#allocation40_spill] sm:$0xff] %v19161_v27  ;;  %v15024_v39 = vpop.f32.mrf.mxu1 }
 0x41d   : > { %v19163_v58 = vpop.f32.mrf.mxu0  ;;  %v19166_v13 = vadd.f32 %v15024_v39, %v19039_v36 }
 0x41e   : > { %19774 = vst [vmem:[#allocation43_spill] sm:$0xff] %v19163_v58  ;;  %v10184_v52 = vpop.f32.mrf.mxu1 }
 0x41f   : > { %19775 = vst [vmem:[#allocation35_spill] sm:$0xff] %v19166_v13  ;;  %v19168_v26 = vpop.f32.mrf.mxu0  ;;  %v19171_v38 = vadd.f32 %v10184_v52, %v19044_v54 }
 0x420   : > { %19776 = vst [vmem:[#allocation36_spill] sm:$0xff] %v19168_v26  ;;  %v15025_v23 = vpop.f32.mrf.mxu1 }
 0x421   : > { %19777 = vst [vmem:[#allocation38_spill] sm:$0xff] %v19171_v38  ;;  %v19173_v48 = vpop.f32.mrf.mxu0  ;;  %v19176_v22 = vadd.f32 %v15025_v23, %v19049_v37 }
 0x422   : > { %19778 = vst [vmem:[#allocation39_spill] sm:$0xff] %v19173_v48  ;;  %v10187_v63 = vpop.f32.mrf.mxu1 }
 0x423   : > { %19779 = vst [vmem:[#allocation41_spill] sm:$0xff] %v19176_v22  ;;  %v19178_v42 = vpop.f32.mrf.mxu0  ;;  %v19181_v12 = vadd.f32 %v10187_v63, %v19054_v5 }
 0x424   : > { %19780 = vst [vmem:[#allocation42_spill] sm:$0xff] %v19178_v42  ;;  %v15092_v36 = vpop.f32.mrf.mxu1 }
 0x425   : > { %19781 = vst [vmem:[#allocation45_spill] sm:$0xff] %v19181_v12  ;;  %v19183_v39 = vpop.f32.mrf.mxu0 }
 0x426   : > { %19782 = vst [vmem:[#allocation47_spill] sm:$0xff] %v19183_v39  ;;  %v11116_v13 = vpop.f32.mrf.mxu1 }
 0x427   : > { %v19185_v28 = vpop.f32.mrf.mxu0 }
 0x428   : > { %19783 = vst [vmem:[#allocation46_spill] sm:$0xff] %v19185_v28  ;;  %v15093_v54 = vpop.f32.mrf.mxu1 }
 0x429   : > { %v19187_v52 = vpop.f32.mrf.mxu0 }
 0x42a   : > { %19784 = vst [vmem:[#allocation48_spill] sm:$0xff] %v19187_v52  ;;  %v19189_v38 = vpop.f32.mrf.mxu1 }
 0x42b   : > { %v19191_v48 = vpop.f32.mrf.mxu0 }
 0x42c   : > { %19785 = vst [vmem:[#allocation49_spill] sm:$0xff] %v19191_v48  ;;  %v19193_v37 = vpop.f32.mrf.mxu1 }
 0x42d   : > { %v19195_v23 = vpop.f32.mrf.mxu0 }
 0x42e   : > { %19786 = vst [vmem:[#allocation50_spill] sm:$0xff] %v19195_v23  ;;  %v19197_v22 = vpop.f32.mrf.mxu1 }
 0x42f   : > { %v19199_v5 = vpop.f32.mrf.mxu0 }
 0x430   : > { %19787 = vst [vmem:[#allocation52_spill] sm:$0xff] %v19199_v5  ;;  %v19201_v63 = vpop.f32.mrf.mxu1 }
 0x431   : > { %v15140_v12 = vpop.f32.mrf.mxu0 }
 0x432   : > { %v19203_v39 = vpop.f32.mrf.mxu1 }
 0x433   : > { %v11934_v28 = vpop.f32.mrf.mxu0 }
 0x434   : > { %v19205_v42 = vpop.f32.mrf.mxu1 }
 0x435   : > { %v15141_v52 = vpop.f32.mrf.mxu0 }
 0x436   : > { %v19207_v0 = vpop.f32.mrf.mxu1 }
 0x437   : > { %v11937_v48 = vpop.f32.mrf.mxu0 }
 0x438   : > { %v19209_v26 = vpop.f32.mrf.mxu1 }
 0x439   : > { %v19211_v40 = vpop.f32.mrf.mxu0 }
 0x43a   : > { %v19213_v23 = vpop.f32.mrf.mxu1 }
 0x43b   : > { %v19215_v58 = vpop.f32.mrf.mxu0 }
 0x43c   : > { %v19217_v5 = vpop.f32.mrf.mxu1 }
 0x43d   : > { %v19221_v27 = vpop.f32.mrf.mxu0 }
 0x43e   : > { %v19219_v47 = vpop.f32.mrf.mxu1 }
 0x43f   : > { %19788 = vst [vmem:[#allocation65_spill] sm:$0xff] %v19219_v47  ;;  %v19227_v59 = vpop.f32.mrf.mxu0 }
 0x440   : > { %v19223_v8 = vpop.f32.mrf.mxu1 }
 0x441   : > { %19789 = vst [vmem:[#allocation51_spill] sm:$0xff] %v19223_v8  ;;  %v19233_v3 = vpop.f32.mrf.mxu0 }
 0x442   : > { %v19225_v6 = vpop.f32.mrf.mxu1 }
 0x443   : > { %19790 = vst [vmem:[#allocation53_spill] sm:$0xff] %v19225_v6  ;;  %v19239_v2 = vpop.f32.mrf.mxu0 }
 0x444   : > { %v19229_v32 = vpop.f32.mrf.mxu1 }
 0x445   : > { %19791 = vst [vmem:[#allocation55_spill] sm:$0xff] %v19229_v32  ;;  %v19245_v8 = vpop.f32.mrf.mxu0 }
 0x446   : > { %v19231_v35 = vpop.f32.mrf.mxu1 }
 0x447   : > { %19792 = vst [vmem:[#allocation54_spill] sm:$0xff] %v19231_v35  ;;  %v19251_v32 = vpop.f32.mrf.mxu0 }
 0x448   : > { %v19235_v21 = vpop.f32.mrf.mxu1 }
 0x449   : > { %19793 = vst [vmem:[#allocation58_spill] sm:$0xff] %v19235_v21  ;;  %v19257_v21 = vpop.f32.mrf.mxu0 }
 0x44a   : > { %v19237_v14 = vpop.f32.mrf.mxu1  ;;  %19801 = vst [vmem:[#allocation66_spill] sm:$0xff] %v19257_v21 }
 0x44b   : > { %19794 = vst [vmem:[#allocation56_spill] sm:$0xff] %v19237_v14 }
 0x44c   : > { %v19241_v11 = vpop.f32.mrf.mxu1 }
 0x44d   : > { %19795 = vst [vmem:[#allocation59_spill] sm:$0xff] %v19241_v11 }
 0x44e   : > { %v19243_v20 = vpop.f32.mrf.mxu1 }
 0x44f   : > { %19796 = vst [vmem:[#allocation57_spill] sm:$0xff] %v19243_v20  ;;  %v19263_v20 = vpop.f32.mrf.mxu0 }
 0x450   : > { %v19247_v6 = vpop.f32.mrf.mxu1  ;;  %19804 = vst [vmem:[#allocation64_spill] sm:$0xff] %v19263_v20 }
 0x451   : > { %19797 = vst [vmem:[#allocation61_spill] sm:$0xff] %v19247_v6 }
 0x452   : > { %v19249_v30 = vpop.f32.mrf.mxu1 }
 0x453   : > { %19798 = vst [vmem:[#allocation63_spill] sm:$0xff] %v19249_v30  ;;  %v19269_v30 = vpop.f32.mrf.mxu0 }
 0x454   : > { %v19253_v35 = vpop.f32.mrf.mxu1  ;;  %19807 = vst [vmem:[#allocation67_spill] sm:$0xff] %v19269_v30 }
 0x455   : > { %19799 = vst [vmem:[#allocation73_spill] sm:$0xff] %v19253_v35  ;;  %v19275_v35 = vpop.f32.mrf.mxu0 }
 0x456   : > { %v19255_v17 = vpop.f32.mrf.mxu1 }
 0x457   : > { %19800 = vst [vmem:[#allocation60_spill] sm:$0xff] %v19255_v17  ;;  %v10795_v17 = vadd.f32 %v19059_v50, %v19022_v56  ;;  %v19283_v21 = vpop.f32.mrf.mxu0  ;;  %v19289_v50 = vld [vmem:[%s19576_s4] ss:$0 sm:$0xff] }
 0x458   : > { %v19259_v14 = vpop.f32.mrf.mxu1 }
 0x459   : > { %19802 = vst [vmem:[#allocation62_spill] sm:$0xff] %v19259_v14  ;;  %v11245_v20 = vadd.f32 %v15092_v36, %v10795_v17 }
 0x45a   : > { %v19261_v11 = vpop.f32.mrf.mxu1 }
 0x45b   : > { %19803 = vst [vmem:[#allocation68_spill] sm:$0xff] %v19261_v11  ;;  %v10793_v11 = vadd.f32 %v19064_v15, %v19027_v33  ;;  %v12063_v30 = vadd.f32 %v15140_v12, %v11245_v20  ;;  %v10794_v33 = vadd.f32 %v19074_v25, %v19037_v18  ;;  %v19295_v12 = vpop.f32.mrf.mxu0  ;;  %v12790_v18 = vld [vmem:[%s15687_s17] sm:$0xff] }
 0x45c   : > { %v19265_v47 = vpop.f32.mrf.mxu1 }
 0x45d   : > { %19805 = vst [vmem:[#allocation70_spill] sm:$0xff] %v19265_v47  ;;  %v10796_v47 = vadd.f32 %v19069_v34, %v19032_v31  ;;  %v12792_v31 = vld [vmem:[%s15687_s17 + $0x10] sm:$0xff]  ;;  %v11244_v20 = vadd.f32 %v19189_v38, %v10794_v33  ;;  %v10797_v38 = vadd.f32 %v19084_v45, %v19047_v57  ;;  %v19308_v33 = vpop.f32.mrf.mxu0 }
 0x45e   : > { %v19267_v6 = vpop.f32.mrf.mxu1 }
 0x45f   : > { %19806 = vst [vmem:[#allocation72_spill] sm:$0xff] %v19267_v6  ;;  %v11243_v6 = vadd.f32 %v11116_v13, %v10793_v11  ;;  %v11246_v15 = vadd.f32 %v15093_v54, %v10796_v47  ;;  %v12062_v47 = vadd.f32 %v11937_v48, %v11244_v20  ;;  %v10800_v48 = vadd.f32 %v19089_v43, %v19052_v19 }
 0x460   : > { %v19271_v24 = vpop.f32.mrf.mxu1 }
 0x461   : > { %19808 = vst [vmem:[#allocation74_spill] sm:$0xff] %v19271_v24  ;;  %v12061_v17 = vadd.f32 %v11934_v28, %v11243_v6  ;;  %v12064_v11 = vadd.f32 %v15141_v52, %v11246_v15  ;;  %v10799_v24 = vadd.f32 %v19079_v29, %v19042_v46  ;;  %v12793_v52 = vld [vmem:[%s15687_s17 + $0x18] sm:$0xff]  ;;  %v11250_v19 = vadd.f32 %v19201_v63, %v10800_v48 }
 0x462   : > { %v19277_v14 = vpop.f32.mrf.mxu1 }
 0x463   : > { %19809 = vst [vmem:[#allocation69_spill] sm:$0xff] %v19277_v14  ;;  %v11249_v54 = vadd.f32 %v19193_v37, %v10799_v24  ;;  %v10798_v37 = vadd.f32 %v19094_v61, %v19057_v53  ;;  %v12068_v61 = vadd.f32 %v19221_v27, %v11250_v19 }
 0x468   : > { %v15188_v56 = vpop.f32.mrf.mxu1 }
 0x469   : > { %v12657_v36 = vadd.f32 %v15188_v56, %v12063_v30 }
 0x46a   : > { %v12528_v34 = vpop.f32.mrf.mxu1 }
 0x46b   : > { %v12760_v13 = vadd.f32 %v19289_v50, %v12657_v36  ;;  %v12655_v14 = vadd.f32 %v12528_v34, %v12061_v17  ;;  %v12791_v36 = vld [vmem:[%s15687_s17 + $0x8] sm:$0xff] }
 0x46c   : > { %v15189_v25 = vpop.f32.mrf.mxu1 }
 0x46d   : > { %v12824_v30 = vadd.f32 %v12792_v31, %v12760_v13  ;;  %v12758_v28 = vadd.f32 %v19289_v50, %v12655_v14  ;;  %v12658_v6 = vadd.f32 %v15189_v25, %v12064_v11  ;;  %v11247_v14 = vadd.f32 %v19197_v22, %v10797_v38  ;;  %v12796_v25 = vld [vmem:[%s15687_s17 + $0x30] sm:$0xff] }
 0x46e   : > { %v12531_v56 = vpop.f32.mrf.mxu1  ;;  %v12067_v31 = vadd.f32 %v19211_v40, %v11249_v54  ;;  %v19324_v40 = vpop.f32.mrf.mxu0  ;;  %v10803_v13 = vadd.f32 %v19099_v16, %v19062_v4 }
 0x46f   : > { %v12856_v15 = vmax.f32 %v12824_v30, 0.0  ;;  %v12822_v17 = vadd.f32 %v12790_v18, %v12758_v28  ;;  %v12761_v46 = vadd.f32 %v19289_v50, %v12658_v6  ;;  %v12656_v29 = vadd.f32 %v12531_v56, %v12062_v47  ;;  %v12794_v6 = vld [vmem:[%s15687_s17 + $0x20] sm:$0xff] }
 0x470   : > { %v12065_v22 = vadd.f32 %v19215_v58, %v11247_v14  ;;  %v11248_v18 = vadd.f32 %v19203_v39, %v10798_v37  ;;  %v10801_v30 = vadd.f32 %v19104_v7, %v19067_v44  ;;  %v11253_v28 = vadd.f32 %v19205_v42, %v10803_v13  ;;  %v19339_v16 = vpop.f32.mrf.mxu0  ;;  %v12797_v42 = vld [vmem:[%s15687_s17 + $0x38] sm:$0xff] }
 0x471   : > { %12888 = vst [vmem:[%s19316_s6 + $0x10] sm:$0xff] %v12856_v15  ;;  %v12854_v57 = vmax.f32 %v12822_v17, 0.0  ;;  %v12825_v45 = vadd.f32 %v12793_v52, %v12761_v46  ;;  %v12759_v24 = vadd.f32 %v19289_v50, %v12656_v29  ;;  %v15192_v43 = vpop.f32.mrf.mxu1  ;;  %v10804_v52 = vadd.f32 %v19109_v41, %v19072_v49  ;;  %v12795_v41 = vld [vmem:[%s15687_s17 + $0x28] sm:$0xff] }
 0x472   : > { %v12661_v11 = vadd.f32 %v15192_v43, %v12067_v31  ;;  %v12066_v4 = vadd.f32 %v19227_v59, %v11248_v18  ;;  %v11251_v44 = vadd.f32 %v19207_v0, %v10801_v30  ;;  %v12071_v7 = vadd.f32 %v19233_v3, %v11253_v28  ;;  %v19354_v14 = vpop.f32.mrf.mxu0 }
 0x473   : > { %12886 = vst [vmem:[%s19316_s6] sm:$0xff] %v12854_v57  ;;  %v12857_v34 = vmax.f32 %v12825_v45, 0.0  ;;  %v12823_v20 = vadd.f32 %v12791_v36, %v12759_v24  ;;  %v12544_v53 = vpop.f32.mrf.mxu1  ;;  %v10802_v29 = vadd.f32 %v19114_v60, %v19077_v10  ;;  %v11254_v48 = vadd.f32 %v19209_v26, %v10804_v52  ;;  %v12799_v52 = vld [vmem:[%s15687_s17 + $0x48] sm:$0xff] }
 0x474   : > { %v12764_v58 = vadd.f32 %v19289_v50, %v12661_v11  ;;  %v12659_v47 = vadd.f32 %v12544_v53, %v12065_v22  ;;  %v12069_v49 = vadd.f32 %v19239_v2, %v11251_v44  ;;  %v10807_v45 = vadd.f32 %v19119_v9, %v19082_v55  ;;  %v12800_v2 = vld [vmem:[%s15687_s17 + $0x50] sm:$0xff] }
 0x475   : > { %12889 = vst [vmem:[%s19316_s6 + $0x18] sm:$0xff] %v12857_v34  ;;  %v12855_v63 = vmax.f32 %v12823_v20, 0.0  ;;  %v15193_v38 = vpop.f32.mrf.mxu1  ;;  %v11252_v10 = vadd.f32 %v19213_v23, %v10802_v29  ;;  %v12072_v60 = vadd.f32 %v19245_v8, %v11254_v48  ;;  %v10805_v22 = vadd.f32 %v19124_v51, %v19087_v1  ;;  %v12798_v23 = vld [vmem:[%s15687_s17 + $0x40] sm:$0xff]  ;;  %v19370_v8 = vpop.f32.mrf.mxu0  ;;  %v19811_v1 = vld [vmem:[#allocation65_spill] sm:$0xff] }
 0x476   : > { %v12828_v27 = vadd.f32 %v12796_v25, %v12764_v58  ;;  %v12762_v39 = vadd.f32 %v19289_v50, %v12659_v47  ;;  %v12662_v54 = vadd.f32 %v15193_v38, %v12068_v61  ;;  %v11257_v55 = vadd.f32 %v19217_v5, %v10807_v45  ;;  %v19810_v25 = vld [vmem:[#allocation23_spill] sm:$0xff]  ;;  %v19812_v5 = vld [vmem:[#allocation66_spill] sm:$0xff]  ;;  %v19819_v48 = vld [vmem:[#allocation53_spill] sm:$0xff] }
 0x477   : > { %12887 = vst [vmem:[%s19316_s6 + $0x8] sm:$0xff] %v12855_v63  ;;  %v12547_v56 = vpop.f32.mrf.mxu1  ;;  %v12070_v9 = vadd.f32 %v19251_v32, %v11252_v10  ;;  %v10808_v53 = vadd.f32 %v19810_v25, %v19092_v62  ;;  %v11255_v51 = vadd.f32 %v19811_v1, %v10805_v22  ;;  %v12801_v32 = vld [vmem:[%s15687_s17 + $0x58] sm:$0xff]  ;;  %v19814_v38 = vld [vmem:[#allocation26_spill] sm:$0xff] }
 0x478   : > { %v12860_v15 = vmax.f32 %v12828_v27, 0.0  ;;  %v12826_v59 = vadd.f32 %v12794_v6, %v12762_v39  ;;  %v12765_v17 = vadd.f32 %v19289_v50, %v12662_v54  ;;  %v12660_v46 = vadd.f32 %v12547_v56, %v12066_v4  ;;  %v19813_v6 = vld [vmem:[#allocation15_spill] sm:$0xff]  ;;  %v19816_v39 = vld [vmem:[#allocation64_spill] sm:$0xff]  ;;  %v19826_v25 = vld [vmem:[#allocation54_spill] sm:$0xff] }
 0x479   : > { %v15196_v0 = vpop.f32.mrf.mxu1  ;;  %v12075_v61 = vadd.f32 %v19812_v5, %v11257_v55  ;;  %v10806_v4 = vadd.f32 %v19814_v38, %v19813_v6  ;;  %v19815_v27 = vld [vmem:[#allocation51_spill] sm:$0xff]  ;;  %v12073_v54 = vadd.f32 %v19816_v39, %v11255_v51 }
 0x47a   : > { %12892 = vst [vmem:[%s19316_s6 + $0x30] sm:$0xff] %v12860_v15  ;;  %v12858_v3 = vmax.f32 %v12826_v59, 0.0  ;;  %v12829_v36 = vadd.f32 %v12797_v42, %v12765_v17  ;;  %v12763_v31 = vadd.f32 %v19289_v50, %v12660_v46  ;;  %v12665_v57 = vadd.f32 %v15196_v0, %v12071_v7  ;;  %v19386_v7 = vpop.f32.mrf.mxu0  ;;  %v19817_v17 = vld [vmem:[#allocation16_spill] sm:$0xff] }
 0x47b   : > { %v12560_v26 = vpop.f32.mrf.mxu1  ;;  %v11258_v62 = vadd.f32 %v19815_v27, %v10808_v53  ;;  %v19818_v46 = vld [vmem:[#allocation32_spill] sm:$0xff] }
 0x47c   : > { %12890 = vst [vmem:[%s19316_s6 + $0x20] sm:$0xff] %v12858_v3  ;;  %v12861_v24 = vmax.f32 %v12829_v36, 0.0  ;;  %v12827_v37 = vadd.f32 %v12795_v41, %v12763_v31  ;;  %v12768_v19 = vadd.f32 %v19289_v50, %v12665_v57  ;;  %v12663_v43 = vadd.f32 %v12560_v26, %v12069_v49  ;;  %v19820_v41 = vld [vmem:[#allocation67_spill] sm:$0xff]  ;;  %v12804_v3 = vld [vmem:[%s15687_s17 + $0x70] sm:$0xff]  ;;  %v19402_v55 = vpop.f32.mrf.mxu0 }
 0x47d   : > { %v15197_v34 = vpop.f32.mrf.mxu1  ;;  %v10811_v29 = vadd.f32 %v19818_v46, %v19817_v17  ;;  %v11256_v49 = vadd.f32 %v19819_v48, %v10806_v4  ;;  %v12076_v0 = vadd.f32 %v19820_v41, %v11258_v62  ;;  %v12803_v4 = vld [vmem:[%s15687_s17 + $0x68] sm:$0xff] }
 0x47e   : > { %12893 = vst [vmem:[%s19316_s6 + $0x38] sm:$0xff] %v12861_v24  ;;  %v12859_v20 = vmax.f32 %v12827_v37, 0.0  ;;  %v12832_v11 = vadd.f32 %v12800_v2, %v12768_v19  ;;  %v12766_v13 = vadd.f32 %v19289_v50, %v12663_v43  ;;  %v12666_v18 = vadd.f32 %v15197_v34, %v12072_v60  ;;  %v19821_v60 = vld [vmem:[#allocation17_spill] sm:$0xff]  ;;  %v19822_v2 = vld [vmem:[#allocation27_spill] sm:$0xff]  ;;  %v12802_v43 = vld [vmem:[%s15687_s17 + $0x60] sm:$0xff] }
 0x47f   : > { %v12563_v63 = vpop.f32.mrf.mxu1  ;;  %v10809_v26 = vadd.f32 %v19822_v2, %v19821_v60  ;;  %v19823_v24 = vld [vmem:[#allocation55_spill] sm:$0xff]  ;;  %v12074_v19 = vadd.f32 %v19275_v35, %v11256_v49 }
 0x480   : > { %12891 = vst [vmem:[%s19316_s6 + $0x28] sm:$0xff] %v12859_v20  ;;  %v12864_v58 = vmax.f32 %v12832_v11, 0.0  ;;  %v12830_v47 = vadd.f32 %v12798_v23, %v12766_v13  ;;  %v12769_v30 = vadd.f32 %v19289_v50, %v12666_v18  ;;  %v12664_v28 = vadd.f32 %v12563_v63, %v12070_v9  ;;  %v19824_v11 = vld [vmem:[#allocation18_spill] sm:$0xff]  ;;  %v19825_v13 = vld [vmem:[#allocation28_spill] sm:$0xff]  ;;  %v12805_v35 = vld [vmem:[%s15687_s17 + $0x78] sm:$0xff] }
 0x481   : > { %v15200_v44 = vpop.f32.mrf.mxu1  ;;  %v11261_v37 = vadd.f32 %v19823_v24, %v10811_v29  ;;  %v10812_v18 = vadd.f32 %v19825_v13, %v19824_v11  ;;  %v11259_v53 = vadd.f32 %v19826_v25, %v10809_v26 }
 0x482   : > { %12896 = vst [vmem:[%s19316_s6 + $0x50] sm:$0xff] %v12864_v58  ;;  %v12862_v42 = vmax.f32 %v12830_v47, 0.0  ;;  %v12833_v56 = vadd.f32 %v12801_v32, %v12769_v30  ;;  %v12767_v15 = vadd.f32 %v19289_v50, %v12664_v28  ;;  %v12669_v59 = vadd.f32 %v15200_v44, %v12075_v61  ;;  %v19827_v58 = vld [vmem:[#allocation19_spill] sm:$0xff]  ;;  %v19828_v47 = vld [vmem:[#allocation37_spill] sm:$0xff]  ;;  %v19829_v28 = vld [vmem:[#allocation58_spill] sm:$0xff] }
 0x483   : > { %v12576_v36 = vpop.f32.mrf.mxu1  ;;  %v12079_v1 = vadd.f32 %v19283_v21, %v11261_v37  ;;  %v10810_v30 = vadd.f32 %v19828_v47, %v19827_v58  ;;  %v11262_v6 = vadd.f32 %v19829_v28, %v10812_v18  ;;  %v12077_v38 = vadd.f32 %v19295_v12, %v11259_v53  ;;  %v19418_v21 = vpop.f32.mrf.mxu0  ;;  %v19830_v44 = vld [vmem:[#allocation21_spill] sm:$0xff]  ;;  %v12808_v12 = vld [vmem:[%s15687_s17 + $0x90] sm:$0xff] }
 0x484   : > { %12894 = vst [vmem:[%s19316_s6 + $0x40] sm:$0xff] %v12862_v42  ;;  %v12865_v31 = vmax.f32 %v12833_v56, 0.0  ;;  %v12831_v57 = vadd.f32 %v12799_v52, %v12767_v15  ;;  %v12772_v45 = vadd.f32 %v19289_v50, %v12669_v59  ;;  %v12667_v10 = vadd.f32 %v12576_v36, %v12073_v54  ;;  %v19831_v42 = vld [vmem:[#allocation34_spill] sm:$0xff]  ;;  %v19832_v15 = vld [vmem:[#allocation56_spill] sm:$0xff] }
 0x485   : > { %v15201_v22 = vpop.f32.mrf.mxu1  ;;  %v10815_v56 = vadd.f32 %v19831_v42, %v19830_v44  ;;  %v11260_v59 = vadd.f32 %v19832_v15, %v10810_v30  ;;  %v12080_v17 = vadd.f32 %v19308_v33, %v11262_v6  ;;  %v19434_v33 = vpop.f32.mrf.mxu0  ;;  %v19839_v53 = vld [vmem:[#allocation30_spill] sm:$0xff]  ;;  %v19842_v6 = vld [vmem:[#allocation25_spill] sm:$0xff] }
 0x486   : > { %12897 = vst [vmem:[%s19316_s6 + $0x58] sm:$0xff] %v12865_v31  ;;  %v12863_v9 = vmax.f32 %v12831_v57, 0.0  ;;  %v12836_v23 = vadd.f32 %v12804_v3, %v12772_v45  ;;  %v12770_v34 = vadd.f32 %v19289_v50, %v12667_v10  ;;  %v12670_v20 = vadd.f32 %v15201_v22, %v12076_v0  ;;  %v19833_v0 = vld [vmem:[#allocation20_spill] sm:$0xff]  ;;  %v19835_v31 = vld [vmem:[#allocation59_spill] sm:$0xff]  ;;  %v19845_v15 = vld [vmem:[#allocation29_spill] sm:$0xff] }
 0x487   : > { %v12579_v51 = vpop.f32.mrf.mxu1  ;;  %v19834_v3 = vld [vmem:[#allocation40_spill] sm:$0xff]  ;;  %v11265_v57 = vadd.f32 %v19835_v31, %v10815_v56  ;;  %v12078_v45 = vadd.f32 %v19324_v40, %v11260_v59  ;;  %v12809_v40 = vld [vmem:[%s15687_s17 + $0x98] sm:$0xff]  ;;  %v19846_v59 = vld [vmem:[#allocation42_spill] sm:$0xff] }
 0x488   : > { %12895 = vst [vmem:[%s19316_s6 + $0x48] sm:$0xff] %v12863_v9  ;;  %v12868_v5 = vmax.f32 %v12836_v23, 0.0  ;;  %v12834_v61 = vadd.f32 %v12802_v43, %v12770_v34  ;;  %v12773_v32 = vadd.f32 %v19289_v50, %v12670_v20  ;;  %v12668_v63 = vadd.f32 %v12579_v51, %v12074_v19  ;;  %v12806_v10 = vld [vmem:[%s15687_s17 + $0x80] sm:$0xff]  ;;  %v19837_v43 = vld [vmem:[#allocation43_spill] sm:$0xff]  ;;  %v19838_v9 = vld [vmem:[#allocation57_spill] sm:$0xff] }
 0x489   : > { %v15204_v27 = vpop.f32.mrf.mxu1  ;;  %v10813_v36 = vadd.f32 %v19834_v3, %v19833_v0  ;;  %v19836_v19 = vld [vmem:[#allocation24_spill] sm:$0xff]  ;;  %v12083_v34 = vadd.f32 %v19339_v16, %v11265_v57  ;;  %v19841_v51 = vld [vmem:[#allocation61_spill] sm:$0xff]  ;;  %v12033_v16 = vpop.f32.mrf.mxu0  ;;  %v19848_v31 = vld [vmem:[#allocation31_spill] sm:$0xff] }
 0x48a   : > { %12900 = vst [vmem:[%s19316_s6 + $0x70] sm:$0xff] %v12868_v5  ;;  %v12866_v62 = vmax.f32 %v12834_v61, 0.0  ;;  %v12837_v39 = vadd.f32 %v12805_v35, %v12773_v32  ;;  %v12771_v54 = vadd.f32 %v19289_v50, %v12668_v63  ;;  %v12673_v52 = vadd.f32 %v15204_v27, %v12079_v1  ;;  %v19840_v1 = vld [vmem:[#allocation36_spill] sm:$0xff]  ;;  %v12807_v32 = vld [vmem:[%s15687_s17 + $0x88] sm:$0xff]  ;;  %v19844_v27 = vld [vmem:[#allocation63_spill] sm:$0xff] }
 0x48b   : > { %v12592_v46 = vpop.f32.mrf.mxu1  ;;  %v10816_v22 = vadd.f32 %v19837_v43, %v19836_v19  ;;  %v11263_v23 = vadd.f32 %v19838_v9, %v10813_v36  ;;  %v10814_v35 = vadd.f32 %v19840_v1, %v19839_v53  ;;  %v19849_v57 = vld [vmem:[#allocation47_spill] sm:$0xff]  ;;  %v19852_v9 = vld [vmem:[#allocation46_spill] sm:$0xff] }
 0x48c   : > { %12898 = vst [vmem:[%s19316_s6 + $0x60] sm:$0xff] %v12866_v62  ;;  %v12869_v29 = vmax.f32 %v12837_v39, 0.0  ;;  %v12835_v48 = vadd.f32 %v12803_v4, %v12771_v54  ;;  %v12776_v49 = vadd.f32 %v19289_v50, %v12673_v52  ;;  %v12671_v41 = vadd.f32 %v12592_v46, %v12077_v38  ;;  %v19843_v38 = vld [vmem:[#allocation39_spill] sm:$0xff]  ;;  %v12812_v54 = vld [vmem:[%s15687_s17 + $0xb0] sm:$0xff] }
 0x48d   : > { %v15205_v60 = vpop.f32.mrf.mxu1  ;;  %v11266_v5 = vadd.f32 %v19841_v51, %v10816_v22  ;;  %v12081_v61 = vadd.f32 %v19354_v14, %v11263_v23  ;;  %v10819_v4 = vadd.f32 %v19843_v38, %v19842_v6  ;;  %v11264_v62 = vadd.f32 %v19844_v27, %v10814_v35  ;;  %v19851_v22 = vld [vmem:[#allocation33_spill] sm:$0xff]  ;;  %v19854_v35 = vld [vmem:[#allocation35_spill] sm:$0xff]  ;;  %v19855_v51 = vld [vmem:[#allocation48_spill] sm:$0xff] }
 0x48e   : > { %12901 = vst [vmem:[%s19316_s6 + $0x78] sm:$0xff] %v12869_v29  ;;  %v12867_v2 = vmax.f32 %v12835_v48, 0.0  ;;  %v12840_v26 = vadd.f32 %v12808_v12, %v12776_v49  ;;  %v12774_v24 = vadd.f32 %v19289_v50, %v12671_v41  ;;  %v12674_v37 = vadd.f32 %v15205_v60, %v12080_v17  ;;  %v19847_v12 = vld [vmem:[#allocation73_spill] sm:$0xff]  ;;  %v12810_v48 = vld [vmem:[%s15687_s17 + $0xa0] sm:$0xff]  ;;  %v19857_v38 = vld [vmem:[#allocation38_spill] sm:$0xff] }
 0x48f   : > { %v12595_v20 = vpop.f32.mrf.mxu1  ;;  %v12084_v39 = vadd.f32 %v19370_v8, %v11266_v5  ;;  %v10817_v17 = vadd.f32 %v19846_v59, %v19845_v15  ;;  %v11269_v46 = vadd.f32 %v19847_v12, %v10819_v4  ;;  %v12082_v29 = vadd.f32 %v19386_v7, %v11264_v62  ;;  %v15168_v8 = vpop.f32.mrf.mxu0  ;;  %v19858_v4 = vld [vmem:[#allocation49_spill] sm:$0xff]  ;;  %v19859_v62 = vld [vmem:[#allocation70_spill] sm:$0xff] }
 0x490   : > { %12899 = vst [vmem:[%s19316_s6 + $0x68] sm:$0xff] %v12867_v2  ;;  %v12872_v11 = vmax.f32 %v12840_v26, 0.0  ;;  %v12838_v13 = vadd.f32 %v12806_v10, %v12774_v24  ;;  %v12777_v18 = vadd.f32 %v19289_v50, %v12674_v37  ;;  %v12672_v25 = vadd.f32 %v12595_v20, %v12078_v45  ;;  %v19850_v10 = vld [vmem:[#allocation60_spill] sm:$0xff]  ;;  %v12813_v26 = vld [vmem:[%s15687_s17 + $0xb8] sm:$0xff]  ;;  %v19860_v59 = vld [vmem:[#allocation41_spill] sm:$0xff] }
 0x491   : > { %v15208_v63 = vpop.f32.mrf.mxu1  ;;  %v10820_v45 = vadd.f32 %v19849_v57, %v19848_v31  ;;  %v11267_v60 = vadd.f32 %v19850_v10, %v10817_v17  ;;  %v12087_v2 = vadd.f32 %v19402_v55, %v11269_v46  ;;  %v10818_v23 = vadd.f32 %v19852_v9, %v19851_v22  ;;  %v12046_v55 = vpop.f32.mrf.mxu0  ;;  %v19861_v17 = vld [vmem:[#allocation50_spill] sm:$0xff]  ;;  %v19862_v46 = vld [vmem:[#allocation72_spill] sm:$0xff]  ;;  %v19863_v31 = vld [vmem:[#allocation45_spill] sm:$0xff] }
 0x492   : > { %12904 = vst [vmem:[%s19316_s6 + $0x90] sm:$0xff] %v12872_v11  ;;  %v12870_v58 = vmax.f32 %v12838_v13, 0.0  ;;  %v12841_v47 = vadd.f32 %v12809_v40, %v12777_v18  ;;  %v12775_v30 = vadd.f32 %v19289_v50, %v12672_v25  ;;  %v12677_v28 = vadd.f32 %v15208_v63, %v12083_v34  ;;  %v19853_v34 = vld [vmem:[#allocation62_spill] sm:$0xff]  ;;  %v12811_v11 = vld [vmem:[%s15687_s17 + $0xa8] sm:$0xff]  ;;  %v19864_v57 = vld [vmem:[#allocation52_spill] sm:$0xff] }
 0x493   : > { %v12608_v14 = vpop.f32.mrf.mxu1  ;;  %v11270_v40 = vadd.f32 %v19853_v34, %v10820_v45  ;;  %v12085_v20 = vadd.f32 %v19418_v21, %v11267_v60  ;;  %v10823_v5 = vadd.f32 %v19855_v51, %v19854_v35  ;;  %v10821_v27 = vadd.f32 %v19858_v4, %v19857_v38  ;;  %v19865_v10 = vld [vmem:[#allocation74_spill] sm:$0xff]  ;;  %v19866_v22 = vld [vmem:[#allocation69_spill] sm:$0xff] }
 0x494   : > { %12902 = vst [vmem:[%s19316_s6 + $0x80] sm:$0xff] %v12870_v58  ;;  %v12873_v52 = vmax.f32 %v12841_v47, 0.0  ;;  %v12839_v44 = vadd.f32 %v12807_v32, %v12775_v30  ;;  %v12780_v42 = vadd.f32 %v19289_v50, %v12677_v28  ;;  %v12675_v56 = vadd.f32 %v12608_v14, %v12081_v61  ;;  %v19856_v61 = vld [vmem:[#allocation68_spill] sm:$0xff]  ;;  %v12816_v58 = vld [vmem:[%s15687_s17 + $0xd0] sm:$0xff] }
 0x495   : > { %v15209_v49 = vpop.f32.mrf.mxu1  ;;  %v11268_v32 = vadd.f32 %v19856_v61, %v10818_v23  ;;  %v12088_v63 = vadd.f32 %v19434_v33, %v11270_v40  ;;  %v12814_v14 = vld [vmem:[%s15687_s17 + $0xc0] sm:$0xff]  ;;  %v10824_v12 = vadd.f32 %v19861_v17, %v19860_v59  ;;  %v10822_v45 = vadd.f32 %v19864_v57, %v19863_v31  ;;  %v12820_v34 = vld [vmem:[%s15687_s17 + $0xf0] sm:$0xff]  ;;  %v12821_v61 = vld [vmem:[%s15687_s17 + $0xf8] sm:$0xff] }
 0x496   : > { %12905 = vst [vmem:[%s19316_s6 + $0x98] sm:$0xff] %v12873_v52  ;;  %v12871_v41 = vmax.f32 %v12839_v44, 0.0  ;;  %v12844_v0 = vadd.f32 %v12812_v54, %v12780_v42  ;;  %v12778_v3 = vadd.f32 %v19289_v50, %v12675_v56  ;;  %v12678_v36 = vadd.f32 %v15209_v49, %v12084_v39  ;;  %v15169_v44 = vpop.f32.mrf.mxu0  ;;  %v12817_v49 = vld [vmem:[%s15687_s17 + $0xd8] sm:$0xff] }
 0x497   : > { %v12611_v7 = vpop.f32.mrf.mxu1  ;;  %v11273_v39 = vadd.f32 %v19859_v62, %v10823_v5  ;;  %v12086_v54 = vadd.f32 %v12033_v16, %v11268_v32  ;;  %v11274_v60 = vadd.f32 %v19865_v10, %v10824_v12  ;;  %v11272_v9 = vadd.f32 %v19866_v22, %v10822_v45 }
 0x498   : > { %12903 = vst [vmem:[%s19316_s6 + $0x88] sm:$0xff] %v12871_v41  ;;  %v12876_v24 = vmax.f32 %v12844_v0, 0.0  ;;  %v12842_v37 = vadd.f32 %v12810_v48, %v12778_v3  ;;  %v12781_v19 = vadd.f32 %v19289_v50, %v12678_v36  ;;  %v12676_v43 = vadd.f32 %v12611_v7, %v12082_v29 }
 0x499   : > { %v15212_v13 = vpop.f32.mrf.mxu1  ;;  %v11271_v29 = vadd.f32 %v19862_v46, %v10821_v27  ;;  %v12091_v48 = vadd.f32 %v15168_v8, %v11273_v39  ;;  %v12092_v23 = vadd.f32 %v15169_v44, %v11274_v60 }
 0x49a   : > { %12908 = vst [vmem:[%s19316_s6 + $0xb0] sm:$0xff] %v12876_v24  ;;  %v12874_v18 = vmax.f32 %v12842_v37, 0.0  ;;  %v12845_v25 = vadd.f32 %v12813_v26, %v12781_v19  ;;  %v12779_v53 = vadd.f32 %v19289_v50, %v12676_v43  ;;  %v12681_v1 = vadd.f32 %v15212_v13, %v12087_v2  ;;  %v12815_v26 = vld [vmem:[%s15687_s17 + $0xc8] sm:$0xff]  ;;  %v12049_v24 = vpop.f32.mrf.mxu0 }
 0x49b   : > { %v12624_v21 = vpop.f32.mrf.mxu1  ;;  %v12089_v2 = vadd.f32 %v12046_v55, %v11271_v29 }
 0x49c   : > { %12906 = vst [vmem:[%s19316_s6 + $0xa0] sm:$0xff] %v12874_v18  ;;  %v12877_v47 = vmax.f32 %v12845_v25, 0.0  ;;  %v12843_v30 = vadd.f32 %v12811_v11, %v12779_v53  ;;  %v12784_v28 = vadd.f32 %v19289_v50, %v12681_v1  ;;  %v12679_v6 = vadd.f32 %v12624_v21, %v12085_v20  ;;  %v12818_v25 = vld [vmem:[%s15687_s17 + $0xe0] sm:$0xff] }
 0x49d   : > { %v15213_v52 = vpop.f32.mrf.mxu1  ;;  %v12090_v18 = vadd.f32 %v12049_v24, %v11272_v9 }
 0x49e   : > { %12909 = vst [vmem:[%s19316_s6 + $0xb8] sm:$0xff] %v12877_v47  ;;  %v12875_v33 = vmax.f32 %v12843_v30, 0.0  ;;  %v12848_v42 = vadd.f32 %v12816_v58, %v12784_v28  ;;  %v12782_v56 = vadd.f32 %v19289_v50, %v12679_v6  ;;  %v12682_v15 = vadd.f32 %v15213_v52, %v12088_v63  ;;  %v12819_v30 = vld [vmem:[%s15687_s17 + $0xe8] sm:$0xff]  ;;  %s19532_s17 = scalar_lea.sflag [#allocation5], %s215_s23 }
 0x49f   : > { %v12627_v41 = vpop.f32.mrf.mxu1 }
 0x4a0   : > { %12907 = vst [vmem:[%s19316_s6 + $0xa8] sm:$0xff] %v12875_v33  ;;  %v12880_v16 = vmax.f32 %v12848_v42, 0.0  ;;  %v12846_v0 = vadd.f32 %v12814_v14, %v12782_v56  ;;  %v12785_v3 = vadd.f32 %v19289_v50, %v12682_v15  ;;  %v12680_v36 = vadd.f32 %v12627_v41, %v12086_v54 }
 0x4a1   : > { %v15216_v7 = vpop.f32.mrf.mxu1 }
 0x4a2   : > { %12912 = vst [vmem:[%s19316_s6 + $0xd0] sm:$0xff] %v12880_v16  ;;  %v12878_v8 = vmax.f32 %v12846_v0, 0.0  ;;  %v12849_v37 = vadd.f32 %v12817_v49, %v12785_v3  ;;  %v12783_v19 = vadd.f32 %v19289_v50, %v12680_v36  ;;  %v12685_v43 = vadd.f32 %v15216_v7, %v12091_v48 }
 0x4a3   : > { %v12640_v40 = vpop.f32.mrf.mxu1 }
 0x4a4   : > { %12910 = vst [vmem:[%s19316_s6 + $0xc0] sm:$0xff] %v12878_v8  ;;  %v12881_v20 = vmax.f32 %v12849_v37, 0.0  ;;  %v12847_v11 = vadd.f32 %v12815_v26, %v12783_v19  ;;  %v12788_v13 = vadd.f32 %v19289_v50, %v12685_v43  ;;  %v12683_v55 = vadd.f32 %v12640_v40, %v12089_v2 }
 0x4a5   : > { %v15217_v53 = vpop.f32.mrf.mxu1 }
 0x4a6   : > { %12913 = vst [vmem:[%s19316_s6 + $0xd8] sm:$0xff] %v12881_v20  ;;  %v12879_v1 = vmax.f32 %v12847_v11, 0.0  ;;  %v12852_v35 = vadd.f32 %v12820_v34, %v12788_v13  ;;  %v12786_v51 = vadd.f32 %v19289_v50, %v12683_v55  ;;  %v12686_v5 = vadd.f32 %v15217_v53, %v12092_v23 }
 0x4a7   : > { %v12643_v32 = vpop.f32.mrf.mxu1 }
 0x4a8   : > { %12911 = vst [vmem:[%s19316_s6 + $0xc8] sm:$0xff] %v12879_v1  ;;  %v12884_v63 = vmax.f32 %v12852_v35, 0.0  ;;  %v12850_v58 = vadd.f32 %v12818_v25, %v12786_v51  ;;  %v12789_v21 = vadd.f32 %v19289_v50, %v12686_v5  ;;  %v12684_v47 = vadd.f32 %v12643_v32, %v12090_v18 }
 0x4aa   : > { %12916 = vst [vmem:[%s19316_s6 + $0xf0] sm:$0xff] %v12884_v63  ;;  %v12882_v28 = vmax.f32 %v12850_v58, 0.0  ;;  %v12853_v6 = vadd.f32 %v12821_v61, %v12789_v21  ;;  %v12787_v38 = vadd.f32 %v19289_v50, %v12684_v47 }
 0x4ac   : > { %12914 = vst [vmem:[%s19316_s6 + $0xe0] sm:$0xff] %v12882_v28  ;;  %v12885_v4 = vmax.f32 %v12853_v6, 0.0  ;;  %v12851_v27 = vadd.f32 %v12819_v30, %v12787_v38 }
 0x4ae   : > { %12917 = vst [vmem:[%s19316_s6 + $0xf8] sm:$0xff] %v12885_v4  ;;  %v12883_v62 = vmax.f32 %v12851_v27, 0.0 }
 0x4b0   : > { %12915 = vst [vmem:[%s19316_s6 + $0xe8] sm:$0xff] %v12883_v62 }
 0x4b1   : > { %15515 = shalt.err (!%p15512_p3)
}
 0x4b2   : > { %s15516_s15 = scalar_lea.hbm %s19524_s11, 4096  ;;  %s15520_s25 = scalar_lea.hbm %s19577_s5, 8192 }
 0x4b3   : > { %p15517_p4 = scmp.ne.s32.totalorder %s19524_s11, %s15516_s15  ;;  %p15521_p9 = scmp.lt.s32.totalorder %s19524_s11, %s19577_s5 }
 0x4b4   : > { %p15522_p10 = scmp.lt.s32.totalorder %s15520_s25, %s15516_s15 }
 0x4b5   : > { %p15518_p7 = pnand %p15517_p4, %p15636_p5 }
 0x4b6   : > { %p15523_p11 = por %p15522_p10, %p15521_p9 }
 0x4b7   : > { %p15519_p8 = pneg %p15518_p7 }
 0x4b9   : > { %p15524_p12 = pnand %p15523_p11, %p15519_p8 }
 0x4bb   : > { %15527 = shalt.err (!%p15524_p12)
}
 0x4bc   : > { %s15566_s6 = smov 128   ;;  %s15567_s7 = smov 8  }
 0x4bd   : > { %15218 = dma.vmem_to_hbm [thread:$0]  (%p15636_p5), %s19526_s8, 4096, %s19524_s11, %s19532_s17, %s15566_s6, %s15566_s6, %s15567_s7  }
 0x4be PF: > { %p15224_p13 = scmp.ge.s32.totalorder %s15562_s21, 2  ;;  %s12947_s9 = sand.u32 1, %s15550_s18  }
 0x4bf   : > { %s12948_s10 = scalar_lea.sflag [#allocation5], %s12947_s9 }
 0x4c0   : > { %p15221_p0 = pnand %p15224_p13, %p15640_p6 }
 0x4c2   : > { %p15222_p1 = pneg %p15221_p0 }
 0x4c4   : > { %15545 = dma.done.wait (%p15222_p1), %s12948_s10, 4096  }
 0x4c5   : > { %15547 = vsyncadd (%p15222_p1), %s12948_s10, 4294963200  ;;  %p15_p2 = scmp.ge.s32.totalorder %s15623_s24, 4   ;;  %s19867_s18 = smov %s15554_s19 }
 0x4c6   : > { %s19868_s19 = smov %s15558_s20  ;;  %s19869_s20 = smov %s15634_s27 }
 0x4c7   : > { %s19870_s21 = smov %s15623_s24  ;;  %17 = sbr.rel (!%p15_p2) target bundleno = 3 (0x3), region = 93 }
 0x4cc   :  { %12953 = vsyncpa [#allocation5], 1 }
 0x4cd   :  { %12955 = vsyncpa [#allocation5 + $0x1], 1 }

</bundles_post_ra>
